<compile_context>
chip_gen: v7x
topology: tpu7x:2x2x1
jax: 0.10.0
libtpu: 0.0.40
codegen_flags: <defaults>
</compile_context>

<pallas_src>
import functools

import numpy as np
import jax
import jax.numpy as jnp
from jax.experimental import pallas as pl
from jax.experimental.pallas import tpu as pltpu


@functools.lru_cache(maxsize=None)
def _vmem_limit_bytes():
    """Generation-aware VMEM budget: ~75% of per-TC physical VMEM (v7x: 64 MiB -> 48 MiB,
    v5e/v6e: 128 MiB -> 96 MiB), capped at 112 MiB.  Leaves headroom for compiler internal
    scratch and double-buffer overshoot instead of pinning the limit at physical capacity."""
    cap = 64 * 1024 * 1024  # conservative fallback: v7x per-TC physical VMEM
    try:
        cap = int(pltpu.get_tpu_info().vmem_capacity_bytes)
    except Exception:
        pass
    return int(min(cap * 3 // 4, 112 * 1024 * 1024))


_ROW_ALIGN = 256   # row tiles: multiple of 256 (>= bf16 sublane pack of 16, MXU-friendly M)
_RED_ALIGN = 128   # reduction tiles: lane dim of the streamed graph tile (must stay 128-aligned)


def _pick_tile(dim, target, aligns, *, prefer_split=False):
    """Largest tile <= target that divides `dim` and is a multiple of aligns[0].

    prefer_split keeps >= 2 tiles along the parallel row axis when the dim allows it (v7x
    megacore: only 'parallel' grid axes are sharded across the 2 TensorCores).  Falls back
    through the remaining alignments for small / oddly sized dims; build_model keeps all row
    dims multiples of _ROW_ALIGN so the full-dim fallback never produces an oversized block
    at production scale (zero-pad graphs/features to a tile multiple at build time otherwise —
    zero rows/cols are harmless for this model's math).
    """
    align = aligns[0]
    if prefer_split and dim >= 2 * align and dim % align == 0:
        target = min(target, max(align, (dim // 2) // align * align))
    if dim <= target:
        return dim
    for a in aligns:
        t = min(target, dim) // a * a
        while t >= a:
            if dim % t == 0:
                return t
            t -= a
    return dim  # last resort: single full block (only for dims not padded to alignment)


# --------------------------- propagation step kernel ---------------------------

def _prop_step_kernel(g_ref, f_ref, acc_ref, carried_ref, newacc_ref, psum_ref, *, inv_scale):
    """One bipartite half-step:  p = G_row_stripe @ f  (accumulated over the k grid axis),
    then  carried = (p * inv_scale) in bf16  and  new_acc = acc + p / ||p||_2  (row-wise, f32)."""
    k = pl.program_id(1)

    @pl.when(k == 0)
    def _():
        psum_ref[...] = jnp.zeros_like(psum_ref)

    # bf16 x bf16 on the MXU (native rate on all generations); f32 accumulation in VMEM scratch.
    psum_ref[...] += jnp.dot(g_ref[...], f_ref[...], preferred_element_type=jnp.float32)

    @pl.when(k == pl.num_programs(1) - 1)
    def _():
        p = psum_ref[...]
        # F.normalize(p / (i+2)) == p / max(||p||, eps): the layer scale cancels, so it is only
        # applied to the carried feature.  rsqrt -> EUP slot instead of sqrt + divide on the VPU.
        inv_nrm = jax.lax.rsqrt(jnp.maximum(jnp.sum(p * p, axis=1, keepdims=True), 1e-24))
        carried_ref[...] = (p * jnp.float32(inv_scale)).astype(carried_ref.dtype)
        newacc_ref[...] = acc_ref[...] + p * inv_nrm


def prop_step(g, f, acc, inv_scale, *, tile_rows=2048, tile_red=2048):
    """carried, new_acc = prop_step(G, f, acc): p = G @ f; carried = p/(i+2) (bf16);
    new_acc = acc + p/||p|| (f32).  G and f are bf16, accumulation is f32."""
    R, S = g.shape
    S2, D = f.shape
    assert S == S2 and acc.shape == (R, D)
    tm = _pick_tile(R, tile_rows, (_ROW_ALIGN, 16, 8), prefer_split=True)
    tk = _pick_tile(S, tile_red, (_RED_ALIGN,))
    # VMEM @ tm=tk=2048, D=128: 2x-buffered bf16 G tile 16 MiB + f/acc/outputs/psum ~7 MiB,
    # comfortably inside the 48 MiB v7x budget (96 MiB on v5e/v6e allows tk up to 4096).
    carried, new_acc = pl.pallas_call(
        functools.partial(_prop_step_kernel, inv_scale=float(inv_scale)),
        grid=(pl.cdiv(R, tm), pl.cdiv(S, tk)),
        in_specs=[
            # Graph stripe: dominant HBM stream (bf16).  On v5e, if the profile shows exposed
            # DMA, add pipeline_mode=pl.Buffered(3) here.
            pl.BlockSpec((tm, tk), lambda i, k: (i, k)),
            pl.BlockSpec((tk, D), lambda i, k: (k, 0)),    # features (bf16)
            pl.BlockSpec((tm, D), lambda i, k: (i, 0)),    # running accumulator (f32)
        ],
        out_specs=(
            pl.BlockSpec((tm, D), lambda i, k: (i, 0)),    # carried features (bf16)
            pl.BlockSpec((tm, D), lambda i, k: (i, 0)),    # updated accumulator (f32)
        ),
        out_shape=(jax.ShapeDtypeStruct((R, D), jnp.bfloat16),
                   jax.ShapeDtypeStruct((R, D), jnp.float32)),
        scratch_shapes=[pltpu.VMEM((tm, D), jnp.float32)],
        input_output_aliases={2: 1},   # reuse the acc HBM buffer for new_acc (no fresh RxD alloc)
        compiler_params=pltpu.CompilerParams(
            dimension_semantics=("parallel", "arbitrary"),
            vmem_limit_bytes=_vmem_limit_bytes()),
    )(g, f, acc)
    return carried, new_acc


def bipartite_propagate(a_hat, a_hat_t, f_a0, f_b0, layer_num, *, tile_rows=2048, tile_red=2048):
    """graph_propagate() of the module with G = [[0, A],[A^T, 0]]:
    per layer  f_A <- A_hat @ f_B,  f_B <- A_hat^T @ f_A  (old f_A), both scaled by 1/(i+2),
    acc_X += normalize(f_X), acc initialised with the raw input features (f32)."""
    # TODO(synk): fuse the A and A^T half-steps of a layer into one kernel that streams each A
    # tile once (row accumulator + column-side accumulator in scratch) to halve graph traffic;
    # needs the SxD f32 column accumulator to fit VMEM (caps S ~64k on v7x), so kept split here.
    acc_a, acc_b = f_a0, f_b0                       # f32 accumulators
    f_a = f_a0.astype(jnp.bfloat16)                 # bf16 streamed features for the MXU
    f_b = f_b0.astype(jnp.bfloat16)
    for i in range(layer_num):
        inv = 1.0 / (i + 2)
        new_f_a, acc_a = prop_step(a_hat, f_b, acc_a, inv,
                                   tile_rows=tile_rows, tile_red=tile_red)
        new_f_b, acc_b = prop_step(a_hat_t, f_a, acc_b, inv,
                                   tile_rows=tile_rows, tile_red=tile_red)
        f_a, f_b = new_f_a, new_f_b
    return acc_a, acc_b


# ------------------------------ tiled matmul kernel -----------------------------

def _matmul_kernel(a_ref, b_ref, o_ref, acc_ref):
    k = pl.program_id(1)

    @pl.when(k == 0)
    def _():
        acc_ref[...] = jnp.zeros_like(acc_ref)

    acc_ref[...] += jnp.dot(a_ref[...], b_ref[...], preferred_element_type=jnp.float32)

    @pl.when(k == pl.num_programs(1) - 1)
    def _():
        o_ref[...] = acc_ref[...]


def dense_matmul(a, b, *, tile_rows=2048, tile_red=2048):
    """course_aggregate_graph (bf16) @ concept_features (cast to bf16), f32 accumulation."""
    M, K = a.shape
    K2, D = b.shape
    assert K == K2
    b = b.astype(jnp.bfloat16)
    tm = _pick_tile(M, tile_rows, (_ROW_ALIGN, 16, 8), prefer_split=True)
    tk = _pick_tile(K, tile_red, (_RED_ALIGN,))
    return pl.pallas_call(
        _matmul_kernel,
        grid=(pl.cdiv(M, tm), pl.cdiv(K, tk)),
        in_specs=[pl.BlockSpec((tm, tk), lambda i, k: (i, k)),
                  pl.BlockSpec((tk, D), lambda i, k: (k, 0))],
        out_specs=pl.BlockSpec((tm, D), lambda i, k: (i, 0)),
        out_shape=jax.ShapeDtypeStruct((M, D), jnp.float32),
        scratch_shapes=[pltpu.VMEM((tm, D), jnp.float32)],
        compiler_params=pltpu.CompilerParams(
            dimension_semantics=("parallel", "arbitrary"),
            vmem_limit_bytes=_vmem_limit_bytes()),
    )(a, b)


# --------------------------------- loss kernel ----------------------------------

def _loss_kernel(cgl_ref, crl_ref, cgc_ref, crc_ref, bpr_ref, cl_ref, *, c_temp):
    cgl = cgl_ref[...]            # [B, D]   (learner rows; T-expansion is done in-kernel)
    crl = crl_ref[...]            # [B, D]
    cgc = cgc_ref[...]            # [B, T, D]
    crc = crc_ref[...]            # [B, T, D]
    B, T, D = cgc.shape
    inv_temp = jnp.float32(1.0 / c_temp)

    # ---- BPR: pred[b,t] = <cgl_b, cgc_bt> + <crl_b, crc_bt>
    pred = (jnp.sum(jnp.broadcast_to(cgl[:, None, :], (B, T, D)) * cgc, axis=2)
            + jnp.sum(jnp.broadcast_to(crl[:, None, :], (B, T, D)) * crc, axis=2))  # [B, T]
    x = pred[:, 0:1] - pred[:, 1:]                     # pos - negs, [B, T-1]
    # -log(sigmoid(x)) = softplus(-x), overflow-safe form.
    m = jnp.maximum(-x, 0.0)
    bpr = m + jnp.log(jnp.exp(-m) + jnp.exp(-x - m))
    bpr_sum = jnp.sum(jnp.sum(bpr, axis=1, keepdims=True), axis=0, keepdims=True)
    bpr_ref[...] = bpr_sum * jnp.float32(1.0 / (B * (T - 1)))

    # ---- contrastive (InfoNCE) on first-column embeddings, stabilized logsumexp
    def contrastive(a, b):
        a = a * jax.lax.rsqrt(jnp.maximum(jnp.sum(a * a, axis=1, keepdims=True), 1e-24))
        b = b * jax.lax.rsqrt(jnp.maximum(jnp.sum(b * b, axis=1, keepdims=True), 1e-24))
        pos = jnp.sum(a * b, axis=1, keepdims=True) * inv_temp                      # [B, 1]
        scores = jax.lax.dot_general(a, b, (((1,), (1,)), ((), ())),                # a @ b.T
                                     preferred_element_type=jnp.float32) * inv_temp
        mx = jnp.max(scores, axis=1, keepdims=True)
        lse = mx + jnp.log(jnp.sum(jnp.exp(scores - mx), axis=1, keepdims=True))    # [B, 1]
        term = pos - lse                                                            # log(pos/tot)
        return -jnp.sum(term, axis=0, keepdims=True) * jnp.float32(1.0 / a.shape[0])

    cl_learner = contrastive(cgl, crl)                  # cgl/crl already are the [:,0,:] rows
    cl_course = contrastive(cgc[:, 0, :], crc[:, 0, :])
    cl_ref[...] = (cl_learner + cl_course) * 0.5


def compute_losses(cgl, crl, cgc, crc, c_temp):
    B, T, D = cgc.shape
    spec2 = pl.BlockSpec((B, D), lambda: (0, 0))
    spec3 = pl.BlockSpec((B, T, D), lambda: (0, 0, 0))
    spec_s = pl.BlockSpec((1, 1), lambda: (0, 0))
    # TODO(synk): at production B, grid this over B-tiles with a lane-dense score tile and an
    # online logsumexp (fusing the batch gather via PrefetchScalarGridSpec + pl.Element row maps)
    # instead of materializing the gathered [B,T,D] tensors; negligible at B=8/T=3.
    bpr, cl = pl.pallas_call(
        functools.partial(_loss_kernel, c_temp=float(c_temp)),
        out_shape=(jax.ShapeDtypeStruct((1, 1), jnp.float32),
                   jax.ShapeDtypeStruct((1, 1), jnp.float32)),
        in_specs=[spec2, spec2, spec3, spec3],
        out_specs=(spec_s, spec_s),
        compiler_params=pltpu.CompilerParams(vmem_limit_bytes=_vmem_limit_bytes()),
    )(cgl, crl, cgc, crc)
    return bpr[0, 0], cl[0, 0]


# ----------------------------- plain-JAX build glue -----------------------------

def laplace_bipartite(a):
    """D_r^{-1/2} A D_c^{-1/2}; identical to laplace_transform of the bipartite block graph."""
    r = 1.0 / (jnp.sqrt(jnp.sum(a, axis=1)) + 1e-8)
    c = 1.0 / (jnp.sqrt(jnp.sum(a, axis=0)) + 1e-8)
    return r[:, None] * a * c[None, :]


def build_model(key, num_learners, num_courses, num_concepts, embedding_size, d_pad=128):
    # Row dims (learners/courses/concepts) should be multiples of _ROW_ALIGN at production
    # scale (zero-pad the graphs/features otherwise; zero rows/cols are harmless here).
    ks = jax.random.split(key, 8)
    # synthetic deterministic KG features (stand-in for the csv-based init_emb_KG load)
    lf = jax.random.normal(ks[0], (num_learners, embedding_size), jnp.float32) * 0.1
    cf = jax.random.normal(ks[1], (num_courses, embedding_size), jnp.float32) * 0.1
    kf = jax.random.normal(ks[2], (num_concepts, embedding_size), jnp.float32) * 0.1
    # init_emb_KG MLP: Linear(E,64) -> Linear(64,64) -> ReLU   (init-time glue)
    w1 = jax.random.normal(ks[3], (embedding_size, 64), jnp.float32) * 0.1
    b1 = jnp.zeros((64,), jnp.float32)
    w2 = jax.random.normal(ks[4], (64, 64), jnp.float32) * 0.1
    b2 = jnp.zeros((64,), jnp.float32)

    def mlp(x):
        return jax.nn.relu((x @ w1 + b1) @ w2 + b2)

    def pad(x):  # zero-pad emb dim 64 -> 128 so every kernel output is lane-dense
        return jnp.pad(x, ((0, 0), (0, d_pad - x.shape[1])))

    feats = {"learners": mlp(lf), "courses": mlp(cf), "concepts": mlp(kf)}
    params = {k: pad(v) for k, v in feats.items()}     # padded features for the Pallas path
    params_ref = feats                                 # unpadded f32 features for the reference

    # synthetic deterministic bipartite interaction graphs (edge-dropout ratios = 0)
    lc = jax.random.bernoulli(ks[5], 0.4, (num_learners, num_courses)).astype(jnp.float32)
    lk = jax.random.bernoulli(ks[6], 0.4, (num_learners, num_concepts)).astype(jnp.float32)
    ck = jax.random.bernoulli(ks[7], 0.4, (num_courses, num_concepts)).astype(jnp.float32)

    lc_hat = laplace_bipartite(lc).astype(jnp.bfloat16)   # streamed operands stored as bf16
    lk_hat = laplace_bipartite(lk).astype(jnp.bfloat16)
    agg = ((1.0 / (jnp.sum(ck, axis=1) + 1e-8))[:, None] * ck).astype(jnp.bfloat16)

    graphs = {
        "lc_hat": lc_hat, "lc_hat_T": lc_hat.T,
        "lk_hat": lk_hat, "lk_hat_T": lk_hat.T,
        "course_aggregate": agg,
    }
    return params, params_ref, graphs


# ---------------------------------- forward -------------------------------------

def llmcrec_forward(params, graphs, learners, courses, layer_num, c_temp,
                    tile_rows=2048, tile_red=2048):
    """Equivalent of LLMCRec.forward(batch) with aug_type='ED' and dropout ratios 0."""
    # propagate(): two bipartite propagations (course-grained / concept-grained), Pallas.
    crs_l, crs_c = bipartite_propagate(graphs["lc_hat"], graphs["lc_hat_T"],
                                       params["learners"], params["courses"], layer_num,
                                       tile_rows=tile_rows, tile_red=tile_red)
    cg_l, cg_k = bipartite_propagate(graphs["lk_hat"], graphs["lk_hat_T"],
                                     params["learners"], params["concepts"], layer_num,
                                     tile_rows=tile_rows, tile_red=tile_red)
    # concept-grained course representations (Pallas tiled matmul)
    cg_c = dense_matmul(graphs["course_aggregate"], cg_k,
                        tile_rows=tile_rows, tile_red=tile_red)

    # batch gather (XLA glue); the T-expansion of learner rows happens inside the loss kernel
    lidx = learners[:, 0]
    cgl = cg_l[lidx]          # [B, D]
    crl = crs_l[lidx]         # [B, D]
    cgc = cg_c[courses]       # [B, T, D]
    crc = crs_c[courses]      # [B, T, D]

    bpr_loss, c_loss = compute_losses(cgl, crl, cgc, crc, c_temp)
    return bpr_loss, c_loss


def llmcrec_forward_ref(params_ref, graphs, learners, courses, layer_num, c_temp):
    """Pure-JAX reference with the original dense block-graph propagation (unpadded, f32)."""
    hp = jax.lax.Precision.HIGHEST
    L = params_ref["learners"].shape[0]

    def block_graph(a_bf16):
        a = a_bf16.astype(jnp.float32)
        m, n = a.shape
        top = jnp.concatenate([jnp.zeros((m, m), jnp.float32), a], axis=1)
        bot = jnp.concatenate([a.T, jnp.zeros((n, n), jnp.float32)], axis=1)
        return jnp.concatenate([top, bot], axis=0)

    def prop(g, feats):
        f = feats
        acc = f
        for i in range(layer_num):
            f = jnp.dot(g, f, precision=hp)
            f = f / (i + 2)
            n = jnp.maximum(jnp.linalg.norm(f, axis=1, keepdims=True), 1e-12)
            acc = acc + f / n
        return acc

    out_lc = prop(block_graph(graphs["lc_hat"]),
                  jnp.concatenate([params_ref["learners"], params_ref["courses"]], axis=0))
    crs_l, crs_c = out_lc[:L], out_lc[L:]
    out_lk = prop(block_graph(graphs["lk_hat"]),
                  jnp.concatenate([params_ref["learners"], params_ref["concepts"]], axis=0))
    cg_l, cg_k = out_lk[:L], out_lk[L:]
    cg_c = jnp.dot(graphs["course_aggregate"].astype(jnp.float32), cg_k, precision=hp)

    lidx = learners[:, 0]
    B, T = courses.shape
    D = cg_l.shape[1]
    cgl = jnp.broadcast_to(cg_l[lidx][:, None, :], (B, T, D))
    crl = jnp.broadcast_to(crs_l[lidx][:, None, :], (B, T, D))
    cgc = cg_c[courses]
    crc = crs_c[courses]

    pred = jnp.sum(cgl * cgc, 2) + jnp.sum(crl * crc, 2)
    bpr = jnp.mean(-jnp.log(jax.nn.sigmoid(pred[:, 0:1] - pred[:, 1:])))

    def contrastive(a, b):
        a = a / jnp.maximum(jnp.linalg.norm(a, axis=1, keepdims=True), 1e-12)
        b = b / jnp.maximum(jnp.linalg.norm(b, axis=1, keepdims=True), 1e-12)
        pos = jnp.exp(jnp.sum(a * b, axis=1) / c_temp)
        tot = jnp.sum(jnp.exp(jnp.dot(a, b.T, precision=hp) / c_temp), axis=1)
        return -jnp.mean(jnp.log(pos / tot))

    cl = (contrastive(cgl[:, 0, :], crl[:, 0, :]) + contrastive(cgc[:, 0, :], crc[:, 0, :])) / 2.0
    return bpr, cl


# ------------------------------------ main ---------------------------------------

if __name__ == "__main__":
    # Small shapes for the toy test.  tile_red=128 is passed ONLY so the multi-step reduction
    # grid (pl.when init/finalize on the psum scratch) is exercised at these tiny sizes; the
    # production defaults are tile_rows=tile_red=2048 (v7x), and on v5e/v6e the larger VMEM
    # budget allows tile_red up to 4096.
    num_learners, num_courses, num_concepts = 512, 256, 256
    embedding_size = 32              # pre-MLP size; post-MLP dim is 64, lane-padded to 128
    layer_num, c_temp = 2, 0.25
    B, T = 8, 3                      # 1 positive + 2 negative courses per example

    key = jax.random.PRNGKey(0)
    k_model, k_batch = jax.random.split(key)
    params, params_ref, graphs = build_model(
        k_model, num_learners, num_courses, num_concepts, embedding_size)

    k_l, k_c = jax.random.split(k_batch)
    learners = jax.random.randint(k_l, (B, 1), 0, num_learners, dtype=jnp.int32)
    courses = jax.random.randint(k_c, (B, T), 0, num_courses, dtype=jnp.int32)

    fwd = jax.jit(functools.partial(llmcrec_forward,
                                    layer_num=layer_num, c_temp=c_temp,
                                    tile_red=128))
    bpr_loss, c_loss = fwd(params, graphs, learners, courses)
    bpr_loss = jax.block_until_ready(bpr_loss)
    c_loss = jax.block_until_ready(c_loss)

    bpr_ref, c_ref = llmcrec_forward_ref(params_ref, graphs, learners, courses,
                                         layer_num, c_temp)
    # Tolerance accounts for the bf16 feature / carried-feature path (bf16 eps ~= 4e-3 per
    # rounding stage) vs. the f32 reference; the f32 psum / accumulator keeps drift well below.
    np.testing.assert_allclose(np.asarray(bpr_loss), np.asarray(bpr_ref), rtol=2e-2, atol=2e-2)
    np.testing.assert_allclose(np.asarray(c_loss), np.asarray(c_ref), rtol=2e-2, atol=2e-2)

    print("KERNEL_OK")
</pallas_src>

<mosaic_0001>
module attributes {stable_mosaic.version = 11 : i64} {
  func.func @_prop_step_kernel(%arg0: i32, %arg1: i32, %arg2: memref<256x128xbf16, #tpu.memory_space<vmem>>, %arg3: memref<128x128xbf16, #tpu.memory_space<vmem>>, %arg4: memref<256x128xf32, #tpu.memory_space<vmem>>, %arg5: memref<256x128xbf16, #tpu.memory_space<vmem>>, %arg6: memref<256x128xf32, #tpu.memory_space<vmem>>, %arg7: memref<256x128xf32, #tpu.memory_space<vmem>>) attributes {dimension_semantics = [#tpu.dimension_semantics<parallel>, #tpu.dimension_semantics<arbitrary>], iteration_bounds = array<i64: 2, 2>, scalar_prefetch = 0 : i64, scratch_operands = 1 : i64, tpu.core_type = #tpu.core_type<tc>, window_params = [{transform_indices = @transform_0, window_bounds = array<i64: 256, 128>}, {transform_indices = @transform_1, window_bounds = array<i64: 128, 128>}, {transform_indices = @transform_2, window_bounds = array<i64: 256, 128>}, {transform_indices = @transform_3, window_bounds = array<i64: 256, 128>}, {transform_indices = @transform_4, window_bounds = array<i64: 256, 128>}]} {
    %c0_i32 = arith.constant 0 : i32
    %0 = arith.cmpi eq, %arg1, %c0_i32 : i32
    %1 = arith.extui %0 : i1 to i32
    %c0_i32_0 = arith.constant 0 : i32
    %2 = arith.cmpi ne, %1, %c0_i32_0 : i32
    scf.if %2 {
      %cst_9 = arith.constant 0.000000e+00 : f32
      %12 = vector.broadcast %cst_9 : f32 to vector<256x128xf32>
      %c0_10 = arith.constant 0 : index
      %c0_11 = arith.constant 0 : index
      %13 = vector.load %arg7[%c0_10, %c0_11] : memref<256x128xf32, #tpu.memory_space<vmem>>, vector<256x128xf32>
      tpu.vector_store %arg7[%c0_10, %c0_11], %12 {strides = array<i32>} : memref<256x128xf32, #tpu.memory_space<vmem>>, vector<256x128xf32>,
    } else {
    }
    %c0 = arith.constant 0 : index
    %c0_1 = arith.constant 0 : index
    %3 = vector.load %arg7[%c0, %c0_1] : memref<256x128xf32, #tpu.memory_space<vmem>>, vector<256x128xf32>
    %c0_2 = arith.constant 0 : index
    %c0_3 = arith.constant 0 : index
    %4 = vector.load %arg2[%c0_2, %c0_3] : memref<256x128xbf16, #tpu.memory_space<vmem>>, vector<256x128xbf16>
    %c0_4 = arith.constant 0 : index
    %c0_5 = arith.constant 0 : index
    %5 = vector.load %arg3[%c0_4, %c0_5] : memref<128x128xbf16, #tpu.memory_space<vmem>>, vector<128x128xbf16>
    %cst = arith.constant dense<0.000000e+00> : vector<256x128xf32>
    %6 = tpu.matmul %4, %5, %cst {dimension_numbers = #tpu.dot_dimension_numbers<[1], [0], [0], [1], [0, 0, 1, 1], [], []>} : vector<256x128xbf16>, vector<128x128xbf16>, vector<256x128xf32> -> vector<256x128xf32>
    %7 = arith.addf %3, %6 : vector<256x128xf32>
    %c0_6 = arith.constant 0 : index
    %c0_7 = arith.constant 0 : index
    %8 = vector.load %arg7[%c0_6, %c0_7] : memref<256x128xf32, #tpu.memory_space<vmem>>, vector<256x128xf32>
    tpu.vector_store %arg7[%c0_6, %c0_7], %7 {strides = array<i32>} : memref<256x128xf32, #tpu.memory_space<vmem>>, vector<256x128xf32>,
    %c1_i32 = arith.constant 1 : i32
    %9 = arith.cmpi eq, %arg1, %c1_i32 : i32
    %10 = arith.extui %9 : i1 to i32
    %c0_i32_8 = arith.constant 0 : i32
    %11 = arith.cmpi ne, %10, %c0_i32_8 : i32
    scf.if %11 {
      %c0_9 = arith.constant 0 : index
      %c0_10 = arith.constant 0 : index
      %12 = vector.load %arg7[%c0_9, %c0_10] : memref<256x128xf32, #tpu.memory_space<vmem>>, vector<256x128xf32>
      %13 = arith.mulf %12, %12 : vector<256x128xf32>
      %cst_11 = arith.constant dense<0.000000e+00> : vector<256xf32>
      %14 = vector.multi_reduction <add>, %13, %cst_11 [1] : vector<256x128xf32> to vector<256xf32>
      %15 = vector.shape_cast %14 : vector<256xf32> to vector<256x1xf32>
      %cst_12 = arith.constant 1.000000e-24 : f32
      %16 = vector.broadcast %cst_12 : f32 to vector<256x1xf32>
      %17 = arith.maximumf %15, %16 : vector<256x1xf32>
      %18 = math.rsqrt %17 : vector<256x1xf32>
      %cst_13 = arith.constant 0.333333343 : f32
      %19 = vector.broadcast %cst_13 : f32 to vector<256x128xf32>
      %20 = arith.mulf %12, %19 : vector<256x128xf32>
      %21 = arith.truncf %20 : vector<256x128xf32> to vector<256x128xbf16>
      %c0_14 = arith.constant 0 : index
      %c0_15 = arith.constant 0 : index
      %22 = vector.load %arg5[%c0_14, %c0_15] : memref<256x128xbf16, #tpu.memory_space<vmem>>, vector<256x128xbf16>
      tpu.vector_store %arg5[%c0_14, %c0_15], %21 {strides = array<i32>} : memref<256x128xbf16, #tpu.memory_space<vmem>>, vector<256x128xbf16>,
      %c0_16 = arith.constant 0 : index
      %c0_17 = arith.constant 0 : index
      %23 = vector.load %arg4[%c0_16, %c0_17] : memref<256x128xf32, #tpu.memory_space<vmem>>, vector<256x128xf32>
      %24 = vector.broadcast %18 : vector<256x1xf32> to vector<256x128xf32>
      %25 = arith.mulf %12, %24 : vector<256x128xf32>
      %26 = arith.addf %23, %25 : vector<256x128xf32>
      %c0_18 = arith.constant 0 : index
      %c0_19 = arith.constant 0 : index
      %27 = vector.load %arg6[%c0_18, %c0_19] : memref<256x128xf32, #tpu.memory_space<vmem>>, vector<256x128xf32>
      tpu.vector_store %arg6[%c0_18, %c0_19], %26 {strides = array<i32>} : memref<256x128xf32, #tpu.memory_space<vmem>>, vector<256x128xf32>,
    } else {
    }
    return
  }
  func.func @transform_0(%arg0: i32, %arg1: i32) -> (i32, i32) {
    %c0_i32 = arith.constant 0 : i32
    return %arg0, %arg1 : i32, i32
  }
  func.func @transform_1(%arg0: i32, %arg1: i32) -> (i32, i32) {
    %c0_i32 = arith.constant 0 : i32
    %c0_i32_0 = arith.constant 0 : i32
    return %arg1, %c0_i32 : i32, i32
  }
  func.func @transform_2(%arg0: i32, %arg1: i32) -> (i32, i32) {
    %c0_i32 = arith.constant 0 : i32
    %c0_i32_0 = arith.constant 0 : i32
    return %arg0, %c0_i32 : i32, i32
  }
  func.func @transform_3(%arg0: i32, %arg1: i32) -> (i32, i32) {
    %c0_i32 = arith.constant 0 : i32
    %c0_i32_0 = arith.constant 0 : i32
    return %arg0, %c0_i32 : i32, i32
  }
  func.func @transform_4(%arg0: i32, %arg1: i32) -> (i32, i32) {
    %c0_i32 = arith.constant 0 : i32
    %c0_i32_0 = arith.constant 0 : i32
    return %arg0, %c0_i32 : i32, i32
  }
}

module attributes {stable_mosaic.version = 11 : i64} {
  func.func @_prop_step_kernel(%arg0: i32, %arg1: i32, %arg2: memref<256x128xbf16, #tpu.memory_space<vmem>>, %arg3: memref<128x128xbf16, #tpu.memory_space<vmem>>, %arg4: memref<256x128xf32, #tpu.memory_space<vmem>>, %arg5: memref<256x128xbf16, #tpu.memory_space<vmem>>, %arg6: memref<256x128xf32, #tpu.memory_space<vmem>>, %arg7: memref<256x128xf32, #tpu.memory_space<vmem>>) attributes {dimension_semantics = [#tpu.dimension_semantics<parallel>, #tpu.dimension_semantics<arbitrary>], iteration_bounds = array<i64: 2, 2>, scalar_prefetch = 0 : i64, scratch_operands = 1 : i64, tpu.core_type = #tpu.core_type<tc>, window_params = [{transform_indices = @transform_0, window_bounds = array<i64: 256, 128>}, {transform_indices = @transform_1, window_bounds = array<i64: 128, 128>}, {transform_indices = @transform_2, window_bounds = array<i64: 256, 128>}, {transform_indices = @transform_3, window_bounds = array<i64: 256, 128>}, {transform_indices = @transform_4, window_bounds = array<i64: 256, 128>}]} {
    %c0_i32 = arith.constant 0 : i32
    %0 = arith.cmpi eq, %arg1, %c0_i32 : i32
    %1 = arith.extui %0 : i1 to i32
    %c0_i32_0 = arith.constant 0 : i32
    %2 = arith.cmpi ne, %1, %c0_i32_0 : i32
    scf.if %2 {
      %cst_9 = arith.constant 0.000000e+00 : f32
      %12 = vector.broadcast %cst_9 : f32 to vector<256x128xf32>
      %c0_10 = arith.constant 0 : index
      %c0_11 = arith.constant 0 : index
      %13 = vector.load %arg7[%c0_10, %c0_11] : memref<256x128xf32, #tpu.memory_space<vmem>>, vector<256x128xf32>
      tpu.vector_store %arg7[%c0_10, %c0_11], %12 {strides = array<i32>} : memref<256x128xf32, #tpu.memory_space<vmem>>, vector<256x128xf32>,
    } else {
    }
    %c0 = arith.constant 0 : index
    %c0_1 = arith.constant 0 : index
    %3 = vector.load %arg7[%c0, %c0_1] : memref<256x128xf32, #tpu.memory_space<vmem>>, vector<256x128xf32>
    %c0_2 = arith.constant 0 : index
    %c0_3 = arith.constant 0 : index
    %4 = vector.load %arg2[%c0_2, %c0_3] : memref<256x128xbf16, #tpu.memory_space<vmem>>, vector<256x128xbf16>
    %c0_4 = arith.constant 0 : index
    %c0_5 = arith.constant 0 : index
    %5 = vector.load %arg3[%c0_4, %c0_5] : memref<128x128xbf16, #tpu.memory_space<vmem>>, vector<128x128xbf16>
    %cst = arith.constant dense<0.000000e+00> : vector<256x128xf32>
    %6 = tpu.matmul %4, %5, %cst {dimension_numbers = #tpu.dot_dimension_numbers<[1], [0], [0], [1], [0, 0, 1, 1], [], []>} : vector<256x128xbf16>, vector<128x128xbf16>, vector<256x128xf32> -> vector<256x128xf32>
    %7 = arith.addf %3, %6 : vector<256x128xf32>
    %c0_6 = arith.constant 0 : index
    %c0_7 = arith.constant 0 : index
    %8 = vector.load %arg7[%c0_6, %c0_7] : memref<256x128xf32, #tpu.memory_space<vmem>>, vector<256x128xf32>
    tpu.vector_store %arg7[%c0_6, %c0_7], %7 {strides = array<i32>} : memref<256x128xf32, #tpu.memory_space<vmem>>, vector<256x128xf32>,
    %c1_i32 = arith.constant 1 : i32
    %9 = arith.cmpi eq, %arg1, %c1_i32 : i32
    %10 = arith.extui %9 : i1 to i32
    %c0_i32_8 = arith.constant 0 : i32
    %11 = arith.cmpi ne, %10, %c0_i32_8 : i32
    scf.if %11 {
      %c0_9 = arith.constant 0 : index
      %c0_10 = arith.constant 0 : index
      %12 = vector.load %arg7[%c0_9, %c0_10] : memref<256x128xf32, #tpu.memory_space<vmem>>, vector<256x128xf32>
      %13 = arith.mulf %12, %12 : vector<256x128xf32>
      %cst_11 = arith.constant dense<0.000000e+00> : vector<256xf32>
      %14 = vector.multi_reduction <add>, %13, %cst_11 [1] : vector<256x128xf32> to vector<256xf32>
      %15 = vector.shape_cast %14 : vector<256xf32> to vector<256x1xf32>
      %cst_12 = arith.constant 1.000000e-24 : f32
      %16 = vector.broadcast %cst_12 : f32 to vector<256x1xf32>
      %17 = arith.maximumf %15, %16 : vector<256x1xf32>
      %18 = math.rsqrt %17 : vector<256x1xf32>
      %cst_13 = arith.constant 5.000000e-01 : f32
      %19 = vector.broadcast %cst_13 : f32 to vector<256x128xf32>
      %20 = arith.mulf %12, %19 : vector<256x128xf32>
      %21 = arith.truncf %20 : vector<256x128xf32> to vector<256x128xbf16>
      %c0_14 = arith.constant 0 : index
      %c0_15 = arith.constant 0 : index
      %22 = vector.load %arg5[%c0_14, %c0_15] : memref<256x128xbf16, #tpu.memory_space<vmem>>, vector<256x128xbf16>
      tpu.vector_store %arg5[%c0_14, %c0_15], %21 {strides = array<i32>} : memref<256x128xbf16, #tpu.memory_space<vmem>>, vector<256x128xbf16>,
      %c0_16 = arith.constant 0 : index
      %c0_17 = arith.constant 0 : index
      %23 = vector.load %arg4[%c0_16, %c0_17] : memref<256x128xf32, #tpu.memory_space<vmem>>, vector<256x128xf32>
      %24 = vector.broadcast %18 : vector<256x1xf32> to vector<256x128xf32>
      %25 = arith.mulf %12, %24 : vector<256x128xf32>
      %26 = arith.addf %23, %25 : vector<256x128xf32>
      %c0_18 = arith.constant 0 : index
      %c0_19 = arith.constant 0 : index
      %27 = vector.load %arg6[%c0_18, %c0_19] : memref<256x128xf32, #tpu.memory_space<vmem>>, vector<256x128xf32>
      tpu.vector_store %arg6[%c0_18, %c0_19], %26 {strides = array<i32>} : memref<256x128xf32, #tpu.memory_space<vmem>>, vector<256x128xf32>,
    } else {
    }
    return
  }
  func.func @transform_0(%arg0: i32, %arg1: i32) -> (i32, i32) {
    %c0_i32 = arith.constant 0 : i32
    return %arg0, %arg1 : i32, i32
  }
  func.func @transform_1(%arg0: i32, %arg1: i32) -> (i32, i32) {
    %c0_i32 = arith.constant 0 : i32
    %c0_i32_0 = arith.constant 0 : i32
    return %arg1, %c0_i32 : i32, i32
  }
  func.func @transform_2(%arg0: i32, %arg1: i32) -> (i32, i32) {
    %c0_i32 = arith.constant 0 : i32
    %c0_i32_0 = arith.constant 0 : i32
    return %arg0, %c0_i32 : i32, i32
  }
  func.func @transform_3(%arg0: i32, %arg1: i32) -> (i32, i32) {
    %c0_i32 = arith.constant 0 : i32
    %c0_i32_0 = arith.constant 0 : i32
    return %arg0, %c0_i32 : i32, i32
  }
  func.func @transform_4(%arg0: i32, %arg1: i32) -> (i32, i32) {
    %c0_i32 = arith.constant 0 : i32
    %c0_i32_0 = arith.constant 0 : i32
    return %arg0, %c0_i32 : i32, i32
  }
}

module attributes {stable_mosaic.version = 11 : i64} {
  func.func @_prop_step_kernel(%arg0: i32, %arg1: i32, %arg2: memref<256x128xbf16, #tpu.memory_space<vmem>>, %arg3: memref<128x128xbf16, #tpu.memory_space<vmem>>, %arg4: memref<256x128xf32, #tpu.memory_space<vmem>>, %arg5: memref<256x128xbf16, #tpu.memory_space<vmem>>, %arg6: memref<256x128xf32, #tpu.memory_space<vmem>>, %arg7: memref<256x128xf32, #tpu.memory_space<vmem>>) attributes {dimension_semantics = [#tpu.dimension_semantics<parallel>, #tpu.dimension_semantics<arbitrary>], iteration_bounds = array<i64: 1, 4>, scalar_prefetch = 0 : i64, scratch_operands = 1 : i64, tpu.core_type = #tpu.core_type<tc>, window_params = [{transform_indices = @transform_0, window_bounds = array<i64: 256, 128>}, {transform_indices = @transform_1, window_bounds = array<i64: 128, 128>}, {transform_indices = @transform_2, window_bounds = array<i64: 256, 128>}, {transform_indices = @transform_3, window_bounds = array<i64: 256, 128>}, {transform_indices = @transform_4, window_bounds = array<i64: 256, 128>}]} {
    %c0_i32 = arith.constant 0 : i32
    %0 = arith.cmpi eq, %arg1, %c0_i32 : i32
    %1 = arith.extui %0 : i1 to i32
    %c0_i32_0 = arith.constant 0 : i32
    %2 = arith.cmpi ne, %1, %c0_i32_0 : i32
    scf.if %2 {
      %cst_9 = arith.constant 0.000000e+00 : f32
      %12 = vector.broadcast %cst_9 : f32 to vector<256x128xf32>
      %c0_10 = arith.constant 0 : index
      %c0_11 = arith.constant 0 : index
      %13 = vector.load %arg7[%c0_10, %c0_11] : memref<256x128xf32, #tpu.memory_space<vmem>>, vector<256x128xf32>
      tpu.vector_store %arg7[%c0_10, %c0_11], %12 {strides = array<i32>} : memref<256x128xf32, #tpu.memory_space<vmem>>, vector<256x128xf32>,
    } else {
    }
    %c0 = arith.constant 0 : index
    %c0_1 = arith.constant 0 : index
    %3 = vector.load %arg7[%c0, %c0_1] : memref<256x128xf32, #tpu.memory_space<vmem>>, vector<256x128xf32>
    %c0_2 = arith.constant 0 : index
    %c0_3 = arith.constant 0 : index
    %4 = vector.load %arg2[%c0_2, %c0_3] : memref<256x128xbf16, #tpu.memory_space<vmem>>, vector<256x128xbf16>
    %c0_4 = arith.constant 0 : index
    %c0_5 = arith.constant 0 : index
    %5 = vector.load %arg3[%c0_4, %c0_5] : memref<128x128xbf16, #tpu.memory_space<vmem>>, vector<128x128xbf16>
    %cst = arith.constant dense<0.000000e+00> : vector<256x128xf32>
    %6 = tpu.matmul %4, %5, %cst {dimension_numbers = #tpu.dot_dimension_numbers<[1], [0], [0], [1], [0, 0, 1, 1], [], []>} : vector<256x128xbf16>, vector<128x128xbf16>, vector<256x128xf32> -> vector<256x128xf32>
    %7 = arith.addf %3, %6 : vector<256x128xf32>
    %c0_6 = arith.constant 0 : index
    %c0_7 = arith.constant 0 : index
    %8 = vector.load %arg7[%c0_6, %c0_7] : memref<256x128xf32, #tpu.memory_space<vmem>>, vector<256x128xf32>
    tpu.vector_store %arg7[%c0_6, %c0_7], %7 {strides = array<i32>} : memref<256x128xf32, #tpu.memory_space<vmem>>, vector<256x128xf32>,
    %c3_i32 = arith.constant 3 : i32
    %9 = arith.cmpi eq, %arg1, %c3_i32 : i32
    %10 = arith.extui %9 : i1 to i32
    %c0_i32_8 = arith.constant 0 : i32
    %11 = arith.cmpi ne, %10, %c0_i32_8 : i32
    scf.if %11 {
      %c0_9 = arith.constant 0 : index
      %c0_10 = arith.constant 0 : index
      %12 = vector.load %arg7[%c0_9, %c0_10] : memref<256x128xf32, #tpu.memory_space<vmem>>, vector<256x128xf32>
      %13 = arith.mulf %12, %12 : vector<256x128xf32>
      %cst_11 = arith.constant dense<0.000000e+00> : vector<256xf32>
      %14 = vector.multi_reduction <add>, %13, %cst_11 [1] : vector<256x128xf32> to vector<256xf32>
      %15 = vector.shape_cast %14 : vector<256xf32> to vector<256x1xf32>
      %cst_12 = arith.constant 1.000000e-24 : f32
      %16 = vector.broadcast %cst_12 : f32 to vector<256x1xf32>
      %17 = arith.maximumf %15, %16 : vector<256x1xf32>
      %18 = math.rsqrt %17 : vector<256x1xf32>
      %cst_13 = arith.constant 5.000000e-01 : f32
      %19 = vector.broadcast %cst_13 : f32 to vector<256x128xf32>
      %20 = arith.mulf %12, %19 : vector<256x128xf32>
      %21 = arith.truncf %20 : vector<256x128xf32> to vector<256x128xbf16>
      %c0_14 = arith.constant 0 : index
      %c0_15 = arith.constant 0 : index
      %22 = vector.load %arg5[%c0_14, %c0_15] : memref<256x128xbf16, #tpu.memory_space<vmem>>, vector<256x128xbf16>
      tpu.vector_store %arg5[%c0_14, %c0_15], %21 {strides = array<i32>} : memref<256x128xbf16, #tpu.memory_space<vmem>>, vector<256x128xbf16>,
      %c0_16 = arith.constant 0 : index
      %c0_17 = arith.constant 0 : index
      %23 = vector.load %arg4[%c0_16, %c0_17] : memref<256x128xf32, #tpu.memory_space<vmem>>, vector<256x128xf32>
      %24 = vector.broadcast %18 : vector<256x1xf32> to vector<256x128xf32>
      %25 = arith.mulf %12, %24 : vector<256x128xf32>
      %26 = arith.addf %23, %25 : vector<256x128xf32>
      %c0_18 = arith.constant 0 : index
      %c0_19 = arith.constant 0 : index
      %27 = vector.load %arg6[%c0_18, %c0_19] : memref<256x128xf32, #tpu.memory_space<vmem>>, vector<256x128xf32>
      tpu.vector_store %arg6[%c0_18, %c0_19], %26 {strides = array<i32>} : memref<256x128xf32, #tpu.memory_space<vmem>>, vector<256x128xf32>,
    } else {
    }
    return
  }
  func.func @transform_0(%arg0: i32, %arg1: i32) -> (i32, i32) {
    %c0_i32 = arith.constant 0 : i32
    return %arg0, %arg1 : i32, i32
  }
  func.func @transform_1(%arg0: i32, %arg1: i32) -> (i32, i32) {
    %c0_i32 = arith.constant 0 : i32
    %c0_i32_0 = arith.constant 0 : i32
    return %arg1, %c0_i32 : i32, i32
  }
  func.func @transform_2(%arg0: i32, %arg1: i32) -> (i32, i32) {
    %c0_i32 = arith.constant 0 : i32
    %c0_i32_0 = arith.constant 0 : i32
    return %arg0, %c0_i32 : i32, i32
  }
  func.func @transform_3(%arg0: i32, %arg1: i32) -> (i32, i32) {
    %c0_i32 = arith.constant 0 : i32
    %c0_i32_0 = arith.constant 0 : i32
    return %arg0, %c0_i32 : i32, i32
  }
  func.func @transform_4(%arg0: i32, %arg1: i32) -> (i32, i32) {
    %c0_i32 = arith.constant 0 : i32
    %c0_i32_0 = arith.constant 0 : i32
    return %arg0, %c0_i32 : i32, i32
  }
}

module attributes {stable_mosaic.version = 11 : i64} {
  func.func @_prop_step_kernel(%arg0: i32, %arg1: i32, %arg2: memref<256x128xbf16, #tpu.memory_space<vmem>>, %arg3: memref<128x128xbf16, #tpu.memory_space<vmem>>, %arg4: memref<256x128xf32, #tpu.memory_space<vmem>>, %arg5: memref<256x128xbf16, #tpu.memory_space<vmem>>, %arg6: memref<256x128xf32, #tpu.memory_space<vmem>>, %arg7: memref<256x128xf32, #tpu.memory_space<vmem>>) attributes {dimension_semantics = [#tpu.dimension_semantics<parallel>, #tpu.dimension_semantics<arbitrary>], iteration_bounds = array<i64: 1, 4>, scalar_prefetch = 0 : i64, scratch_operands = 1 : i64, tpu.core_type = #tpu.core_type<tc>, window_params = [{transform_indices = @transform_0, window_bounds = array<i64: 256, 128>}, {transform_indices = @transform_1, window_bounds = array<i64: 128, 128>}, {transform_indices = @transform_2, window_bounds = array<i64: 256, 128>}, {transform_indices = @transform_3, window_bounds = array<i64: 256, 128>}, {transform_indices = @transform_4, window_bounds = array<i64: 256, 128>}]} {
    %c0_i32 = arith.constant 0 : i32
    %0 = arith.cmpi eq, %arg1, %c0_i32 : i32
    %1 = arith.extui %0 : i1 to i32
    %c0_i32_0 = arith.constant 0 : i32
    %2 = arith.cmpi ne, %1, %c0_i32_0 : i32
    scf.if %2 {
      %cst_9 = arith.constant 0.000000e+00 : f32
      %12 = vector.broadcast %cst_9 : f32 to vector<256x128xf32>
      %c0_10 = arith.constant 0 : index
      %c0_11 = arith.constant 0 : index
      %13 = vector.load %arg7[%c0_10, %c0_11] : memref<256x128xf32, #tpu.memory_space<vmem>>, vector<256x128xf32>
      tpu.vector_store %arg7[%c0_10, %c0_11], %12 {strides = array<i32>} : memref<256x128xf32, #tpu.memory_space<vmem>>, vector<256x128xf32>,
    } else {
    }
    %c0 = arith.constant 0 : index
    %c0_1 = arith.constant 0 : index
    %3 = vector.load %arg7[%c0, %c0_1] : memref<256x128xf32, #tpu.memory_space<vmem>>, vector<256x128xf32>
    %c0_2 = arith.constant 0 : index
    %c0_3 = arith.constant 0 : index
    %4 = vector.load %arg2[%c0_2, %c0_3] : memref<256x128xbf16, #tpu.memory_space<vmem>>, vector<256x128xbf16>
    %c0_4 = arith.constant 0 : index
    %c0_5 = arith.constant 0 : index
    %5 = vector.load %arg3[%c0_4, %c0_5] : memref<128x128xbf16, #tpu.memory_space<vmem>>, vector<128x128xbf16>
    %cst = arith.constant dense<0.000000e+00> : vector<256x128xf32>
    %6 = tpu.matmul %4, %5, %cst {dimension_numbers = #tpu.dot_dimension_numbers<[1], [0], [0], [1], [0, 0, 1, 1], [], []>} : vector<256x128xbf16>, vector<128x128xbf16>, vector<256x128xf32> -> vector<256x128xf32>
    %7 = arith.addf %3, %6 : vector<256x128xf32>
    %c0_6 = arith.constant 0 : index
    %c0_7 = arith.constant 0 : index
    %8 = vector.load %arg7[%c0_6, %c0_7] : memref<256x128xf32, #tpu.memory_space<vmem>>, vector<256x128xf32>
    tpu.vector_store %arg7[%c0_6, %c0_7], %7 {strides = array<i32>} : memref<256x128xf32, #tpu.memory_space<vmem>>, vector<256x128xf32>,
    %c3_i32 = arith.constant 3 : i32
    %9 = arith.cmpi eq, %arg1, %c3_i32 : i32
    %10 = arith.extui %9 : i1 to i32
    %c0_i32_8 = arith.constant 0 : i32
    %11 = arith.cmpi ne, %10, %c0_i32_8 : i32
    scf.if %11 {
      %c0_9 = arith.constant 0 : index
      %c0_10 = arith.constant 0 : index
      %12 = vector.load %arg7[%c0_9, %c0_10] : memref<256x128xf32, #tpu.memory_space<vmem>>, vector<256x128xf32>
      %13 = arith.mulf %12, %12 : vector<256x128xf32>
      %cst_11 = arith.constant dense<0.000000e+00> : vector<256xf32>
      %14 = vector.multi_reduction <add>, %13, %cst_11 [1] : vector<256x128xf32> to vector<256xf32>
      %15 = vector.shape_cast %14 : vector<256xf32> to vector<256x1xf32>
      %cst_12 = arith.constant 1.000000e-24 : f32
      %16 = vector.broadcast %cst_12 : f32 to vector<256x1xf32>
      %17 = arith.maximumf %15, %16 : vector<256x1xf32>
      %18 = math.rsqrt %17 : vector<256x1xf32>
      %cst_13 = arith.constant 0.333333343 : f32
      %19 = vector.broadcast %cst_13 : f32 to vector<256x128xf32>
      %20 = arith.mulf %12, %19 : vector<256x128xf32>
      %21 = arith.truncf %20 : vector<256x128xf32> to vector<256x128xbf16>
      %c0_14 = arith.constant 0 : index
      %c0_15 = arith.constant 0 : index
      %22 = vector.load %arg5[%c0_14, %c0_15] : memref<256x128xbf16, #tpu.memory_space<vmem>>, vector<256x128xbf16>
      tpu.vector_store %arg5[%c0_14, %c0_15], %21 {strides = array<i32>} : memref<256x128xbf16, #tpu.memory_space<vmem>>, vector<256x128xbf16>,
      %c0_16 = arith.constant 0 : index
      %c0_17 = arith.constant 0 : index
      %23 = vector.load %arg4[%c0_16, %c0_17] : memref<256x128xf32, #tpu.memory_space<vmem>>, vector<256x128xf32>
      %24 = vector.broadcast %18 : vector<256x1xf32> to vector<256x128xf32>
      %25 = arith.mulf %12, %24 : vector<256x128xf32>
      %26 = arith.addf %23, %25 : vector<256x128xf32>
      %c0_18 = arith.constant 0 : index
      %c0_19 = arith.constant 0 : index
      %27 = vector.load %arg6[%c0_18, %c0_19] : memref<256x128xf32, #tpu.memory_space<vmem>>, vector<256x128xf32>
      tpu.vector_store %arg6[%c0_18, %c0_19], %26 {strides = array<i32>} : memref<256x128xf32, #tpu.memory_space<vmem>>, vector<256x128xf32>,
    } else {
    }
    return
  }
  func.func @transform_0(%arg0: i32, %arg1: i32) -> (i32, i32) {
    %c0_i32 = arith.constant 0 : i32
    return %arg0, %arg1 : i32, i32
  }
  func.func @transform_1(%arg0: i32, %arg1: i32) -> (i32, i32) {
    %c0_i32 = arith.constant 0 : i32
    %c0_i32_0 = arith.constant 0 : i32
    return %arg1, %c0_i32 : i32, i32
  }
  func.func @transform_2(%arg0: i32, %arg1: i32) -> (i32, i32) {
    %c0_i32 = arith.constant 0 : i32
    %c0_i32_0 = arith.constant 0 : i32
    return %arg0, %c0_i32 : i32, i32
  }
  func.func @transform_3(%arg0: i32, %arg1: i32) -> (i32, i32) {
    %c0_i32 = arith.constant 0 : i32
    %c0_i32_0 = arith.constant 0 : i32
    return %arg0, %c0_i32 : i32, i32
  }
  func.func @transform_4(%arg0: i32, %arg1: i32) -> (i32, i32) {
    %c0_i32 = arith.constant 0 : i32
    %c0_i32_0 = arith.constant 0 : i32
    return %arg0, %c0_i32 : i32, i32
  }
}

module attributes {stable_mosaic.version = 11 : i64} {
  func.func @_matmul_kernel(%arg0: i32, %arg1: i32, %arg2: memref<256x128xbf16, #tpu.memory_space<vmem>>, %arg3: memref<128x128xbf16, #tpu.memory_space<vmem>>, %arg4: memref<256x128xf32, #tpu.memory_space<vmem>>, %arg5: memref<256x128xf32, #tpu.memory_space<vmem>>) attributes {dimension_semantics = [#tpu.dimension_semantics<parallel>, #tpu.dimension_semantics<arbitrary>], iteration_bounds = array<i64: 1, 2>, scalar_prefetch = 0 : i64, scratch_operands = 1 : i64, tpu.core_type = #tpu.core_type<tc>, window_params = [{transform_indices = @transform_0, window_bounds = array<i64: 256, 128>}, {transform_indices = @transform_1, window_bounds = array<i64: 128, 128>}, {transform_indices = @transform_2, window_bounds = array<i64: 256, 128>}]} {
    %c0_i32 = arith.constant 0 : i32
    %0 = arith.cmpi eq, %arg1, %c0_i32 : i32
    %1 = arith.extui %0 : i1 to i32
    %c0_i32_0 = arith.constant 0 : i32
    %2 = arith.cmpi ne, %1, %c0_i32_0 : i32
    scf.if %2 {
      %cst_9 = arith.constant 0.000000e+00 : f32
      %12 = vector.broadcast %cst_9 : f32 to vector<256x128xf32>
      %c0_10 = arith.constant 0 : index
      %c0_11 = arith.constant 0 : index
      %13 = vector.load %arg5[%c0_10, %c0_11] : memref<256x128xf32, #tpu.memory_space<vmem>>, vector<256x128xf32>
      tpu.vector_store %arg5[%c0_10, %c0_11], %12 {strides = array<i32>} : memref<256x128xf32, #tpu.memory_space<vmem>>, vector<256x128xf32>,
    } else {
    }
    %c0 = arith.constant 0 : index
    %c0_1 = arith.constant 0 : index
    %3 = vector.load %arg5[%c0, %c0_1] : memref<256x128xf32, #tpu.memory_space<vmem>>, vector<256x128xf32>
    %c0_2 = arith.constant 0 : index
    %c0_3 = arith.constant 0 : index
    %4 = vector.load %arg2[%c0_2, %c0_3] : memref<256x128xbf16, #tpu.memory_space<vmem>>, vector<256x128xbf16>
    %c0_4 = arith.constant 0 : index
    %c0_5 = arith.constant 0 : index
    %5 = vector.load %arg3[%c0_4, %c0_5] : memref<128x128xbf16, #tpu.memory_space<vmem>>, vector<128x128xbf16>
    %cst = arith.constant dense<0.000000e+00> : vector<256x128xf32>
    %6 = tpu.matmul %4, %5, %cst {dimension_numbers = #tpu.dot_dimension_numbers<[1], [0], [0], [1], [0, 0, 1, 1], [], []>} : vector<256x128xbf16>, vector<128x128xbf16>, vector<256x128xf32> -> vector<256x128xf32>
    %7 = arith.addf %3, %6 : vector<256x128xf32>
    %c0_6 = arith.constant 0 : index
    %c0_7 = arith.constant 0 : index
    %8 = vector.load %arg5[%c0_6, %c0_7] : memref<256x128xf32, #tpu.memory_space<vmem>>, vector<256x128xf32>
    tpu.vector_store %arg5[%c0_6, %c0_7], %7 {strides = array<i32>} : memref<256x128xf32, #tpu.memory_space<vmem>>, vector<256x128xf32>,
    %c1_i32 = arith.constant 1 : i32
    %9 = arith.cmpi eq, %arg1, %c1_i32 : i32
    %10 = arith.extui %9 : i1 to i32
    %c0_i32_8 = arith.constant 0 : i32
    %11 = arith.cmpi ne, %10, %c0_i32_8 : i32
    scf.if %11 {
      %c0_9 = arith.constant 0 : index
      %c0_10 = arith.constant 0 : index
      %12 = vector.load %arg5[%c0_9, %c0_10] : memref<256x128xf32, #tpu.memory_space<vmem>>, vector<256x128xf32>
      %c0_11 = arith.constant 0 : index
      %c0_12 = arith.constant 0 : index
      %13 = vector.load %arg4[%c0_11, %c0_12] : memref<256x128xf32, #tpu.memory_space<vmem>>, vector<256x128xf32>
      tpu.vector_store %arg4[%c0_11, %c0_12], %12 {strides = array<i32>} : memref<256x128xf32, #tpu.memory_space<vmem>>, vector<256x128xf32>,
    } else {
    }
    return
  }
  func.func @transform_0(%arg0: i32, %arg1: i32) -> (i32, i32) {
    %c0_i32 = arith.constant 0 : i32
    return %arg0, %arg1 : i32, i32
  }
  func.func @transform_1(%arg0: i32, %arg1: i32) -> (i32, i32) {
    %c0_i32 = arith.constant 0 : i32
    %c0_i32_0 = arith.constant 0 : i32
    return %arg1, %c0_i32 : i32, i32
  }
  func.func @transform_2(%arg0: i32, %arg1: i32) -> (i32, i32) {
    %c0_i32 = arith.constant 0 : i32
    %c0_i32_0 = arith.constant 0 : i32
    return %arg0, %c0_i32 : i32, i32
  }
}

module attributes {stable_mosaic.version = 11 : i64} {
  func.func @_loss_kernel(%arg0: memref<8x128xf32, #tpu.memory_space<vmem>>, %arg1: memref<8x128xf32, #tpu.memory_space<vmem>>, %arg2: memref<8x3x128xf32, #tpu.memory_space<vmem>>, %arg3: memref<8x3x128xf32, #tpu.memory_space<vmem>>, %arg4: memref<1x1xf32, #tpu.memory_space<vmem>>, %arg5: memref<1x1xf32, #tpu.memory_space<vmem>>) attributes {dimension_semantics = [], scalar_prefetch = 0 : i64, scratch_operands = 0 : i64, tpu.core_type = #tpu.core_type<tc>} {
    %c0 = arith.constant 0 : index
    %c0_0 = arith.constant 0 : index
    %0 = vector.load %arg0[%c0, %c0_0] : memref<8x128xf32, #tpu.memory_space<vmem>>, vector<8x128xf32>
    %c0_1 = arith.constant 0 : index
    %c0_2 = arith.constant 0 : index
    %1 = vector.load %arg1[%c0_1, %c0_2] : memref<8x128xf32, #tpu.memory_space<vmem>>, vector<8x128xf32>
    %c0_3 = arith.constant 0 : index
    %c0_4 = arith.constant 0 : index
    %c0_5 = arith.constant 0 : index
    %2 = vector.load %arg2[%c0_3, %c0_4, %c0_5] : memref<8x3x128xf32, #tpu.memory_space<vmem>>, vector<8x3x128xf32>
    %c0_6 = arith.constant 0 : index
    %c0_7 = arith.constant 0 : index
    %c0_8 = arith.constant 0 : index
    %3 = vector.load %arg3[%c0_6, %c0_7, %c0_8] : memref<8x3x128xf32, #tpu.memory_space<vmem>>, vector<8x3x128xf32>
    %4 = vector.shape_cast %0 : vector<8x128xf32> to vector<8x1x128xf32>
    %5 = vector.shape_cast %4 : vector<8x1x128xf32> to vector<8x1x128xf32>
    %6 = vector.broadcast %5 : vector<8x1x128xf32> to vector<8x3x128xf32>
    %7 = arith.mulf %6, %2 : vector<8x3x128xf32>
    %cst = arith.constant dense<0.000000e+00> : vector<8x3xf32>
    %8 = vector.multi_reduction <add>, %7, %cst [2] : vector<8x3x128xf32> to vector<8x3xf32>
    %9 = vector.shape_cast %1 : vector<8x128xf32> to vector<8x1x128xf32>
    %10 = vector.shape_cast %9 : vector<8x1x128xf32> to vector<8x1x128xf32>
    %11 = vector.broadcast %10 : vector<8x1x128xf32> to vector<8x3x128xf32>
    %12 = arith.mulf %11, %3 : vector<8x3x128xf32>
    %cst_9 = arith.constant dense<0.000000e+00> : vector<8x3xf32>
    %13 = vector.multi_reduction <add>, %12, %cst_9 [2] : vector<8x3x128xf32> to vector<8x3xf32>
    %14 = arith.addf %8, %13 : vector<8x3xf32>
    %15 = vector.extract_strided_slice %14 {offsets = [0, 0], sizes = [8, 1], strides = [1, 1]} : vector<8x3xf32> to vector<8x1xf32>
    %16 = vector.extract_strided_slice %14 {offsets = [0, 1], sizes = [8, 2], strides = [1, 1]} : vector<8x3xf32> to vector<8x2xf32>
    %17 = vector.broadcast %15 : vector<8x1xf32> to vector<8x2xf32>
    %18 = arith.subf %17, %16 : vector<8x2xf32>
    %cst_10 = arith.constant 0.000000e+00 : f32
    %19 = vector.broadcast %cst_10 : f32 to vector<8x2xf32>
    %20 = arith.subf %19, %18 : vector<8x2xf32>
    %cst_11 = arith.constant 0.000000e+00 : f32
    %21 = vector.broadcast %cst_11 : f32 to vector<8x2xf32>
    %22 = arith.maximumf %20, %21 : vector<8x2xf32>
    %cst_12 = arith.constant 0.000000e+00 : f32
    %23 = vector.broadcast %cst_12 : f32 to vector<8x2xf32>
    %24 = arith.subf %23, %22 : vector<8x2xf32>
    %25 = math.exp %24 : vector<8x2xf32>
    %cst_13 = arith.constant 0.000000e+00 : f32
    %26 = vector.broadcast %cst_13 : f32 to vector<8x2xf32>
    %27 = arith.subf %26, %18 : vector<8x2xf32>
    %28 = arith.subf %27, %22 : vector<8x2xf32>
    %29 = math.exp %28 : vector<8x2xf32>
    %30 = arith.addf %25, %29 : vector<8x2xf32>
    %31 = math.log %30 : vector<8x2xf32>
    %32 = arith.addf %22, %31 : vector<8x2xf32>
    %cst_14 = arith.constant dense<0.000000e+00> : vector<8xf32>
    %33 = vector.multi_reduction <add>, %32, %cst_14 [1] : vector<8x2xf32> to vector<8xf32>
    %34 = vector.shape_cast %33 : vector<8xf32> to vector<8x1xf32>
    %cst_15 = arith.constant dense<0.000000e+00> : vector<1xf32>
    %35 = vector.multi_reduction <add>, %34, %cst_15 [0] : vector<8x1xf32> to vector<1xf32>
    %36 = vector.shape_cast %35 : vector<1xf32> to vector<1x1xf32>
    %cst_16 = arith.constant 6.250000e-02 : f32
    %37 = vector.broadcast %cst_16 : f32 to vector<1x1xf32>
    %38 = arith.mulf %36, %37 : vector<1x1xf32>
    %c0_17 = arith.constant 0 : index
    %c0_18 = arith.constant 0 : index
    %39 = vector.load %arg4[%c0_17, %c0_18] : memref<1x1xf32, #tpu.memory_space<vmem>>, vector<1x1xf32>
    tpu.vector_store %arg4[%c0_17, %c0_18], %38 {strides = array<i32>} : memref<1x1xf32, #tpu.memory_space<vmem>>, vector<1x1xf32>,
    %40 = arith.mulf %0, %0 : vector<8x128xf32>
    %cst_19 = arith.constant dense<0.000000e+00> : vector<8xf32>
    %41 = vector.multi_reduction <add>, %40, %cst_19 [1] : vector<8x128xf32> to vector<8xf32>
    %42 = vector.shape_cast %41 : vector<8xf32> to vector<8x1xf32>
    %cst_20 = arith.constant 1.000000e-24 : f32
    %43 = vector.broadcast %cst_20 : f32 to vector<8x1xf32>
    %44 = arith.maximumf %42, %43 : vector<8x1xf32>
    %45 = math.rsqrt %44 : vector<8x1xf32>
    %46 = vector.broadcast %45 : vector<8x1xf32> to vector<8x128xf32>
    %47 = arith.mulf %0, %46 : vector<8x128xf32>
    %48 = arith.mulf %1, %1 : vector<8x128xf32>
    %cst_21 = arith.constant dense<0.000000e+00> : vector<8xf32>
    %49 = vector.multi_reduction <add>, %48, %cst_21 [1] : vector<8x128xf32> to vector<8xf32>
    %50 = vector.shape_cast %49 : vector<8xf32> to vector<8x1xf32>
    %cst_22 = arith.constant 1.000000e-24 : f32
    %51 = vector.broadcast %cst_22 : f32 to vector<8x1xf32>
    %52 = arith.maximumf %50, %51 : vector<8x1xf32>
    %53 = math.rsqrt %52 : vector<8x1xf32>
    %54 = vector.broadcast %53 : vector<8x1xf32> to vector<8x128xf32>
    %55 = arith.mulf %1, %54 : vector<8x128xf32>
    %56 = arith.mulf %47, %55 : vector<8x128xf32>
    %cst_23 = arith.constant dense<0.000000e+00> : vector<8xf32>
    %57 = vector.multi_reduction <add>, %56, %cst_23 [1] : vector<8x128xf32> to vector<8xf32>
    %58 = vector.shape_cast %57 : vector<8xf32> to vector<8x1xf32>
    %cst_24 = arith.constant 4.000000e+00 : f32
    %59 = vector.broadcast %cst_24 : f32 to vector<8x1xf32>
    %60 = arith.mulf %58, %59 : vector<8x1xf32>
    %cst_25 = arith.constant dense<0.000000e+00> : vector<8x8xf32>
    %61 = tpu.matmul %47, %55, %cst_25 {dimension_numbers = #tpu.dot_dimension_numbers<[1], [1], [0], [0], [0, 0, 1, 0], [], []>} : vector<8x128xf32>, vector<8x128xf32>, vector<8x8xf32> -> vector<8x8xf32>
    %cst_26 = arith.constant 4.000000e+00 : f32
    %62 = vector.broadcast %cst_26 : f32 to vector<8x8xf32>
    %63 = arith.mulf %61, %62 : vector<8x8xf32>
    %cst_27 = arith.constant dense<0xFF800000> : vector<8xf32>
    %64 = vector.multi_reduction <maximumf>, %63, %cst_27 [1] : vector<8x8xf32> to vector<8xf32>
    %65 = vector.shape_cast %64 : vector<8xf32> to vector<8x1xf32>
    %66 = vector.broadcast %65 : vector<8x1xf32> to vector<8x8xf32>
    %67 = arith.subf %63, %66 : vector<8x8xf32>
    %68 = math.exp %67 : vector<8x8xf32>
    %cst_28 = arith.constant dense<0.000000e+00> : vector<8xf32>
    %69 = vector.multi_reduction <add>, %68, %cst_28 [1] : vector<8x8xf32> to vector<8xf32>
    %70 = vector.shape_cast %69 : vector<8xf32> to vector<8x1xf32>
    %71 = math.log %70 : vector<8x1xf32>
    %72 = arith.addf %65, %71 : vector<8x1xf32>
    %73 = arith.subf %60, %72 : vector<8x1xf32>
    %cst_29 = arith.constant dense<0.000000e+00> : vector<1xf32>
    %74 = vector.multi_reduction <add>, %73, %cst_29 [0] : vector<8x1xf32> to vector<1xf32>
    %75 = vector.shape_cast %74 : vector<1xf32> to vector<1x1xf32>
    %cst_30 = arith.constant 0.000000e+00 : f32
    %76 = vector.broadcast %cst_30 : f32 to vector<1x1xf32>
    %77 = arith.subf %76, %75 : vector<1x1xf32>
    %cst_31 = arith.constant 1.250000e-01 : f32
    %78 = vector.broadcast %cst_31 : f32 to vector<1x1xf32>
    %79 = arith.mulf %77, %78 : vector<1x1xf32>
    %80 = vector.extract_strided_slice %2 {offsets = [0, 0, 0], sizes = [8, 1, 128], strides = [1, 1, 1]} : vector<8x3x128xf32> to vector<8x1x128xf32>
    %81 = vector.shape_cast %80 : vector<8x1x128xf32> to vector<8x128xf32>
    %82 = vector.extract_strided_slice %3 {offsets = [0, 0, 0], sizes = [8, 1, 128], strides = [1, 1, 1]} : vector<8x3x128xf32> to vector<8x1x128xf32>
    %83 = vector.shape_cast %82 : vector<8x1x128xf32> to vector<8x128xf32>
    %84 = arith.mulf %81, %81 : vector<8x128xf32>
    %cst_32 = arith.constant dense<0.000000e+00> : vector<8xf32>
    %85 = vector.multi_reduction <add>, %84, %cst_32 [1] : vector<8x128xf32> to vector<8xf32>
    %86 = vector.shape_cast %85 : vector<8xf32> to vector<8x1xf32>
    %cst_33 = arith.constant 1.000000e-24 : f32
    %87 = vector.broadcast %cst_33 : f32 to vector<8x1xf32>
    %88 = arith.maximumf %86, %87 : vector<8x1xf32>
    %89 = math.rsqrt %88 : vector<8x1xf32>
    %90 = vector.broadcast %89 : vector<8x1xf32> to vector<8x128xf32>
    %91 = arith.mulf %81, %90 : vector<8x128xf32>
    %92 = arith.mulf %83, %83 : vector<8x128xf32>
    %cst_34 = arith.constant dense<0.000000e+00> : vector<8xf32>
    %93 = vector.multi_reduction <add>, %92, %cst_34 [1] : vector<8x128xf32> to vector<8xf32>
    %94 = vector.shape_cast %93 : vector<8xf32> to vector<8x1xf32>
    %cst_35 = arith.constant 1.000000e-24 : f32
    %95 = vector.broadcast %cst_35 : f32 to vector<8x1xf32>
    %96 = arith.maximumf %94, %95 : vector<8x1xf32>
    %97 = math.rsqrt %96 : vector<8x1xf32>
    %98 = vector.broadcast %97 : vector<8x1xf32> to vector<8x128xf32>
    %99 = arith.mulf %83, %98 : vector<8x128xf32>
    %100 = arith.mulf %91, %99 : vector<8x128xf32>
    %cst_36 = arith.constant dense<0.000000e+00> : vector<8xf32>
    %101 = vector.multi_reduction <add>, %100, %cst_36 [1] : vector<8x128xf32> to vector<8xf32>
    %102 = vector.shape_cast %101 : vector<8xf32> to vector<8x1xf32>
    %cst_37 = arith.constant 4.000000e+00 : f32
    %103 = vector.broadcast %cst_37 : f32 to vector<8x1xf32>
    %104 = arith.mulf %102, %103 : vector<8x1xf32>
    %cst_38 = arith.constant dense<0.000000e+00> : vector<8x8xf32>
    %105 = tpu.matmul %91, %99, %cst_38 {dimension_numbers = #tpu.dot_dimension_numbers<[1], [1], [0], [0], [0, 0, 1, 0], [], []>} : vector<8x128xf32>, vector<8x128xf32>, vector<8x8xf32> -> vector<8x8xf32>
    %cst_39 = arith.constant 4.000000e+00 : f32
    %106 = vector.broadcast %cst_39 : f32 to vector<8x8xf32>
    %107 = arith.mulf %105, %106 : vector<8x8xf32>
    %cst_40 = arith.constant dense<0xFF800000> : vector<8xf32>
    %108 = vector.multi_reduction <maximumf>, %107, %cst_40 [1] : vector<8x8xf32> to vector<8xf32>
    %109 = vector.shape_cast %108 : vector<8xf32> to vector<8x1xf32>
    %110 = vector.broadcast %109 : vector<8x1xf32> to vector<8x8xf32>
    %111 = arith.subf %107, %110 : vector<8x8xf32>
    %112 = math.exp %111 : vector<8x8xf32>
    %cst_41 = arith.constant dense<0.000000e+00> : vector<8xf32>
    %113 = vector.multi_reduction <add>, %112, %cst_41 [1] : vector<8x8xf32> to vector<8xf32>
    %114 = vector.shape_cast %113 : vector<8xf32> to vector<8x1xf32>
    %115 = math.log %114 : vector<8x1xf32>
    %116 = arith.addf %109, %115 : vector<8x1xf32>
    %117 = arith.subf %104, %116 : vector<8x1xf32>
    %cst_42 = arith.constant dense<0.000000e+00> : vector<1xf32>
    %118 = vector.multi_reduction <add>, %117, %cst_42 [0] : vector<8x1xf32> to vector<1xf32>
    %119 = vector.shape_cast %118 : vector<1xf32> to vector<1x1xf32>
    %cst_43 = arith.constant 0.000000e+00 : f32
    %120 = vector.broadcast %cst_43 : f32 to vector<1x1xf32>
    %121 = arith.subf %120, %119 : vector<1x1xf32>
    %cst_44 = arith.constant 1.250000e-01 : f32
    %122 = vector.broadcast %cst_44 : f32 to vector<1x1xf32>
    %123 = arith.mulf %121, %122 : vector<1x1xf32>
    %124 = arith.addf %79, %123 : vector<1x1xf32>
    %cst_45 = arith.constant 5.000000e-01 : f32
    %125 = vector.broadcast %cst_45 : f32 to vector<1x1xf32>
    %126 = arith.mulf %124, %125 : vector<1x1xf32>
    %c0_46 = arith.constant 0 : index
    %c0_47 = arith.constant 0 : index
    %127 = vector.load %arg5[%c0_46, %c0_47] : memref<1x1xf32, #tpu.memory_space<vmem>>, vector<1x1xf32>
    tpu.vector_store %arg5[%c0_46, %c0_47], %126 {strides = array<i32>} : memref<1x1xf32, #tpu.memory_space<vmem>>, vector<1x1xf32>,
    return
  }
}

</mosaic_0001>

<bundles_post_ra>
// kernel: llmcrec_forward.12
= control target key start
LH: loop header
LB: loop body
LE: loop exit
PB: predicated region body
PF: predicated region fallthrough
CT: control target
= control target key end

     0   :  { %s2851_s0 = inlined_call_operand.vmem [shape: bf16[512,256], index: 0, kind: input, shape index: {}]   ;;  %s2852_s1 = inlined_call_operand.vmem [shape: bf16[256,128], index: 1, kind: input, shape index: {}]   ;;  %s2853_s2 = inlined_call_operand.vmem [shape: f32[512,128], index: 2, kind: input, shape index: {}, may-alias: {2,4}]   ;;  %s2854_s3 = inlined_call_operand.hbm [shape: bf16[512,128], index: 3, kind: output, shape index: {0}]   ;;  %s2855_s4 = inlined_call_operand.vmem [shape: f32[512,128], index: 4, kind: output, shape index: {1}, may-alias: {2,4}]  }
   0x1   :  { %2868 = sst [smem:[#allocation26_spill]] %s2851_s0 }
   0x2   :  { %10 = vsyncpa [#allocation5], 0 }
   0x3   :  { %12 = vsyncpa [#allocation5 + $0x1], 0  ;;  %s2209_s15 = smov 0   ;;  %s2211_s16 = smov 0  }
   0x4   :  { %s2213_s17 = smov 0   ;;  %s2215_s18 = smov 0  }
   0x5   :  { %s2217_s19 = smov 0   ;;  %s2219_s20 = smov 0  }
   0x6   :  { %s2221_s21 = smov 0   ;;  %s2223_s22 = smov 0  }
   0x7   :  { %s2225_s23 = smov 0   ;;  %s2227_s24 = smov 0  }
   0x8 LB: > { %2869 = sst [smem:[#allocation7_spill]] %s2170_s22  ;;  %s1593_s25 = sadd.s32 4294967295, %s2178_s24   ;;  %s2178_s24 = sphi %s2227_s24, %s18_s24   ;;  %s2174_s23 = sphi %s2225_s23, %s2911_s23   ;;  %s2170_s22 = sphi %s2223_s22, %s2910_s22   ;;  %s2166_s21 = sphi %s2221_s21, %s2909_s21   ;;  %s2162_s20 = sphi %s2219_s20, %s2908_s20   ;;  %s2158_s19 = sphi %s2217_s19, %s2916_s19   ;;  %s2154_s18 = sphi %s2215_s18, %s2915_s18   ;;  %s2150_s17 = sphi %s2213_s17, %s2914_s17   ;;  %s2146_s16 = sphi %s2211_s16, %s2913_s16   ;;  %s2142_s15 = sphi %s2209_s15, %s2912_s15  }
   0x9   : > { %2870 = sst [smem:[#allocation8_spill]] %s2174_s23  ;;  %s1594_s26 = sadd.s32 4294967294, %s2178_s24  }
   0xa   : > { %s27_s27 = sadd.s32 1, %s2170_s22  ;;  %s30_s28 = sadd.s32 1, %s2174_s23 }
   0xb   : > { %p28_p0 = scmp.ge.s32.totalorder %s27_s27, 2  ;;  %s39_s29 = sadd.s32 1, %s2158_s19 }
   0xc   : > { %p46_p1 = scmp.ne.s32.totalorder %s2158_s19, %s2154_s18  ;;  %p47_p2 = scmp.eq.s32.totalorder %s2178_s24, 0 }
   0xd   : > { %s2918_s27 = smov (%p28_p0, %s27_s27), 0  ;;  %s2920_s28 = smov (!%p28_p0, %s30_s28), %s2174_s23 }
   0xe   : > { %2871 = sst [smem:[#allocation9_spill]] %s2918_s27  ;;  %s35_s30 = ssub.s32 %s2170_s22, %s2918_s27 }
   0xf   : > { %p2272_p3 = por %p47_p2, %p46_p1  ;;  %p32_p4 = scmp.ge.s32.totalorder %s2920_s28, 2 }
  0x10   : > { %s117_s6 = sadd.s32 1, %s2150_s17  ;;  %p127_p5 = scmp.ne.s32.totalorder %s2150_s17, %s2146_s16 }
  0x11   : > { %p128_p6 = scmp.eq.s32.totalorder %s1593_s25, 3  ;;  %s2922_s28 = smov (%p32_p4, %s2920_s28), 0 }
  0x12   : > { %2873 = sst [smem:[#allocation10_spill]] %s2922_s28  ;;  %p133_p8 = scmp.ne.s32.totalorder %s2146_s16, %s2142_s15 }
  0x13   : > { %p2281_p7 = por %p128_p6, %p127_p5  ;;  %s34_s8 = ssub.s32 %s2174_s23, %s2922_s28 }
  0x14   : > { %p134_p9 = scmp.eq.s32.totalorder %s1594_s26, 3  ;;  %s36_s9 = sor.u32 %s35_s30, %s34_s8 }
  0x15   : > { %p115_p10 = scmp.eq.s32.totalorder %s34_s8, 0  ;;  %p37_p11 = scmp.eq.s32.totalorder %s36_s9, 0 }
  0x16   : > { %p2289_p12 = por %p134_p9, %p133_p8  ;;  %p1596_p13 = scmp.ge.s32.totalorder %s2178_s24, 4 }
  0x17   : > { %s2294_s11 = scalar_select %p115_p10, %s2150_s17, %s117_s6  }
  0x18   : > { %s2297_s12 = scalar_select %p37_p11, %s2158_s19, %s39_s29  }
  0x19   : > { %176 = sbr.rel (%p1596_p13) target bundleno = 63 (0x3f), region = 16 }
  0x1a   : > { %2876 = sst [smem:[#allocation11_spill]] %s2297_s12 }
  0x20   : > { %179 = sbr.rel (!%p2272_p3) target bundleno = 63 (0x3f), region = 20  ;;  %s181_s13 = sand.u32 (%p2272_p3), 1, %s2158_s19  }
  0x21   : > { %s1673_s14 = sshll.u32 (%p2272_p3), %s2174_s23, 6  ;;  %s1597_s25 = sshll.u32 (%p2272_p3), %s181_s13, 7 }
  0x22   : > { %s186_s26 = sadd.s32 (%p2272_p3), %s2170_s22, %s1673_s14  ;;  %s2877_s0 = sld [smem:[#allocation26_spill]] (%p2272_p3) }
  0x23   : > { %s1600_s30 = sshll.u32 (%p2272_p3), %s186_s26, 2  ;;  %s2313_s29 = scalar_lea.vmem (%p2272_p3), [#allocation3], %s1597_s25 }
  0x28   : > { %s2308_s6 = scalar_lea.vmem %s2877_s0, %s1600_s30 }
  0x29   : > { %v204_v0 = vld [vmem:[%s2308_s6] sm:$0xf]  ;;  %v206_v1 = vld [vmem:[%s2308_s6 + $0x8] sm:$0xf]  ;;  %v208_v2 = vld [vmem:[%s2308_s6 + $0x10] sm:$0xf] }
  0x2a   : > { %205 = vst [vmem:[%s2313_s29] sm:$0xf] %v204_v0  ;;  %207 = vst [vmem:[%s2313_s29 + $0x4] sm:$0xf] %v206_v1  ;;  %v210_v3 = vld [vmem:[%s2308_s6 + $0x18] sm:$0xf] }
  0x2b   : > { %209 = vst [vmem:[%s2313_s29 + $0x8] sm:$0xf] %v208_v2  ;;  %v212_v4 = vld [vmem:[%s2308_s6 + $0x20] sm:$0xf]  ;;  %v214_v5 = vld [vmem:[%s2308_s6 + $0x28] sm:$0xf] }
  0x2c   : > { %211 = vst [vmem:[%s2313_s29 + $0xc] sm:$0xf] %v210_v3  ;;  %213 = vst [vmem:[%s2313_s29 + $0x10] sm:$0xf] %v212_v4  ;;  %v216_v6 = vld [vmem:[%s2308_s6 + $0x30] sm:$0xf] }
  0x2d   : > { %215 = vst [vmem:[%s2313_s29 + $0x14] sm:$0xf] %v214_v5  ;;  %v218_v7 = vld [vmem:[%s2308_s6 + $0x38] sm:$0xf]  ;;  %v220_v8 = vld [vmem:[%s2308_s6 + $0x40] sm:$0xf] }
  0x2e   : > { %217 = vst [vmem:[%s2313_s29 + $0x18] sm:$0xf] %v216_v6  ;;  %219 = vst [vmem:[%s2313_s29 + $0x1c] sm:$0xf] %v218_v7  ;;  %v222_v9 = vld [vmem:[%s2308_s6 + $0x48] sm:$0xf] }
  0x2f   : > { %221 = vst [vmem:[%s2313_s29 + $0x20] sm:$0xf] %v220_v8  ;;  %v224_v10 = vld [vmem:[%s2308_s6 + $0x50] sm:$0xf]  ;;  %v226_v11 = vld [vmem:[%s2308_s6 + $0x58] sm:$0xf] }
  0x30   : > { %223 = vst [vmem:[%s2313_s29 + $0x24] sm:$0xf] %v222_v9  ;;  %225 = vst [vmem:[%s2313_s29 + $0x28] sm:$0xf] %v224_v10  ;;  %v228_v12 = vld [vmem:[%s2308_s6 + $0x60] sm:$0xf] }
  0x31   : > { %227 = vst [vmem:[%s2313_s29 + $0x2c] sm:$0xf] %v226_v11  ;;  %v230_v13 = vld [vmem:[%s2308_s6 + $0x68] sm:$0xf]  ;;  %v232_v14 = vld [vmem:[%s2308_s6 + $0x70] sm:$0xf] }
  0x32   : > { %229 = vst [vmem:[%s2313_s29 + $0x30] sm:$0xf] %v228_v12  ;;  %231 = vst [vmem:[%s2313_s29 + $0x34] sm:$0xf] %v230_v13  ;;  %v234_v15 = vld [vmem:[%s2308_s6 + $0x78] sm:$0xf] }
  0x33   : > { %233 = vst [vmem:[%s2313_s29 + $0x38] sm:$0xf] %v232_v14  ;;  %v236_v16 = vld [vmem:[%s2308_s6 + $0x80] sm:$0xf]  ;;  %v238_v17 = vld [vmem:[%s2308_s6 + $0x88] sm:$0xf] }
  0x34   : > { %235 = vst [vmem:[%s2313_s29 + $0x3c] sm:$0xf] %v234_v15  ;;  %237 = vst [vmem:[%s2313_s29 + $0x40] sm:$0xf] %v236_v16  ;;  %v240_v18 = vld [vmem:[%s2308_s6 + $0x90] sm:$0xf] }
  0x35   : > { %239 = vst [vmem:[%s2313_s29 + $0x44] sm:$0xf] %v238_v17  ;;  %v242_v19 = vld [vmem:[%s2308_s6 + $0x98] sm:$0xf]  ;;  %v244_v20 = vld [vmem:[%s2308_s6 + $0xa0] sm:$0xf] }
  0x36   : > { %241 = vst [vmem:[%s2313_s29 + $0x48] sm:$0xf] %v240_v18  ;;  %243 = vst [vmem:[%s2313_s29 + $0x4c] sm:$0xf] %v242_v19  ;;  %v246_v21 = vld [vmem:[%s2308_s6 + $0xa8] sm:$0xf] }
  0x37   : > { %245 = vst [vmem:[%s2313_s29 + $0x50] sm:$0xf] %v244_v20  ;;  %v248_v22 = vld [vmem:[%s2308_s6 + $0xb0] sm:$0xf]  ;;  %v250_v23 = vld [vmem:[%s2308_s6 + $0xb8] sm:$0xf] }
  0x38   : > { %247 = vst [vmem:[%s2313_s29 + $0x54] sm:$0xf] %v246_v21  ;;  %249 = vst [vmem:[%s2313_s29 + $0x58] sm:$0xf] %v248_v22  ;;  %v252_v24 = vld [vmem:[%s2308_s6 + $0xc0] sm:$0xf] }
  0x39   : > { %251 = vst [vmem:[%s2313_s29 + $0x5c] sm:$0xf] %v250_v23  ;;  %v254_v25 = vld [vmem:[%s2308_s6 + $0xc8] sm:$0xf]  ;;  %v256_v26 = vld [vmem:[%s2308_s6 + $0xd0] sm:$0xf] }
  0x3a   : > { %253 = vst [vmem:[%s2313_s29 + $0x60] sm:$0xf] %v252_v24  ;;  %255 = vst [vmem:[%s2313_s29 + $0x64] sm:$0xf] %v254_v25  ;;  %v258_v27 = vld [vmem:[%s2308_s6 + $0xd8] sm:$0xf] }
  0x3b   : > { %257 = vst [vmem:[%s2313_s29 + $0x68] sm:$0xf] %v256_v26  ;;  %v260_v28 = vld [vmem:[%s2308_s6 + $0xe0] sm:$0xf]  ;;  %v262_v29 = vld [vmem:[%s2308_s6 + $0xe8] sm:$0xf] }
  0x3c   : > { %259 = vst [vmem:[%s2313_s29 + $0x6c] sm:$0xf] %v258_v27  ;;  %261 = vst [vmem:[%s2313_s29 + $0x70] sm:$0xf] %v260_v28  ;;  %v264_v30 = vld [vmem:[%s2308_s6 + $0xf0] sm:$0xf] }
  0x3d   : > { %263 = vst [vmem:[%s2313_s29 + $0x74] sm:$0xf] %v262_v29  ;;  %v266_v31 = vld [vmem:[%s2308_s6 + $0xf8] sm:$0xf]  ;;  %265 = vst [vmem:[%s2313_s29 + $0x78] sm:$0xf] %v264_v30 }
  0x3e   : > { %267 = vst [vmem:[%s2313_s29 + $0x7c] sm:$0xf] %v266_v31 }
  0x3f PF: > { %p1601_p0 = scmp.ge.s32.totalorder %s2178_s24, 1  ;;  %p371_p1 = scmp.lt.s32.totalorder %s2178_s24, 5 }
  0x41   : > { %p372_p2 = pnand %p1601_p0, %p371_p1 }
  0x42   : > { %s378_s5 = sand.u32 (!%p372_p2), 1, %s2154_s18   ;;  %s2858_s13 = sand.u32 (!%p372_p2), 1, %s2146_s16  }
  0x43   : > { %375 = sbr.rel (%p372_p2) target bundleno = 617 (0x269), region = 69  ;;  %s1602_s14 = sshll.u32 (!%p372_p2), %s378_s5, 7 }
  0x44   : > { %s1603_s25 = sshll.u32 (!%p372_p2), %s2858_s13, 7  ;;  %s1604_s26 = sshll.u32 (!%p372_p2), %s2162_s20, 4 }
  0x45   : > { %s1606_s30 = sshll.u32 (!%p372_p2), %s2166_s21, 5  ;;  %p420_p3 = scmp.lt.s32.totalorder (!%p372_p2), %s1604_s26, 31 }
  0x46   : > { %p426_p4 = scmp.lt.s32.totalorder (!%p372_p2), %s1606_s30, 63  ;;  %s2399_s22 = scalar_lea.vmem (!%p372_p2), [#allocation3], %s1602_s14 }
  0x47   : > { %s2401_s12 = scalar_lea.vmem (!%p372_p2), [#allocation4], %s1603_s25  ;;  %p1610_p5 = scmp.ne.s32.totalorder (!%p372_p2), %s2162_s20, 0 }
  0x4a   : > { %s2924_s26 = smov (!%p420_p3, %s1604_s26), 31  ;;  %s2926_s30 = smov (!%p426_p4, %s1606_s30), 63 }
  0x4b   : > { %s1605_s8 = sshll.u32 %s2924_s26, 2  ;;  %s1607_s0 = sshll.u32 %s2926_s30, 3  ;;  %v2180_v32 = vmov (!%p1610_p5), 0.0  }
  0x4c   : > { %s2387_s29 = scalar_lea.vmem %s2852_s1, %s1605_s8  ;;  %s2392_s18 = scalar_lea.vmem %s2853_s2, %s1607_s0  ;;  %443 = vst [vmem:[#allocation2] sm:$0xff] (!%p1610_p5), %v2180_v32  ;;  %444 = vst [vmem:[#allocation2 + $0x8] sm:$0xff] (!%p1610_p5), %v2180_v32 }
  0x4d   : > { %s2397_s23 = scalar_lea.vmem %s2855_s4, %s1607_s0  ;;  %442 = sbr.rel (%p1610_p5) target bundleno = 92 (0x5c), region = 77  ;;  %445 = vst [vmem:[#allocation2 + $0x10] sm:$0xff] (!%p1610_p5), %v2180_v32  ;;  %446 = vst [vmem:[#allocation2 + $0x18] sm:$0xff] (!%p1610_p5), %v2180_v32 }
  0x4e   : > { %447 = vst [vmem:[#allocation2 + $0x20] sm:$0xff] (!%p1610_p5), %v2180_v32  ;;  %448 = vst [vmem:[#allocation2 + $0x28] sm:$0xff] (!%p1610_p5), %v2180_v32 }
  0x4f   : > { %449 = vst [vmem:[#allocation2 + $0x30] sm:$0xff] (!%p1610_p5), %v2180_v32  ;;  %450 = vst [vmem:[#allocation2 + $0x38] sm:$0xff] (!%p1610_p5), %v2180_v32 }
  0x50   : > { %451 = vst [vmem:[#allocation2 + $0x40] sm:$0xff] (!%p1610_p5), %v2180_v32  ;;  %452 = vst [vmem:[#allocation2 + $0x48] sm:$0xff] (!%p1610_p5), %v2180_v32 }
  0x51   : > { %453 = vst [vmem:[#allocation2 + $0x50] sm:$0xff] (!%p1610_p5), %v2180_v32  ;;  %454 = vst [vmem:[#allocation2 + $0x58] sm:$0xff] (!%p1610_p5), %v2180_v32 }
  0x52   : > { %455 = vst [vmem:[#allocation2 + $0x60] sm:$0xff] (!%p1610_p5), %v2180_v32  ;;  %456 = vst [vmem:[#allocation2 + $0x68] sm:$0xff] (!%p1610_p5), %v2180_v32 }
  0x53   : > { %457 = vst [vmem:[#allocation2 + $0x70] sm:$0xff] (!%p1610_p5), %v2180_v32  ;;  %458 = vst [vmem:[#allocation2 + $0x78] sm:$0xff] (!%p1610_p5), %v2180_v32 }
  0x54   : > { %459 = vst [vmem:[#allocation2 + $0x80] sm:$0xff] %v2180_v32  ;;  %460 = vst [vmem:[#allocation2 + $0x88] sm:$0xff] %v2180_v32 }
  0x55   : > { %461 = vst [vmem:[#allocation2 + $0x90] sm:$0xff] %v2180_v32  ;;  %462 = vst [vmem:[#allocation2 + $0x98] sm:$0xff] %v2180_v32 }
  0x56   : > { %463 = vst [vmem:[#allocation2 + $0xa0] sm:$0xff] %v2180_v32  ;;  %464 = vst [vmem:[#allocation2 + $0xa8] sm:$0xff] %v2180_v32 }
  0x57   : > { %465 = vst [vmem:[#allocation2 + $0xb0] sm:$0xff] %v2180_v32  ;;  %466 = vst [vmem:[#allocation2 + $0xb8] sm:$0xff] %v2180_v32 }
  0x58   : > { %467 = vst [vmem:[#allocation2 + $0xc0] sm:$0xff] %v2180_v32  ;;  %468 = vst [vmem:[#allocation2 + $0xc8] sm:$0xff] %v2180_v32 }
  0x59   : > { %469 = vst [vmem:[#allocation2 + $0xd0] sm:$0xff] %v2180_v32  ;;  %470 = vst [vmem:[#allocation2 + $0xd8] sm:$0xff] %v2180_v32 }
  0x5a   : > { %471 = vst [vmem:[#allocation2 + $0xe0] sm:$0xff] %v2180_v32  ;;  %472 = vst [vmem:[#allocation2 + $0xe8] sm:$0xff] %v2180_v32 }
  0x5b   : > { %473 = vst [vmem:[#allocation2 + $0xf0] sm:$0xff] %v2180_v32  ;;  %474 = vst [vmem:[#allocation2 + $0xf8] sm:$0xff] %v2180_v32 }
  0x5c PF: > { %v1980_v33 = vld [vmem:[%s2387_s29] sm:$0xff]   ;;  %v1981_v34 = vld [vmem:[%s2387_s29 + $0x8] sm:$0xff]   ;;  %v1982_v35 = vld [vmem:[%s2387_s29 + $0x10] sm:$0xff]   ;;  %p1635_p6 = scmp.ne.s32.totalorder %s2162_s20, 1 }
  0x5d   : > { %1826 = vmatprep.subr.bf16.mxu0 %v1980_v33  ;;  %1874 = vmatprep.subr.bf16.mxu1 %v1980_v33  ;;  %v1983_v36 = vld [vmem:[%s2387_s29 + $0x18] sm:$0xff]   ;;  %v1988_v37 = vld [vmem:[%s2399_s22] sm:$0xff]   ;;  %v1985_v40 = vld [vmem:[%s2387_s29 + $0x28] sm:$0xff]  }
  0x5e   : > { %1827 = vmatpush3.bf16.msra.mxu0 %v1980_v33  ;;  %1882 = vmatpush3.bf16.msra.mxu1 %v1980_v33  ;;  %v1989_v38 = vld [vmem:[%s2399_s22 + $0x40] sm:$0xff]   ;;  %v1986_v41 = vld [vmem:[%s2387_s29 + $0x30] sm:$0xff]   ;;  %v1987_v42 = vld [vmem:[%s2387_s29 + $0x38] sm:$0xff]  }
  0x5f   : > { %1828 = vmatprep.subr.bf16.mxu0 %v1981_v34  ;;  %1875 = vmatprep.subr.bf16.mxu1 %v1981_v34  ;;  %v1984_v39 = vld [vmem:[%s2387_s29 + $0x20] sm:$0xff]   ;;  %v1990_v43 = vld [vmem:[%s2399_s22 + $0x8] sm:$0xff]   ;;  %v1992_v45 = vld [vmem:[%s2399_s22 + $0x10] sm:$0xff]  }
  0x60   : > { %1842 = vmatprep.mubr.bf16.mxu0 %v1988_v37  ;;  %1858 = vmatprep.mubr.bf16.mxu1 %v1989_v38  ;;  %v1991_v44 = vld [vmem:[%s2399_s22 + $0x48] sm:$0xff]   ;;  %v1993_v46 = vld [vmem:[%s2399_s22 + $0x50] sm:$0xff]   ;;  %v1994_v47 = vld [vmem:[%s2399_s22 + $0x18] sm:$0xff]  }
  0x61   : > { %v1995_v48 = vld [vmem:[%s2399_s22 + $0x58] sm:$0xff]   ;;  %v1996_v49 = vld [vmem:[%s2399_s22 + $0x20] sm:$0xff]   ;;  %v1998_v51 = vld [vmem:[%s2399_s22 + $0x28] sm:$0xff]  }
  0x62   : > { %1829 = vmatpush3.bf16.msra.mxu0 %v1981_v34  ;;  %1883 = vmatpush3.bf16.msra.mxu1 %v1981_v34  ;;  %v1997_v50 = vld [vmem:[%s2399_s22 + $0x60] sm:$0xff]   ;;  %v1999_v52 = vld [vmem:[%s2399_s22 + $0x68] sm:$0xff]   ;;  %v2000_v53 = vld [vmem:[%s2399_s22 + $0x30] sm:$0xff]  }
  0x63   : > { %1830 = vmatprep.subr.bf16.mxu0 %v1982_v35  ;;  %1876 = vmatprep.subr.bf16.mxu1 %v1982_v35  ;;  %v2001_v54 = vld [vmem:[%s2399_s22 + $0x70] sm:$0xff]   ;;  %v2002_v55 = vld [vmem:[%s2399_s22 + $0x38] sm:$0xff]   ;;  %v475_v59 = vld [vmem:[#allocation2] sm:$0xff] }
  0x64   : > { %v2003_v56 = vld [vmem:[%s2399_s22 + $0x78] sm:$0xff]   ;;  %v477_v57 = vld [vmem:[#allocation2 + $0x10] sm:$0xff]  ;;  %v491_v60 = vld [vmem:[#allocation2 + $0x80] sm:$0xff] }
  0x65   : > { %v493_v58 = vld [vmem:[#allocation2 + $0x90] sm:$0xff]  ;;  %v478_v63 = vld [vmem:[#allocation2 + $0x18] sm:$0xff]  ;;  %v476_v5 = vld [vmem:[#allocation2 + $0x8] sm:$0xff] }
  0x66   : > { %1831 = vmatpush3.bf16.msra.mxu0 %v1982_v35  ;;  %1884 = vmatpush3.bf16.msra.mxu1 %v1982_v35  ;;  %v494_v0 = vld [vmem:[#allocation2 + $0x98] sm:$0xff]  ;;  %v492_v6 = vld [vmem:[#allocation2 + $0x88] sm:$0xff]  ;;  %v481_v17 = vld [vmem:[#allocation2 + $0x30] sm:$0xff] }
  0x67   : > { %1832 = vmatprep.subr.bf16.mxu0 %v1983_v36  ;;  %1877 = vmatprep.subr.bf16.mxu1 %v1983_v36  ;;  %v497_v18 = vld [vmem:[#allocation2 + $0xb0] sm:$0xff]  ;;  %v479_v19 = vld [vmem:[#allocation2 + $0x20] sm:$0xff]  ;;  %v482_v23 = vld [vmem:[#allocation2 + $0x38] sm:$0xff] }
  0x68   : > { %v495_v20 = vld [vmem:[#allocation2 + $0xa0] sm:$0xff]  ;;  %v498_v24 = vld [vmem:[#allocation2 + $0xb8] sm:$0xff]  ;;  %v480_v29 = vld [vmem:[#allocation2 + $0x28] sm:$0xff] }
  0x69   : > { %v496_v30 = vld [vmem:[#allocation2 + $0xa8] sm:$0xff] }
  0x6a   : > { %1833 = vmatpush3.bf16.msra.mxu0 %v1983_v36  ;;  %1885 = vmatpush3.bf16.msra.mxu1 %v1983_v36 }
  0x6b   : > { %1834 = vmatprep.subr.bf16.mxu0 %v1984_v39  ;;  %1878 = vmatprep.subr.bf16.mxu1 %v1984_v39 }
  0x6e   : > { %1835 = vmatpush3.bf16.msra.mxu0 %v1984_v39  ;;  %1886 = vmatpush3.bf16.msra.mxu1 %v1984_v39 }
  0x6f   : > { %1836 = vmatprep.subr.bf16.mxu0 %v1985_v40  ;;  %1879 = vmatprep.subr.bf16.mxu1 %v1985_v40 }
  0x72   : > { %1837 = vmatpush3.bf16.msra.mxu0 %v1985_v40  ;;  %1887 = vmatpush3.bf16.msra.mxu1 %v1985_v40 }
  0x73   : > { %1838 = vmatprep.subr.bf16.mxu0 %v1986_v41  ;;  %1880 = vmatprep.subr.bf16.mxu1 %v1986_v41 }
  0x76   : > { %1839 = vmatpush3.bf16.msra.mxu0 %v1986_v41  ;;  %1888 = vmatpush3.bf16.msra.mxu1 %v1986_v41  ;;  %v485_v41 = vld [vmem:[#allocation2 + $0x50] sm:$0xff] }
  0x77   : > { %1840 = vmatprep.subr.bf16.mxu0 %v1987_v42  ;;  %1881 = vmatprep.subr.bf16.mxu1 %v1987_v42 }
  0x7a   : > { %1841 = vmatpush3.bf16.msra.mxu0 %v1987_v42  ;;  %1889 = vmatpush3.bf16.msra.mxu1 %v1987_v42  ;;  %v501_v42 = vld [vmem:[#allocation2 + $0xd0] sm:$0xff] }
  0x7d   : > { %1843 = vmatmul.mubr.bf16.vlgmr.msra.gmra.mrb[0].mxu0 %v1990_v43  ;;  %1859 = vmatmul.mubr.bf16.vlgmr.msra.gmra.mrb[0].mxu1 %v1991_v44  ;;  %v483_v43 = vld [vmem:[#allocation2 + $0x40] sm:$0xff] }
  0x7e   : > { %1846 = vmatprep.mubr.bf16.mxu0 %v1992_v45  ;;  %1862 = vmatprep.mubr.bf16.mxu1 %v1993_v46  ;;  %v499_v44 = vld [vmem:[#allocation2 + $0xc0] sm:$0xff] }
  0x85   : > { %1847 = vmatmul.mubr.bf16.gmra.mrb[4].mxu0 %v1994_v47  ;;  %1863 = vmatmul.mubr.bf16.gmra.mrb[4].mxu1 %v1995_v48  ;;  %v486_v47 = vld [vmem:[#allocation2 + $0x58] sm:$0xff] }
  0x86   : > { %1850 = vmatprep.mubr.bf16.mxu0 %v1996_v49  ;;  %1866 = vmatprep.mubr.bf16.mxu1 %v1997_v50  ;;  %v502_v48 = vld [vmem:[#allocation2 + $0xd8] sm:$0xff] }
  0x8d   : > { %1851 = vmatmul.mubr.bf16.gmra.mrb[8].mxu0 %v1998_v51  ;;  %1867 = vmatmul.mubr.bf16.gmra.mrb[8].mxu1 %v1999_v52 }
  0x8e   : > { %1854 = vmatprep.mubr.bf16.mxu0 %v2000_v53  ;;  %1870 = vmatprep.mubr.bf16.mxu1 %v2001_v54  ;;  %v484_v53 = vld [vmem:[#allocation2 + $0x48] sm:$0xff] }
  0x8f   : > { %v500_v54 = vld [vmem:[#allocation2 + $0xc8] sm:$0xff] }
  0x95   : > { %1855 = vmatmul.mubr.bf16.gmra.mrb[12].mxu0 %v2002_v55  ;;  %1871 = vmatmul.mubr.bf16.gmra.mrb[12].mxu1 %v2003_v56 }
 0x150   : > { %v1844_v61 = vpop.f32.mrb[0].mxu0  ;;  %v1860_v62 = vpop.f32.mrb[0].mxu1 }
 0x151   : > { %v862_v1 = vadd.f32 %v1844_v61, %v477_v57  ;;  %v878_v2 = vadd.f32 %v1860_v62, %v493_v58  ;;  %v733_v3 = vpop.f32.mrb[1].mxu0  ;;  %v797_v4 = vpop.f32.mrb[1].mxu1 }
 0x152   : > { %v860_v7 = vadd.f32 %v733_v3, %v475_v59  ;;  %v876_v8 = vadd.f32 %v797_v4, %v491_v60  ;;  %v1845_v9 = vpop.f32.mrb[2].mxu0  ;;  %v1861_v10 = vpop.f32.mrb[2].mxu1  ;;  %v487_v3 = vld [vmem:[#allocation2 + $0x60] sm:$0xff] }
 0x153   : > { %894 = vst [vmem:[#allocation2 + $0x10] sm:$0xff] %v862_v1  ;;  %910 = vst [vmem:[#allocation2 + $0x90] sm:$0xff] %v878_v2  ;;  %v863_v11 = vadd.f32 %v1845_v9, %v478_v63  ;;  %v879_v12 = vadd.f32 %v1861_v10, %v494_v0  ;;  %v736_v13 = vpop.f32.mrb[3].mxu0  ;;  %v800_v14 = vpop.f32.mrb[3].mxu1  ;;  %v489_v1 = vld [vmem:[#allocation2 + $0x70] sm:$0xff]  ;;  %v503_v4 = vld [vmem:[#allocation2 + $0xe0] sm:$0xff] }
 0x154   : > { %892 = vst [vmem:[#allocation2] sm:$0xff] %v860_v7  ;;  %908 = vst [vmem:[#allocation2 + $0x80] sm:$0xff] %v876_v8  ;;  %v861_v15 = vadd.f32 %v736_v13, %v476_v5  ;;  %v877_v16 = vadd.f32 %v800_v14, %v492_v6  ;;  %v505_v2 = vld [vmem:[#allocation2 + $0xf0] sm:$0xff]  ;;  %v490_v7 = vld [vmem:[#allocation2 + $0x78] sm:$0xff] }
 0x155   : > { %895 = vst [vmem:[#allocation2 + $0x18] sm:$0xff] %v863_v11  ;;  %911 = vst [vmem:[#allocation2 + $0x98] sm:$0xff] %v879_v12  ;;  %v506_v8 = vld [vmem:[#allocation2 + $0xf8] sm:$0xff]  ;;  %v488_v13 = vld [vmem:[#allocation2 + $0x68] sm:$0xff] }
 0x156   : > { %893 = vst [vmem:[#allocation2 + $0x8] sm:$0xff] %v861_v15  ;;  %909 = vst [vmem:[#allocation2 + $0x88] sm:$0xff] %v877_v16  ;;  %v504_v14 = vld [vmem:[#allocation2 + $0xe8] sm:$0xff] }
 0x158   : > { %v1848_v21 = vpop.f32.mrb[4].mxu0  ;;  %v1864_v22 = vpop.f32.mrb[4].mxu1 }
 0x159   : > { %v866_v25 = vadd.f32 %v1848_v21, %v481_v17  ;;  %v882_v26 = vadd.f32 %v1864_v22, %v497_v18  ;;  %v749_v27 = vpop.f32.mrb[5].mxu0  ;;  %v813_v28 = vpop.f32.mrb[5].mxu1 }
 0x15a   : > { %v864_v31 = vadd.f32 %v749_v27, %v479_v19  ;;  %v880_v32 = vadd.f32 %v813_v28, %v495_v20  ;;  %v1849_v33 = vpop.f32.mrb[6].mxu0  ;;  %v1865_v34 = vpop.f32.mrb[6].mxu1 }
 0x15b   : > { %898 = vst [vmem:[#allocation2 + $0x30] sm:$0xff] %v866_v25  ;;  %914 = vst [vmem:[#allocation2 + $0xb0] sm:$0xff] %v882_v26  ;;  %v867_v35 = vadd.f32 %v1849_v33, %v482_v23  ;;  %v883_v36 = vadd.f32 %v1865_v34, %v498_v24  ;;  %v752_v37 = vpop.f32.mrb[7].mxu0  ;;  %v816_v38 = vpop.f32.mrb[7].mxu1 }
 0x15c   : > { %896 = vst [vmem:[#allocation2 + $0x20] sm:$0xff] %v864_v31  ;;  %912 = vst [vmem:[#allocation2 + $0xa0] sm:$0xff] %v880_v32  ;;  %v865_v39 = vadd.f32 %v752_v37, %v480_v29  ;;  %v881_v40 = vadd.f32 %v816_v38, %v496_v30 }
 0x15d   : > { %899 = vst [vmem:[#allocation2 + $0x38] sm:$0xff] %v867_v35  ;;  %915 = vst [vmem:[#allocation2 + $0xb8] sm:$0xff] %v883_v36 }
 0x15e   : > { %897 = vst [vmem:[#allocation2 + $0x28] sm:$0xff] %v865_v39  ;;  %913 = vst [vmem:[#allocation2 + $0xa8] sm:$0xff] %v881_v40 }
 0x160   : > { %v1852_v45 = vpop.f32.mrb[8].mxu0  ;;  %v1868_v46 = vpop.f32.mrb[8].mxu1 }
 0x161   : > { %v870_v49 = vadd.f32 %v1852_v45, %v485_v41  ;;  %v886_v50 = vadd.f32 %v1868_v46, %v501_v42  ;;  %v765_v51 = vpop.f32.mrb[9].mxu0  ;;  %v829_v52 = vpop.f32.mrb[9].mxu1 }
 0x162   : > { %v868_v55 = vadd.f32 %v765_v51, %v483_v43  ;;  %v884_v56 = vadd.f32 %v829_v52, %v499_v44  ;;  %v1853_v57 = vpop.f32.mrb[10].mxu0  ;;  %v1869_v58 = vpop.f32.mrb[10].mxu1 }
 0x163   : > { %902 = vst [vmem:[#allocation2 + $0x50] sm:$0xff] %v870_v49  ;;  %918 = vst [vmem:[#allocation2 + $0xd0] sm:$0xff] %v886_v50  ;;  %v871_v59 = vadd.f32 %v1853_v57, %v486_v47  ;;  %v887_v60 = vadd.f32 %v1869_v58, %v502_v48  ;;  %v768_v61 = vpop.f32.mrb[11].mxu0  ;;  %v832_v62 = vpop.f32.mrb[11].mxu1 }
 0x164   : > { %900 = vst [vmem:[#allocation2 + $0x40] sm:$0xff] %v868_v55  ;;  %916 = vst [vmem:[#allocation2 + $0xc0] sm:$0xff] %v884_v56  ;;  %v869_v63 = vadd.f32 %v768_v61, %v484_v53  ;;  %v885_v0 = vadd.f32 %v832_v62, %v500_v54 }
 0x165   : > { %903 = vst [vmem:[#allocation2 + $0x58] sm:$0xff] %v871_v59  ;;  %919 = vst [vmem:[#allocation2 + $0xd8] sm:$0xff] %v887_v60 }
 0x166   : > { %901 = vst [vmem:[#allocation2 + $0x48] sm:$0xff] %v869_v63  ;;  %917 = vst [vmem:[#allocation2 + $0xc8] sm:$0xff] %v885_v0 }
 0x168   : > { %v1856_v5 = vpop.f32.mrb[12].mxu0  ;;  %v1872_v6 = vpop.f32.mrb[12].mxu1  ;;  %927 = sbr.rel (%p1635_p6) target bundleno = 591 (0x24f), region = 81 }
 0x169   : > { %v874_v9 = vadd.f32 %v1856_v5, %v489_v1  ;;  %v890_v10 = vadd.f32 %v1872_v6, %v505_v2  ;;  %v781_v11 = vpop.f32.mrb[13].mxu0  ;;  %v845_v12 = vpop.f32.mrb[13].mxu1 }
 0x16a   : > { %v872_v15 = vadd.f32 %v781_v11, %v487_v3  ;;  %v888_v16 = vadd.f32 %v845_v12, %v503_v4  ;;  %v1857_v17 = vpop.f32.mrb[14].mxu0  ;;  %v1873_v18 = vpop.f32.mrb[14].mxu1 }
 0x16b   : > { %906 = vst [vmem:[#allocation2 + $0x70] sm:$0xff] %v874_v9  ;;  %922 = vst [vmem:[#allocation2 + $0xf0] sm:$0xff] %v890_v10  ;;  %v875_v19 = vadd.f32 %v1857_v17, %v490_v7  ;;  %v891_v20 = vadd.f32 %v1873_v18, %v506_v8  ;;  %v784_v21 = vpop.f32.mrb[15].mxu0  ;;  %v848_v22 = vpop.f32.mrb[15].mxu1 }
 0x16c   : > { %904 = vst [vmem:[#allocation2 + $0x60] sm:$0xff] %v872_v15  ;;  %920 = vst [vmem:[#allocation2 + $0xe0] sm:$0xff] %v888_v16  ;;  %v873_v23 = vadd.f32 %v784_v21, %v488_v13  ;;  %v889_v24 = vadd.f32 %v848_v22, %v504_v14 }
 0x16d   : > { %907 = vst [vmem:[#allocation2 + $0x78] sm:$0xff] %v875_v19  ;;  %923 = vst [vmem:[#allocation2 + $0xf8] sm:$0xff] %v891_v20 }
 0x16e   : > { %905 = vst [vmem:[#allocation2 + $0x68] sm:$0xff] %v873_v23  ;;  %921 = vst [vmem:[#allocation2 + $0xe8] sm:$0xff] %v889_v24 }
 0x16f   : > { %v2429_v25 = vld [vmem:[#allocation2 + $0x10] sm:$0xff]  ;;  %v2431_v26 = vld [vmem:[#allocation2] sm:$0xff]  ;;  %v2433_v27 = vld [vmem:[#allocation2 + $0x18] sm:$0xff] }
 0x170   : > { %v962_v28 = vmul.f32 %v2429_v25, %v2429_v25  ;;  %v1122_v29 = vmul.f32 0.33333334, %v2429_v25  ;;  %v960_v30 = vmul.f32 %v2431_v26, %v2431_v26  ;;  %v1120_v31 = vmul.f32 0.33333334, %v2431_v26  ;;  %v2441_v32 = vld [vmem:[#allocation2 + $0x8] sm:$0xff]  ;;  %v2447_v36 = vld [vmem:[#allocation2 + $0x20] sm:$0xff] }
 0x171   : > { %v1123_v33 = vmul.f32 0.33333334, %v2433_v27  ;;  %v1121_v34 = vmul.f32 0.33333334, %v2441_v32  ;;  %v2445_v35 = vld [vmem:[#allocation2 + $0x28] sm:$0xff]  ;;  %v963_v37 = vmul.f32 %v2433_v27, %v2433_v27  ;;  %v961_v38 = vmul.f32 %v2441_v32, %v2441_v32  ;;  %v2455_v41 = vld [vmem:[#allocation2 + $0x38] sm:$0xff] }
 0x172   : > { %996 = vadd.xlane.f32.xlu1 %v962_v28  ;;  %992 = vadd.xlane.f32.xlu0 %v960_v30  ;;  %v1125_v39 = vmul.f32 0.33333334, %v2445_v35  ;;  %v1124_v40 = vmul.f32 0.33333334, %v2447_v36  ;;  %v1127_v44 = vmul.f32 0.33333334, %v2455_v41  ;;  %v965_v50 = vmul.f32 %v2445_v35, %v2445_v35 }
 0x173   : > { %v1715_v42 = vpack.c.bf16 %v1123_v33, %v1122_v29  ;;  %v1710_v43 = vpack.c.bf16 %v1121_v34, %v1120_v31  ;;  %v2458_v45 = vld [vmem:[#allocation2 + $0x30] sm:$0xff]  ;;  %v2461_v48 = vld [vmem:[#allocation2 + $0x48] sm:$0xff]  ;;  %v2463_v49 = vld [vmem:[#allocation2 + $0x40] sm:$0xff]  ;;  %v964_v55 = vmul.f32 %v2447_v36, %v2447_v36  ;;  %v967_v8 = vmul.f32 %v2455_v41, %v2455_v41 }
 0x174   : > { %v1720_v46 = vpack.c.bf16 %v1125_v39, %v1124_v40  ;;  %v1126_v47 = vmul.f32 0.33333334, %v2458_v45  ;;  %v1129_v51 = vmul.f32 0.33333334, %v2461_v48  ;;  %v1128_v52 = vmul.f32 0.33333334, %v2463_v49 }
 0x175   : > { %1787 = vst [vmem:[%s2401_s12 + $0x8] sm:$0xff] %v1715_v42   ;;  %1711 = vst [vmem:[%s2401_s12] sm:$0xff] %v1710_v43   ;;  %v2471_v53 = vld [vmem:[#allocation2 + $0x58] sm:$0xff]  ;;  %v2473_v54 = vld [vmem:[#allocation2 + $0x50] sm:$0xff]  ;;  %v966_v9 = vmul.f32 %v2458_v45, %v2458_v45  ;;  %v969_v30 = vmul.f32 %v2461_v48, %v2461_v48  ;;  %v968_v31 = vmul.f32 %v2463_v49, %v2463_v49 }
 0x176   : > { %998 = vadd.xlane.f32.xlu1 %v963_v37  ;;  %994 = vadd.xlane.f32.xlu0 %v961_v38  ;;  %1788 = vst [vmem:[%s2401_s12 + $0x10] sm:$0xff] %v1720_v46   ;;  %v1725_v56 = vpack.c.bf16 %v1127_v44, %v1126_v47  ;;  %v1131_v57 = vmul.f32 0.33333334, %v2471_v53  ;;  %v1130_v58 = vmul.f32 0.33333334, %v2473_v54  ;;  %v2480_v59 = vld [vmem:[#allocation2 + $0x68] sm:$0xff]  ;;  %v1730_v60 = vpack.c.bf16 %v1129_v51, %v1128_v52 }
 0x177   : > { %v1133_v61 = vmul.f32 0.33333334, %v2480_v59  ;;  %v2483_v62 = vld [vmem:[#allocation2 + $0x60] sm:$0xff]  ;;  %v2485_v63 = vld [vmem:[#allocation2 + $0x78] sm:$0xff]  ;;  %v2490_v3 = vld [vmem:[#allocation2 + $0x70] sm:$0xff] }
 0x178   : > { %1789 = vst [vmem:[%s2401_s12 + $0x18] sm:$0xff] %v1725_v56   ;;  %v1735_v0 = vpack.c.bf16 %v1131_v57, %v1130_v58  ;;  %v1132_v1 = vmul.f32 0.33333334, %v2483_v62  ;;  %v1135_v2 = vmul.f32 0.33333334, %v2485_v63  ;;  %v2492_v4 = vld [vmem:[#allocation2 + $0x88] sm:$0xff]  ;;  %v970_v57 = vmul.f32 %v2473_v54, %v2473_v54 }
 0x179   : > { %1790 = vst [vmem:[%s2401_s12 + $0x20] sm:$0xff] %v1730_v60   ;;  %v1134_v5 = vmul.f32 0.33333334, %v2490_v3  ;;  %v1137_v6 = vmul.f32 0.33333334, %v2492_v4  ;;  %v2497_v7 = vld [vmem:[#allocation2 + $0x80] sm:$0xff] }
 0x17a   : > { %1002 = vadd.xlane.f32.xlu1 %v965_v50  ;;  %1000 = vadd.xlane.f32.xlu0 %v964_v55  ;;  %1791 = vst [vmem:[%s2401_s12 + $0x28] sm:$0xff] %v1735_v0   ;;  %v1740_v10 = vpack.c.bf16 %v1133_v61, %v1132_v1  ;;  %v1136_v11 = vmul.f32 0.33333334, %v2497_v7  ;;  %v2505_v12 = vld [vmem:[#allocation2 + $0x98] sm:$0xff]  ;;  %v2507_v13 = vld [vmem:[#allocation2 + $0x90] sm:$0xff]  ;;  %v2511_v17 = vld [vmem:[#allocation2 + $0xa8] sm:$0xff]  ;;  %v971_v50 = vmul.f32 %v2471_v53, %v2471_v53 }
 0x17b   : > { %v1745_v14 = vpack.c.bf16 %v1135_v2, %v1134_v5  ;;  %v1139_v15 = vmul.f32 0.33333334, %v2505_v12  ;;  %v1138_v16 = vmul.f32 0.33333334, %v2507_v13  ;;  %v1141_v19 = vmul.f32 0.33333334, %v2511_v17 }
 0x17c   : > { %1792 = vst [vmem:[%s2401_s12 + $0x30] sm:$0xff] %v1740_v10   ;;  %v1750_v18 = vpack.c.bf16 %v1137_v6, %v1136_v11  ;;  %v2515_v20 = vld [vmem:[#allocation2 + $0xa0] sm:$0xff]  ;;  %v2517_v21 = vld [vmem:[#allocation2 + $0xb8] sm:$0xff]  ;;  %v2522_v28 = vld [vmem:[#allocation2 + $0xb0] sm:$0xff]  ;;  %v973_v6 = vmul.f32 %v2480_v59, %v2480_v59  ;;  %v974_v10 = vmul.f32 %v2490_v3, %v2490_v3  ;;  %v977_v11 = vmul.f32 %v2492_v4, %v2492_v4 }
 0x17d   : > { %1793 = vst [vmem:[%s2401_s12 + $0x38] sm:$0xff] %v1745_v14   ;;  %v1755_v22 = vpack.c.bf16 %v1139_v15, %v1138_v16  ;;  %v1140_v23 = vmul.f32 0.33333334, %v2515_v20  ;;  %v1143_v24 = vmul.f32 0.33333334, %v2517_v21  ;;  %v2524_v29 = vld [vmem:[#allocation2 + $0xc8] sm:$0xff]  ;;  %v976_v14 = vmul.f32 %v2497_v7, %v2497_v7 }
 0x17e   : > { %1006 = vadd.xlane.f32.xlu1 %v967_v8  ;;  %1004 = vadd.xlane.f32.xlu0 %v966_v9  ;;  %1794 = vst [vmem:[%s2401_s12 + $0x40] sm:$0xff] %v1750_v18   ;;  %v1142_v33 = vmul.f32 0.33333334, %v2522_v28  ;;  %v1145_v34 = vmul.f32 0.33333334, %v2524_v29  ;;  %v2533_v37 = vld [vmem:[#allocation2 + $0xc0] sm:$0xff]  ;;  %v972_v8 = vmul.f32 %v2483_v62, %v2483_v62  ;;  %v975_v9 = vmul.f32 %v2485_v63, %v2485_v63 }
 0x17f   : > { %2878 = vst [vmem:[#allocation12_spill] sm:$0xff] %v2533_v37  ;;  %1795 = vst [vmem:[%s2401_s12 + $0x48] sm:$0xff] %v1755_v22   ;;  %v1760_v38 = vpack.c.bf16 %v1141_v19, %v1140_v23  ;;  %v1144_v39 = vmul.f32 0.33333334, %v2533_v37  ;;  %v2537_v40 = vld [vmem:[#allocation2 + $0xd8] sm:$0xff]  ;;  %v2539_v42 = vld [vmem:[#allocation2 + $0xd0] sm:$0xff]  ;;  %v979_v15 = vmul.f32 %v2505_v12, %v2505_v12  ;;  %v978_v16 = vmul.f32 %v2507_v13, %v2507_v13 }
 0x180   : > { %2879 = vst [vmem:[#allocation13_spill] sm:$0xff] %v2537_v40  ;;  %2880 = vst [vmem:[#allocation14_spill] sm:$0xff] %v2539_v42  ;;  %v1765_v43 = vpack.c.bf16 %v1143_v24, %v1142_v33  ;;  %v1147_v44 = vmul.f32 0.33333334, %v2537_v40  ;;  %v1146_v46 = vmul.f32 0.33333334, %v2539_v42  ;;  %v981_v18 = vmul.f32 %v2511_v17, %v2511_v17 }
 0x181   : > { %v2543_v47 = vld [vmem:[#allocation2 + $0xe8] sm:$0xff]  ;;  %1796 = vst [vmem:[%s2401_s12 + $0x50] sm:$0xff] %v1760_v38   ;;  %v1770_v51 = vpack.c.bf16 %v1145_v34, %v1144_v39  ;;  %v2549_v55 = vld [vmem:[#allocation2 + $0xe0] sm:$0xff]  ;;  %v2551_v56 = vld [vmem:[#allocation2 + $0xf8] sm:$0xff]  ;;  %v980_v19 = vmul.f32 %v2515_v20, %v2515_v20  ;;  %v983_v22 = vmul.f32 %v2517_v21, %v2517_v21  ;;  %v982_v23 = vmul.f32 %v2522_v28, %v2522_v28 }
 0x182   : > { %2881 = vst [vmem:[#allocation15_spill] sm:$0xff] %v2543_v47  ;;  %v1149_v52 = vmul.f32 0.33333334, %v2543_v47  ;;  %2882 = vst [vmem:[#allocation16_spill] sm:$0xff] %v2549_v55  ;;  %1010 = vadd.xlane.f32.xlu1 %v969_v30  ;;  %1008 = vadd.xlane.f32.xlu0 %v968_v31  ;;  %v1775_v58 = vpack.c.bf16 %v1147_v44, %v1146_v46  ;;  %v1148_v60 = vmul.f32 0.33333334, %v2549_v55 }
 0x183   : > { %2883 = vst [vmem:[#allocation17_spill] sm:$0xff] %v2551_v56  ;;  %1797 = vst [vmem:[%s2401_s12 + $0x58] sm:$0xff] %v1765_v43   ;;  %v1151_v61 = vmul.f32 0.33333334, %v2551_v56  ;;  %v2558_v0 = vld [vmem:[#allocation2 + $0xf0] sm:$0xff]  ;;  %v985_v24 = vmul.f32 %v2524_v29, %v2524_v29  ;;  %v984_v30 = vmul.f32 %v2533_v37, %v2533_v37  ;;  %v987_v31 = vmul.f32 %v2537_v40, %v2537_v40 }
 0x184   : > { %2884 = vst [vmem:[#allocation18_spill] sm:$0xff] %v2558_v0  ;;  %1798 = vst [vmem:[%s2401_s12 + $0x60] sm:$0xff] %v1770_v51   ;;  %v1150_v1 = vmul.f32 0.33333334, %v2558_v0  ;;  %v1780_v2 = vpack.c.bf16 %v1149_v52, %v1148_v60  ;;  %v986_v33 = vmul.f32 %v2539_v42, %v2539_v42  ;;  %v989_v34 = vmul.f32 %v2543_v47, %v2543_v47  ;;  %v2685_v47 = vld [vmem:[%s2392_s18 + $0xe0] sm:$0xff]  ;;  %v2688_v42 = vld [vmem:[%s2392_s18 + $0xf8] sm:$0xff] }
 0x185   : > { %1799 = vst [vmem:[%s2401_s12 + $0x68] sm:$0xff] %v1775_v58   ;;  %v988_v38 = vmul.f32 %v2549_v55, %v2549_v55  ;;  %v991_v39 = vmul.f32 %v2551_v56, %v2551_v56  ;;  %v990_v43 = vmul.f32 %v2558_v0, %v2558_v0  ;;  %v2678_v0 = vld [vmem:[%s2392_s18 + $0xd0] sm:$0xff]  ;;  %v2681_v56 = vld [vmem:[%s2392_s18 + $0xe8] sm:$0xff]  ;;  %2890 = vst [vmem:[#allocation24_spill] sm:$0xff] %v2688_v42 }
 0x186   : > { %v1785_v5 = vpack.c.bf16 %v1151_v61, %v1150_v1  ;;  %1014 = vadd.xlane.f32.xlu1 %v971_v50  ;;  %1012 = vadd.xlane.f32.xlu0 %v970_v57  ;;  %1800 = vst [vmem:[%s2401_s12 + $0x70] sm:$0xff] %v1780_v2   ;;  %2888 = vst [vmem:[#allocation22_spill] sm:$0xff] %v2678_v0  ;;  %v2691_v40 = vld [vmem:[%s2392_s18 + $0xf0] sm:$0xff] }
 0x187   : > { %2889 = vst [vmem:[#allocation23_spill] sm:$0xff] %v2681_v56  ;;  %2891 = vst [vmem:[#allocation25_spill] sm:$0xff] %v2691_v40 }
 0x188   : > { %1801 = vst [vmem:[%s2401_s12 + $0x78] sm:$0xff] %v1785_v5  }
 0x18a   : > { %1018 = vadd.xlane.f32.xlu1 %v973_v6  ;;  %1016 = vadd.xlane.f32.xlu0 %v972_v8  ;;  %v1314_v6 = vld [vmem:[%s2392_s18 + $0x10] sm:$0xff]  ;;  %v1312_v8 = vld [vmem:[%s2392_s18] sm:$0xff] }
 0x18e   : > { %1022 = vadd.xlane.f32.xlu1 %v975_v9  ;;  %1020 = vadd.xlane.f32.xlu0 %v974_v10 }
 0x192   : > { %1026 = vadd.xlane.f32.xlu1 %v977_v11  ;;  %1024 = vadd.xlane.f32.xlu0 %v976_v14  ;;  %v1315_v14 = vld [vmem:[%s2392_s18 + $0x18] sm:$0xff] }
 0x196   : > { %1030 = vadd.xlane.f32.xlu1 %v979_v15  ;;  %1028 = vadd.xlane.f32.xlu0 %v978_v16  ;;  %v1313_v15 = vld [vmem:[%s2392_s18 + $0x8] sm:$0xff] }
 0x197   : > { %v1317_v16 = vld [vmem:[%s2392_s18 + $0x28] sm:$0xff] }
 0x19a   : > { %1034 = vadd.xlane.f32.xlu1 %v981_v18  ;;  %1032 = vadd.xlane.f32.xlu0 %v980_v19  ;;  %v2611_v18 = vld [vmem:[%s2392_s18 + $0x20] sm:$0xff]  ;;  %v2614_v19 = vld [vmem:[%s2392_s18 + $0x38] sm:$0xff] }
 0x19e   : > { %1038 = vadd.xlane.f32.xlu1 %v983_v22  ;;  %1036 = vadd.xlane.f32.xlu0 %v982_v23  ;;  %v2617_v23 = vld [vmem:[%s2392_s18 + $0x30] sm:$0xff] }
 0x1a2   : > { %1042 = vadd.xlane.f32.xlu1 %v985_v24  ;;  %1040 = vadd.xlane.f32.xlu0 %v984_v30  ;;  %v2620_v30 = vld [vmem:[%s2392_s18 + $0x48] sm:$0xff] }
 0x1a6   : > { %1046 = vadd.xlane.f32.xlu1 %v987_v31  ;;  %1044 = vadd.xlane.f32.xlu0 %v986_v33  ;;  %v2623_v31 = vld [vmem:[%s2392_s18 + $0x40] sm:$0xff]  ;;  %v2626_v33 = vld [vmem:[%s2392_s18 + $0x58] sm:$0xff] }
 0x1aa   : > { %1050 = vadd.xlane.f32.xlu1 %v989_v34  ;;  %1048 = vadd.xlane.f32.xlu0 %v988_v38  ;;  %v2629_v34 = vld [vmem:[%s2392_s18 + $0x50] sm:$0xff]  ;;  %v2632_v38 = vld [vmem:[%s2392_s18 + $0x68] sm:$0xff] }
 0x1ae   : > { %1054 = vadd.xlane.f32.xlu1 %v991_v39  ;;  %1052 = vadd.xlane.f32.xlu0 %v990_v43  ;;  %v2635_v39 = vld [vmem:[%s2392_s18 + $0x60] sm:$0xff]  ;;  %v2638_v43 = vld [vmem:[%s2392_s18 + $0x78] sm:$0xff] }
 0x1ff   : > { %v997_v44 = vpop.xlane.xlu1 %996  ;;  %v993_v46 = vpop.xlane.xlu0 %992 }
 0x200   : > { %v1058_v50 = vmax.f32 %v997_v44, 1e-24  ;;  %v1056_v51 = vmax.f32 %v993_v46, 1e-24  ;;  %v2641_v44 = vld [vmem:[%s2392_s18 + $0x70] sm:$0xff]  ;;  %v2644_v46 = vld [vmem:[%s2392_s18 + $0x88] sm:$0xff] }
 0x202   : > { %2004 = vrsqrt.f32 %v1058_v50  ;;  %v2647_v50 = vld [vmem:[%s2392_s18 + $0x80] sm:$0xff] }
 0x203   : > { %2006 = vrsqrt.f32 %v1056_v51  ;;  %v999_v52 = vpop.xlane.xlu1 %998  ;;  %v995_v57 = vpop.xlane.xlu0 %994  ;;  %v2650_v51 = vld [vmem:[%s2392_s18 + $0x98] sm:$0xff] }
 0x204   : > { %v1059_v58 = vmax.f32 %v999_v52, 1e-24  ;;  %v1057_v60 = vmax.f32 %v995_v57, 1e-24  ;;  %v2653_v52 = vld [vmem:[%s2392_s18 + $0x90] sm:$0xff]  ;;  %v2656_v57 = vld [vmem:[%s2392_s18 + $0xa8] sm:$0xff] }
 0x206   : > { %2008 = vrsqrt.f32 %v1059_v58  ;;  %v2659_v58 = vld [vmem:[%s2392_s18 + $0xa0] sm:$0xff] }
 0x207   : > { %2010 = vrsqrt.f32 %v1057_v60  ;;  %v1003_v61 = vpop.xlane.xlu1 %1002  ;;  %v1001_v1 = vpop.xlane.xlu0 %1000  ;;  %v2662_v60 = vld [vmem:[%s2392_s18 + $0xb8] sm:$0xff] }
 0x208   : > { %v1061_v2 = vmax.f32 %v1003_v61, 1e-24  ;;  %v1060_v5 = vmax.f32 %v1001_v1, 1e-24  ;;  %v2665_v61 = vld [vmem:[%s2392_s18 + $0xb0] sm:$0xff]  ;;  %v2668_v1 = vld [vmem:[%s2392_s18 + $0xc8] sm:$0xff] }
 0x209   : > { %2885 = vst [vmem:[#allocation19_spill] sm:$0xff] %v2668_v1 }
 0x20a   : > { %2012 = vrsqrt.f32 %v1061_v2  ;;  %v2671_v2 = vld [vmem:[%s2392_s18 + $0xc0] sm:$0xff] }
 0x20b   : > { %2014 = vrsqrt.f32 %v1060_v5  ;;  %v1007_v9 = vpop.xlane.xlu1 %1006  ;;  %v1005_v10 = vpop.xlane.xlu0 %1004  ;;  %2886 = vst [vmem:[#allocation20_spill] sm:$0xff] %v2671_v2 }
 0x20c   : > { %v2005_v11 = vpop.eup %2004  ;;  %v1063_v22 = vmax.f32 %v1007_v9, 1e-24  ;;  %v1062_v24 = vmax.f32 %v1005_v10, 1e-24  ;;  %v2675_v10 = vld [vmem:[%s2392_s18 + $0xd8] sm:$0xff] }
 0x20d   : > { %v2007_v5 = vpop.eup %2006  ;;  %v1346_v9 = vmul.f32 %v2005_v11, %v2429_v25  ;;  %2887 = vst [vmem:[#allocation21_spill] sm:$0xff] %v2675_v10 }
 0x20e   : > { %v1344_v55 = vmul.f32 %v2007_v5, %v2431_v26  ;;  %2016 = vrsqrt.f32 %v1063_v22 }
 0x20f   : > { %v1378_v2 = vadd.f32 %v1346_v9, %v1314_v6  ;;  %2018 = vrsqrt.f32 %v1062_v24  ;;  %v1011_v25 = vpop.xlane.xlu1 %1010  ;;  %v1009_v11 = vpop.xlane.xlu0 %1008 }
 0x210   : > { %v2009_v10 = vpop.eup %2008  ;;  %v1376_v1 = vadd.f32 %v1344_v55, %v1312_v8  ;;  %v1065_v0 = vmax.f32 %v1011_v25, 1e-24  ;;  %v1064_v37 = vmax.f32 %v1009_v11, 1e-24 }
 0x211   : > { %v2011_v56 = vpop.eup %2010  ;;  %v1347_v26 = vmul.f32 %v2009_v10, %v2433_v27  ;;  %1410 = vst [vmem:[%s2397_s23 + $0x10] sm:$0xff] %v1378_v2 }
 0x212   : > { %v1345_v22 = vmul.f32 %v2011_v56, %v2441_v32  ;;  %2020 = vrsqrt.f32 %v1065_v0  ;;  %1408 = vst [vmem:[%s2397_s23] sm:$0xff] %v1376_v1 }
 0x213   : > { %v1379_v5 = vadd.f32 %v1347_v26, %v1315_v14  ;;  %2022 = vrsqrt.f32 %v1064_v37  ;;  %v1015_v6 = vpop.xlane.xlu1 %1014  ;;  %v1013_v24 = vpop.xlane.xlu0 %1012 }
 0x214   : > { %v2013_v9 = vpop.eup %2012  ;;  %v1377_v40 = vadd.f32 %v1345_v22, %v1313_v15  ;;  %v1067_v42 = vmax.f32 %v1015_v6, 1e-24  ;;  %v1066_v55 = vmax.f32 %v1013_v24, 1e-24 }
 0x215   : > { %v2015_v8 = vpop.eup %2014  ;;  %v1349_v25 = vmul.f32 %v2013_v9, %v2445_v35  ;;  %1411 = vst [vmem:[%s2397_s23 + $0x18] sm:$0xff] %v1379_v5 }
 0x216   : > { %v1348_v27 = vmul.f32 %v2015_v8, %v2447_v36  ;;  %2024 = vrsqrt.f32 %v1067_v42  ;;  %1409 = vst [vmem:[%s2397_s23 + $0x8] sm:$0xff] %v1377_v40 }
 0x217   : > { %v1381_v32 = vadd.f32 %v1349_v25, %v1317_v16  ;;  %2026 = vrsqrt.f32 %v1066_v55  ;;  %v1019_v56 = vpop.xlane.xlu1 %1018  ;;  %v1017_v37 = vpop.xlane.xlu0 %1016 }
 0x218   : > { %v2017_v0 = vpop.eup %2016  ;;  %v1380_v14 = vadd.f32 %v1348_v27, %v2611_v18  ;;  %v1069_v15 = vmax.f32 %v1019_v56, 1e-24  ;;  %v1068_v1 = vmax.f32 %v1017_v37, 1e-24 }
 0x219   : > { %v2019_v2 = vpop.eup %2018  ;;  %v1351_v10 = vmul.f32 %v2017_v0, %v2455_v41  ;;  %1413 = vst [vmem:[%s2397_s23 + $0x28] sm:$0xff] %v1381_v32 }
 0x21a   : > { %v1350_v35 = vmul.f32 %v2019_v2, %v2458_v45  ;;  %2028 = vrsqrt.f32 %v1069_v15  ;;  %1412 = vst [vmem:[%s2397_s23 + $0x20] sm:$0xff] %v1380_v14 }
 0x21b   : > { %v1383_v36 = vadd.f32 %v1351_v10, %v2614_v19  ;;  %2030 = vrsqrt.f32 %v1068_v1  ;;  %v1023_v40 = vpop.xlane.xlu1 %1022  ;;  %v1021_v42 = vpop.xlane.xlu0 %1020 }
 0x21c   : > { %v2021_v16 = vpop.eup %2020  ;;  %v1382_v18 = vadd.f32 %v1350_v35, %v2617_v23  ;;  %v1071_v11 = vmax.f32 %v1023_v40, 1e-24  ;;  %v1070_v26 = vmax.f32 %v1021_v42, 1e-24 }
 0x21d   : > { %v2023_v22 = vpop.eup %2022  ;;  %v1353_v41 = vmul.f32 %v2021_v16, %v2461_v48  ;;  %1415 = vst [vmem:[%s2397_s23 + $0x38] sm:$0xff] %v1383_v36 }
 0x21e   : > { %v1352_v45 = vmul.f32 %v2023_v22, %v2463_v49  ;;  %2032 = vrsqrt.f32 %v1071_v11  ;;  %1414 = vst [vmem:[%s2397_s23 + $0x30] sm:$0xff] %v1382_v18 }
 0x21f   : > { %v1385_v19 = vadd.f32 %v1353_v41, %v2620_v30  ;;  %2034 = vrsqrt.f32 %v1070_v26  ;;  %v1027_v5 = vpop.xlane.xlu1 %1026  ;;  %v1025_v6 = vpop.xlane.xlu0 %1024 }
 0x220   : > { %v2025_v24 = vpop.eup %2024  ;;  %v1384_v23 = vadd.f32 %v1352_v45, %v2623_v31  ;;  %v1073_v9 = vmax.f32 %v1027_v5, 1e-24  ;;  %v1072_v55 = vmax.f32 %v1025_v6, 1e-24 }
 0x221   : > { %v2027_v8 = vpop.eup %2026  ;;  %v1355_v48 = vmul.f32 %v2025_v24, %v2471_v53  ;;  %1417 = vst [vmem:[%s2397_s23 + $0x48] sm:$0xff] %v1385_v19 }
 0x222   : > { %v1354_v49 = vmul.f32 %v2027_v8, %v2473_v54  ;;  %2036 = vrsqrt.f32 %v1073_v9  ;;  %1416 = vst [vmem:[%s2397_s23 + $0x40] sm:$0xff] %v1384_v23 }
 0x223   : > { %v1387_v30 = vadd.f32 %v1355_v48, %v2626_v33  ;;  %2038 = vrsqrt.f32 %v1072_v55  ;;  %v1031_v25 = vpop.xlane.xlu1 %1030  ;;  %v1029_v27 = vpop.xlane.xlu0 %1028 }
 0x224   : > { %v2029_v32 = vpop.eup %2028  ;;  %v1386_v31 = vadd.f32 %v1354_v49, %v2629_v34  ;;  %v1075_v56 = vmax.f32 %v1031_v25, 1e-24  ;;  %v1074_v37 = vmax.f32 %v1029_v27, 1e-24 }
 0x225   : > { %v2031_v0 = vpop.eup %2030  ;;  %v1357_v53 = vmul.f32 %v2029_v32, %v2480_v59  ;;  %1419 = vst [vmem:[%s2397_s23 + $0x58] sm:$0xff] %v1387_v30 }
 0x226   : > { %v1356_v54 = vmul.f32 %v2031_v0, %v2483_v62  ;;  %2040 = vrsqrt.f32 %v1075_v56  ;;  %1418 = vst [vmem:[%s2397_s23 + $0x50] sm:$0xff] %v1386_v31 }
 0x227   : > { %v1389_v33 = vadd.f32 %v1357_v53, %v2632_v38  ;;  %2042 = vrsqrt.f32 %v1074_v37  ;;  %v1035_v14 = vpop.xlane.xlu1 %1034  ;;  %v1033_v15 = vpop.xlane.xlu0 %1032 }
 0x228   : > { %v2033_v1 = vpop.eup %2032  ;;  %v1388_v34 = vadd.f32 %v1356_v54, %v2635_v39  ;;  %v1077_v2 = vmax.f32 %v1035_v14, 1e-24  ;;  %v1076_v10 = vmax.f32 %v1033_v15, 1e-24 }
 0x229   : > { %v2035_v35 = vpop.eup %2034  ;;  %v1359_v59 = vmul.f32 %v2033_v1, %v2485_v63  ;;  %1421 = vst [vmem:[%s2397_s23 + $0x68] sm:$0xff] %v1389_v33  ;;  %v2894_v1 = vld [vmem:[#allocation20_spill] sm:$0xff] }
 0x22a   : > { %v1358_v62 = vmul.f32 %v2035_v35, %v2490_v3  ;;  %2044 = vrsqrt.f32 %v1077_v2  ;;  %1420 = vst [vmem:[%s2397_s23 + $0x60] sm:$0xff] %v1388_v34  ;;  %v2895_v2 = vld [vmem:[#allocation13_spill] sm:$0xff]  ;;  %v2896_v35 = vld [vmem:[#allocation14_spill] sm:$0xff] }
 0x22b   : > { %v1391_v38 = vadd.f32 %v1359_v59, %v2638_v43  ;;  %2046 = vrsqrt.f32 %v1076_v10  ;;  %v1039_v36 = vpop.xlane.xlu1 %1038  ;;  %v1037_v40 = vpop.xlane.xlu0 %1036  ;;  %v2897_v59 = vld [vmem:[#allocation21_spill] sm:$0xff] }
 0x22c   : > { %v2037_v42 = vpop.eup %2036  ;;  %v1390_v39 = vadd.f32 %v1358_v62, %v2641_v44  ;;  %v1079_v16 = vmax.f32 %v1039_v36, 1e-24  ;;  %v1078_v18 = vmax.f32 %v1037_v40, 1e-24  ;;  %v2898_v36 = vld [vmem:[#allocation22_spill] sm:$0xff] }
 0x22d   : > { %v2039_v11 = vpop.eup %2038  ;;  %v1361_v63 = vmul.f32 %v2037_v42, %v2492_v4  ;;  %1423 = vst [vmem:[%s2397_s23 + $0x78] sm:$0xff] %v1391_v38 }
 0x22e   : > { %v1360_v3 = vmul.f32 %v2039_v11, %v2497_v7  ;;  %2048 = vrsqrt.f32 %v1079_v16  ;;  %1422 = vst [vmem:[%s2397_s23 + $0x70] sm:$0xff] %v1390_v39  ;;  %v2899_v39 = vld [vmem:[#allocation15_spill] sm:$0xff] }
 0x22f   : > { %v1393_v43 = vadd.f32 %v1361_v63, %v2644_v46  ;;  %2050 = vrsqrt.f32 %v1078_v18  ;;  %v1043_v26 = vpop.xlane.xlu1 %1042  ;;  %v1041_v22 = vpop.xlane.xlu0 %1040  ;;  %v2900_v18 = vld [vmem:[#allocation16_spill] sm:$0xff]  ;;  %v2901_v63 = vld [vmem:[#allocation23_spill] sm:$0xff] }
 0x230   : > { %v2041_v41 = vpop.eup %2040  ;;  %v1392_v44 = vadd.f32 %v1360_v3, %v2647_v50  ;;  %v1081_v45 = vmax.f32 %v1043_v26, 1e-24  ;;  %v1080_v19 = vmax.f32 %v1041_v22, 1e-24 }
 0x231   : > { %v2043_v5 = vpop.eup %2042  ;;  %v1363_v4 = vmul.f32 %v2041_v41, %v2505_v12  ;;  %1425 = vst [vmem:[%s2397_s23 + $0x88] sm:$0xff] %v1393_v43  ;;  %v2902_v41 = vld [vmem:[#allocation17_spill] sm:$0xff] }
 0x232   : > { %v1362_v7 = vmul.f32 %v2043_v5, %v2507_v13  ;;  %2052 = vrsqrt.f32 %v1081_v45  ;;  %1424 = vst [vmem:[%s2397_s23 + $0x80] sm:$0xff] %v1392_v44  ;;  %v2903_v45 = vld [vmem:[#allocation18_spill] sm:$0xff]  ;;  %v2904_v5 = vld [vmem:[#allocation24_spill] sm:$0xff] }
 0x233   : > { %v1395_v46 = vadd.f32 %v1363_v4, %v2650_v51  ;;  %2054 = vrsqrt.f32 %v1080_v19  ;;  %v1047_v6 = vpop.xlane.xlu1 %1046  ;;  %v1045_v24 = vpop.xlane.xlu0 %1044 }
 0x234   : > { %v2045_v23 = vpop.eup %2044  ;;  %v1394_v50 = vadd.f32 %v1362_v7, %v2653_v52  ;;  %v1083_v9 = vmax.f32 %v1047_v6, 1e-24  ;;  %v1082_v55 = vmax.f32 %v1045_v24, 1e-24  ;;  %v2905_v7 = vld [vmem:[#allocation25_spill] sm:$0xff] }
 0x235   : > { %v2047_v8 = vpop.eup %2046  ;;  %v1365_v12 = vmul.f32 %v2045_v23, %v2511_v17  ;;  %1427 = vst [vmem:[%s2397_s23 + $0x98] sm:$0xff] %v1395_v46 }
 0x236   : > { %v1364_v13 = vmul.f32 %v2047_v8, %v2515_v20  ;;  %2056 = vrsqrt.f32 %v1083_v9  ;;  %1426 = vst [vmem:[%s2397_s23 + $0x90] sm:$0xff] %v1394_v50 }
 0x237   : > { %v1397_v51 = vadd.f32 %v1365_v12, %v2656_v57  ;;  %2058 = vrsqrt.f32 %v1082_v55  ;;  %v1051_v48 = vpop.xlane.xlu1 %1050  ;;  %v1049_v49 = vpop.xlane.xlu0 %1048 }
 0x238   : > { %v2049_v30 = vpop.eup %2048  ;;  %v1396_v52 = vadd.f32 %v1364_v13, %v2659_v58  ;;  %v1085_v25 = vmax.f32 %v1051_v48, 1e-24  ;;  %v1084_v27 = vmax.f32 %v1049_v49, 1e-24 }
 0x239   : > { %v2051_v32 = vpop.eup %2050  ;;  %v1367_v17 = vmul.f32 %v2049_v30, %v2517_v21  ;;  %1429 = vst [vmem:[%s2397_s23 + $0xa8] sm:$0xff] %v1397_v51 }
 0x23a   : > { %v1366_v20 = vmul.f32 %v2051_v32, %v2522_v28  ;;  %2060 = vrsqrt.f32 %v1085_v25  ;;  %1428 = vst [vmem:[%s2397_s23 + $0xa0] sm:$0xff] %v1396_v52  ;;  %v2892_v28 = vld [vmem:[#allocation12_spill] sm:$0xff] }
 0x23b   : > { %v1399_v57 = vadd.f32 %v1367_v17, %v2662_v60  ;;  %2062 = vrsqrt.f32 %v1084_v27  ;;  %v1055_v31 = vpop.xlane.xlu1 %1054  ;;  %v1053_v56 = vpop.xlane.xlu0 %1052  ;;  %v2893_v60 = vld [vmem:[#allocation19_spill] sm:$0xff] }
 0x23c   : > { %v2053_v37 = vpop.eup %2052  ;;  %v1398_v58 = vadd.f32 %v1366_v20, %v2665_v61  ;;  %v1087_v0 = vmax.f32 %v1055_v31, 1e-24  ;;  %v1086_v53 = vmax.f32 %v1053_v56, 1e-24 }
 0x23d   : > { %v2055_v54 = vpop.eup %2054  ;;  %v1369_v21 = vmul.f32 %v2053_v37, %v2524_v29  ;;  %1431 = vst [vmem:[%s2397_s23 + $0xb8] sm:$0xff] %v1399_v57 }
 0x23e   : > { %v1368_v33 = vmul.f32 %v2055_v54, %v2892_v28  ;;  %2064 = vrsqrt.f32 %v1087_v0  ;;  %1430 = vst [vmem:[%s2397_s23 + $0xb0] sm:$0xff] %v1398_v58 }
 0x23f   : > { %v1401_v14 = vadd.f32 %v1369_v21, %v2893_v60  ;;  %2066 = vrsqrt.f32 %v1086_v53 }
 0x240   : > { %v2057_v15 = vpop.eup %2056  ;;  %v1400_v34 = vadd.f32 %v1368_v33, %v2894_v1 }
 0x241   : > { %v2059_v61 = vpop.eup %2058  ;;  %v1371_v10 = vmul.f32 %v2057_v15, %v2895_v2  ;;  %1433 = vst [vmem:[%s2397_s23 + $0xc8] sm:$0xff] %v1401_v14 }
 0x242   : > { %v1370_v29 = vmul.f32 %v2059_v61, %v2896_v35  ;;  %1432 = vst [vmem:[%s2397_s23 + $0xc0] sm:$0xff] %v1400_v34 }
 0x243   : > { %v1403_v62 = vadd.f32 %v1371_v10, %v2897_v59 }
 0x244   : > { %v2061_v38 = vpop.eup %2060  ;;  %v1402_v40 = vadd.f32 %v1370_v29, %v2898_v36 }
 0x245   : > { %v2063_v42 = vpop.eup %2062  ;;  %v1373_v16 = vmul.f32 %v2061_v38, %v2899_v39  ;;  %1435 = vst [vmem:[%s2397_s23 + $0xd8] sm:$0xff] %v1403_v62 }
 0x246   : > { %v1372_v11 = vmul.f32 %v2063_v42, %v2900_v18  ;;  %1434 = vst [vmem:[%s2397_s23 + $0xd0] sm:$0xff] %v1402_v40 }
 0x247   : > { %v1405_v3 = vadd.f32 %v1373_v16, %v2901_v63 }
 0x248   : > { %v2065_v43 = vpop.eup %2064  ;;  %v1404_v26 = vadd.f32 %v1372_v11, %v2685_v47 }
 0x249   : > { %v2067_v22 = vpop.eup %2066  ;;  %v1375_v44 = vmul.f32 %v2065_v43, %v2902_v41  ;;  %1437 = vst [vmem:[%s2397_s23 + $0xe8] sm:$0xff] %v1405_v3 }
 0x24a   : > { %1436 = vst [vmem:[%s2397_s23 + $0xe0] sm:$0xff] %v1404_v26  ;;  %v1374_v19 = vmul.f32 %v2067_v22, %v2903_v45 }
 0x24b   : > { %v1407_v4 = vadd.f32 %v1375_v44, %v2904_v5 }
 0x24c   : > { %v1406_v46 = vadd.f32 %v1374_v19, %v2905_v7 }
 0x24d   : > { %1439 = vst [vmem:[%s2397_s23 + $0xf8] sm:$0xff] %v1407_v4 }
 0x24e   : > { %1438 = vst [vmem:[%s2397_s23 + $0xf0] sm:$0xff] %v1406_v46 }
 0x24f PF: > { %s1706_s0 = sshll.u32 %s2166_s21, 11  ;;  %s1459_s28 = sshll.u32 %s2401_s12, 4  ;;  %s2789_s28 = int_to_ptr.vmem [resolvable:$true] %s1459_s28 }
 0x250   : > { %s2786_s27 = scalar_lea.hbm %s2854_s3, %s1706_s0  ;;  %s2906_s13 = sand.u32 1, %s2146_s16  }
 0x251   : > { %s2793_s14 = scalar_lea.sflag [#allocation5], %s2906_s13  ;;  %s2068_s23 = scalar_lea.vmem %s2789_s28, 2048 }
 0x252   : > { %p2069_p8 = scmp.ne.s32.totalorder %s2789_s28, %s2068_s23  ;;  %s2181_s21 = smov [#allocation4]  }
 0x253   : > { %s2072_s25 = sshll.u32 %s2181_s21, 4  ;;  %s2073_s25 = int_to_ptr.vmem [resolvable:$false] %s2072_s25 }
 0x254   : > { %p2070_p9 = pnand %p2069_p8, %p2281_p7  ;;  %s2074_s26 = scalar_lea.vmem %s2073_s25, 4096 }
 0x255   : > { %p2075_p11 = scmp.lt.s32.totalorder %s2789_s28, %s2073_s25  ;;  %p2076_p13 = scmp.lt.s32.totalorder %s2074_s26, %s2068_s23 }
 0x256   : > { %p2071_p10 = pneg %p2070_p9 }
 0x257   : > { %p2077_p0 = por %p2076_p13, %p2075_p11 }
 0x259   : > { %p2078_p1 = pnand %p2077_p0, %p2071_p10 }
 0x25b   : > { %2081 = shalt.err (!%p2078_p1)
}
 0x25c   : > { %s2082_s12 = scalar_lea.hbm %s2786_s27, 2048  ;;  %s2086_s9 = scalar_lea.hbm %s2854_s3, 4096 }
 0x25d   : > { %p2083_p2 = scmp.ne.s32.totalorder %s2786_s27, %s2082_s12  ;;  %p2087_p5 = scmp.lt.u32.totalorder %s2786_s27, %s2854_s3 }
 0x25e   : > { %p2088_p6 = scmp.lt.u32.totalorder %s2086_s9, %s2082_s12  ;;  %p2090_p9 = scmp.lt.u32.totalorder %s2082_s12, %s2786_s27 }
 0x25f   : > { %p2084_p3 = pnand %p2083_p2, %p2281_p7 }
 0x260   : > { %p2089_p8 = por %p2088_p6, %p2087_p5 }
 0x261   : > { %p2085_p4 = pneg %p2084_p3 }
 0x262   : > { %p2091_p10 = por %p2090_p9, %p2089_p8 }
 0x264   : > { %p2092_p11 = pnand %p2091_p10, %p2085_p4 }
 0x266   : > { %2095 = shalt.err (!%p2092_p11)
}
 0x267   : > { %s2182_s18 = smov 64   ;;  %s2183_s5 = smov 4  }
 0x268   : > { %1890 = dma.vmem_to_hbm [thread:$0]  (%p2281_p7), %s2789_s28, 2048, %s2786_s27, %s2793_s14, %s2182_s18, %s2182_s18, %s2183_s5  }
 0x269 PF: > { %p1896_p13 = scmp.ge.s32.totalorder %s2178_s24, 2  ;;  %s1478_s0 = sand.u32 1, %s2142_s15  }
 0x26a   : > { %s1479_s20 = scalar_lea.sflag [#allocation5], %s1478_s0 }
 0x26b   : > { %p1893_p0 = pnand %p1896_p13, %p2289_p12 }
 0x26d   : > { %2137 = dma.done.wait (!%p1893_p0), %s1479_s20, 2048  }
 0x26e   : > { %2139 = vsyncadd (!%p1893_p0), %s1479_s20, 4294965248  ;;  %s18_s24 = sadd.s32 1, %s2178_s24   ;;  %s2907_s7 = sld [smem:[#allocation11_spill]] }
 0x26f   : > { %p15_p1 = scmp.ge.s32.totalorder %s18_s24, 6   ;;  %s2908_s20 = sld [smem:[#allocation7_spill]] }
 0x270   : > { %s2909_s21 = sld [smem:[#allocation8_spill]]  ;;  %s2910_s22 = sld [smem:[#allocation9_spill]] }
 0x271   : > { %s2911_s23 = sld [smem:[#allocation10_spill]]  ;;  %s2912_s15 = smov %s2146_s16 }
 0x272   : > { %s2913_s16 = smov %s2150_s17  ;;  %s2914_s17 = smov %s2294_s11 }
 0x273   : > { %s2915_s18 = smov %s2158_s19  ;;  %17 = sbr.rel (!%p15_p1) target bundleno = 8 (0x8), region = 139 }
 0x274   : > { %s2916_s19 = smov %s2907_s7 }
 0x27a   :  { %1492 = vsyncpa [#allocation5], 1 }
 0x27b   :  { %1494 = vsyncpa [#allocation5 + $0x1], 1 }

// kernel: llmcrec_forward.11
= control target key start
LH: loop header
LB: loop body
LE: loop exit
PB: predicated region body
PF: predicated region fallthrough
CT: control target
= control target key end

     0   :  { %s2054_s15 = smov 0   ;;  %s2056_s16 = smov 0   ;;  %s2649_s0 = inlined_call_operand.vmem [shape: bf16[256,512], index: 0, kind: input, shape index: {}]   ;;  %s2650_s1 = inlined_call_operand.vmem [shape: bf16[512,128], index: 1, kind: input, shape index: {}]   ;;  %s2651_s2 = inlined_call_operand.vmem [shape: f32[256,128], index: 2, kind: input, shape index: {}, may-alias: {2,4}]   ;;  %s2652_s3 = inlined_call_operand.vmem [shape: bf16[256,128], index: 3, kind: output, shape index: {0}]   ;;  %s2653_s4 = inlined_call_operand.vmem [shape: f32[256,128], index: 4, kind: output, shape index: {1}, may-alias: {2,4}]  }
   0x1   :  { %s2058_s17 = smov 0   ;;  %s2060_s18 = smov 0  }
   0x2   :  { %s2062_s19 = smov 0  }
   0x3 LB: > { %s24_s20 = sadd.s32 1, %s2022_s18  ;;  %p43_p1 = scmp.ne.s32.totalorder %s2014_s16, %s2010_s15  ;;  %s2026_s19 = sphi %s2062_s19, %s15_s19   ;;  %s2022_s18 = sphi %s2060_s18, %s2657_s18   ;;  %s2018_s17 = sphi %s2058_s17, %s2656_s17   ;;  %s2014_s16 = sphi %s2056_s16, %s2655_s16   ;;  %s2010_s15 = sphi %s2054_s15, %s2654_s15  }
   0x4   : > { %p25_p0 = scmp.ge.s32.totalorder %s24_s20, 4  ;;  %p44_p2 = scmp.eq.s32.totalorder %s2026_s19, 0 }
   0x5   : > { %s36_s22 = sadd.s32 1, %s2014_s16  ;;  %p1573_p5 = scmp.ge.s32.totalorder %s2026_s19, 4 }
   0x6   : > { %s2659_s20 = smov (%p25_p0, %s24_s20), 0  ;;  %p45_p3 = por %p44_p2, %p43_p1 }
   0x7   : > { %s32_s21 = ssub.s32 %s2022_s18, %s2659_s20  ;;  %182 = sbr.rel (%p1573_p5) target bundleno = 39 (0x27), region = 20 }
   0x8   : > { %p34_p4 = scmp.eq.s32.totalorder %s32_s21, 0 }
   0xa   : > { %s2089_s23 = scalar_select %p34_p4, %s2014_s16, %s36_s22  }
   0xe   : > { %185 = sbr.rel (!%p45_p3) target bundleno = 39 (0x27), region = 24  ;;  %s187_s24 = sand.u32 (%p45_p3), 1, %s2014_s16  }
   0xf   : > { %s1575_s25 = sshll.u32 (%p45_p3), %s2022_s18, 2  ;;  %s1574_s26 = sshll.u32 (%p45_p3), %s187_s24, 7 }
  0x10   : > { %s2097_s29 = scalar_lea.vmem (%p45_p3), %s2649_s0, %s1575_s25  ;;  %s2101_s30 = scalar_lea.vmem (%p45_p3), [#allocation3], %s1574_s26 }
  0x11   : > { %v210_v0 = vld [vmem:[%s2097_s29] sm:$0xf] (%p45_p3)  ;;  %v212_v1 = vld [vmem:[%s2097_s29 + $0x10] sm:$0xf] (%p45_p3) }
  0x12   : > { %211 = vst [vmem:[%s2101_s30] sm:$0xf] (%p45_p3), %v210_v0  ;;  %213 = vst [vmem:[%s2101_s30 + $0x4] sm:$0xf] (%p45_p3), %v212_v1  ;;  %v214_v2 = vld [vmem:[%s2097_s29 + $0x20] sm:$0xf] (%p45_p3) }
  0x13   : > { %v216_v3 = vld [vmem:[%s2097_s29 + $0x30] sm:$0xf] (%p45_p3)  ;;  %v218_v4 = vld [vmem:[%s2097_s29 + $0x40] sm:$0xf] (%p45_p3)  ;;  %215 = vst [vmem:[%s2101_s30 + $0x8] sm:$0xf] (%p45_p3), %v214_v2 }
  0x14   : > { %217 = vst [vmem:[%s2101_s30 + $0xc] sm:$0xf] (%p45_p3), %v216_v3  ;;  %219 = vst [vmem:[%s2101_s30 + $0x10] sm:$0xf] (%p45_p3), %v218_v4  ;;  %v220_v5 = vld [vmem:[%s2097_s29 + $0x50] sm:$0xf] (%p45_p3) }
  0x15   : > { %v222_v6 = vld [vmem:[%s2097_s29 + $0x60] sm:$0xf]  ;;  %v224_v7 = vld [vmem:[%s2097_s29 + $0x70] sm:$0xf]  ;;  %221 = vst [vmem:[%s2101_s30 + $0x14] sm:$0xf] %v220_v5 }
  0x16   : > { %223 = vst [vmem:[%s2101_s30 + $0x18] sm:$0xf] %v222_v6  ;;  %225 = vst [vmem:[%s2101_s30 + $0x1c] sm:$0xf] %v224_v7  ;;  %v226_v8 = vld [vmem:[%s2097_s29 + $0x80] sm:$0xf] }
  0x17   : > { %v228_v9 = vld [vmem:[%s2097_s29 + $0x90] sm:$0xf]  ;;  %v230_v10 = vld [vmem:[%s2097_s29 + $0xa0] sm:$0xf]  ;;  %227 = vst [vmem:[%s2101_s30 + $0x20] sm:$0xf] %v226_v8 }
  0x18   : > { %229 = vst [vmem:[%s2101_s30 + $0x24] sm:$0xf] %v228_v9  ;;  %231 = vst [vmem:[%s2101_s30 + $0x28] sm:$0xf] %v230_v10  ;;  %v232_v11 = vld [vmem:[%s2097_s29 + $0xb0] sm:$0xf] }
  0x19   : > { %v234_v12 = vld [vmem:[%s2097_s29 + $0xc0] sm:$0xf]  ;;  %v236_v13 = vld [vmem:[%s2097_s29 + $0xd0] sm:$0xf]  ;;  %233 = vst [vmem:[%s2101_s30 + $0x2c] sm:$0xf] %v232_v11 }
  0x1a   : > { %235 = vst [vmem:[%s2101_s30 + $0x30] sm:$0xf] %v234_v12  ;;  %237 = vst [vmem:[%s2101_s30 + $0x34] sm:$0xf] %v236_v13  ;;  %v238_v14 = vld [vmem:[%s2097_s29 + $0xe0] sm:$0xf] }
  0x1b   : > { %v240_v15 = vld [vmem:[%s2097_s29 + $0xf0] sm:$0xf]  ;;  %v242_v16 = vld [vmem:[%s2097_s29 + $0x100] sm:$0xf]  ;;  %239 = vst [vmem:[%s2101_s30 + $0x38] sm:$0xf] %v238_v14 }
  0x1c   : > { %241 = vst [vmem:[%s2101_s30 + $0x3c] sm:$0xf] %v240_v15  ;;  %243 = vst [vmem:[%s2101_s30 + $0x40] sm:$0xf] %v242_v16  ;;  %v244_v17 = vld [vmem:[%s2097_s29 + $0x110] sm:$0xf] }
  0x1d   : > { %v246_v18 = vld [vmem:[%s2097_s29 + $0x120] sm:$0xf]  ;;  %v248_v19 = vld [vmem:[%s2097_s29 + $0x130] sm:$0xf]  ;;  %245 = vst [vmem:[%s2101_s30 + $0x44] sm:$0xf] %v244_v17 }
  0x1e   : > { %247 = vst [vmem:[%s2101_s30 + $0x48] sm:$0xf] %v246_v18  ;;  %249 = vst [vmem:[%s2101_s30 + $0x4c] sm:$0xf] %v248_v19  ;;  %v250_v20 = vld [vmem:[%s2097_s29 + $0x140] sm:$0xf] }
  0x1f   : > { %v252_v21 = vld [vmem:[%s2097_s29 + $0x150] sm:$0xf]  ;;  %v254_v22 = vld [vmem:[%s2097_s29 + $0x160] sm:$0xf]  ;;  %251 = vst [vmem:[%s2101_s30 + $0x50] sm:$0xf] %v250_v20 }
  0x20   : > { %253 = vst [vmem:[%s2101_s30 + $0x54] sm:$0xf] %v252_v21  ;;  %255 = vst [vmem:[%s2101_s30 + $0x58] sm:$0xf] %v254_v22  ;;  %v256_v23 = vld [vmem:[%s2097_s29 + $0x170] sm:$0xf] }
  0x21   : > { %v258_v24 = vld [vmem:[%s2097_s29 + $0x180] sm:$0xf]  ;;  %v260_v25 = vld [vmem:[%s2097_s29 + $0x190] sm:$0xf]  ;;  %257 = vst [vmem:[%s2101_s30 + $0x5c] sm:$0xf] %v256_v23 }
  0x22   : > { %259 = vst [vmem:[%s2101_s30 + $0x60] sm:$0xf] %v258_v24  ;;  %261 = vst [vmem:[%s2101_s30 + $0x64] sm:$0xf] %v260_v25  ;;  %v262_v26 = vld [vmem:[%s2097_s29 + $0x1a0] sm:$0xf] }
  0x23   : > { %v264_v27 = vld [vmem:[%s2097_s29 + $0x1b0] sm:$0xf]  ;;  %v266_v28 = vld [vmem:[%s2097_s29 + $0x1c0] sm:$0xf]  ;;  %263 = vst [vmem:[%s2101_s30 + $0x68] sm:$0xf] %v262_v26 }
  0x24   : > { %265 = vst [vmem:[%s2101_s30 + $0x6c] sm:$0xf] %v264_v27  ;;  %267 = vst [vmem:[%s2101_s30 + $0x70] sm:$0xf] %v266_v28  ;;  %v268_v29 = vld [vmem:[%s2097_s29 + $0x1d0] sm:$0xf] }
  0x25   : > { %v270_v30 = vld [vmem:[%s2097_s29 + $0x1e0] sm:$0xf]  ;;  %v272_v31 = vld [vmem:[%s2097_s29 + $0x1f0] sm:$0xf]  ;;  %269 = vst [vmem:[%s2101_s30 + $0x74] sm:$0xf] %v268_v29 }
  0x26   : > { %271 = vst [vmem:[%s2101_s30 + $0x78] sm:$0xf] %v270_v30  ;;  %273 = vst [vmem:[%s2101_s30 + $0x7c] sm:$0xf] %v272_v31 }
  0x27 PF: > { %p1576_p6 = scmp.ge.s32.totalorder %s2026_s19, 1  ;;  %p368_p7 = scmp.lt.s32.totalorder %s2026_s19, 5 }
  0x29   : > { %p369_p8 = pnand %p1576_p6, %p368_p7 }
  0x2a   : > { %s375_s5 = sand.u32 (!%p369_p8), 1, %s2010_s15   ;;  %s1578_s6 = sshll.u32 (!%p369_p8), %s2018_s17, 4 }
  0x2b   : > { %372 = sbr.rel (%p369_p8) target bundleno = 720 (0x2d0), region = 69  ;;  %s1577_s7 = sshll.u32 (!%p369_p8), %s375_s5, 7 }
  0x2c   : > { %p417_p9 = scmp.lt.s32.totalorder (!%p369_p8), %s1578_s6, 63  ;;  %s2174_s12 = scalar_lea.vmem (!%p369_p8), [#allocation3], %s1577_s7 }
  0x2d   : > { %p1580_p10 = scmp.ne.s32.totalorder (!%p369_p8), %s2018_s17, 0 }
  0x32   : > { %s2661_s6 = smov (!%p417_p9, %s1578_s6), 63  ;;  %444 = sbr.rel (%p1580_p10) target bundleno = 68 (0x44), region = 77 }
  0x33   : > { %s1579_s8 = sshll.u32 %s2661_s6, 2  ;;  %v2028_v32 = vmov (!%p1580_p10), 0.0  }
  0x34   : > { %s2172_s11 = scalar_lea.vmem %s2650_s1, %s1579_s8  ;;  %445 = vst [vmem:[#allocation2] sm:$0xff] (!%p1580_p10), %v2028_v32  ;;  %446 = vst [vmem:[#allocation2 + $0x8] sm:$0xff] (!%p1580_p10), %v2028_v32 }
  0x35   : > { %447 = vst [vmem:[#allocation2 + $0x10] sm:$0xff] (!%p1580_p10), %v2028_v32  ;;  %448 = vst [vmem:[#allocation2 + $0x18] sm:$0xff] (!%p1580_p10), %v2028_v32 }
  0x36   : > { %449 = vst [vmem:[#allocation2 + $0x20] sm:$0xff] (!%p1580_p10), %v2028_v32  ;;  %450 = vst [vmem:[#allocation2 + $0x28] sm:$0xff] (!%p1580_p10), %v2028_v32 }
  0x37   : > { %451 = vst [vmem:[#allocation2 + $0x30] sm:$0xff] (!%p1580_p10), %v2028_v32  ;;  %452 = vst [vmem:[#allocation2 + $0x38] sm:$0xff] (!%p1580_p10), %v2028_v32 }
  0x38   : > { %453 = vst [vmem:[#allocation2 + $0x40] sm:$0xff] (!%p1580_p10), %v2028_v32  ;;  %454 = vst [vmem:[#allocation2 + $0x48] sm:$0xff] (!%p1580_p10), %v2028_v32 }
  0x39   : > { %455 = vst [vmem:[#allocation2 + $0x50] sm:$0xff] %v2028_v32  ;;  %456 = vst [vmem:[#allocation2 + $0x58] sm:$0xff] %v2028_v32 }
  0x3a   : > { %457 = vst [vmem:[#allocation2 + $0x60] sm:$0xff] %v2028_v32  ;;  %458 = vst [vmem:[#allocation2 + $0x68] sm:$0xff] %v2028_v32 }
  0x3b   : > { %459 = vst [vmem:[#allocation2 + $0x70] sm:$0xff] %v2028_v32  ;;  %460 = vst [vmem:[#allocation2 + $0x78] sm:$0xff] %v2028_v32 }
  0x3c   : > { %461 = vst [vmem:[#allocation2 + $0x80] sm:$0xff] %v2028_v32  ;;  %462 = vst [vmem:[#allocation2 + $0x88] sm:$0xff] %v2028_v32 }
  0x3d   : > { %463 = vst [vmem:[#allocation2 + $0x90] sm:$0xff] %v2028_v32  ;;  %464 = vst [vmem:[#allocation2 + $0x98] sm:$0xff] %v2028_v32 }
  0x3e   : > { %465 = vst [vmem:[#allocation2 + $0xa0] sm:$0xff] %v2028_v32  ;;  %466 = vst [vmem:[#allocation2 + $0xa8] sm:$0xff] %v2028_v32 }
  0x3f   : > { %467 = vst [vmem:[#allocation2 + $0xb0] sm:$0xff] %v2028_v32  ;;  %468 = vst [vmem:[#allocation2 + $0xb8] sm:$0xff] %v2028_v32 }
  0x40   : > { %469 = vst [vmem:[#allocation2 + $0xc0] sm:$0xff] %v2028_v32  ;;  %470 = vst [vmem:[#allocation2 + $0xc8] sm:$0xff] %v2028_v32 }
  0x41   : > { %471 = vst [vmem:[#allocation2 + $0xd0] sm:$0xff] %v2028_v32  ;;  %472 = vst [vmem:[#allocation2 + $0xd8] sm:$0xff] %v2028_v32 }
  0x42   : > { %473 = vst [vmem:[#allocation2 + $0xe0] sm:$0xff] %v2028_v32  ;;  %474 = vst [vmem:[#allocation2 + $0xe8] sm:$0xff] %v2028_v32 }
  0x43   : > { %475 = vst [vmem:[#allocation2 + $0xf0] sm:$0xff] %v2028_v32  ;;  %476 = vst [vmem:[#allocation2 + $0xf8] sm:$0xff] %v2028_v32 }
  0x44 PF: > { %v1900_v33 = vld [vmem:[%s2172_s11] sm:$0xff]   ;;  %v1901_v34 = vld [vmem:[%s2172_s11 + $0x8] sm:$0xff]   ;;  %v1902_v35 = vld [vmem:[%s2172_s11 + $0x10] sm:$0xff]   ;;  %p1605_p11 = scmp.ne.s32.totalorder %s2018_s17, 3 }
  0x45   : > { %1795 = vmatprep.subr.bf16.mxu0 %v1900_v33  ;;  %1843 = vmatprep.subr.bf16.mxu1 %v1900_v33  ;;  %v1903_v36 = vld [vmem:[%s2172_s11 + $0x18] sm:$0xff]   ;;  %v1908_v37 = vld [vmem:[%s2174_s12] sm:$0xff]   ;;  %v1905_v40 = vld [vmem:[%s2172_s11 + $0x28] sm:$0xff]  }
  0x46   : > { %1796 = vmatpush3.bf16.msra.mxu0 %v1900_v33  ;;  %1851 = vmatpush3.bf16.msra.mxu1 %v1900_v33  ;;  %v1909_v38 = vld [vmem:[%s2174_s12 + $0x40] sm:$0xff]   ;;  %v1906_v41 = vld [vmem:[%s2172_s11 + $0x30] sm:$0xff]   ;;  %v1907_v42 = vld [vmem:[%s2172_s11 + $0x38] sm:$0xff]  }
  0x47   : > { %1797 = vmatprep.subr.bf16.mxu0 %v1901_v34  ;;  %1844 = vmatprep.subr.bf16.mxu1 %v1901_v34  ;;  %v1904_v39 = vld [vmem:[%s2172_s11 + $0x20] sm:$0xff]   ;;  %v1910_v43 = vld [vmem:[%s2174_s12 + $0x8] sm:$0xff]   ;;  %v1912_v45 = vld [vmem:[%s2174_s12 + $0x10] sm:$0xff]  }
  0x48   : > { %1811 = vmatprep.mubr.bf16.mxu0 %v1908_v37  ;;  %1827 = vmatprep.mubr.bf16.mxu1 %v1909_v38  ;;  %v1911_v44 = vld [vmem:[%s2174_s12 + $0x48] sm:$0xff]   ;;  %v1913_v46 = vld [vmem:[%s2174_s12 + $0x50] sm:$0xff]   ;;  %v1914_v47 = vld [vmem:[%s2174_s12 + $0x18] sm:$0xff]  }
  0x49   : > { %v1915_v48 = vld [vmem:[%s2174_s12 + $0x58] sm:$0xff]   ;;  %v1916_v49 = vld [vmem:[%s2174_s12 + $0x20] sm:$0xff]   ;;  %v1918_v51 = vld [vmem:[%s2174_s12 + $0x28] sm:$0xff]  }
  0x4a   : > { %1798 = vmatpush3.bf16.msra.mxu0 %v1901_v34  ;;  %1852 = vmatpush3.bf16.msra.mxu1 %v1901_v34  ;;  %v1917_v50 = vld [vmem:[%s2174_s12 + $0x60] sm:$0xff]   ;;  %v1919_v52 = vld [vmem:[%s2174_s12 + $0x68] sm:$0xff]   ;;  %v1920_v53 = vld [vmem:[%s2174_s12 + $0x30] sm:$0xff]  }
  0x4b   : > { %1799 = vmatprep.subr.bf16.mxu0 %v1902_v35  ;;  %1845 = vmatprep.subr.bf16.mxu1 %v1902_v35  ;;  %v1921_v54 = vld [vmem:[%s2174_s12 + $0x70] sm:$0xff]   ;;  %v1922_v55 = vld [vmem:[%s2174_s12 + $0x38] sm:$0xff]   ;;  %v477_v59 = vld [vmem:[#allocation2] sm:$0xff] }
  0x4c   : > { %v1923_v56 = vld [vmem:[%s2174_s12 + $0x78] sm:$0xff]   ;;  %v479_v57 = vld [vmem:[#allocation2 + $0x10] sm:$0xff]  ;;  %v493_v60 = vld [vmem:[#allocation2 + $0x80] sm:$0xff] }
  0x4d   : > { %v495_v58 = vld [vmem:[#allocation2 + $0x90] sm:$0xff]  ;;  %v480_v63 = vld [vmem:[#allocation2 + $0x18] sm:$0xff]  ;;  %v478_v5 = vld [vmem:[#allocation2 + $0x8] sm:$0xff] }
  0x4e   : > { %1800 = vmatpush3.bf16.msra.mxu0 %v1902_v35  ;;  %1853 = vmatpush3.bf16.msra.mxu1 %v1902_v35  ;;  %v496_v0 = vld [vmem:[#allocation2 + $0x98] sm:$0xff]  ;;  %v494_v6 = vld [vmem:[#allocation2 + $0x88] sm:$0xff]  ;;  %v483_v17 = vld [vmem:[#allocation2 + $0x30] sm:$0xff] }
  0x4f   : > { %1801 = vmatprep.subr.bf16.mxu0 %v1903_v36  ;;  %1846 = vmatprep.subr.bf16.mxu1 %v1903_v36  ;;  %v499_v18 = vld [vmem:[#allocation2 + $0xb0] sm:$0xff]  ;;  %v481_v19 = vld [vmem:[#allocation2 + $0x20] sm:$0xff]  ;;  %v484_v23 = vld [vmem:[#allocation2 + $0x38] sm:$0xff] }
  0x50   : > { %v497_v20 = vld [vmem:[#allocation2 + $0xa0] sm:$0xff]  ;;  %v500_v24 = vld [vmem:[#allocation2 + $0xb8] sm:$0xff]  ;;  %v482_v29 = vld [vmem:[#allocation2 + $0x28] sm:$0xff] }
  0x51   : > { %v498_v30 = vld [vmem:[#allocation2 + $0xa8] sm:$0xff] }
  0x52   : > { %1802 = vmatpush3.bf16.msra.mxu0 %v1903_v36  ;;  %1854 = vmatpush3.bf16.msra.mxu1 %v1903_v36 }
  0x53   : > { %1803 = vmatprep.subr.bf16.mxu0 %v1904_v39  ;;  %1847 = vmatprep.subr.bf16.mxu1 %v1904_v39 }
  0x56   : > { %1804 = vmatpush3.bf16.msra.mxu0 %v1904_v39  ;;  %1855 = vmatpush3.bf16.msra.mxu1 %v1904_v39 }
  0x57   : > { %1805 = vmatprep.subr.bf16.mxu0 %v1905_v40  ;;  %1848 = vmatprep.subr.bf16.mxu1 %v1905_v40 }
  0x5a   : > { %1806 = vmatpush3.bf16.msra.mxu0 %v1905_v40  ;;  %1856 = vmatpush3.bf16.msra.mxu1 %v1905_v40 }
  0x5b   : > { %1807 = vmatprep.subr.bf16.mxu0 %v1906_v41  ;;  %1849 = vmatprep.subr.bf16.mxu1 %v1906_v41 }
  0x5e   : > { %1808 = vmatpush3.bf16.msra.mxu0 %v1906_v41  ;;  %1857 = vmatpush3.bf16.msra.mxu1 %v1906_v41  ;;  %v487_v41 = vld [vmem:[#allocation2 + $0x50] sm:$0xff] }
  0x5f   : > { %1809 = vmatprep.subr.bf16.mxu0 %v1907_v42  ;;  %1850 = vmatprep.subr.bf16.mxu1 %v1907_v42 }
  0x62   : > { %1810 = vmatpush3.bf16.msra.mxu0 %v1907_v42  ;;  %1858 = vmatpush3.bf16.msra.mxu1 %v1907_v42  ;;  %v503_v42 = vld [vmem:[#allocation2 + $0xd0] sm:$0xff] }
  0x65   : > { %1812 = vmatmul.mubr.bf16.vlgmr.msra.gmra.mrb[0].mxu0 %v1910_v43  ;;  %1828 = vmatmul.mubr.bf16.vlgmr.msra.gmra.mrb[0].mxu1 %v1911_v44  ;;  %v485_v43 = vld [vmem:[#allocation2 + $0x40] sm:$0xff] }
  0x66   : > { %1815 = vmatprep.mubr.bf16.mxu0 %v1912_v45  ;;  %1831 = vmatprep.mubr.bf16.mxu1 %v1913_v46  ;;  %v501_v44 = vld [vmem:[#allocation2 + $0xc0] sm:$0xff] }
  0x6d   : > { %1816 = vmatmul.mubr.bf16.gmra.mrb[4].mxu0 %v1914_v47  ;;  %1832 = vmatmul.mubr.bf16.gmra.mrb[4].mxu1 %v1915_v48  ;;  %v488_v47 = vld [vmem:[#allocation2 + $0x58] sm:$0xff] }
  0x6e   : > { %1819 = vmatprep.mubr.bf16.mxu0 %v1916_v49  ;;  %1835 = vmatprep.mubr.bf16.mxu1 %v1917_v50  ;;  %v504_v48 = vld [vmem:[#allocation2 + $0xd8] sm:$0xff] }
  0x75   : > { %1820 = vmatmul.mubr.bf16.gmra.mrb[8].mxu0 %v1918_v51  ;;  %1836 = vmatmul.mubr.bf16.gmra.mrb[8].mxu1 %v1919_v52 }
  0x76   : > { %1823 = vmatprep.mubr.bf16.mxu0 %v1920_v53  ;;  %1839 = vmatprep.mubr.bf16.mxu1 %v1921_v54  ;;  %v486_v53 = vld [vmem:[#allocation2 + $0x48] sm:$0xff] }
  0x77   : > { %v502_v54 = vld [vmem:[#allocation2 + $0xc8] sm:$0xff] }
  0x7d   : > { %1824 = vmatmul.mubr.bf16.gmra.mrb[12].mxu0 %v1922_v55  ;;  %1840 = vmatmul.mubr.bf16.gmra.mrb[12].mxu1 %v1923_v56 }
 0x138   : > { %v1813_v61 = vpop.f32.mrb[0].mxu0  ;;  %v1829_v62 = vpop.f32.mrb[0].mxu1 }
 0x139   : > { %v864_v1 = vadd.f32 %v1813_v61, %v479_v57  ;;  %v880_v2 = vadd.f32 %v1829_v62, %v495_v58  ;;  %v735_v3 = vpop.f32.mrb[1].mxu0  ;;  %v799_v4 = vpop.f32.mrb[1].mxu1 }
 0x13a   : > { %v862_v7 = vadd.f32 %v735_v3, %v477_v59  ;;  %v878_v8 = vadd.f32 %v799_v4, %v493_v60  ;;  %v1814_v9 = vpop.f32.mrb[2].mxu0  ;;  %v1830_v10 = vpop.f32.mrb[2].mxu1  ;;  %v489_v3 = vld [vmem:[#allocation2 + $0x60] sm:$0xff] }
 0x13b   : > { %896 = vst [vmem:[#allocation2 + $0x10] sm:$0xff] %v864_v1  ;;  %912 = vst [vmem:[#allocation2 + $0x90] sm:$0xff] %v880_v2  ;;  %v865_v11 = vadd.f32 %v1814_v9, %v480_v63  ;;  %v881_v12 = vadd.f32 %v1830_v10, %v496_v0  ;;  %v738_v13 = vpop.f32.mrb[3].mxu0  ;;  %v802_v14 = vpop.f32.mrb[3].mxu1  ;;  %v491_v1 = vld [vmem:[#allocation2 + $0x70] sm:$0xff]  ;;  %v505_v4 = vld [vmem:[#allocation2 + $0xe0] sm:$0xff] }
 0x13c   : > { %894 = vst [vmem:[#allocation2] sm:$0xff] %v862_v7  ;;  %910 = vst [vmem:[#allocation2 + $0x80] sm:$0xff] %v878_v8  ;;  %v863_v15 = vadd.f32 %v738_v13, %v478_v5  ;;  %v879_v16 = vadd.f32 %v802_v14, %v494_v6  ;;  %v507_v2 = vld [vmem:[#allocation2 + $0xf0] sm:$0xff]  ;;  %v492_v7 = vld [vmem:[#allocation2 + $0x78] sm:$0xff] }
 0x13d   : > { %897 = vst [vmem:[#allocation2 + $0x18] sm:$0xff] %v865_v11  ;;  %913 = vst [vmem:[#allocation2 + $0x98] sm:$0xff] %v881_v12  ;;  %v508_v8 = vld [vmem:[#allocation2 + $0xf8] sm:$0xff]  ;;  %v490_v13 = vld [vmem:[#allocation2 + $0x68] sm:$0xff] }
 0x13e   : > { %895 = vst [vmem:[#allocation2 + $0x8] sm:$0xff] %v863_v15  ;;  %911 = vst [vmem:[#allocation2 + $0x88] sm:$0xff] %v879_v16  ;;  %v506_v14 = vld [vmem:[#allocation2 + $0xe8] sm:$0xff] }
 0x140   : > { %v1817_v21 = vpop.f32.mrb[4].mxu0  ;;  %v1833_v22 = vpop.f32.mrb[4].mxu1 }
 0x141   : > { %v868_v25 = vadd.f32 %v1817_v21, %v483_v17  ;;  %v884_v26 = vadd.f32 %v1833_v22, %v499_v18  ;;  %v751_v27 = vpop.f32.mrb[5].mxu0  ;;  %v815_v28 = vpop.f32.mrb[5].mxu1 }
 0x142   : > { %v866_v31 = vadd.f32 %v751_v27, %v481_v19  ;;  %v882_v32 = vadd.f32 %v815_v28, %v497_v20  ;;  %v1818_v33 = vpop.f32.mrb[6].mxu0  ;;  %v1834_v34 = vpop.f32.mrb[6].mxu1 }
 0x143   : > { %900 = vst [vmem:[#allocation2 + $0x30] sm:$0xff] %v868_v25  ;;  %916 = vst [vmem:[#allocation2 + $0xb0] sm:$0xff] %v884_v26  ;;  %v869_v35 = vadd.f32 %v1818_v33, %v484_v23  ;;  %v885_v36 = vadd.f32 %v1834_v34, %v500_v24  ;;  %v754_v37 = vpop.f32.mrb[7].mxu0  ;;  %v818_v38 = vpop.f32.mrb[7].mxu1  ;;  %v2202_v25 = vld [vmem:[#allocation2 + $0x10] sm:$0xff] (!%p1605_p11)  ;;  %v2204_v26 = vld [vmem:[#allocation2] sm:$0xff] (!%p1605_p11) }
 0x144   : > { %898 = vst [vmem:[#allocation2 + $0x20] sm:$0xff] %v866_v31  ;;  %914 = vst [vmem:[#allocation2 + $0xa0] sm:$0xff] %v882_v32  ;;  %v867_v39 = vadd.f32 %v754_v37, %v482_v29  ;;  %v883_v40 = vadd.f32 %v818_v38, %v498_v30  ;;  %v2206_v27 = vld [vmem:[#allocation2 + $0x18] sm:$0xff] (!%p1605_p11)  ;;  %v964_v28 = vmul.f32 (!%p1605_p11), %v2202_v25, %v2202_v25  ;;  %v1124_v29 = vmul.f32 (!%p1605_p11), 0.5, %v2202_v25 }
 0x145   : > { %901 = vst [vmem:[#allocation2 + $0x38] sm:$0xff] %v869_v35  ;;  %917 = vst [vmem:[#allocation2 + $0xb8] sm:$0xff] %v885_v36  ;;  %v962_v30 = vmul.f32 (!%p1605_p11), %v2204_v26, %v2204_v26  ;;  %v1122_v31 = vmul.f32 (!%p1605_p11), 0.5, %v2204_v26  ;;  %v2214_v32 = vld [vmem:[#allocation2 + $0x8] sm:$0xff] (!%p1605_p11)  ;;  %v1125_v33 = vmul.f32 (!%p1605_p11), 0.5, %v2206_v27  ;;  %v965_v37 = vmul.f32 (!%p1605_p11), %v2206_v27, %v2206_v27 }
 0x146   : > { %899 = vst [vmem:[#allocation2 + $0x28] sm:$0xff] %v867_v39  ;;  %915 = vst [vmem:[#allocation2 + $0xa8] sm:$0xff] %v883_v40  ;;  %v1123_v34 = vmul.f32 (!%p1605_p11), 0.5, %v2214_v32  ;;  %998 = vadd.xlane.f32.xlu1 (!%p1605_p11), %v964_v28  ;;  %v963_v38 = vmul.f32 (!%p1605_p11), %v2214_v32, %v2214_v32 }
 0x147   : > { %994 = vadd.xlane.f32.xlu0 (!%p1605_p11), %v962_v30 }
 0x148   : > { %v1821_v45 = vpop.f32.mrb[8].mxu0  ;;  %v1837_v46 = vpop.f32.mrb[8].mxu1 }
 0x149   : > { %v872_v49 = vadd.f32 %v1821_v45, %v487_v41  ;;  %v888_v50 = vadd.f32 %v1837_v46, %v503_v42  ;;  %v767_v51 = vpop.f32.mrb[9].mxu0  ;;  %v831_v52 = vpop.f32.mrb[9].mxu1  ;;  %v1684_v42 = vpack.c.bf16 (!%p1605_p11), %v1125_v33, %v1124_v29 }
 0x14a   : > { %v870_v55 = vadd.f32 %v767_v51, %v485_v43  ;;  %v886_v56 = vadd.f32 %v831_v52, %v501_v44  ;;  %v1822_v57 = vpop.f32.mrb[10].mxu0  ;;  %v1838_v58 = vpop.f32.mrb[10].mxu1  ;;  %v1679_v43 = vpack.c.bf16 (!%p1605_p11), %v1123_v34, %v1122_v31  ;;  %v2231_v45 = vld [vmem:[#allocation2 + $0x30] sm:$0xff] (!%p1605_p11)  ;;  %1000 = vadd.xlane.f32.xlu1 (!%p1605_p11), %v965_v37 }
 0x14b   : > { %904 = vst [vmem:[#allocation2 + $0x50] sm:$0xff] %v872_v49  ;;  %920 = vst [vmem:[#allocation2 + $0xd0] sm:$0xff] %v888_v50  ;;  %v873_v59 = vadd.f32 %v1822_v57, %v488_v47  ;;  %v889_v60 = vadd.f32 %v1838_v58, %v504_v48  ;;  %v770_v61 = vpop.f32.mrb[11].mxu0  ;;  %v834_v62 = vpop.f32.mrb[11].mxu1  ;;  %v2220_v36 = vld [vmem:[#allocation2 + $0x20] sm:$0xff] (!%p1605_p11)  ;;  %v1128_v47 = vmul.f32 (!%p1605_p11), 0.5, %v2231_v45  ;;  %996 = vadd.xlane.f32.xlu0 (!%p1605_p11), %v963_v38 }
 0x14c   : > { %902 = vst [vmem:[#allocation2 + $0x40] sm:$0xff] %v870_v55  ;;  %918 = vst [vmem:[#allocation2 + $0xc0] sm:$0xff] %v886_v56  ;;  %v871_v63 = vadd.f32 %v770_v61, %v486_v53  ;;  %v887_v0 = vadd.f32 %v834_v62, %v502_v54  ;;  %v1126_v40 = vmul.f32 (!%p1605_p11), 0.5, %v2220_v36  ;;  %v2228_v41 = vld [vmem:[#allocation2 + $0x38] sm:$0xff] (!%p1605_p11)  ;;  %v966_v55 = vmul.f32 (!%p1605_p11), %v2220_v36, %v2220_v36  ;;  %v2311_v28 = vld [vmem:[#allocation2 + $0xb0] sm:$0xff] (!%p1605_p11) }
 0x14d   : > { %905 = vst [vmem:[#allocation2 + $0x58] sm:$0xff] %v873_v59  ;;  %921 = vst [vmem:[#allocation2 + $0xd8] sm:$0xff] %v889_v60  ;;  %v2218_v35 = vld [vmem:[#allocation2 + $0x28] sm:$0xff] (!%p1605_p11)  ;;  %v1129_v44 = vmul.f32 (!%p1605_p11), 0.5, %v2228_v41  ;;  %v1144_v33 = vmul.f32 (!%p1605_p11), 0.5, %v2311_v28 }
 0x14e   : > { %903 = vst [vmem:[#allocation2 + $0x48] sm:$0xff] %v871_v63  ;;  %919 = vst [vmem:[#allocation2 + $0xc8] sm:$0xff] %v887_v0  ;;  %v1127_v39 = vmul.f32 (!%p1605_p11), 0.5, %v2218_v35  ;;  %v967_v50 = vmul.f32 (!%p1605_p11), %v2218_v35, %v2218_v35 }
 0x14f   : > { %1756 = vst [vmem:[%s2652_s3 + $0x8] sm:$0xff] (!%p1605_p11), %v1684_v42   ;;  %1680 = vst [vmem:[%s2652_s3] sm:$0xff] (!%p1605_p11), %v1679_v43   ;;  %v1694_v56 = vpack.c.bf16 (!%p1605_p11), %v1129_v44, %v1128_v47  ;;  %1002 = vadd.xlane.f32.xlu0 (!%p1605_p11), %v966_v55 }
 0x150   : > { %v1825_v5 = vpop.f32.mrb[12].mxu0  ;;  %v1841_v6 = vpop.f32.mrb[12].mxu1  ;;  %929 = sbr.rel (%p1605_p11) target bundleno = 720 (0x2d0), region = 81  ;;  %v1689_v46 = vpack.c.bf16 (!%p1605_p11), %v1127_v39, %v1126_v40  ;;  %1004 = vadd.xlane.f32.xlu1 (!%p1605_p11), %v967_v50 }
 0x151   : > { %v876_v9 = vadd.f32 %v1825_v5, %v491_v1  ;;  %v892_v10 = vadd.f32 %v1841_v6, %v507_v2  ;;  %v783_v11 = vpop.f32.mrb[13].mxu0  ;;  %v847_v12 = vpop.f32.mrb[13].mxu1  ;;  %1758 = vst [vmem:[%s2652_s3 + $0x18] sm:$0xff] (!%p1605_p11), %v1694_v56  }
 0x152   : > { %v874_v15 = vadd.f32 %v783_v11, %v489_v3  ;;  %v890_v16 = vadd.f32 %v847_v12, %v505_v4  ;;  %v1826_v17 = vpop.f32.mrb[14].mxu0  ;;  %v1842_v18 = vpop.f32.mrb[14].mxu1  ;;  %v2250_v54 = vld [vmem:[#allocation2 + $0x50] sm:$0xff] (!%p1605_p11)  ;;  %1757 = vst [vmem:[%s2652_s3 + $0x10] sm:$0xff] (!%p1605_p11), %v1689_v46   ;;  %v2273_v4 = vld [vmem:[#allocation2 + $0x88] sm:$0xff] (!%p1605_p11)  ;;  %v2290_v12 = vld [vmem:[#allocation2 + $0x98] sm:$0xff] (!%p1605_p11) }
 0x153   : > { %908 = vst [vmem:[#allocation2 + $0x70] sm:$0xff] %v876_v9  ;;  %924 = vst [vmem:[#allocation2 + $0xf0] sm:$0xff] %v892_v10  ;;  %v877_v19 = vadd.f32 %v1826_v17, %v492_v7  ;;  %v893_v20 = vadd.f32 %v1842_v18, %v508_v8  ;;  %v786_v21 = vpop.f32.mrb[15].mxu0  ;;  %v850_v22 = vpop.f32.mrb[15].mxu1  ;;  %v2236_v49 = vld [vmem:[#allocation2 + $0x40] sm:$0xff] (!%p1605_p11)  ;;  %v1132_v58 = vmul.f32 (!%p1605_p11), 0.5, %v2250_v54  ;;  %v969_v8 = vmul.f32 (!%p1605_p11), %v2228_v41, %v2228_v41 }
 0x154   : > { %906 = vst [vmem:[#allocation2 + $0x60] sm:$0xff] %v874_v15  ;;  %922 = vst [vmem:[#allocation2 + $0xe0] sm:$0xff] %v890_v16  ;;  %v875_v23 = vadd.f32 %v786_v21, %v490_v13  ;;  %v891_v24 = vadd.f32 %v850_v22, %v506_v14  ;;  %v1130_v52 = vmul.f32 (!%p1605_p11), 0.5, %v2236_v49  ;;  %v2248_v53 = vld [vmem:[#allocation2 + $0x58] sm:$0xff] (!%p1605_p11)  ;;  %v1139_v6 = vmul.f32 (!%p1605_p11), 0.5, %v2273_v4  ;;  %v2280_v7 = vld [vmem:[#allocation2 + $0x80] sm:$0xff] (!%p1605_p11) }
 0x155   : > { %909 = vst [vmem:[#allocation2 + $0x78] sm:$0xff] %v877_v19  ;;  %925 = vst [vmem:[#allocation2 + $0xf8] sm:$0xff] %v893_v20  ;;  %v2234_v48 = vld [vmem:[#allocation2 + $0x48] sm:$0xff] (!%p1605_p11)  ;;  %v1133_v57 = vmul.f32 (!%p1605_p11), 0.5, %v2248_v53  ;;  %v968_v9 = vmul.f32 (!%p1605_p11), %v2231_v45, %v2231_v45  ;;  %v1138_v11 = vmul.f32 (!%p1605_p11), 0.5, %v2280_v7  ;;  %v2292_v13 = vld [vmem:[#allocation2 + $0x90] sm:$0xff] (!%p1605_p11)  ;;  %1008 = vadd.xlane.f32.xlu1 (!%p1605_p11), %v969_v8  ;;  %v970_v31 = vmul.f32 (!%p1605_p11), %v2236_v49, %v2236_v49 }
 0x156   : > { %907 = vst [vmem:[#allocation2 + $0x68] sm:$0xff] %v875_v23  ;;  %923 = vst [vmem:[#allocation2 + $0xe8] sm:$0xff] %v891_v24  ;;  %v1131_v51 = vmul.f32 (!%p1605_p11), 0.5, %v2234_v48  ;;  %v1141_v15 = vmul.f32 (!%p1605_p11), 0.5, %v2290_v12  ;;  %v1140_v16 = vmul.f32 (!%p1605_p11), 0.5, %v2292_v13  ;;  %v2296_v17 = vld [vmem:[#allocation2 + $0xa8] sm:$0xff] (!%p1605_p11)  ;;  %v971_v30 = vmul.f32 (!%p1605_p11), %v2234_v48, %v2234_v48 }
 0x157   : > { %v1704_v0 = vpack.c.bf16 %v1133_v57, %v1132_v58  ;;  %v1719_v18 = vpack.c.bf16 %v1139_v6, %v1138_v11  ;;  %v1143_v19 = vmul.f32 0.5, %v2296_v17  ;;  %v2302_v20 = vld [vmem:[#allocation2 + $0xa0] sm:$0xff]  ;;  %v2304_v21 = vld [vmem:[#allocation2 + $0xb8] sm:$0xff]  ;;  %v2313_v29 = vld [vmem:[#allocation2 + $0xc8] sm:$0xff]  ;;  %1006 = vadd.xlane.f32.xlu0 %v968_v9  ;;  %v973_v50 = vmul.f32 %v2248_v53, %v2248_v53 }
 0x158   : > { %v1699_v60 = vpack.c.bf16 %v1131_v51, %v1130_v52  ;;  %v1724_v22 = vpack.c.bf16 %v1141_v15, %v1140_v16  ;;  %v1142_v23 = vmul.f32 0.5, %v2302_v20  ;;  %v1145_v24 = vmul.f32 0.5, %v2304_v21  ;;  %v2324_v37 = vld [vmem:[#allocation2 + $0xc0] sm:$0xff]  ;;  %v2330_v40 = vld [vmem:[#allocation2 + $0xd8] sm:$0xff]  ;;  %v2332_v42 = vld [vmem:[#allocation2 + $0xd0] sm:$0xff] }
 0x159   : > { %1760 = vst [vmem:[%s2652_s3 + $0x28] sm:$0xff] %v1704_v0   ;;  %1763 = vst [vmem:[%s2652_s3 + $0x40] sm:$0xff] %v1719_v18   ;;  %v1147_v34 = vmul.f32 0.5, %v2313_v29  ;;  %v1146_v39 = vmul.f32 0.5, %v2324_v37  ;;  %v1149_v44 = vmul.f32 0.5, %v2330_v40  ;;  %v1148_v46 = vmul.f32 0.5, %v2332_v42  ;;  %1012 = vadd.xlane.f32.xlu1 %v971_v30 }
 0x15a   : > { %v2271_v3 = vld [vmem:[#allocation2 + $0x70] sm:$0xff]  ;;  %1759 = vst [vmem:[%s2652_s3 + $0x20] sm:$0xff] %v1699_v60   ;;  %1764 = vst [vmem:[%s2652_s3 + $0x48] sm:$0xff] %v1724_v22   ;;  %v1729_v38 = vpack.c.bf16 %v1143_v19, %v1142_v23  ;;  %v1734_v43 = vpack.c.bf16 %v1145_v24, %v1144_v33  ;;  %v972_v57 = vmul.f32 %v2250_v54, %v2250_v54 }
 0x15b   : > { %v2262_v62 = vld [vmem:[#allocation2 + $0x60] sm:$0xff]  ;;  %v1136_v5 = vmul.f32 0.5, %v2271_v3  ;;  %v1739_v51 = vpack.c.bf16 %v1147_v34, %v1146_v39  ;;  %1010 = vadd.xlane.f32.xlu0 %v970_v31  ;;  %v1744_v58 = vpack.c.bf16 %v1149_v44, %v1148_v46  ;;  %v2355_v0 = vld [vmem:[#allocation2 + $0xf0] sm:$0xff]  ;;  %v979_v11 = vmul.f32 %v2273_v4, %v2273_v4 }
 0x15c   : > { %v2264_v63 = vld [vmem:[#allocation2 + $0x78] sm:$0xff]  ;;  %v1134_v1 = vmul.f32 0.5, %v2262_v62  ;;  %1765 = vst [vmem:[%s2652_s3 + $0x50] sm:$0xff] %v1729_v38   ;;  %v2344_v55 = vld [vmem:[#allocation2 + $0xe0] sm:$0xff]  ;;  %1766 = vst [vmem:[%s2652_s3 + $0x58] sm:$0xff] %v1734_v43   ;;  %v974_v8 = vmul.f32 %v2262_v62, %v2262_v62  ;;  %v981_v15 = vmul.f32 %v2290_v12, %v2290_v12  ;;  %v980_v16 = vmul.f32 %v2292_v13, %v2292_v13 }
 0x15d   : > { %v2259_v59 = vld [vmem:[#allocation2 + $0x68] sm:$0xff]  ;;  %v1137_v2 = vmul.f32 0.5, %v2264_v63  ;;  %v2346_v56 = vld [vmem:[#allocation2 + $0xf8] sm:$0xff]  ;;  %v1150_v60 = vmul.f32 0.5, %v2344_v55  ;;  %1767 = vst [vmem:[%s2652_s3 + $0x60] sm:$0xff] %v1739_v51   ;;  %1768 = vst [vmem:[%s2652_s3 + $0x68] sm:$0xff] %v1744_v58   ;;  %1016 = vadd.xlane.f32.xlu1 %v973_v50  ;;  %v977_v9 = vmul.f32 %v2264_v63, %v2264_v63  ;;  %v983_v18 = vmul.f32 %v2296_v17, %v2296_v17 }
 0x15e   : > { %v1135_v61 = vmul.f32 0.5, %v2259_v59  ;;  %v2336_v47 = vld [vmem:[#allocation2 + $0xe8] sm:$0xff]  ;;  %v975_v6 = vmul.f32 %v2259_v59, %v2259_v59  ;;  %v982_v19 = vmul.f32 %v2302_v20, %v2302_v20  ;;  %v985_v22 = vmul.f32 %v2304_v21, %v2304_v21 }
 0x15f   : > { %v1714_v14 = vpack.c.bf16 %v1137_v2, %v1136_v5  ;;  %v1151_v52 = vmul.f32 0.5, %v2336_v47  ;;  %1014 = vadd.xlane.f32.xlu0 %v972_v57  ;;  %v984_v23 = vmul.f32 %v2311_v28, %v2311_v28  ;;  %v987_v24 = vmul.f32 %v2313_v29, %v2313_v29 }
 0x160   : > { %v1709_v10 = vpack.c.bf16 %v1135_v61, %v1134_v1  ;;  %v1153_v61 = vmul.f32 0.5, %v2346_v56  ;;  %v1152_v1 = vmul.f32 0.5, %v2355_v0  ;;  %v986_v30 = vmul.f32 %v2324_v37, %v2324_v37 }
 0x161   : > { %1762 = vst [vmem:[%s2652_s3 + $0x38] sm:$0xff] %v1714_v14   ;;  %v1749_v2 = vpack.c.bf16 %v1151_v52, %v1150_v60  ;;  %1020 = vadd.xlane.f32.xlu1 %v975_v6  ;;  %v978_v14 = vmul.f32 %v2280_v7, %v2280_v7  ;;  %v989_v31 = vmul.f32 %v2330_v40, %v2330_v40 }
 0x162   : > { %1761 = vst [vmem:[%s2652_s3 + $0x30] sm:$0xff] %v1709_v10   ;;  %v1754_v5 = vpack.c.bf16 %v1153_v61, %v1152_v1  ;;  %v976_v10 = vmul.f32 %v2271_v3, %v2271_v3  ;;  %v988_v33 = vmul.f32 %v2332_v42, %v2332_v42  ;;  %v991_v34 = vmul.f32 %v2336_v47, %v2336_v47 }
 0x163   : > { %1769 = vst [vmem:[%s2652_s3 + $0x70] sm:$0xff] %v1749_v2   ;;  %1018 = vadd.xlane.f32.xlu0 %v974_v8  ;;  %v990_v38 = vmul.f32 %v2344_v55, %v2344_v55  ;;  %v993_v39 = vmul.f32 %v2346_v56, %v2346_v56  ;;  %v992_v43 = vmul.f32 %v2355_v0, %v2355_v0 }
 0x164   : > { %1770 = vst [vmem:[%s2652_s3 + $0x78] sm:$0xff] %v1754_v5  }
 0x165   : > { %1024 = vadd.xlane.f32.xlu1 %v977_v9 }
 0x167   : > { %1022 = vadd.xlane.f32.xlu0 %v976_v10  ;;  %v1316_v10 = vld [vmem:[%s2651_s2 + $0x10] sm:$0xff] }
 0x169   : > { %1028 = vadd.xlane.f32.xlu1 %v979_v11 }
 0x16b   : > { %1026 = vadd.xlane.f32.xlu0 %v978_v14 }
 0x16d   : > { %1032 = vadd.xlane.f32.xlu1 %v981_v15 }
 0x16f   : > { %1030 = vadd.xlane.f32.xlu0 %v980_v16 }
 0x171   : > { %1036 = vadd.xlane.f32.xlu1 %v983_v18  ;;  %v1314_v18 = vld [vmem:[%s2651_s2] sm:$0xff] }
 0x173   : > { %1034 = vadd.xlane.f32.xlu0 %v982_v19 }
 0x175   : > { %1040 = vadd.xlane.f32.xlu1 %v985_v22 }
 0x177   : > { %1038 = vadd.xlane.f32.xlu0 %v984_v23 }
 0x179   : > { %1044 = vadd.xlane.f32.xlu1 %v987_v24 }
 0x17b   : > { %1042 = vadd.xlane.f32.xlu0 %v986_v30 }
 0x17d   : > { %1048 = vadd.xlane.f32.xlu1 %v989_v31 }
 0x17f   : > { %1046 = vadd.xlane.f32.xlu0 %v988_v33  ;;  %v1317_v33 = vld [vmem:[%s2651_s2 + $0x18] sm:$0xff] }
 0x181   : > { %1052 = vadd.xlane.f32.xlu1 %v991_v34 }
 0x183   : > { %1050 = vadd.xlane.f32.xlu0 %v990_v38 }
 0x185   : > { %1056 = vadd.xlane.f32.xlu1 %v993_v39 }
 0x187   : > { %1054 = vadd.xlane.f32.xlu0 %v992_v43 }
 0x1d3   : > { %v999_v44 = vpop.xlane.xlu1 %998 }
 0x1d4   : > { %v995_v46 = vpop.xlane.xlu0 %994  ;;  %v1060_v50 = vmax.f32 %v999_v44, 1e-24 }
 0x1d5   : > { %v1058_v51 = vmax.f32 %v995_v46, 1e-24 }
 0x1d6   : > { %1924 = vrsqrt.f32 %v1060_v50 }
 0x1d7   : > { %1926 = vrsqrt.f32 %v1058_v51  ;;  %v1001_v52 = vpop.xlane.xlu1 %1000 }
 0x1d8   : > { %v997_v57 = vpop.xlane.xlu0 %996  ;;  %v1061_v58 = vmax.f32 %v1001_v52, 1e-24 }
 0x1d9   : > { %v1059_v60 = vmax.f32 %v997_v57, 1e-24 }
 0x1da   : > { %1928 = vrsqrt.f32 %v1061_v58 }
 0x1db   : > { %1930 = vrsqrt.f32 %v1059_v60 }
 0x1dc   : > { %v1003_v1 = vpop.xlane.xlu0 %1002 }
 0x1dd   : > { %v1005_v61 = vpop.xlane.xlu1 %1004  ;;  %v1062_v5 = vmax.f32 %v1003_v1, 1e-24 }
 0x1de   : > { %v1063_v2 = vmax.f32 %v1005_v61, 1e-24 }
 0x1e0   : > { %1932 = vrsqrt.f32 %v1063_v2  ;;  %v1925_v9 = vpop.eup %1924 }
 0x1e1   : > { %1934 = vrsqrt.f32 %v1062_v5  ;;  %v1927_v15 = vpop.eup %1926  ;;  %v1348_v16 = vmul.f32 %v1925_v9, %v2202_v25 }
 0x1e2   : > { %v1009_v6 = vpop.xlane.xlu1 %1008  ;;  %v1346_v19 = vmul.f32 %v1927_v15, %v2204_v26 }
 0x1e3   : > { %v1065_v11 = vmax.f32 %v1009_v6, 1e-24  ;;  %v1380_v22 = vadd.f32 %v1348_v16, %v1316_v10 }
 0x1e4   : > { %v1007_v8 = vpop.xlane.xlu0 %1006  ;;  %v1929_v30 = vpop.eup %1928  ;;  %v1378_v31 = vadd.f32 %v1346_v19, %v1314_v18 }
 0x1e5   : > { %v1064_v14 = vmax.f32 %v1007_v8, 1e-24  ;;  %1936 = vrsqrt.f32 %v1065_v11  ;;  %v1931_v25 = vpop.eup %1930  ;;  %1412 = vst [vmem:[%s2653_s4 + $0x10] sm:$0xff] %v1380_v22  ;;  %v1349_v26 = vmul.f32 %v1929_v30, %v2206_v27 }
 0x1e6   : > { %v1013_v23 = vpop.xlane.xlu1 %1012  ;;  %v1347_v43 = vmul.f32 %v1931_v25, %v2214_v32 }
 0x1e7   : > { %1938 = vrsqrt.f32 %v1064_v14  ;;  %v1067_v34 = vmax.f32 %v1013_v23, 1e-24  ;;  %v1381_v44 = vadd.f32 %v1349_v26, %v1317_v33 }
 0x1e8   : > { %v1011_v24 = vpop.xlane.xlu0 %1010 }
 0x1e9   : > { %v1066_v38 = vmax.f32 %v1011_v24, 1e-24  ;;  %1940 = vrsqrt.f32 %v1067_v34 }
 0x1ea   : > { %v1017_v46 = vpop.xlane.xlu1 %1016  ;;  %v1933_v51 = vpop.eup %1932 }
 0x1eb   : > { %1942 = vrsqrt.f32 %v1066_v38  ;;  %v1069_v57 = vmax.f32 %v1017_v46, 1e-24  ;;  %v1935_v60 = vpop.eup %1934  ;;  %v1351_v32 = vmul.f32 %v1933_v51, %v2218_v35 }
 0x1ec   : > { %v1315_v39 = vld [vmem:[%s2651_s2 + $0x8] sm:$0xff]  ;;  %v1015_v50 = vpop.xlane.xlu0 %1014  ;;  %v1350_v1 = vmul.f32 %v1935_v60, %v2220_v36 }
 0x1ed   : > { %1410 = vst [vmem:[%s2653_s4] sm:$0xff] %v1378_v31  ;;  %v1379_v52 = vadd.f32 %v1347_v43, %v1315_v39  ;;  %v1068_v58 = vmax.f32 %v1015_v50, 1e-24  ;;  %1944 = vrsqrt.f32 %v1069_v57 }
 0x1ee   : > { %v1021_v5 = vpop.xlane.xlu1 %1020 }
 0x1ef   : > { %1946 = vrsqrt.f32 %v1068_v58  ;;  %v1937_v8 = vpop.eup %1936  ;;  %v1071_v10 = vmax.f32 %v1021_v5, 1e-24 }
 0x1f0   : > { %v1019_v6 = vpop.xlane.xlu0 %1018  ;;  %v1353_v36 = vmul.f32 %v1937_v8, %v2228_v41 }
 0x1f1   : > { %v1070_v11 = vmax.f32 %v1019_v6, 1e-24  ;;  %v1939_v14 = vpop.eup %1938  ;;  %1948 = vrsqrt.f32 %v1071_v10 }
 0x1f2   : > { %v1352_v16 = vmul.f32 %v1939_v14, %v2231_v45  ;;  %v1025_v19 = vpop.xlane.xlu1 %1024 }
 0x1f3   : > { %1950 = vrsqrt.f32 %v1070_v11  ;;  %v1941_v23 = vpop.eup %1940  ;;  %v1073_v30 = vmax.f32 %v1025_v19, 1e-24 }
 0x1f4   : > { %v1319_v27 = vld [vmem:[%s2651_s2 + $0x28] sm:$0xff]  ;;  %v1023_v22 = vpop.xlane.xlu0 %1022  ;;  %v1355_v45 = vmul.f32 %v1941_v23, %v2234_v48 }
 0x1f5   : > { %1413 = vst [vmem:[%s2653_s4 + $0x18] sm:$0xff] %v1381_v44  ;;  %v1383_v2 = vadd.f32 %v1351_v32, %v1319_v27  ;;  %v1072_v31 = vmax.f32 %v1023_v22, 1e-24  ;;  %v1943_v33 = vpop.eup %1942  ;;  %1952 = vrsqrt.f32 %v1073_v30 }
 0x1f6   : > { %v1354_v38 = vmul.f32 %v1943_v33, %v2236_v49  ;;  %v1029_v26 = vpop.xlane.xlu1 %1028 }
 0x1f7   : > { %1954 = vrsqrt.f32 %v1072_v31  ;;  %v1945_v43 = vpop.eup %1944  ;;  %v1075_v46 = vmax.f32 %v1029_v26, 1e-24 }
 0x1f8   : > { %v1027_v39 = vpop.xlane.xlu0 %1026  ;;  %v1357_v49 = vmul.f32 %v1945_v43, %v2248_v53 }
 0x1f9   : > { %v1074_v50 = vmax.f32 %v1027_v39, 1e-24  ;;  %v1947_v51 = vpop.eup %1946  ;;  %1956 = vrsqrt.f32 %v1075_v46 }
 0x1fa   : > { %v1356_v27 = vmul.f32 %v1947_v51, %v2250_v54  ;;  %v1033_v58 = vpop.xlane.xlu1 %1032 }
 0x1fb   : > { %1958 = vrsqrt.f32 %v1074_v50  ;;  %v1949_v32 = vpop.eup %1948 }
 0x1fc   : > { %v1318_v61 = vld [vmem:[%s2651_s2 + $0x20] sm:$0xff]  ;;  %v1031_v60 = vpop.xlane.xlu0 %1030  ;;  %v1359_v54 = vmul.f32 %v1949_v32, %v2259_v59 }
 0x1fd   : > { %1411 = vst [vmem:[%s2653_s4 + $0x8] sm:$0xff] %v1379_v52  ;;  %v1382_v9 = vadd.f32 %v1350_v1, %v1318_v61  ;;  %v1077_v1 = vmax.f32 %v1033_v58, 1e-24  ;;  %v1951_v5 = vpop.eup %1950 }
 0x1fe   : > { %v1358_v8 = vmul.f32 %v1951_v5, %v2262_v62 }
 0x1ff   : > { %1960 = vrsqrt.f32 %v1077_v1  ;;  %v1953_v11 = vpop.eup %1952 }
 0x200   : > { %v1035_v10 = vpop.xlane.xlu0 %1034  ;;  %v1361_v62 = vmul.f32 %v1953_v11, %v2264_v63 }
 0x204   : > { %v1321_v35 = vld [vmem:[%s2651_s2 + $0x38] sm:$0xff] }
 0x205   : > { %1415 = vst [vmem:[%s2653_s4 + $0x28] sm:$0xff] %v1383_v2  ;;  %v1385_v18 = vadd.f32 %v1353_v36, %v1321_v35  ;;  %v1076_v2 = vmax.f32 %v1031_v60, 1e-24  ;;  %v1037_v35 = vpop.xlane.xlu1 %1036 }
 0x206   : > { %v1079_v36 = vmax.f32 %v1037_v35, 1e-24 }
 0x207   : > { %1962 = vrsqrt.f32 %v1076_v2 }
 0x208   : > { %1964 = vrsqrt.f32 %v1079_v36 }
 0x209   : > { %v1041_v23 = vpop.xlane.xlu1 %1040 }
 0x20a   : > { %v1081_v31 = vmax.f32 %v1041_v23, 1e-24 }
 0x20c   : > { %v1320_v15 = vld [vmem:[%s2651_s2 + $0x30] sm:$0xff] }
 0x20d   : > { %1414 = vst [vmem:[%s2653_s4 + $0x20] sm:$0xff] %v1382_v9  ;;  %v1384_v24 = vadd.f32 %v1352_v16, %v1320_v15  ;;  %v1078_v15 = vmax.f32 %v1035_v10, 1e-24  ;;  %v1955_v16 = vpop.eup %1954  ;;  %v1045_v26 = vpop.xlane.xlu1 %1044 }
 0x20e   : > { %v1360_v19 = vmul.f32 %v1955_v16, %v2271_v3 }
 0x20f   : > { %1966 = vrsqrt.f32 %v1078_v15 }
 0x210   : > { %1968 = vrsqrt.f32 %v1081_v31 }
 0x214   : > { %v1323_v41 = vld [vmem:[%s2651_s2 + $0x48] sm:$0xff] }
 0x215   : > { %1417 = vst [vmem:[%s2653_s4 + $0x38] sm:$0xff] %v1385_v18  ;;  %v1387_v25 = vadd.f32 %v1355_v45, %v1323_v41  ;;  %v1957_v41 = vpop.eup %1956 }
 0x216   : > { %v1959_v45 = vpop.eup %1958  ;;  %v1363_v3 = vmul.f32 %v1957_v41, %v2273_v4 }
 0x217   : > { %v1961_v43 = vpop.eup %1960 }
 0x218   : > { %v1963_v50 = vpop.eup %1962 }
 0x219   : > { %v1965_v58 = vpop.eup %1964 }
 0x21c   : > { %v1322_v34 = vld [vmem:[%s2651_s2 + $0x40] sm:$0xff] }
 0x21d   : > { %1416 = vst [vmem:[%s2653_s4 + $0x30] sm:$0xff] %v1384_v24  ;;  %v1386_v44 = vadd.f32 %v1354_v38, %v1322_v34  ;;  %v1039_v24 = vpop.xlane.xlu0 %1038  ;;  %v1362_v38 = vmul.f32 %v1959_v45, %v2280_v7  ;;  %v1365_v7 = vmul.f32 %v1961_v43, %v2290_v12 }
 0x21e   : > { %v1080_v33 = vmax.f32 %v1039_v24, 1e-24 }
 0x220   : > { %1970 = vrsqrt.f32 %v1080_v33 }
 0x221   : > { %v1043_v39 = vpop.xlane.xlu0 %1042 }
 0x222   : > { %v1082_v46 = vmax.f32 %v1043_v39, 1e-24 }
 0x224   : > { %v1325_v48 = vld [vmem:[%s2651_s2 + $0x58] sm:$0xff] }
 0x225   : > { %1419 = vst [vmem:[%s2653_s4 + $0x48] sm:$0xff] %v1387_v25  ;;  %v1389_v57 = vadd.f32 %v1357_v49, %v1325_v48  ;;  %v1083_v48 = vmax.f32 %v1045_v26, 1e-24  ;;  %v1364_v49 = vmul.f32 %v1963_v50, %v2292_v13  ;;  %v1367_v13 = vmul.f32 %v1965_v58, %v2296_v17 }
 0x227   : > { %1972 = vrsqrt.f32 %v1083_v48 }
 0x228   : > { %1974 = vrsqrt.f32 %v1082_v46 }
 0x22c   : > { %v1324_v52 = vld [vmem:[%s2651_s2 + $0x50] sm:$0xff] }
 0x22d   : > { %1418 = vst [vmem:[%s2653_s4 + $0x40] sm:$0xff] %v1386_v44  ;;  %v1388_v61 = vadd.f32 %v1356_v27, %v1324_v52  ;;  %v1049_v27 = vpop.xlane.xlu1 %1048 }
 0x22e   : > { %v1085_v32 = vmax.f32 %v1049_v27, 1e-24 }
 0x230   : > { %1976 = vrsqrt.f32 %v1085_v32 }
 0x234   : > { %v1327_v53 = vld [vmem:[%s2651_s2 + $0x68] sm:$0xff] }
 0x235   : > { %1421 = vst [vmem:[%s2653_s4 + $0x58] sm:$0xff] %v1389_v57  ;;  %v1391_v9 = vadd.f32 %v1359_v54, %v1327_v53  ;;  %v1047_v57 = vpop.xlane.xlu0 %1046  ;;  %v1967_v53 = vpop.eup %1966 }
 0x236   : > { %v1366_v2 = vmul.f32 %v1967_v53, %v2302_v20  ;;  %v1053_v54 = vpop.xlane.xlu1 %1052 }
 0x237   : > { %v1087_v35 = vmax.f32 %v1053_v54, 1e-24 }
 0x23a   : > { %v1057_v15 = vpop.xlane.xlu1 %1056 }
 0x23c   : > { %v1326_v6 = vld [vmem:[%s2651_s2 + $0x60] sm:$0xff] }
 0x23d   : > { %1420 = vst [vmem:[%s2653_s4 + $0x50] sm:$0xff] %v1388_v61  ;;  %v1390_v14 = vadd.f32 %v1358_v8, %v1326_v6  ;;  %v1084_v61 = vmax.f32 %v1047_v57, 1e-24  ;;  %v1051_v6 = vpop.xlane.xlu0 %1050  ;;  %v1969_v8 = vpop.eup %1968 }
 0x23e   : > { %v1086_v10 = vmax.f32 %v1051_v6, 1e-24  ;;  %v1971_v11 = vpop.eup %1970  ;;  %v1369_v20 = vmul.f32 %v1969_v8, %v2304_v21 }
 0x23f   : > { %1978 = vrsqrt.f32 %v1084_v61 }
 0x240   : > { %1980 = vrsqrt.f32 %v1087_v35 }
 0x241   : > { %1982 = vrsqrt.f32 %v1086_v10  ;;  %v1055_v16 = vpop.xlane.xlu0 %1054 }
 0x244   : > { %v1329_v59 = vld [vmem:[%s2651_s2 + $0x78] sm:$0xff] }
 0x245   : > { %1423 = vst [vmem:[%s2653_s4 + $0x68] sm:$0xff] %v1391_v9  ;;  %v1393_v22 = vadd.f32 %v1361_v62, %v1329_v59  ;;  %v1368_v59 = vmul.f32 %v1971_v11, %v2311_v28  ;;  %v1973_v62 = vpop.eup %1972 }
 0x246   : > { %v1975_v23 = vpop.eup %1974  ;;  %v1371_v28 = vmul.f32 %v1973_v62, %v2313_v29 }
 0x247   : > { %v1370_v41 = vmul.f32 %v1975_v23, %v2324_v37 }
 0x24c   : > { %v1328_v18 = vld [vmem:[%s2651_s2 + $0x70] sm:$0xff] }
 0x24d   : > { %1422 = vst [vmem:[%s2653_s4 + $0x60] sm:$0xff] %v1390_v14  ;;  %v1392_v30 = vadd.f32 %v1360_v19, %v1328_v18  ;;  %v1089_v19 = vmax.f32 %v1057_v15, 1e-24 }
 0x24f   : > { %1984 = vrsqrt.f32 %v1089_v19 }
 0x254   : > { %v1331_v63 = vld [vmem:[%s2651_s2 + $0x88] sm:$0xff] }
 0x255   : > { %1425 = vst [vmem:[%s2653_s4 + $0x78] sm:$0xff] %v1393_v22  ;;  %v1395_v25 = vadd.f32 %v1363_v3, %v1331_v63  ;;  %v1088_v22 = vmax.f32 %v1055_v16, 1e-24  ;;  %v1977_v63 = vpop.eup %1976 }
 0x256   : > { %v1979_v29 = vpop.eup %1978  ;;  %v1373_v45 = vmul.f32 %v1977_v63, %v2330_v40 }
 0x257   : > { %1986 = vrsqrt.f32 %v1088_v22  ;;  %v1372_v3 = vmul.f32 %v1979_v29, %v2332_v42 }
 0x25c   : > { %v1330_v34 = vld [vmem:[%s2651_s2 + $0x80] sm:$0xff] }
 0x25d   : > { %1424 = vst [vmem:[%s2653_s4 + $0x70] sm:$0xff] %v1392_v30  ;;  %v1394_v44 = vadd.f32 %v1362_v38, %v1330_v34  ;;  %v1981_v38 = vpop.eup %1980 }
 0x25e   : > { %v1983_v39 = vpop.eup %1982  ;;  %v1375_v40 = vmul.f32 %v1981_v38, %v2336_v47 }
 0x25f   : > { %v1374_v42 = vmul.f32 %v1983_v39, %v2344_v55 }
 0x264   : > { %v1333_v4 = vld [vmem:[%s2651_s2 + $0x98] sm:$0xff] }
 0x265   : > { %1427 = vst [vmem:[%s2653_s4 + $0x88] sm:$0xff] %v1395_v25  ;;  %v1397_v52 = vadd.f32 %v1365_v7, %v1333_v4  ;;  %v1985_v4 = vpop.eup %1984 }
 0x266   : > { %v1987_v50 = vpop.eup %1986  ;;  %v1377_v47 = vmul.f32 %v1985_v4, %v2346_v56 }
 0x267   : > { %v1376_v55 = vmul.f32 %v1987_v50, %v2355_v0 }
 0x26c   : > { %v1332_v51 = vld [vmem:[%s2651_s2 + $0x90] sm:$0xff] }
 0x26d   : > { %1426 = vst [vmem:[%s2653_s4 + $0x80] sm:$0xff] %v1394_v44  ;;  %v1396_v60 = vadd.f32 %v1364_v49, %v1332_v51 }
 0x274   : > { %v1335_v12 = vld [vmem:[%s2651_s2 + $0xa8] sm:$0xff] }
 0x275   : > { %1429 = vst [vmem:[%s2653_s4 + $0x98] sm:$0xff] %v1397_v52  ;;  %v1399_v5 = vadd.f32 %v1367_v13, %v1335_v12 }
 0x27c   : > { %v1334_v1 = vld [vmem:[%s2651_s2 + $0xa0] sm:$0xff] }
 0x27d   : > { %1428 = vst [vmem:[%s2653_s4 + $0x90] sm:$0xff] %v1396_v60  ;;  %v1398_v9 = vadd.f32 %v1366_v2, %v1334_v1 }
 0x284   : > { %v1337_v17 = vld [vmem:[%s2651_s2 + $0xb8] sm:$0xff] }
 0x285   : > { %1431 = vst [vmem:[%s2653_s4 + $0xa8] sm:$0xff] %v1399_v5  ;;  %v1401_v36 = vadd.f32 %v1369_v20, %v1337_v17 }
 0x28c   : > { %v1336_v14 = vld [vmem:[%s2651_s2 + $0xb0] sm:$0xff] }
 0x28d   : > { %1430 = vst [vmem:[%s2653_s4 + $0xa0] sm:$0xff] %v1398_v9  ;;  %v1400_v18 = vadd.f32 %v1368_v59, %v1336_v14 }
 0x294   : > { %v1339_v21 = vld [vmem:[%s2651_s2 + $0xc8] sm:$0xff] }
 0x295   : > { %1433 = vst [vmem:[%s2653_s4 + $0xb8] sm:$0xff] %v1401_v36  ;;  %v1403_v30 = vadd.f32 %v1371_v28, %v1339_v21 }
 0x29c   : > { %v1338_v24 = vld [vmem:[%s2651_s2 + $0xc0] sm:$0xff] }
 0x29d   : > { %1432 = vst [vmem:[%s2653_s4 + $0xb0] sm:$0xff] %v1400_v18  ;;  %v1402_v31 = vadd.f32 %v1370_v41, %v1338_v24 }
 0x2a4   : > { %v1341_v33 = vld [vmem:[%s2651_s2 + $0xd8] sm:$0xff] }
 0x2a5   : > { %1435 = vst [vmem:[%s2653_s4 + $0xc8] sm:$0xff] %v1403_v30  ;;  %v1405_v34 = vadd.f32 %v1373_v45, %v1341_v33 }
 0x2ac   : > { %v1340_v37 = vld [vmem:[%s2651_s2 + $0xd0] sm:$0xff] }
 0x2ad   : > { %1434 = vst [vmem:[%s2653_s4 + $0xc0] sm:$0xff] %v1402_v31  ;;  %v1404_v25 = vadd.f32 %v1372_v3, %v1340_v37 }
 0x2b4   : > { %v1343_v26 = vld [vmem:[%s2651_s2 + $0xe8] sm:$0xff] }
 0x2b5   : > { %1437 = vst [vmem:[%s2653_s4 + $0xd8] sm:$0xff] %v1405_v34  ;;  %v1407_v44 = vadd.f32 %v1375_v40, %v1343_v26 }
 0x2bc   : > { %v1342_v43 = vld [vmem:[%s2651_s2 + $0xe0] sm:$0xff] }
 0x2bd   : > { %1436 = vst [vmem:[%s2653_s4 + $0xd0] sm:$0xff] %v1404_v25  ;;  %v1406_v48 = vadd.f32 %v1374_v42, %v1342_v43 }
 0x2c4   : > { %v1345_v46 = vld [vmem:[%s2651_s2 + $0xf8] sm:$0xff] }
 0x2c5   : > { %1439 = vst [vmem:[%s2653_s4 + $0xe8] sm:$0xff] %v1407_v44  ;;  %v1409_v51 = vadd.f32 %v1377_v47, %v1345_v46 }
 0x2cc   : > { %v1344_v7 = vld [vmem:[%s2651_s2 + $0xf0] sm:$0xff] }
 0x2cd   : > { %1438 = vst [vmem:[%s2653_s4 + $0xe0] sm:$0xff] %v1406_v48  ;;  %v1408_v49 = vadd.f32 %v1376_v55, %v1344_v7  ;;  %1441 = vst [vmem:[%s2653_s4 + $0xf8] sm:$0xff] %v1409_v51 }
 0x2cf   : > { %1440 = vst [vmem:[%s2653_s4 + $0xf0] sm:$0xff] %v1408_v49 }
 0x2d0 PF: > { %s15_s19 = sadd.s32 1, %s2026_s19   ;;  %s2654_s15 = smov %s2014_s16 }
 0x2d1   : > { %p12_p12 = scmp.ge.s32.totalorder %s15_s19, 6   ;;  %s2655_s16 = smov %s2089_s23 }
 0x2d2   : > { %s2656_s17 = smov %s2022_s18  ;;  %s2657_s18 = smov %s2659_s20 }
 0x2d3   :  { %14 = sbr.rel (!%p12_p12) target bundleno = 3 (0x3), region = 134 }

// kernel: llmcrec_forward.10
= control target key start
LH: loop header
LB: loop body
LE: loop exit
PB: predicated region body
PF: predicated region fallthrough
CT: control target
= control target key end

     0   :  { %s2097_s15 = smov 0   ;;  %s2099_s16 = smov 0   ;;  %s2652_s0 = inlined_call_operand.vmem [shape: bf16[512,256], index: 0, kind: input, shape index: {}]   ;;  %s2653_s1 = inlined_call_operand.vmem [shape: bf16[256,128], index: 1, kind: input, shape index: {}]   ;;  %s2654_s2 = inlined_call_operand.vmem [shape: f32[512,128], index: 2, kind: input, shape index: {}, may-alias: {2,4}]   ;;  %s2655_s3 = inlined_call_operand.vmem [shape: bf16[512,128], index: 3, kind: output, shape index: {0}]   ;;  %s2656_s4 = inlined_call_operand.vmem [shape: f32[512,128], index: 4, kind: output, shape index: {1}, may-alias: {2,4}]  }
   0x1   :  { %s2101_s17 = smov 0   ;;  %s2103_s18 = smov 0  }
   0x2   :  { %s2105_s19 = smov 0   ;;  %s2107_s20 = smov 0  }
   0x3   :  { %s2109_s21 = smov 0  }
   0x4 LB: > { %s24_s22 = sadd.s32 1, %s2061_s19  ;;  %s27_s23 = sadd.s32 1, %s2065_s20  ;;  %s2069_s21 = sphi %s2109_s21, %s15_s21   ;;  %s2065_s20 = sphi %s2107_s20, %s2697_s20   ;;  %s2061_s19 = sphi %s2105_s19, %s2696_s19   ;;  %s2057_s18 = sphi %s2103_s18, %s2695_s18   ;;  %s2053_s17 = sphi %s2101_s17, %s2694_s17   ;;  %s2049_s16 = sphi %s2099_s16, %s2693_s16   ;;  %s2045_s15 = sphi %s2097_s15, %s2692_s15  }
   0x5   : > { %p25_p0 = scmp.ge.s32.totalorder %s24_s22, 2  ;;  %p43_p1 = scmp.ne.s32.totalorder %s2049_s16, %s2045_s15 }
   0x6   : > { %p44_p2 = scmp.eq.s32.totalorder %s2069_s21, 0  ;;  %s36_s27 = sadd.s32 1, %s2049_s16 }
   0x7   : > { %s2699_s22 = smov (%p25_p0, %s24_s22), 0  ;;  %s2701_s23 = smov (!%p25_p0, %s27_s23), %s2065_s20 }
   0x8   : > { %p45_p3 = por %p44_p2, %p43_p1  ;;  %p29_p4 = scmp.ge.s32.totalorder %s2701_s23, 2 }
   0x9   : > { %s32_s24 = ssub.s32 %s2061_s19, %s2699_s22  ;;  %p1579_p6 = scmp.ge.s32.totalorder %s2069_s21, 4 }
   0xa   : > { %s2703_s23 = smov (%p29_p4, %s2701_s23), 0 }
   0xb   : > { %s31_s25 = ssub.s32 %s2065_s20, %s2703_s23  ;;  %173 = sbr.rel (%p1579_p6) target bundleno = 45 (0x2d), region = 16 }
   0xc   : > { %s33_s26 = sor.u32 %s32_s24, %s31_s25 }
   0xd   : > { %p34_p5 = scmp.eq.s32.totalorder %s33_s26, 0 }
   0xf   : > { %s2148_s28 = scalar_select %p34_p5, %s2049_s16, %s36_s27  }
  0x12   : > { %176 = sbr.rel (!%p45_p3) target bundleno = 45 (0x2d), region = 20  ;;  %s178_s29 = sand.u32 (%p45_p3), 1, %s2049_s16  }
  0x13   : > { %s1654_s30 = sshll.u32 (%p45_p3), %s2065_s20, 6  ;;  %s1580_s5 = sshll.u32 (%p45_p3), %s178_s29, 7 }
  0x14   : > { %s183_s6 = sadd.s32 (%p45_p3), %s2061_s19, %s1654_s30  ;;  %s2162_s11 = scalar_lea.vmem (%p45_p3), [#allocation3], %s1580_s5 }
  0x15   : > { %s1583_s7 = sshll.u32 (%p45_p3), %s183_s6, 2 }
  0x16   : > { %s2157_s10 = scalar_lea.vmem (%p45_p3), %s2652_s0, %s1583_s7 }
  0x17   : > { %v201_v0 = vld [vmem:[%s2157_s10] sm:$0xf] (%p45_p3)  ;;  %v203_v1 = vld [vmem:[%s2157_s10 + $0x8] sm:$0xf] (%p45_p3)  ;;  %v205_v2 = vld [vmem:[%s2157_s10 + $0x10] sm:$0xf] (%p45_p3) }
  0x18   : > { %202 = vst [vmem:[%s2162_s11] sm:$0xf] (%p45_p3), %v201_v0  ;;  %204 = vst [vmem:[%s2162_s11 + $0x4] sm:$0xf] (%p45_p3), %v203_v1  ;;  %v207_v3 = vld [vmem:[%s2157_s10 + $0x18] sm:$0xf] (%p45_p3) }
  0x19   : > { %206 = vst [vmem:[%s2162_s11 + $0x8] sm:$0xf] %v205_v2  ;;  %v209_v4 = vld [vmem:[%s2157_s10 + $0x20] sm:$0xf]  ;;  %v211_v5 = vld [vmem:[%s2157_s10 + $0x28] sm:$0xf] }
  0x1a   : > { %208 = vst [vmem:[%s2162_s11 + $0xc] sm:$0xf] %v207_v3  ;;  %210 = vst [vmem:[%s2162_s11 + $0x10] sm:$0xf] %v209_v4  ;;  %v213_v6 = vld [vmem:[%s2157_s10 + $0x30] sm:$0xf] }
  0x1b   : > { %212 = vst [vmem:[%s2162_s11 + $0x14] sm:$0xf] %v211_v5  ;;  %v215_v7 = vld [vmem:[%s2157_s10 + $0x38] sm:$0xf]  ;;  %v217_v8 = vld [vmem:[%s2157_s10 + $0x40] sm:$0xf] }
  0x1c   : > { %214 = vst [vmem:[%s2162_s11 + $0x18] sm:$0xf] %v213_v6  ;;  %216 = vst [vmem:[%s2162_s11 + $0x1c] sm:$0xf] %v215_v7  ;;  %v219_v9 = vld [vmem:[%s2157_s10 + $0x48] sm:$0xf] }
  0x1d   : > { %218 = vst [vmem:[%s2162_s11 + $0x20] sm:$0xf] %v217_v8  ;;  %v221_v10 = vld [vmem:[%s2157_s10 + $0x50] sm:$0xf]  ;;  %v223_v11 = vld [vmem:[%s2157_s10 + $0x58] sm:$0xf] }
  0x1e   : > { %220 = vst [vmem:[%s2162_s11 + $0x24] sm:$0xf] %v219_v9  ;;  %222 = vst [vmem:[%s2162_s11 + $0x28] sm:$0xf] %v221_v10  ;;  %v225_v12 = vld [vmem:[%s2157_s10 + $0x60] sm:$0xf] }
  0x1f   : > { %224 = vst [vmem:[%s2162_s11 + $0x2c] sm:$0xf] %v223_v11  ;;  %v227_v13 = vld [vmem:[%s2157_s10 + $0x68] sm:$0xf]  ;;  %v229_v14 = vld [vmem:[%s2157_s10 + $0x70] sm:$0xf] }
  0x20   : > { %226 = vst [vmem:[%s2162_s11 + $0x30] sm:$0xf] %v225_v12  ;;  %228 = vst [vmem:[%s2162_s11 + $0x34] sm:$0xf] %v227_v13  ;;  %v231_v15 = vld [vmem:[%s2157_s10 + $0x78] sm:$0xf] }
  0x21   : > { %230 = vst [vmem:[%s2162_s11 + $0x38] sm:$0xf] %v229_v14  ;;  %v233_v16 = vld [vmem:[%s2157_s10 + $0x80] sm:$0xf]  ;;  %v235_v17 = vld [vmem:[%s2157_s10 + $0x88] sm:$0xf] }
  0x22   : > { %232 = vst [vmem:[%s2162_s11 + $0x3c] sm:$0xf] %v231_v15  ;;  %234 = vst [vmem:[%s2162_s11 + $0x40] sm:$0xf] %v233_v16  ;;  %v237_v18 = vld [vmem:[%s2157_s10 + $0x90] sm:$0xf] }
  0x23   : > { %236 = vst [vmem:[%s2162_s11 + $0x44] sm:$0xf] %v235_v17  ;;  %v239_v19 = vld [vmem:[%s2157_s10 + $0x98] sm:$0xf]  ;;  %v241_v20 = vld [vmem:[%s2157_s10 + $0xa0] sm:$0xf] }
  0x24   : > { %238 = vst [vmem:[%s2162_s11 + $0x48] sm:$0xf] %v237_v18  ;;  %240 = vst [vmem:[%s2162_s11 + $0x4c] sm:$0xf] %v239_v19  ;;  %v243_v21 = vld [vmem:[%s2157_s10 + $0xa8] sm:$0xf] }
  0x25   : > { %242 = vst [vmem:[%s2162_s11 + $0x50] sm:$0xf] %v241_v20  ;;  %v245_v22 = vld [vmem:[%s2157_s10 + $0xb0] sm:$0xf]  ;;  %v247_v23 = vld [vmem:[%s2157_s10 + $0xb8] sm:$0xf] }
  0x26   : > { %244 = vst [vmem:[%s2162_s11 + $0x54] sm:$0xf] %v243_v21  ;;  %246 = vst [vmem:[%s2162_s11 + $0x58] sm:$0xf] %v245_v22  ;;  %v249_v24 = vld [vmem:[%s2157_s10 + $0xc0] sm:$0xf] }
  0x27   : > { %248 = vst [vmem:[%s2162_s11 + $0x5c] sm:$0xf] %v247_v23  ;;  %v251_v25 = vld [vmem:[%s2157_s10 + $0xc8] sm:$0xf]  ;;  %v253_v26 = vld [vmem:[%s2157_s10 + $0xd0] sm:$0xf] }
  0x28   : > { %250 = vst [vmem:[%s2162_s11 + $0x60] sm:$0xf] %v249_v24  ;;  %252 = vst [vmem:[%s2162_s11 + $0x64] sm:$0xf] %v251_v25  ;;  %v255_v27 = vld [vmem:[%s2157_s10 + $0xd8] sm:$0xf] }
  0x29   : > { %254 = vst [vmem:[%s2162_s11 + $0x68] sm:$0xf] %v253_v26  ;;  %v257_v28 = vld [vmem:[%s2157_s10 + $0xe0] sm:$0xf]  ;;  %v259_v29 = vld [vmem:[%s2157_s10 + $0xe8] sm:$0xf] }
  0x2a   : > { %256 = vst [vmem:[%s2162_s11 + $0x6c] sm:$0xf] %v255_v27  ;;  %258 = vst [vmem:[%s2162_s11 + $0x70] sm:$0xf] %v257_v28  ;;  %v261_v30 = vld [vmem:[%s2157_s10 + $0xf0] sm:$0xf] }
  0x2b   : > { %260 = vst [vmem:[%s2162_s11 + $0x74] sm:$0xf] %v259_v29  ;;  %v263_v31 = vld [vmem:[%s2157_s10 + $0xf8] sm:$0xf]  ;;  %262 = vst [vmem:[%s2162_s11 + $0x78] sm:$0xf] %v261_v30 }
  0x2c   : > { %264 = vst [vmem:[%s2162_s11 + $0x7c] sm:$0xf] %v263_v31 }
  0x2d PF: > { %p1584_p7 = scmp.ge.s32.totalorder %s2069_s21, 1  ;;  %p368_p8 = scmp.lt.s32.totalorder %s2069_s21, 5 }
  0x2f   : > { %p369_p9 = pnand %p1584_p7, %p368_p8 }
  0x30   : > { %s375_s12 = sand.u32 (!%p369_p9), 1, %s2045_s15   ;;  %s1586_s13 = sshll.u32 (!%p369_p9), %s2053_s17, 4 }
  0x31   : > { %372 = sbr.rel (%p369_p9) target bundleno = 573 (0x23d), region = 69  ;;  %s1585_s14 = sshll.u32 (!%p369_p9), %s375_s12, 7 }
  0x32   : > { %p417_p10 = scmp.lt.s32.totalorder (!%p369_p9), %s1586_s13, 31  ;;  %s1588_s24 = sshll.u32 (!%p369_p9), %s2057_s18, 5 }
  0x33   : > { %p423_p11 = scmp.lt.s32.totalorder (!%p369_p9), %s1588_s24, 63  ;;  %p1594_p12 = scmp.ne.s32.totalorder (!%p369_p9), %s2053_s17, 0 }
  0x38   : > { %s2705_s13 = smov (!%p417_p10, %s1586_s13), 31  ;;  %s2707_s24 = smov (!%p423_p11, %s1588_s24), 63 }
  0x39   : > { %s1587_s25 = sshll.u32 %s2705_s13, 2  ;;  %s1589_s30 = sshll.u32 %s2707_s24, 3  ;;  %v2071_v32 = vmov (!%p1594_p12), 0.0  }
  0x3a   : > { %s2233_s29 = scalar_lea.vmem %s2653_s1, %s1587_s25  ;;  %s1591_s5 = sshll.u32 %s2707_s24, 2  ;;  %445 = vst [vmem:[#allocation2] sm:$0xff] (!%p1594_p12), %v2071_v32  ;;  %446 = vst [vmem:[#allocation2 + $0x8] sm:$0xff] (!%p1594_p12), %v2071_v32 }
  0x3b   : > { %s2238_s8 = scalar_lea.vmem %s2654_s2, %s1589_s30  ;;  %s2243_s18 = scalar_lea.vmem %s2655_s3, %s1591_s5  ;;  %447 = vst [vmem:[#allocation2 + $0x10] sm:$0xff] (!%p1594_p12), %v2071_v32  ;;  %448 = vst [vmem:[#allocation2 + $0x18] sm:$0xff] (!%p1594_p12), %v2071_v32 }
  0x3c   : > { %s2248_s12 = scalar_lea.vmem %s2656_s4, %s1589_s30  ;;  %s2250_s13 = scalar_lea.vmem [#allocation3], %s1585_s14  ;;  %449 = vst [vmem:[#allocation2 + $0x20] sm:$0xff] (!%p1594_p12), %v2071_v32  ;;  %450 = vst [vmem:[#allocation2 + $0x28] sm:$0xff] (!%p1594_p12), %v2071_v32 }
  0x3d   : > { %444 = sbr.rel (%p1594_p12) target bundleno = 74 (0x4a), region = 77  ;;  %451 = vst [vmem:[#allocation2 + $0x30] sm:$0xff] (!%p1594_p12), %v2071_v32  ;;  %452 = vst [vmem:[#allocation2 + $0x38] sm:$0xff] (!%p1594_p12), %v2071_v32 }
  0x3e   : > { %453 = vst [vmem:[#allocation2 + $0x40] sm:$0xff] (!%p1594_p12), %v2071_v32  ;;  %454 = vst [vmem:[#allocation2 + $0x48] sm:$0xff] (!%p1594_p12), %v2071_v32 }
  0x3f   : > { %455 = vst [vmem:[#allocation2 + $0x50] sm:$0xff] (!%p1594_p12), %v2071_v32  ;;  %456 = vst [vmem:[#allocation2 + $0x58] sm:$0xff] (!%p1594_p12), %v2071_v32 }
  0x40   : > { %457 = vst [vmem:[#allocation2 + $0x60] sm:$0xff] (!%p1594_p12), %v2071_v32  ;;  %458 = vst [vmem:[#allocation2 + $0x68] sm:$0xff] (!%p1594_p12), %v2071_v32 }
  0x41   : > { %459 = vst [vmem:[#allocation2 + $0x70] sm:$0xff] (!%p1594_p12), %v2071_v32  ;;  %460 = vst [vmem:[#allocation2 + $0x78] sm:$0xff] (!%p1594_p12), %v2071_v32 }
  0x42   : > { %461 = vst [vmem:[#allocation2 + $0x80] sm:$0xff] (!%p1594_p12), %v2071_v32  ;;  %462 = vst [vmem:[#allocation2 + $0x88] sm:$0xff] (!%p1594_p12), %v2071_v32 }
  0x43   : > { %463 = vst [vmem:[#allocation2 + $0x90] sm:$0xff] (!%p1594_p12), %v2071_v32  ;;  %464 = vst [vmem:[#allocation2 + $0x98] sm:$0xff] (!%p1594_p12), %v2071_v32 }
  0x44   : > { %465 = vst [vmem:[#allocation2 + $0xa0] sm:$0xff] %v2071_v32  ;;  %466 = vst [vmem:[#allocation2 + $0xa8] sm:$0xff] %v2071_v32 }
  0x45   : > { %467 = vst [vmem:[#allocation2 + $0xb0] sm:$0xff] %v2071_v32  ;;  %468 = vst [vmem:[#allocation2 + $0xb8] sm:$0xff] %v2071_v32 }
  0x46   : > { %469 = vst [vmem:[#allocation2 + $0xc0] sm:$0xff] %v2071_v32  ;;  %470 = vst [vmem:[#allocation2 + $0xc8] sm:$0xff] %v2071_v32 }
  0x47   : > { %471 = vst [vmem:[#allocation2 + $0xd0] sm:$0xff] %v2071_v32  ;;  %472 = vst [vmem:[#allocation2 + $0xd8] sm:$0xff] %v2071_v32 }
  0x48   : > { %473 = vst [vmem:[#allocation2 + $0xe0] sm:$0xff] %v2071_v32  ;;  %474 = vst [vmem:[#allocation2 + $0xe8] sm:$0xff] %v2071_v32 }
  0x49   : > { %475 = vst [vmem:[#allocation2 + $0xf0] sm:$0xff] %v2071_v32  ;;  %476 = vst [vmem:[#allocation2 + $0xf8] sm:$0xff] %v2071_v32 }
  0x4a PF: > { %v1927_v33 = vld [vmem:[%s2233_s29] sm:$0xff]   ;;  %v1928_v34 = vld [vmem:[%s2233_s29 + $0x8] sm:$0xff]   ;;  %v1929_v35 = vld [vmem:[%s2233_s29 + $0x10] sm:$0xff]   ;;  %p1619_p13 = scmp.ne.s32.totalorder %s2053_s17, 1 }
  0x4b   : > { %1806 = vmatprep.subr.bf16.mxu0 %v1927_v33  ;;  %1854 = vmatprep.subr.bf16.mxu1 %v1927_v33  ;;  %v1930_v36 = vld [vmem:[%s2233_s29 + $0x18] sm:$0xff]   ;;  %v1935_v37 = vld [vmem:[%s2250_s13] sm:$0xff]   ;;  %v1932_v40 = vld [vmem:[%s2233_s29 + $0x28] sm:$0xff]  }
  0x4c   : > { %1807 = vmatpush3.bf16.msra.mxu0 %v1927_v33  ;;  %1862 = vmatpush3.bf16.msra.mxu1 %v1927_v33  ;;  %v1936_v38 = vld [vmem:[%s2250_s13 + $0x40] sm:$0xff]   ;;  %v1933_v41 = vld [vmem:[%s2233_s29 + $0x30] sm:$0xff]   ;;  %v1934_v42 = vld [vmem:[%s2233_s29 + $0x38] sm:$0xff]  }
  0x4d   : > { %1808 = vmatprep.subr.bf16.mxu0 %v1928_v34  ;;  %1855 = vmatprep.subr.bf16.mxu1 %v1928_v34  ;;  %v1931_v39 = vld [vmem:[%s2233_s29 + $0x20] sm:$0xff]   ;;  %v1937_v43 = vld [vmem:[%s2250_s13 + $0x8] sm:$0xff]   ;;  %v1939_v45 = vld [vmem:[%s2250_s13 + $0x10] sm:$0xff]  }
  0x4e   : > { %1822 = vmatprep.mubr.bf16.mxu0 %v1935_v37  ;;  %1838 = vmatprep.mubr.bf16.mxu1 %v1936_v38  ;;  %v1938_v44 = vld [vmem:[%s2250_s13 + $0x48] sm:$0xff]   ;;  %v1940_v46 = vld [vmem:[%s2250_s13 + $0x50] sm:$0xff]   ;;  %v1941_v47 = vld [vmem:[%s2250_s13 + $0x18] sm:$0xff]  }
  0x4f   : > { %v1942_v48 = vld [vmem:[%s2250_s13 + $0x58] sm:$0xff]   ;;  %v1943_v49 = vld [vmem:[%s2250_s13 + $0x20] sm:$0xff]   ;;  %v1945_v51 = vld [vmem:[%s2250_s13 + $0x28] sm:$0xff]  }
  0x50   : > { %1809 = vmatpush3.bf16.msra.mxu0 %v1928_v34  ;;  %1863 = vmatpush3.bf16.msra.mxu1 %v1928_v34  ;;  %v1944_v50 = vld [vmem:[%s2250_s13 + $0x60] sm:$0xff]   ;;  %v1946_v52 = vld [vmem:[%s2250_s13 + $0x68] sm:$0xff]   ;;  %v1947_v53 = vld [vmem:[%s2250_s13 + $0x30] sm:$0xff]  }
  0x51   : > { %1810 = vmatprep.subr.bf16.mxu0 %v1929_v35  ;;  %1856 = vmatprep.subr.bf16.mxu1 %v1929_v35  ;;  %v1948_v54 = vld [vmem:[%s2250_s13 + $0x70] sm:$0xff]   ;;  %v1949_v55 = vld [vmem:[%s2250_s13 + $0x38] sm:$0xff]   ;;  %v477_v59 = vld [vmem:[#allocation2] sm:$0xff] }
  0x52   : > { %v1950_v56 = vld [vmem:[%s2250_s13 + $0x78] sm:$0xff]   ;;  %v479_v57 = vld [vmem:[#allocation2 + $0x10] sm:$0xff]  ;;  %v493_v60 = vld [vmem:[#allocation2 + $0x80] sm:$0xff] }
  0x53   : > { %v495_v58 = vld [vmem:[#allocation2 + $0x90] sm:$0xff]  ;;  %v480_v63 = vld [vmem:[#allocation2 + $0x18] sm:$0xff]  ;;  %v478_v5 = vld [vmem:[#allocation2 + $0x8] sm:$0xff] }
  0x54   : > { %1811 = vmatpush3.bf16.msra.mxu0 %v1929_v35  ;;  %1864 = vmatpush3.bf16.msra.mxu1 %v1929_v35  ;;  %v496_v0 = vld [vmem:[#allocation2 + $0x98] sm:$0xff]  ;;  %v494_v6 = vld [vmem:[#allocation2 + $0x88] sm:$0xff]  ;;  %v483_v17 = vld [vmem:[#allocation2 + $0x30] sm:$0xff] }
  0x55   : > { %1812 = vmatprep.subr.bf16.mxu0 %v1930_v36  ;;  %1857 = vmatprep.subr.bf16.mxu1 %v1930_v36  ;;  %v499_v18 = vld [vmem:[#allocation2 + $0xb0] sm:$0xff]  ;;  %v481_v19 = vld [vmem:[#allocation2 + $0x20] sm:$0xff]  ;;  %v484_v23 = vld [vmem:[#allocation2 + $0x38] sm:$0xff] }
  0x56   : > { %v497_v20 = vld [vmem:[#allocation2 + $0xa0] sm:$0xff]  ;;  %v500_v24 = vld [vmem:[#allocation2 + $0xb8] sm:$0xff]  ;;  %v482_v29 = vld [vmem:[#allocation2 + $0x28] sm:$0xff] }
  0x57   : > { %v498_v30 = vld [vmem:[#allocation2 + $0xa8] sm:$0xff] }
  0x58   : > { %1813 = vmatpush3.bf16.msra.mxu0 %v1930_v36  ;;  %1865 = vmatpush3.bf16.msra.mxu1 %v1930_v36 }
  0x59   : > { %1814 = vmatprep.subr.bf16.mxu0 %v1931_v39  ;;  %1858 = vmatprep.subr.bf16.mxu1 %v1931_v39 }
  0x5c   : > { %1815 = vmatpush3.bf16.msra.mxu0 %v1931_v39  ;;  %1866 = vmatpush3.bf16.msra.mxu1 %v1931_v39 }
  0x5d   : > { %1816 = vmatprep.subr.bf16.mxu0 %v1932_v40  ;;  %1859 = vmatprep.subr.bf16.mxu1 %v1932_v40 }
  0x60   : > { %1817 = vmatpush3.bf16.msra.mxu0 %v1932_v40  ;;  %1867 = vmatpush3.bf16.msra.mxu1 %v1932_v40 }
  0x61   : > { %1818 = vmatprep.subr.bf16.mxu0 %v1933_v41  ;;  %1860 = vmatprep.subr.bf16.mxu1 %v1933_v41 }
  0x64   : > { %1819 = vmatpush3.bf16.msra.mxu0 %v1933_v41  ;;  %1868 = vmatpush3.bf16.msra.mxu1 %v1933_v41  ;;  %v487_v41 = vld [vmem:[#allocation2 + $0x50] sm:$0xff] }
  0x65   : > { %1820 = vmatprep.subr.bf16.mxu0 %v1934_v42  ;;  %1861 = vmatprep.subr.bf16.mxu1 %v1934_v42 }
  0x68   : > { %1821 = vmatpush3.bf16.msra.mxu0 %v1934_v42  ;;  %1869 = vmatpush3.bf16.msra.mxu1 %v1934_v42  ;;  %v503_v42 = vld [vmem:[#allocation2 + $0xd0] sm:$0xff] }
  0x6b   : > { %1823 = vmatmul.mubr.bf16.vlgmr.msra.gmra.mrb[0].mxu0 %v1937_v43  ;;  %1839 = vmatmul.mubr.bf16.vlgmr.msra.gmra.mrb[0].mxu1 %v1938_v44  ;;  %v485_v43 = vld [vmem:[#allocation2 + $0x40] sm:$0xff] }
  0x6c   : > { %1826 = vmatprep.mubr.bf16.mxu0 %v1939_v45  ;;  %1842 = vmatprep.mubr.bf16.mxu1 %v1940_v46  ;;  %v501_v44 = vld [vmem:[#allocation2 + $0xc0] sm:$0xff] }
  0x73   : > { %1827 = vmatmul.mubr.bf16.gmra.mrb[4].mxu0 %v1941_v47  ;;  %1843 = vmatmul.mubr.bf16.gmra.mrb[4].mxu1 %v1942_v48  ;;  %v488_v47 = vld [vmem:[#allocation2 + $0x58] sm:$0xff] }
  0x74   : > { %1830 = vmatprep.mubr.bf16.mxu0 %v1943_v49  ;;  %1846 = vmatprep.mubr.bf16.mxu1 %v1944_v50  ;;  %v504_v48 = vld [vmem:[#allocation2 + $0xd8] sm:$0xff] }
  0x7b   : > { %1831 = vmatmul.mubr.bf16.gmra.mrb[8].mxu0 %v1945_v51  ;;  %1847 = vmatmul.mubr.bf16.gmra.mrb[8].mxu1 %v1946_v52 }
  0x7c   : > { %1834 = vmatprep.mubr.bf16.mxu0 %v1947_v53  ;;  %1850 = vmatprep.mubr.bf16.mxu1 %v1948_v54  ;;  %v486_v53 = vld [vmem:[#allocation2 + $0x48] sm:$0xff] }
  0x7d   : > { %v502_v54 = vld [vmem:[#allocation2 + $0xc8] sm:$0xff] }
  0x83   : > { %1835 = vmatmul.mubr.bf16.gmra.mrb[12].mxu0 %v1949_v55  ;;  %1851 = vmatmul.mubr.bf16.gmra.mrb[12].mxu1 %v1950_v56 }
 0x13e   : > { %v1824_v61 = vpop.f32.mrb[0].mxu0  ;;  %v1840_v62 = vpop.f32.mrb[0].mxu1 }
 0x13f   : > { %v864_v1 = vadd.f32 %v1824_v61, %v479_v57  ;;  %v880_v2 = vadd.f32 %v1840_v62, %v495_v58  ;;  %v735_v3 = vpop.f32.mrb[1].mxu0  ;;  %v799_v4 = vpop.f32.mrb[1].mxu1 }
 0x140   : > { %v862_v7 = vadd.f32 %v735_v3, %v477_v59  ;;  %v878_v8 = vadd.f32 %v799_v4, %v493_v60  ;;  %v1825_v9 = vpop.f32.mrb[2].mxu0  ;;  %v1841_v10 = vpop.f32.mrb[2].mxu1  ;;  %v489_v3 = vld [vmem:[#allocation2 + $0x60] sm:$0xff] }
 0x141   : > { %896 = vst [vmem:[#allocation2 + $0x10] sm:$0xff] %v864_v1  ;;  %912 = vst [vmem:[#allocation2 + $0x90] sm:$0xff] %v880_v2  ;;  %v865_v11 = vadd.f32 %v1825_v9, %v480_v63  ;;  %v881_v12 = vadd.f32 %v1841_v10, %v496_v0  ;;  %v738_v13 = vpop.f32.mrb[3].mxu0  ;;  %v802_v14 = vpop.f32.mrb[3].mxu1  ;;  %v491_v1 = vld [vmem:[#allocation2 + $0x70] sm:$0xff]  ;;  %v505_v4 = vld [vmem:[#allocation2 + $0xe0] sm:$0xff] }
 0x142   : > { %894 = vst [vmem:[#allocation2] sm:$0xff] %v862_v7  ;;  %910 = vst [vmem:[#allocation2 + $0x80] sm:$0xff] %v878_v8  ;;  %v863_v15 = vadd.f32 %v738_v13, %v478_v5  ;;  %v879_v16 = vadd.f32 %v802_v14, %v494_v6  ;;  %v507_v2 = vld [vmem:[#allocation2 + $0xf0] sm:$0xff]  ;;  %v492_v7 = vld [vmem:[#allocation2 + $0x78] sm:$0xff] }
 0x143   : > { %897 = vst [vmem:[#allocation2 + $0x18] sm:$0xff] %v865_v11  ;;  %913 = vst [vmem:[#allocation2 + $0x98] sm:$0xff] %v881_v12  ;;  %v508_v8 = vld [vmem:[#allocation2 + $0xf8] sm:$0xff]  ;;  %v490_v13 = vld [vmem:[#allocation2 + $0x68] sm:$0xff] }
 0x144   : > { %895 = vst [vmem:[#allocation2 + $0x8] sm:$0xff] %v863_v15  ;;  %911 = vst [vmem:[#allocation2 + $0x88] sm:$0xff] %v879_v16  ;;  %v506_v14 = vld [vmem:[#allocation2 + $0xe8] sm:$0xff] }
 0x146   : > { %v1828_v21 = vpop.f32.mrb[4].mxu0  ;;  %v1844_v22 = vpop.f32.mrb[4].mxu1 }
 0x147   : > { %v868_v25 = vadd.f32 %v1828_v21, %v483_v17  ;;  %v884_v26 = vadd.f32 %v1844_v22, %v499_v18  ;;  %v751_v27 = vpop.f32.mrb[5].mxu0  ;;  %v815_v28 = vpop.f32.mrb[5].mxu1 }
 0x148   : > { %v866_v31 = vadd.f32 %v751_v27, %v481_v19  ;;  %v882_v32 = vadd.f32 %v815_v28, %v497_v20  ;;  %v1829_v33 = vpop.f32.mrb[6].mxu0  ;;  %v1845_v34 = vpop.f32.mrb[6].mxu1 }
 0x149   : > { %900 = vst [vmem:[#allocation2 + $0x30] sm:$0xff] %v868_v25  ;;  %916 = vst [vmem:[#allocation2 + $0xb0] sm:$0xff] %v884_v26  ;;  %v869_v35 = vadd.f32 %v1829_v33, %v484_v23  ;;  %v885_v36 = vadd.f32 %v1845_v34, %v500_v24  ;;  %v754_v37 = vpop.f32.mrb[7].mxu0  ;;  %v818_v38 = vpop.f32.mrb[7].mxu1 }
 0x14a   : > { %898 = vst [vmem:[#allocation2 + $0x20] sm:$0xff] %v866_v31  ;;  %914 = vst [vmem:[#allocation2 + $0xa0] sm:$0xff] %v882_v32  ;;  %v867_v39 = vadd.f32 %v754_v37, %v482_v29  ;;  %v883_v40 = vadd.f32 %v818_v38, %v498_v30 }
 0x14b   : > { %901 = vst [vmem:[#allocation2 + $0x38] sm:$0xff] %v869_v35  ;;  %917 = vst [vmem:[#allocation2 + $0xb8] sm:$0xff] %v885_v36 }
 0x14c   : > { %899 = vst [vmem:[#allocation2 + $0x28] sm:$0xff] %v867_v39  ;;  %915 = vst [vmem:[#allocation2 + $0xa8] sm:$0xff] %v883_v40 }
 0x14e   : > { %v1832_v45 = vpop.f32.mrb[8].mxu0  ;;  %v1848_v46 = vpop.f32.mrb[8].mxu1 }
 0x14f   : > { %v872_v49 = vadd.f32 %v1832_v45, %v487_v41  ;;  %v888_v50 = vadd.f32 %v1848_v46, %v503_v42  ;;  %v767_v51 = vpop.f32.mrb[9].mxu0  ;;  %v831_v52 = vpop.f32.mrb[9].mxu1 }
 0x150   : > { %v870_v55 = vadd.f32 %v767_v51, %v485_v43  ;;  %v886_v56 = vadd.f32 %v831_v52, %v501_v44  ;;  %v1833_v57 = vpop.f32.mrb[10].mxu0  ;;  %v1849_v58 = vpop.f32.mrb[10].mxu1 }
 0x151   : > { %904 = vst [vmem:[#allocation2 + $0x50] sm:$0xff] %v872_v49  ;;  %920 = vst [vmem:[#allocation2 + $0xd0] sm:$0xff] %v888_v50  ;;  %v873_v59 = vadd.f32 %v1833_v57, %v488_v47  ;;  %v889_v60 = vadd.f32 %v1849_v58, %v504_v48  ;;  %v770_v61 = vpop.f32.mrb[11].mxu0  ;;  %v834_v62 = vpop.f32.mrb[11].mxu1 }
 0x152   : > { %902 = vst [vmem:[#allocation2 + $0x40] sm:$0xff] %v870_v55  ;;  %918 = vst [vmem:[#allocation2 + $0xc0] sm:$0xff] %v886_v56  ;;  %v871_v63 = vadd.f32 %v770_v61, %v486_v53  ;;  %v887_v0 = vadd.f32 %v834_v62, %v502_v54 }
 0x153   : > { %905 = vst [vmem:[#allocation2 + $0x58] sm:$0xff] %v873_v59  ;;  %921 = vst [vmem:[#allocation2 + $0xd8] sm:$0xff] %v889_v60 }
 0x154   : > { %903 = vst [vmem:[#allocation2 + $0x48] sm:$0xff] %v871_v63  ;;  %919 = vst [vmem:[#allocation2 + $0xc8] sm:$0xff] %v887_v0 }
 0x156   : > { %v1836_v5 = vpop.f32.mrb[12].mxu0  ;;  %v1852_v6 = vpop.f32.mrb[12].mxu1  ;;  %929 = sbr.rel (%p1619_p13) target bundleno = 573 (0x23d), region = 81 }
 0x157   : > { %v876_v9 = vadd.f32 %v1836_v5, %v491_v1  ;;  %v892_v10 = vadd.f32 %v1852_v6, %v507_v2  ;;  %v783_v11 = vpop.f32.mrb[13].mxu0  ;;  %v847_v12 = vpop.f32.mrb[13].mxu1 }
 0x158   : > { %v874_v15 = vadd.f32 %v783_v11, %v489_v3  ;;  %v890_v16 = vadd.f32 %v847_v12, %v505_v4  ;;  %v1837_v17 = vpop.f32.mrb[14].mxu0  ;;  %v1853_v18 = vpop.f32.mrb[14].mxu1 }
 0x159   : > { %908 = vst [vmem:[#allocation2 + $0x70] sm:$0xff] %v876_v9  ;;  %924 = vst [vmem:[#allocation2 + $0xf0] sm:$0xff] %v892_v10  ;;  %v877_v19 = vadd.f32 %v1837_v17, %v492_v7  ;;  %v893_v20 = vadd.f32 %v1853_v18, %v508_v8  ;;  %v786_v21 = vpop.f32.mrb[15].mxu0  ;;  %v850_v22 = vpop.f32.mrb[15].mxu1 }
 0x15a   : > { %906 = vst [vmem:[#allocation2 + $0x60] sm:$0xff] %v874_v15  ;;  %922 = vst [vmem:[#allocation2 + $0xe0] sm:$0xff] %v890_v16  ;;  %v875_v23 = vadd.f32 %v786_v21, %v490_v13  ;;  %v891_v24 = vadd.f32 %v850_v22, %v506_v14 }
 0x15b   : > { %909 = vst [vmem:[#allocation2 + $0x78] sm:$0xff] %v877_v19  ;;  %925 = vst [vmem:[#allocation2 + $0xf8] sm:$0xff] %v893_v20 }
 0x15c   : > { %907 = vst [vmem:[#allocation2 + $0x68] sm:$0xff] %v875_v23  ;;  %923 = vst [vmem:[#allocation2 + $0xe8] sm:$0xff] %v891_v24 }
 0x15d   : > { %v2278_v25 = vld [vmem:[#allocation2 + $0x10] sm:$0xff]  ;;  %v2280_v26 = vld [vmem:[#allocation2] sm:$0xff]  ;;  %v2282_v27 = vld [vmem:[#allocation2 + $0x18] sm:$0xff] }
 0x15e   : > { %v964_v28 = vmul.f32 %v2278_v25, %v2278_v25  ;;  %v1124_v29 = vmul.f32 0.5, %v2278_v25  ;;  %v962_v30 = vmul.f32 %v2280_v26, %v2280_v26  ;;  %v1122_v31 = vmul.f32 0.5, %v2280_v26  ;;  %v2290_v32 = vld [vmem:[#allocation2 + $0x8] sm:$0xff]  ;;  %v2296_v36 = vld [vmem:[#allocation2 + $0x20] sm:$0xff]  ;;  %v2304_v41 = vld [vmem:[#allocation2 + $0x38] sm:$0xff] }
 0x15f   : > { %v1125_v33 = vmul.f32 0.5, %v2282_v27  ;;  %v1123_v34 = vmul.f32 0.5, %v2290_v32  ;;  %v2294_v35 = vld [vmem:[#allocation2 + $0x28] sm:$0xff]  ;;  %v965_v37 = vmul.f32 %v2282_v27, %v2282_v27  ;;  %v963_v38 = vmul.f32 %v2290_v32, %v2290_v32  ;;  %v2307_v45 = vld [vmem:[#allocation2 + $0x30] sm:$0xff]  ;;  %v2312_v49 = vld [vmem:[#allocation2 + $0x40] sm:$0xff] }
 0x160   : > { %998 = vadd.xlane.f32.xlu1 %v964_v28  ;;  %994 = vadd.xlane.f32.xlu0 %v962_v30  ;;  %v1127_v39 = vmul.f32 0.5, %v2294_v35  ;;  %v1126_v40 = vmul.f32 0.5, %v2296_v36  ;;  %v1129_v44 = vmul.f32 0.5, %v2304_v41  ;;  %v1128_v47 = vmul.f32 0.5, %v2307_v45  ;;  %v2310_v48 = vld [vmem:[#allocation2 + $0x48] sm:$0xff]  ;;  %v2320_v53 = vld [vmem:[#allocation2 + $0x58] sm:$0xff] }
 0x161   : > { %v1695_v42 = vpack.c.bf16 %v1125_v33, %v1124_v29  ;;  %v1690_v43 = vpack.c.bf16 %v1123_v34, %v1122_v31  ;;  %v967_v50 = vmul.f32 %v2294_v35, %v2294_v35  ;;  %v1131_v51 = vmul.f32 0.5, %v2310_v48  ;;  %v2322_v54 = vld [vmem:[#allocation2 + $0x50] sm:$0xff]  ;;  %v2332_v62 = vld [vmem:[#allocation2 + $0x60] sm:$0xff]  ;;  %v2341_v4 = vld [vmem:[#allocation2 + $0x88] sm:$0xff] }
 0x162   : > { %v1700_v46 = vpack.c.bf16 %v1127_v39, %v1126_v40  ;;  %v1130_v52 = vmul.f32 0.5, %v2312_v49  ;;  %v966_v55 = vmul.f32 %v2296_v36, %v2296_v36  ;;  %v1705_v56 = vpack.c.bf16 %v1129_v44, %v1128_v47  ;;  %v2334_v63 = vld [vmem:[#allocation2 + $0x78] sm:$0xff]  ;;  %v2339_v3 = vld [vmem:[#allocation2 + $0x70] sm:$0xff]  ;;  %v2346_v7 = vld [vmem:[#allocation2 + $0x80] sm:$0xff] }
 0x163   : > { %1767 = vst [vmem:[%s2243_s18 + $0x8] sm:$0xff] %v1695_v42   ;;  %1691 = vst [vmem:[%s2243_s18] sm:$0xff] %v1690_v43   ;;  %v1133_v57 = vmul.f32 0.5, %v2320_v53  ;;  %v1132_v58 = vmul.f32 0.5, %v2322_v54  ;;  %v2329_v59 = vld [vmem:[#allocation2 + $0x68] sm:$0xff]  ;;  %v1134_v1 = vmul.f32 0.5, %v2332_v62  ;;  %v1137_v2 = vmul.f32 0.5, %v2334_v63 }
 0x164   : > { %1000 = vadd.xlane.f32.xlu1 %v965_v37  ;;  %996 = vadd.xlane.f32.xlu0 %v963_v38  ;;  %1768 = vst [vmem:[%s2243_s18 + $0x10] sm:$0xff] %v1700_v46   ;;  %v1710_v60 = vpack.c.bf16 %v1131_v51, %v1130_v52  ;;  %v1135_v61 = vmul.f32 0.5, %v2329_v59  ;;  %1769 = vst [vmem:[%s2243_s18 + $0x18] sm:$0xff] %v1705_v56   ;;  %v1136_v5 = vmul.f32 0.5, %v2339_v3  ;;  %v1139_v6 = vmul.f32 0.5, %v2341_v4  ;;  %v2354_v12 = vld [vmem:[#allocation2 + $0x98] sm:$0xff] }
 0x165   : > { %v1715_v0 = vpack.c.bf16 %v1133_v57, %v1132_v58  ;;  %v969_v8 = vmul.f32 %v2304_v41, %v2304_v41  ;;  %v968_v9 = vmul.f32 %v2307_v45, %v2307_v45  ;;  %v1138_v11 = vmul.f32 0.5, %v2346_v7  ;;  %v2356_v13 = vld [vmem:[#allocation2 + $0x90] sm:$0xff]  ;;  %v2360_v17 = vld [vmem:[#allocation2 + $0xa8] sm:$0xff]  ;;  %v2364_v20 = vld [vmem:[#allocation2 + $0xa0] sm:$0xff] }
 0x166   : > { %1770 = vst [vmem:[%s2243_s18 + $0x20] sm:$0xff] %v1710_v60   ;;  %v1720_v10 = vpack.c.bf16 %v1135_v61, %v1134_v1  ;;  %v1725_v14 = vpack.c.bf16 %v1137_v2, %v1136_v5  ;;  %v1141_v15 = vmul.f32 0.5, %v2354_v12  ;;  %v1140_v16 = vmul.f32 0.5, %v2356_v13  ;;  %v2366_v21 = vld [vmem:[#allocation2 + $0xb8] sm:$0xff]  ;;  %v2371_v28 = vld [vmem:[#allocation2 + $0xb0] sm:$0xff]  ;;  %v2373_v29 = vld [vmem:[#allocation2 + $0xc8] sm:$0xff] }
 0x167   : > { %1771 = vst [vmem:[%s2243_s18 + $0x28] sm:$0xff] %v1715_v0   ;;  %v1730_v18 = vpack.c.bf16 %v1139_v6, %v1138_v11  ;;  %v1143_v19 = vmul.f32 0.5, %v2360_v17  ;;  %v1142_v23 = vmul.f32 0.5, %v2364_v20  ;;  %v1145_v24 = vmul.f32 0.5, %v2366_v21  ;;  %v2382_v37 = vld [vmem:[#allocation2 + $0xc0] sm:$0xff]  ;;  %v2386_v40 = vld [vmem:[#allocation2 + $0xd8] sm:$0xff] }
 0x168   : > { %1004 = vadd.xlane.f32.xlu1 %v967_v50  ;;  %1002 = vadd.xlane.f32.xlu0 %v966_v55  ;;  %1772 = vst [vmem:[%s2243_s18 + $0x30] sm:$0xff] %v1720_v10   ;;  %1773 = vst [vmem:[%s2243_s18 + $0x38] sm:$0xff] %v1725_v14   ;;  %v1735_v22 = vpack.c.bf16 %v1141_v15, %v1140_v16  ;;  %v971_v30 = vmul.f32 %v2310_v48, %v2310_v48  ;;  %v1144_v33 = vmul.f32 0.5, %v2371_v28  ;;  %v2388_v42 = vld [vmem:[#allocation2 + $0xd0] sm:$0xff]  ;;  %v2392_v47 = vld [vmem:[#allocation2 + $0xe8] sm:$0xff] }
 0x169   : > { %v970_v31 = vmul.f32 %v2312_v49, %v2312_v49  ;;  %1774 = vst [vmem:[%s2243_s18 + $0x40] sm:$0xff] %v1730_v18   ;;  %v1147_v34 = vmul.f32 0.5, %v2373_v29  ;;  %2664 = vst [vmem:[#allocation4_spill] sm:$0xff] %v2382_v37  ;;  %v1740_v38 = vpack.c.bf16 %v1143_v19, %v1142_v23  ;;  %v1146_v39 = vmul.f32 0.5, %v2382_v37  ;;  %v2398_v55 = vld [vmem:[#allocation2 + $0xe0] sm:$0xff]  ;;  %v2400_v56 = vld [vmem:[#allocation2 + $0xf8] sm:$0xff] }
 0x16a   : > { %1775 = vst [vmem:[%s2243_s18 + $0x48] sm:$0xff] %v1735_v22   ;;  %2665 = vst [vmem:[#allocation5_spill] sm:$0xff] %v2386_v40  ;;  %v1745_v43 = vpack.c.bf16 %v1145_v24, %v1144_v33  ;;  %v1149_v44 = vmul.f32 0.5, %v2386_v40  ;;  %v1148_v46 = vmul.f32 0.5, %v2388_v42  ;;  %v973_v50 = vmul.f32 %v2320_v53, %v2320_v53  ;;  %v2407_v0 = vld [vmem:[#allocation2 + $0xf0] sm:$0xff] }
 0x16b   : > { %2666 = vst [vmem:[#allocation6_spill] sm:$0xff] %v2388_v42  ;;  %2667 = vst [vmem:[#allocation7_spill] sm:$0xff] %v2392_v47  ;;  %v1750_v51 = vpack.c.bf16 %v1147_v34, %v1146_v39  ;;  %v1151_v52 = vmul.f32 0.5, %v2392_v47  ;;  %v972_v57 = vmul.f32 %v2322_v54, %v2322_v54  ;;  %v1150_v60 = vmul.f32 0.5, %v2398_v55 }
 0x16c   : > { %1008 = vadd.xlane.f32.xlu1 %v969_v8  ;;  %1006 = vadd.xlane.f32.xlu0 %v968_v9  ;;  %1776 = vst [vmem:[%s2243_s18 + $0x50] sm:$0xff] %v1740_v38   ;;  %2668 = vst [vmem:[#allocation8_spill] sm:$0xff] %v2398_v55  ;;  %v1755_v58 = vpack.c.bf16 %v1149_v44, %v1148_v46  ;;  %v1153_v61 = vmul.f32 0.5, %v2400_v56  ;;  %v1152_v1 = vmul.f32 0.5, %v2407_v0 }
 0x16d   : > { %2669 = vst [vmem:[#allocation9_spill] sm:$0xff] %v2400_v56  ;;  %1777 = vst [vmem:[%s2243_s18 + $0x58] sm:$0xff] %v1745_v43   ;;  %v1760_v2 = vpack.c.bf16 %v1151_v52, %v1150_v60  ;;  %v975_v6 = vmul.f32 %v2329_v59, %v2329_v59  ;;  %v974_v8 = vmul.f32 %v2332_v62, %v2332_v62 }
 0x16e   : > { %2670 = vst [vmem:[#allocation10_spill] sm:$0xff] %v2407_v0  ;;  %1778 = vst [vmem:[%s2243_s18 + $0x60] sm:$0xff] %v1750_v51   ;;  %v1765_v5 = vpack.c.bf16 %v1153_v61, %v1152_v1  ;;  %v977_v9 = vmul.f32 %v2334_v63, %v2334_v63  ;;  %v976_v10 = vmul.f32 %v2339_v3, %v2339_v3 }
 0x16f   : > { %1779 = vst [vmem:[%s2243_s18 + $0x68] sm:$0xff] %v1755_v58   ;;  %1780 = vst [vmem:[%s2243_s18 + $0x70] sm:$0xff] %v1760_v2   ;;  %v979_v11 = vmul.f32 %v2341_v4, %v2341_v4  ;;  %v978_v14 = vmul.f32 %v2346_v7, %v2346_v7  ;;  %v981_v15 = vmul.f32 %v2354_v12, %v2354_v12 }
 0x170   : > { %1012 = vadd.xlane.f32.xlu1 %v971_v30  ;;  %1010 = vadd.xlane.f32.xlu0 %v970_v31  ;;  %1781 = vst [vmem:[%s2243_s18 + $0x78] sm:$0xff] %v1765_v5   ;;  %v980_v16 = vmul.f32 %v2356_v13, %v2356_v13  ;;  %v983_v18 = vmul.f32 %v2360_v17, %v2360_v17 }
 0x171   : > { %v982_v19 = vmul.f32 %v2364_v20, %v2364_v20  ;;  %v985_v22 = vmul.f32 %v2366_v21, %v2366_v21  ;;  %v984_v23 = vmul.f32 %v2371_v28, %v2371_v28  ;;  %v987_v24 = vmul.f32 %v2373_v29, %v2373_v29 }
 0x172   : > { %v986_v30 = vmul.f32 %v2382_v37, %v2382_v37  ;;  %v989_v31 = vmul.f32 %v2386_v40, %v2386_v40  ;;  %v988_v33 = vmul.f32 %v2388_v42, %v2388_v42  ;;  %v991_v34 = vmul.f32 %v2392_v47, %v2392_v47  ;;  %v2534_v47 = vld [vmem:[%s2238_s8 + $0xe0] sm:$0xff]  ;;  %v2537_v42 = vld [vmem:[%s2238_s8 + $0xf8] sm:$0xff]  ;;  %v2540_v40 = vld [vmem:[%s2238_s8 + $0xf0] sm:$0xff] }
 0x173   : > { %v990_v38 = vmul.f32 %v2398_v55, %v2398_v55  ;;  %v993_v39 = vmul.f32 %v2400_v56, %v2400_v56  ;;  %v992_v43 = vmul.f32 %v2407_v0, %v2407_v0  ;;  %v2527_v0 = vld [vmem:[%s2238_s8 + $0xd0] sm:$0xff]  ;;  %v2530_v56 = vld [vmem:[%s2238_s8 + $0xe8] sm:$0xff]  ;;  %2676 = vst [vmem:[#allocation16_spill] sm:$0xff] %v2537_v42  ;;  %2677 = vst [vmem:[#allocation17_spill] sm:$0xff] %v2540_v40 }
 0x174   : > { %1016 = vadd.xlane.f32.xlu1 %v973_v50  ;;  %1014 = vadd.xlane.f32.xlu0 %v972_v57  ;;  %2674 = vst [vmem:[#allocation14_spill] sm:$0xff] %v2527_v0  ;;  %2675 = vst [vmem:[#allocation15_spill] sm:$0xff] %v2530_v56 }
 0x178   : > { %1020 = vadd.xlane.f32.xlu1 %v975_v6  ;;  %1018 = vadd.xlane.f32.xlu0 %v974_v8  ;;  %v1316_v6 = vld [vmem:[%s2238_s8 + $0x10] sm:$0xff]  ;;  %v1314_v8 = vld [vmem:[%s2238_s8] sm:$0xff] }
 0x17c   : > { %1024 = vadd.xlane.f32.xlu1 %v977_v9  ;;  %1022 = vadd.xlane.f32.xlu0 %v976_v10 }
 0x180   : > { %1028 = vadd.xlane.f32.xlu1 %v979_v11  ;;  %1026 = vadd.xlane.f32.xlu0 %v978_v14  ;;  %v1317_v14 = vld [vmem:[%s2238_s8 + $0x18] sm:$0xff] }
 0x184   : > { %1032 = vadd.xlane.f32.xlu1 %v981_v15  ;;  %1030 = vadd.xlane.f32.xlu0 %v980_v16  ;;  %v1315_v15 = vld [vmem:[%s2238_s8 + $0x8] sm:$0xff] }
 0x185   : > { %v1319_v16 = vld [vmem:[%s2238_s8 + $0x28] sm:$0xff] }
 0x188   : > { %1036 = vadd.xlane.f32.xlu1 %v983_v18  ;;  %1034 = vadd.xlane.f32.xlu0 %v982_v19  ;;  %v2460_v18 = vld [vmem:[%s2238_s8 + $0x20] sm:$0xff]  ;;  %v2463_v19 = vld [vmem:[%s2238_s8 + $0x38] sm:$0xff] }
 0x18c   : > { %1040 = vadd.xlane.f32.xlu1 %v985_v22  ;;  %1038 = vadd.xlane.f32.xlu0 %v984_v23  ;;  %v2466_v23 = vld [vmem:[%s2238_s8 + $0x30] sm:$0xff] }
 0x190   : > { %1044 = vadd.xlane.f32.xlu1 %v987_v24  ;;  %1042 = vadd.xlane.f32.xlu0 %v986_v30  ;;  %v2469_v30 = vld [vmem:[%s2238_s8 + $0x48] sm:$0xff] }
 0x194   : > { %1048 = vadd.xlane.f32.xlu1 %v989_v31  ;;  %1046 = vadd.xlane.f32.xlu0 %v988_v33  ;;  %v2472_v31 = vld [vmem:[%s2238_s8 + $0x40] sm:$0xff]  ;;  %v2475_v33 = vld [vmem:[%s2238_s8 + $0x58] sm:$0xff] }
 0x198   : > { %1052 = vadd.xlane.f32.xlu1 %v991_v34  ;;  %1050 = vadd.xlane.f32.xlu0 %v990_v38  ;;  %v2478_v34 = vld [vmem:[%s2238_s8 + $0x50] sm:$0xff]  ;;  %v2481_v38 = vld [vmem:[%s2238_s8 + $0x68] sm:$0xff] }
 0x19c   : > { %1056 = vadd.xlane.f32.xlu1 %v993_v39  ;;  %1054 = vadd.xlane.f32.xlu0 %v992_v43  ;;  %v2484_v39 = vld [vmem:[%s2238_s8 + $0x60] sm:$0xff]  ;;  %v2487_v43 = vld [vmem:[%s2238_s8 + $0x78] sm:$0xff] }
 0x1ed   : > { %v999_v44 = vpop.xlane.xlu1 %998  ;;  %v995_v46 = vpop.xlane.xlu0 %994 }
 0x1ee   : > { %v1060_v50 = vmax.f32 %v999_v44, 1e-24  ;;  %v1058_v51 = vmax.f32 %v995_v46, 1e-24  ;;  %v2490_v44 = vld [vmem:[%s2238_s8 + $0x70] sm:$0xff]  ;;  %v2493_v46 = vld [vmem:[%s2238_s8 + $0x88] sm:$0xff] }
 0x1f0   : > { %1951 = vrsqrt.f32 %v1060_v50  ;;  %v2496_v50 = vld [vmem:[%s2238_s8 + $0x80] sm:$0xff] }
 0x1f1   : > { %1953 = vrsqrt.f32 %v1058_v51  ;;  %v1001_v52 = vpop.xlane.xlu1 %1000  ;;  %v997_v57 = vpop.xlane.xlu0 %996  ;;  %v2499_v51 = vld [vmem:[%s2238_s8 + $0x98] sm:$0xff] }
 0x1f2   : > { %v1061_v58 = vmax.f32 %v1001_v52, 1e-24  ;;  %v1059_v60 = vmax.f32 %v997_v57, 1e-24  ;;  %v2502_v52 = vld [vmem:[%s2238_s8 + $0x90] sm:$0xff]  ;;  %v2505_v57 = vld [vmem:[%s2238_s8 + $0xa8] sm:$0xff] }
 0x1f4   : > { %1955 = vrsqrt.f32 %v1061_v58  ;;  %v2508_v58 = vld [vmem:[%s2238_s8 + $0xa0] sm:$0xff] }
 0x1f5   : > { %1957 = vrsqrt.f32 %v1059_v60  ;;  %v1005_v61 = vpop.xlane.xlu1 %1004  ;;  %v1003_v1 = vpop.xlane.xlu0 %1002  ;;  %v2511_v60 = vld [vmem:[%s2238_s8 + $0xb8] sm:$0xff] }
 0x1f6   : > { %v1063_v2 = vmax.f32 %v1005_v61, 1e-24  ;;  %v1062_v5 = vmax.f32 %v1003_v1, 1e-24  ;;  %v2514_v61 = vld [vmem:[%s2238_s8 + $0xb0] sm:$0xff]  ;;  %v2517_v1 = vld [vmem:[%s2238_s8 + $0xc8] sm:$0xff] }
 0x1f7   : > { %2671 = vst [vmem:[#allocation11_spill] sm:$0xff] %v2517_v1 }
 0x1f8   : > { %1959 = vrsqrt.f32 %v1063_v2  ;;  %v2520_v2 = vld [vmem:[%s2238_s8 + $0xc0] sm:$0xff] }
 0x1f9   : > { %1961 = vrsqrt.f32 %v1062_v5  ;;  %v1009_v9 = vpop.xlane.xlu1 %1008  ;;  %v1007_v10 = vpop.xlane.xlu0 %1006  ;;  %2672 = vst [vmem:[#allocation12_spill] sm:$0xff] %v2520_v2 }
 0x1fa   : > { %v1952_v11 = vpop.eup %1951  ;;  %v1065_v22 = vmax.f32 %v1009_v9, 1e-24  ;;  %v1064_v24 = vmax.f32 %v1007_v10, 1e-24  ;;  %v2524_v10 = vld [vmem:[%s2238_s8 + $0xd8] sm:$0xff] }
 0x1fb   : > { %v1954_v5 = vpop.eup %1953  ;;  %v1348_v9 = vmul.f32 %v1952_v11, %v2278_v25  ;;  %2673 = vst [vmem:[#allocation13_spill] sm:$0xff] %v2524_v10 }
 0x1fc   : > { %v1346_v55 = vmul.f32 %v1954_v5, %v2280_v26  ;;  %1963 = vrsqrt.f32 %v1065_v22 }
 0x1fd   : > { %v1380_v2 = vadd.f32 %v1348_v9, %v1316_v6  ;;  %1965 = vrsqrt.f32 %v1064_v24  ;;  %v1013_v25 = vpop.xlane.xlu1 %1012  ;;  %v1011_v11 = vpop.xlane.xlu0 %1010 }
 0x1fe   : > { %v1956_v10 = vpop.eup %1955  ;;  %v1378_v1 = vadd.f32 %v1346_v55, %v1314_v8  ;;  %v1067_v0 = vmax.f32 %v1013_v25, 1e-24  ;;  %v1066_v37 = vmax.f32 %v1011_v11, 1e-24 }
 0x1ff   : > { %v1958_v56 = vpop.eup %1957  ;;  %v1349_v26 = vmul.f32 %v1956_v10, %v2282_v27  ;;  %1412 = vst [vmem:[%s2248_s12 + $0x10] sm:$0xff] %v1380_v2 }
 0x200   : > { %v1347_v22 = vmul.f32 %v1958_v56, %v2290_v32  ;;  %1967 = vrsqrt.f32 %v1067_v0  ;;  %1410 = vst [vmem:[%s2248_s12] sm:$0xff] %v1378_v1 }
 0x201   : > { %v1381_v5 = vadd.f32 %v1349_v26, %v1317_v14  ;;  %1969 = vrsqrt.f32 %v1066_v37  ;;  %v1017_v6 = vpop.xlane.xlu1 %1016  ;;  %v1015_v24 = vpop.xlane.xlu0 %1014 }
 0x202   : > { %v1960_v9 = vpop.eup %1959  ;;  %v1379_v40 = vadd.f32 %v1347_v22, %v1315_v15  ;;  %v1069_v42 = vmax.f32 %v1017_v6, 1e-24  ;;  %v1068_v55 = vmax.f32 %v1015_v24, 1e-24 }
 0x203   : > { %v1962_v8 = vpop.eup %1961  ;;  %v1351_v25 = vmul.f32 %v1960_v9, %v2294_v35  ;;  %1413 = vst [vmem:[%s2248_s12 + $0x18] sm:$0xff] %v1381_v5 }
 0x204   : > { %v1350_v27 = vmul.f32 %v1962_v8, %v2296_v36  ;;  %1971 = vrsqrt.f32 %v1069_v42  ;;  %1411 = vst [vmem:[%s2248_s12 + $0x8] sm:$0xff] %v1379_v40 }
 0x205   : > { %v1383_v32 = vadd.f32 %v1351_v25, %v1319_v16  ;;  %1973 = vrsqrt.f32 %v1068_v55  ;;  %v1021_v56 = vpop.xlane.xlu1 %1020  ;;  %v1019_v37 = vpop.xlane.xlu0 %1018 }
 0x206   : > { %v1964_v0 = vpop.eup %1963  ;;  %v1382_v14 = vadd.f32 %v1350_v27, %v2460_v18  ;;  %v1071_v15 = vmax.f32 %v1021_v56, 1e-24  ;;  %v1070_v1 = vmax.f32 %v1019_v37, 1e-24 }
 0x207   : > { %v1966_v2 = vpop.eup %1965  ;;  %v1353_v10 = vmul.f32 %v1964_v0, %v2304_v41  ;;  %1415 = vst [vmem:[%s2248_s12 + $0x28] sm:$0xff] %v1383_v32 }
 0x208   : > { %v1352_v35 = vmul.f32 %v1966_v2, %v2307_v45  ;;  %1975 = vrsqrt.f32 %v1071_v15  ;;  %1414 = vst [vmem:[%s2248_s12 + $0x20] sm:$0xff] %v1382_v14 }
 0x209   : > { %v1385_v36 = vadd.f32 %v1353_v10, %v2463_v19  ;;  %1977 = vrsqrt.f32 %v1070_v1  ;;  %v1025_v40 = vpop.xlane.xlu1 %1024  ;;  %v1023_v42 = vpop.xlane.xlu0 %1022 }
 0x20a   : > { %v1968_v16 = vpop.eup %1967  ;;  %v1384_v18 = vadd.f32 %v1352_v35, %v2466_v23  ;;  %v1073_v11 = vmax.f32 %v1025_v40, 1e-24  ;;  %v1072_v26 = vmax.f32 %v1023_v42, 1e-24 }
 0x20b   : > { %v1970_v22 = vpop.eup %1969  ;;  %v1355_v41 = vmul.f32 %v1968_v16, %v2310_v48  ;;  %1417 = vst [vmem:[%s2248_s12 + $0x38] sm:$0xff] %v1385_v36 }
 0x20c   : > { %v1354_v45 = vmul.f32 %v1970_v22, %v2312_v49  ;;  %1979 = vrsqrt.f32 %v1073_v11  ;;  %1416 = vst [vmem:[%s2248_s12 + $0x30] sm:$0xff] %v1384_v18 }
 0x20d   : > { %v1387_v19 = vadd.f32 %v1355_v41, %v2469_v30  ;;  %1981 = vrsqrt.f32 %v1072_v26  ;;  %v1029_v5 = vpop.xlane.xlu1 %1028  ;;  %v1027_v6 = vpop.xlane.xlu0 %1026 }
 0x20e   : > { %v1972_v24 = vpop.eup %1971  ;;  %v1386_v23 = vadd.f32 %v1354_v45, %v2472_v31  ;;  %v1075_v9 = vmax.f32 %v1029_v5, 1e-24  ;;  %v1074_v55 = vmax.f32 %v1027_v6, 1e-24 }
 0x20f   : > { %v1974_v8 = vpop.eup %1973  ;;  %v1357_v48 = vmul.f32 %v1972_v24, %v2320_v53  ;;  %1419 = vst [vmem:[%s2248_s12 + $0x48] sm:$0xff] %v1387_v19 }
 0x210   : > { %v1356_v49 = vmul.f32 %v1974_v8, %v2322_v54  ;;  %1983 = vrsqrt.f32 %v1075_v9  ;;  %1418 = vst [vmem:[%s2248_s12 + $0x40] sm:$0xff] %v1386_v23 }
 0x211   : > { %v1389_v30 = vadd.f32 %v1357_v48, %v2475_v33  ;;  %1985 = vrsqrt.f32 %v1074_v55  ;;  %v1033_v25 = vpop.xlane.xlu1 %1032  ;;  %v1031_v27 = vpop.xlane.xlu0 %1030 }
 0x212   : > { %v1976_v32 = vpop.eup %1975  ;;  %v1388_v31 = vadd.f32 %v1356_v49, %v2478_v34  ;;  %v1077_v56 = vmax.f32 %v1033_v25, 1e-24  ;;  %v1076_v37 = vmax.f32 %v1031_v27, 1e-24 }
 0x213   : > { %v1978_v0 = vpop.eup %1977  ;;  %v1359_v53 = vmul.f32 %v1976_v32, %v2329_v59  ;;  %1421 = vst [vmem:[%s2248_s12 + $0x58] sm:$0xff] %v1389_v30 }
 0x214   : > { %v1358_v54 = vmul.f32 %v1978_v0, %v2332_v62  ;;  %1987 = vrsqrt.f32 %v1077_v56  ;;  %1420 = vst [vmem:[%s2248_s12 + $0x50] sm:$0xff] %v1388_v31 }
 0x215   : > { %v1391_v33 = vadd.f32 %v1359_v53, %v2481_v38  ;;  %1989 = vrsqrt.f32 %v1076_v37  ;;  %v1037_v14 = vpop.xlane.xlu1 %1036  ;;  %v1035_v15 = vpop.xlane.xlu0 %1034 }
 0x216   : > { %v1980_v1 = vpop.eup %1979  ;;  %v1390_v34 = vadd.f32 %v1358_v54, %v2484_v39  ;;  %v1079_v2 = vmax.f32 %v1037_v14, 1e-24  ;;  %v1078_v10 = vmax.f32 %v1035_v15, 1e-24 }
 0x217   : > { %v1982_v35 = vpop.eup %1981  ;;  %v1361_v59 = vmul.f32 %v1980_v1, %v2334_v63  ;;  %1423 = vst [vmem:[%s2248_s12 + $0x68] sm:$0xff] %v1391_v33  ;;  %v2680_v1 = vld [vmem:[#allocation12_spill] sm:$0xff] }
 0x218   : > { %v1360_v62 = vmul.f32 %v1982_v35, %v2339_v3  ;;  %1991 = vrsqrt.f32 %v1079_v2  ;;  %1422 = vst [vmem:[%s2248_s12 + $0x60] sm:$0xff] %v1390_v34  ;;  %v2681_v2 = vld [vmem:[#allocation5_spill] sm:$0xff]  ;;  %v2682_v35 = vld [vmem:[#allocation6_spill] sm:$0xff] }
 0x219   : > { %v1393_v38 = vadd.f32 %v1361_v59, %v2487_v43  ;;  %1993 = vrsqrt.f32 %v1078_v10  ;;  %v1041_v36 = vpop.xlane.xlu1 %1040  ;;  %v1039_v40 = vpop.xlane.xlu0 %1038  ;;  %v2683_v59 = vld [vmem:[#allocation13_spill] sm:$0xff] }
 0x21a   : > { %v1984_v42 = vpop.eup %1983  ;;  %v1392_v39 = vadd.f32 %v1360_v62, %v2490_v44  ;;  %v1081_v16 = vmax.f32 %v1041_v36, 1e-24  ;;  %v1080_v18 = vmax.f32 %v1039_v40, 1e-24  ;;  %v2684_v36 = vld [vmem:[#allocation14_spill] sm:$0xff] }
 0x21b   : > { %v1986_v11 = vpop.eup %1985  ;;  %v1363_v63 = vmul.f32 %v1984_v42, %v2341_v4  ;;  %1425 = vst [vmem:[%s2248_s12 + $0x78] sm:$0xff] %v1393_v38 }
 0x21c   : > { %v1362_v3 = vmul.f32 %v1986_v11, %v2346_v7  ;;  %1995 = vrsqrt.f32 %v1081_v16  ;;  %1424 = vst [vmem:[%s2248_s12 + $0x70] sm:$0xff] %v1392_v39  ;;  %v2685_v39 = vld [vmem:[#allocation7_spill] sm:$0xff] }
 0x21d   : > { %v1395_v43 = vadd.f32 %v1363_v63, %v2493_v46  ;;  %1997 = vrsqrt.f32 %v1080_v18  ;;  %v1045_v26 = vpop.xlane.xlu1 %1044  ;;  %v1043_v22 = vpop.xlane.xlu0 %1042  ;;  %v2686_v18 = vld [vmem:[#allocation8_spill] sm:$0xff]  ;;  %v2687_v63 = vld [vmem:[#allocation15_spill] sm:$0xff] }
 0x21e   : > { %v1988_v41 = vpop.eup %1987  ;;  %v1394_v44 = vadd.f32 %v1362_v3, %v2496_v50  ;;  %v1083_v45 = vmax.f32 %v1045_v26, 1e-24  ;;  %v1082_v19 = vmax.f32 %v1043_v22, 1e-24 }
 0x21f   : > { %v1990_v5 = vpop.eup %1989  ;;  %v1365_v4 = vmul.f32 %v1988_v41, %v2354_v12  ;;  %1427 = vst [vmem:[%s2248_s12 + $0x88] sm:$0xff] %v1395_v43  ;;  %v2688_v41 = vld [vmem:[#allocation9_spill] sm:$0xff] }
 0x220   : > { %v1364_v7 = vmul.f32 %v1990_v5, %v2356_v13  ;;  %1999 = vrsqrt.f32 %v1083_v45  ;;  %1426 = vst [vmem:[%s2248_s12 + $0x80] sm:$0xff] %v1394_v44  ;;  %v2689_v45 = vld [vmem:[#allocation10_spill] sm:$0xff]  ;;  %v2690_v5 = vld [vmem:[#allocation16_spill] sm:$0xff] }
 0x221   : > { %v1397_v46 = vadd.f32 %v1365_v4, %v2499_v51  ;;  %2001 = vrsqrt.f32 %v1082_v19  ;;  %v1049_v6 = vpop.xlane.xlu1 %1048  ;;  %v1047_v24 = vpop.xlane.xlu0 %1046 }
 0x222   : > { %v1992_v23 = vpop.eup %1991  ;;  %v1396_v50 = vadd.f32 %v1364_v7, %v2502_v52  ;;  %v1085_v9 = vmax.f32 %v1049_v6, 1e-24  ;;  %v1084_v55 = vmax.f32 %v1047_v24, 1e-24  ;;  %v2691_v7 = vld [vmem:[#allocation17_spill] sm:$0xff] }
 0x223   : > { %v1994_v8 = vpop.eup %1993  ;;  %v1367_v12 = vmul.f32 %v1992_v23, %v2360_v17  ;;  %1429 = vst [vmem:[%s2248_s12 + $0x98] sm:$0xff] %v1397_v46 }
 0x224   : > { %v1366_v13 = vmul.f32 %v1994_v8, %v2364_v20  ;;  %2003 = vrsqrt.f32 %v1085_v9  ;;  %1428 = vst [vmem:[%s2248_s12 + $0x90] sm:$0xff] %v1396_v50 }
 0x225   : > { %v1399_v51 = vadd.f32 %v1367_v12, %v2505_v57  ;;  %2005 = vrsqrt.f32 %v1084_v55  ;;  %v1053_v48 = vpop.xlane.xlu1 %1052  ;;  %v1051_v49 = vpop.xlane.xlu0 %1050 }
 0x226   : > { %v1996_v30 = vpop.eup %1995  ;;  %v1398_v52 = vadd.f32 %v1366_v13, %v2508_v58  ;;  %v1087_v25 = vmax.f32 %v1053_v48, 1e-24  ;;  %v1086_v27 = vmax.f32 %v1051_v49, 1e-24 }
 0x227   : > { %v1998_v32 = vpop.eup %1997  ;;  %v1369_v17 = vmul.f32 %v1996_v30, %v2366_v21  ;;  %1431 = vst [vmem:[%s2248_s12 + $0xa8] sm:$0xff] %v1399_v51 }
 0x228   : > { %v1368_v20 = vmul.f32 %v1998_v32, %v2371_v28  ;;  %2007 = vrsqrt.f32 %v1087_v25  ;;  %1430 = vst [vmem:[%s2248_s12 + $0xa0] sm:$0xff] %v1398_v52  ;;  %v2678_v28 = vld [vmem:[#allocation4_spill] sm:$0xff] }
 0x229   : > { %v1401_v57 = vadd.f32 %v1369_v17, %v2511_v60  ;;  %2009 = vrsqrt.f32 %v1086_v27  ;;  %v1057_v31 = vpop.xlane.xlu1 %1056  ;;  %v1055_v56 = vpop.xlane.xlu0 %1054  ;;  %v2679_v60 = vld [vmem:[#allocation11_spill] sm:$0xff] }
 0x22a   : > { %v2000_v37 = vpop.eup %1999  ;;  %v1400_v58 = vadd.f32 %v1368_v20, %v2514_v61  ;;  %v1089_v0 = vmax.f32 %v1057_v31, 1e-24  ;;  %v1088_v53 = vmax.f32 %v1055_v56, 1e-24 }
 0x22b   : > { %v2002_v54 = vpop.eup %2001  ;;  %v1371_v21 = vmul.f32 %v2000_v37, %v2373_v29  ;;  %1433 = vst [vmem:[%s2248_s12 + $0xb8] sm:$0xff] %v1401_v57 }
 0x22c   : > { %v1370_v33 = vmul.f32 %v2002_v54, %v2678_v28  ;;  %2011 = vrsqrt.f32 %v1089_v0  ;;  %1432 = vst [vmem:[%s2248_s12 + $0xb0] sm:$0xff] %v1400_v58 }
 0x22d   : > { %v1403_v14 = vadd.f32 %v1371_v21, %v2679_v60  ;;  %2013 = vrsqrt.f32 %v1088_v53 }
 0x22e   : > { %v2004_v15 = vpop.eup %2003  ;;  %v1402_v34 = vadd.f32 %v1370_v33, %v2680_v1 }
 0x22f   : > { %v2006_v61 = vpop.eup %2005  ;;  %v1373_v10 = vmul.f32 %v2004_v15, %v2681_v2  ;;  %1435 = vst [vmem:[%s2248_s12 + $0xc8] sm:$0xff] %v1403_v14 }
 0x230   : > { %v1372_v29 = vmul.f32 %v2006_v61, %v2682_v35  ;;  %1434 = vst [vmem:[%s2248_s12 + $0xc0] sm:$0xff] %v1402_v34 }
 0x231   : > { %v1405_v62 = vadd.f32 %v1373_v10, %v2683_v59 }
 0x232   : > { %v2008_v38 = vpop.eup %2007  ;;  %v1404_v40 = vadd.f32 %v1372_v29, %v2684_v36 }
 0x233   : > { %v2010_v42 = vpop.eup %2009  ;;  %v1375_v16 = vmul.f32 %v2008_v38, %v2685_v39  ;;  %1437 = vst [vmem:[%s2248_s12 + $0xd8] sm:$0xff] %v1405_v62 }
 0x234   : > { %v1374_v11 = vmul.f32 %v2010_v42, %v2686_v18  ;;  %1436 = vst [vmem:[%s2248_s12 + $0xd0] sm:$0xff] %v1404_v40 }
 0x235   : > { %v1407_v3 = vadd.f32 %v1375_v16, %v2687_v63 }
 0x236   : > { %v2012_v43 = vpop.eup %2011  ;;  %v1406_v26 = vadd.f32 %v1374_v11, %v2534_v47 }
 0x237   : > { %v2014_v22 = vpop.eup %2013  ;;  %v1377_v44 = vmul.f32 %v2012_v43, %v2688_v41  ;;  %1439 = vst [vmem:[%s2248_s12 + $0xe8] sm:$0xff] %v1407_v3 }
 0x238   : > { %1438 = vst [vmem:[%s2248_s12 + $0xe0] sm:$0xff] %v1406_v26  ;;  %v1376_v19 = vmul.f32 %v2014_v22, %v2689_v45 }
 0x239   : > { %v1409_v4 = vadd.f32 %v1377_v44, %v2690_v5 }
 0x23a   : > { %v1408_v46 = vadd.f32 %v1376_v19, %v2691_v7 }
 0x23b   : > { %1441 = vst [vmem:[%s2248_s12 + $0xf8] sm:$0xff] %v1409_v4 }
 0x23c   : > { %1440 = vst [vmem:[%s2248_s12 + $0xf0] sm:$0xff] %v1408_v46 }
 0x23d PF: > { %s15_s21 = sadd.s32 1, %s2069_s21   ;;  %s2692_s15 = smov %s2049_s16 }
 0x23e   : > { %p12_p0 = scmp.ge.s32.totalorder %s15_s21, 6   ;;  %s2693_s16 = smov %s2148_s28 }
 0x23f   : > { %s2694_s17 = smov %s2061_s19  ;;  %s2695_s18 = smov %s2065_s20 }
 0x240   : > { %s2696_s19 = smov %s2699_s22  ;;  %s2697_s20 = smov %s2703_s23 }
 0x241   :  { %14 = sbr.rel (!%p12_p0) target bundleno = 4 (0x4), region = 134 }

// kernel: llmcrec_forward.13
= control target key start
LH: loop header
LB: loop body
LE: loop exit
PB: predicated region body
PF: predicated region fallthrough
CT: control target
= control target key end

     0   :  { %10 = vsyncpa [#allocation5], 0  ;;  %s2087_s15 = smov 0   ;;  %s2089_s16 = smov 0   ;;  %s2663_s0 = inlined_call_operand.vmem [shape: bf16[256,512], index: 0, kind: input, shape index: {}]   ;;  %s2664_s1 = inlined_call_operand.vmem [shape: bf16[512,128], index: 1, kind: input, shape index: {}]   ;;  %s2665_s2 = inlined_call_operand.vmem [shape: f32[256,128], index: 2, kind: input, shape index: {}, may-alias: {2,4}]   ;;  %s2666_s3 = inlined_call_operand.hbm [shape: bf16[256,128], index: 3, kind: output, shape index: {0}]   ;;  %s2667_s4 = inlined_call_operand.vmem [shape: f32[256,128], index: 4, kind: output, shape index: {1}, may-alias: {2,4}]  }
   0x1   :  { %s2091_s17 = smov 0   ;;  %s2093_s18 = smov 0  }
   0x2   :  { %s2095_s19 = smov 0  }
   0x3 LB: > { %s1561_s20 = sadd.s32 4294967295, %s2056_s19   ;;  %s25_s21 = sadd.s32 1, %s2052_s18  ;;  %s2056_s19 = sphi %s2095_s19, %s16_s19   ;;  %s2052_s18 = sphi %s2093_s18, %s2672_s18   ;;  %s2048_s17 = sphi %s2091_s17, %s2671_s17   ;;  %s2044_s16 = sphi %s2089_s16, %s2670_s16   ;;  %s2040_s15 = sphi %s2087_s15, %s2669_s15  }
   0x4   : > { %p26_p0 = scmp.ge.s32.totalorder %s25_s21, 4  ;;  %p44_p1 = scmp.ne.s32.totalorder %s2044_s16, %s2040_s15 }
   0x5   : > { %p45_p2 = scmp.eq.s32.totalorder %s2056_s19, 0  ;;  %s37_s23 = sadd.s32 1, %s2044_s16 }
   0x6   : > { %s2674_s21 = smov (%p26_p0, %s25_s21), 0  ;;  %p1564_p5 = scmp.ge.s32.totalorder %s2056_s19, 4 }
   0x7   : > { %p46_p3 = por %p45_p2, %p44_p1  ;;  %s33_s22 = ssub.s32 %s2052_s18, %s2674_s21 }
   0x8   : > { %p35_p4 = scmp.eq.s32.totalorder %s33_s22, 0  ;;  %183 = sbr.rel (%p1564_p5) target bundleno = 40 (0x28), region = 20 }
   0xa   : > { %s2123_s24 = scalar_select %p35_p4, %s2044_s16, %s37_s23  }
   0xf   : > { %186 = sbr.rel (!%p46_p3) target bundleno = 40 (0x28), region = 24  ;;  %s188_s25 = sand.u32 (%p46_p3), 1, %s2044_s16  }
  0x10   : > { %s1566_s26 = sshll.u32 (%p46_p3), %s2052_s18, 2  ;;  %s1565_s27 = sshll.u32 (%p46_p3), %s188_s25, 7 }
  0x11   : > { %s2131_s30 = scalar_lea.vmem (%p46_p3), %s2663_s0, %s1566_s26  ;;  %s2135_s5 = scalar_lea.vmem (%p46_p3), [#allocation3], %s1565_s27 }
  0x12   : > { %v211_v0 = vld [vmem:[%s2131_s30] sm:$0xf] (%p46_p3)  ;;  %v213_v1 = vld [vmem:[%s2131_s30 + $0x10] sm:$0xf] (%p46_p3) }
  0x13   : > { %212 = vst [vmem:[%s2135_s5] sm:$0xf] (%p46_p3), %v211_v0  ;;  %214 = vst [vmem:[%s2135_s5 + $0x4] sm:$0xf] (%p46_p3), %v213_v1  ;;  %v215_v2 = vld [vmem:[%s2131_s30 + $0x20] sm:$0xf] (%p46_p3) }
  0x14   : > { %v217_v3 = vld [vmem:[%s2131_s30 + $0x30] sm:$0xf] (%p46_p3)  ;;  %v219_v4 = vld [vmem:[%s2131_s30 + $0x40] sm:$0xf] (%p46_p3)  ;;  %216 = vst [vmem:[%s2135_s5 + $0x8] sm:$0xf] (%p46_p3), %v215_v2 }
  0x15   : > { %218 = vst [vmem:[%s2135_s5 + $0xc] sm:$0xf] (%p46_p3), %v217_v3  ;;  %220 = vst [vmem:[%s2135_s5 + $0x10] sm:$0xf] (%p46_p3), %v219_v4  ;;  %v221_v5 = vld [vmem:[%s2131_s30 + $0x50] sm:$0xf] (%p46_p3) }
  0x16   : > { %v223_v6 = vld [vmem:[%s2131_s30 + $0x60] sm:$0xf]  ;;  %v225_v7 = vld [vmem:[%s2131_s30 + $0x70] sm:$0xf]  ;;  %222 = vst [vmem:[%s2135_s5 + $0x14] sm:$0xf] %v221_v5 }
  0x17   : > { %224 = vst [vmem:[%s2135_s5 + $0x18] sm:$0xf] %v223_v6  ;;  %226 = vst [vmem:[%s2135_s5 + $0x1c] sm:$0xf] %v225_v7  ;;  %v227_v8 = vld [vmem:[%s2131_s30 + $0x80] sm:$0xf] }
  0x18   : > { %v229_v9 = vld [vmem:[%s2131_s30 + $0x90] sm:$0xf]  ;;  %v231_v10 = vld [vmem:[%s2131_s30 + $0xa0] sm:$0xf]  ;;  %228 = vst [vmem:[%s2135_s5 + $0x20] sm:$0xf] %v227_v8 }
  0x19   : > { %230 = vst [vmem:[%s2135_s5 + $0x24] sm:$0xf] %v229_v9  ;;  %232 = vst [vmem:[%s2135_s5 + $0x28] sm:$0xf] %v231_v10  ;;  %v233_v11 = vld [vmem:[%s2131_s30 + $0xb0] sm:$0xf] }
  0x1a   : > { %v235_v12 = vld [vmem:[%s2131_s30 + $0xc0] sm:$0xf]  ;;  %v237_v13 = vld [vmem:[%s2131_s30 + $0xd0] sm:$0xf]  ;;  %234 = vst [vmem:[%s2135_s5 + $0x2c] sm:$0xf] %v233_v11 }
  0x1b   : > { %236 = vst [vmem:[%s2135_s5 + $0x30] sm:$0xf] %v235_v12  ;;  %238 = vst [vmem:[%s2135_s5 + $0x34] sm:$0xf] %v237_v13  ;;  %v239_v14 = vld [vmem:[%s2131_s30 + $0xe0] sm:$0xf] }
  0x1c   : > { %v241_v15 = vld [vmem:[%s2131_s30 + $0xf0] sm:$0xf]  ;;  %v243_v16 = vld [vmem:[%s2131_s30 + $0x100] sm:$0xf]  ;;  %240 = vst [vmem:[%s2135_s5 + $0x38] sm:$0xf] %v239_v14 }
  0x1d   : > { %242 = vst [vmem:[%s2135_s5 + $0x3c] sm:$0xf] %v241_v15  ;;  %244 = vst [vmem:[%s2135_s5 + $0x40] sm:$0xf] %v243_v16  ;;  %v245_v17 = vld [vmem:[%s2131_s30 + $0x110] sm:$0xf] }
  0x1e   : > { %v247_v18 = vld [vmem:[%s2131_s30 + $0x120] sm:$0xf]  ;;  %v249_v19 = vld [vmem:[%s2131_s30 + $0x130] sm:$0xf]  ;;  %246 = vst [vmem:[%s2135_s5 + $0x44] sm:$0xf] %v245_v17 }
  0x1f   : > { %248 = vst [vmem:[%s2135_s5 + $0x48] sm:$0xf] %v247_v18  ;;  %250 = vst [vmem:[%s2135_s5 + $0x4c] sm:$0xf] %v249_v19  ;;  %v251_v20 = vld [vmem:[%s2131_s30 + $0x140] sm:$0xf] }
  0x20   : > { %v253_v21 = vld [vmem:[%s2131_s30 + $0x150] sm:$0xf]  ;;  %v255_v22 = vld [vmem:[%s2131_s30 + $0x160] sm:$0xf]  ;;  %252 = vst [vmem:[%s2135_s5 + $0x50] sm:$0xf] %v251_v20 }
  0x21   : > { %254 = vst [vmem:[%s2135_s5 + $0x54] sm:$0xf] %v253_v21  ;;  %256 = vst [vmem:[%s2135_s5 + $0x58] sm:$0xf] %v255_v22  ;;  %v257_v23 = vld [vmem:[%s2131_s30 + $0x170] sm:$0xf] }
  0x22   : > { %v259_v24 = vld [vmem:[%s2131_s30 + $0x180] sm:$0xf]  ;;  %v261_v25 = vld [vmem:[%s2131_s30 + $0x190] sm:$0xf]  ;;  %258 = vst [vmem:[%s2135_s5 + $0x5c] sm:$0xf] %v257_v23 }
  0x23   : > { %260 = vst [vmem:[%s2135_s5 + $0x60] sm:$0xf] %v259_v24  ;;  %262 = vst [vmem:[%s2135_s5 + $0x64] sm:$0xf] %v261_v25  ;;  %v263_v26 = vld [vmem:[%s2131_s30 + $0x1a0] sm:$0xf] }
  0x24   : > { %v265_v27 = vld [vmem:[%s2131_s30 + $0x1b0] sm:$0xf]  ;;  %v267_v28 = vld [vmem:[%s2131_s30 + $0x1c0] sm:$0xf]  ;;  %264 = vst [vmem:[%s2135_s5 + $0x68] sm:$0xf] %v263_v26 }
  0x25   : > { %266 = vst [vmem:[%s2135_s5 + $0x6c] sm:$0xf] %v265_v27  ;;  %268 = vst [vmem:[%s2135_s5 + $0x70] sm:$0xf] %v267_v28  ;;  %v269_v29 = vld [vmem:[%s2131_s30 + $0x1d0] sm:$0xf] }
  0x26   : > { %v271_v30 = vld [vmem:[%s2131_s30 + $0x1e0] sm:$0xf]  ;;  %v273_v31 = vld [vmem:[%s2131_s30 + $0x1f0] sm:$0xf]  ;;  %270 = vst [vmem:[%s2135_s5 + $0x74] sm:$0xf] %v269_v29 }
  0x27   : > { %272 = vst [vmem:[%s2135_s5 + $0x78] sm:$0xf] %v271_v30  ;;  %274 = vst [vmem:[%s2135_s5 + $0x7c] sm:$0xf] %v273_v31 }
  0x28 PF: > { %p1567_p6 = scmp.ge.s32.totalorder %s2056_s19, 1  ;;  %p369_p7 = scmp.lt.s32.totalorder %s2056_s19, 5 }
  0x2a   : > { %p370_p8 = pnand %p1567_p6, %p369_p7 }
  0x2b   : > { %s376_s6 = sand.u32 (!%p370_p8), 1, %s2040_s15   ;;  %s1569_s7 = sshll.u32 (!%p370_p8), %s2048_s17, 4 }
  0x2c   : > { %373 = sbr.rel (%p370_p8) target bundleno = 747 (0x2eb), region = 69  ;;  %s1568_s8 = sshll.u32 (!%p370_p8), %s376_s6, 7 }
  0x2d   : > { %p413_p9 = scmp.lt.s32.totalorder (!%p370_p8), %s1569_s7, 63  ;;  %s2208_s13 = scalar_lea.vmem (!%p370_p8), [#allocation3], %s1568_s8 }
  0x2e   : > { %p1571_p10 = scmp.ne.s32.totalorder (!%p370_p8), %s2048_s17, 0 }
  0x33   : > { %s2676_s7 = smov (!%p413_p9, %s1569_s7), 63  ;;  %435 = sbr.rel (%p1571_p10) target bundleno = 69 (0x45), region = 77 }
  0x34   : > { %s1570_s9 = sshll.u32 %s2676_s7, 2  ;;  %v2058_v32 = vmov (!%p1571_p10), 0.0  }
  0x35   : > { %s2206_s12 = scalar_lea.vmem %s2664_s1, %s1570_s9  ;;  %436 = vst [vmem:[#allocation2] sm:$0xff] (!%p1571_p10), %v2058_v32  ;;  %437 = vst [vmem:[#allocation2 + $0x8] sm:$0xff] (!%p1571_p10), %v2058_v32 }
  0x36   : > { %438 = vst [vmem:[#allocation2 + $0x10] sm:$0xff] (!%p1571_p10), %v2058_v32  ;;  %439 = vst [vmem:[#allocation2 + $0x18] sm:$0xff] (!%p1571_p10), %v2058_v32 }
  0x37   : > { %440 = vst [vmem:[#allocation2 + $0x20] sm:$0xff] (!%p1571_p10), %v2058_v32  ;;  %441 = vst [vmem:[#allocation2 + $0x28] sm:$0xff] (!%p1571_p10), %v2058_v32 }
  0x38   : > { %442 = vst [vmem:[#allocation2 + $0x30] sm:$0xff] (!%p1571_p10), %v2058_v32  ;;  %443 = vst [vmem:[#allocation2 + $0x38] sm:$0xff] (!%p1571_p10), %v2058_v32 }
  0x39   : > { %444 = vst [vmem:[#allocation2 + $0x40] sm:$0xff] (!%p1571_p10), %v2058_v32  ;;  %445 = vst [vmem:[#allocation2 + $0x48] sm:$0xff] (!%p1571_p10), %v2058_v32 }
  0x3a   : > { %446 = vst [vmem:[#allocation2 + $0x50] sm:$0xff] %v2058_v32  ;;  %447 = vst [vmem:[#allocation2 + $0x58] sm:$0xff] %v2058_v32 }
  0x3b   : > { %448 = vst [vmem:[#allocation2 + $0x60] sm:$0xff] %v2058_v32  ;;  %449 = vst [vmem:[#allocation2 + $0x68] sm:$0xff] %v2058_v32 }
  0x3c   : > { %450 = vst [vmem:[#allocation2 + $0x70] sm:$0xff] %v2058_v32  ;;  %451 = vst [vmem:[#allocation2 + $0x78] sm:$0xff] %v2058_v32 }
  0x3d   : > { %452 = vst [vmem:[#allocation2 + $0x80] sm:$0xff] %v2058_v32  ;;  %453 = vst [vmem:[#allocation2 + $0x88] sm:$0xff] %v2058_v32 }
  0x3e   : > { %454 = vst [vmem:[#allocation2 + $0x90] sm:$0xff] %v2058_v32  ;;  %455 = vst [vmem:[#allocation2 + $0x98] sm:$0xff] %v2058_v32 }
  0x3f   : > { %456 = vst [vmem:[#allocation2 + $0xa0] sm:$0xff] %v2058_v32  ;;  %457 = vst [vmem:[#allocation2 + $0xa8] sm:$0xff] %v2058_v32 }
  0x40   : > { %458 = vst [vmem:[#allocation2 + $0xb0] sm:$0xff] %v2058_v32  ;;  %459 = vst [vmem:[#allocation2 + $0xb8] sm:$0xff] %v2058_v32 }
  0x41   : > { %460 = vst [vmem:[#allocation2 + $0xc0] sm:$0xff] %v2058_v32  ;;  %461 = vst [vmem:[#allocation2 + $0xc8] sm:$0xff] %v2058_v32 }
  0x42   : > { %462 = vst [vmem:[#allocation2 + $0xd0] sm:$0xff] %v2058_v32  ;;  %463 = vst [vmem:[#allocation2 + $0xd8] sm:$0xff] %v2058_v32 }
  0x43   : > { %464 = vst [vmem:[#allocation2 + $0xe0] sm:$0xff] %v2058_v32  ;;  %465 = vst [vmem:[#allocation2 + $0xe8] sm:$0xff] %v2058_v32 }
  0x44   : > { %466 = vst [vmem:[#allocation2 + $0xf0] sm:$0xff] %v2058_v32  ;;  %467 = vst [vmem:[#allocation2 + $0xf8] sm:$0xff] %v2058_v32 }
  0x45 PF: > { %v1900_v33 = vld [vmem:[%s2206_s12] sm:$0xff]   ;;  %v1901_v34 = vld [vmem:[%s2206_s12 + $0x8] sm:$0xff]   ;;  %v1902_v35 = vld [vmem:[%s2206_s12 + $0x10] sm:$0xff]   ;;  %p1596_p11 = scmp.ne.s32.totalorder %s2048_s17, 3 }
  0x46   : > { %1786 = vmatprep.subr.bf16.mxu0 %v1900_v33  ;;  %1834 = vmatprep.subr.bf16.mxu1 %v1900_v33  ;;  %v1903_v36 = vld [vmem:[%s2206_s12 + $0x18] sm:$0xff]   ;;  %v1908_v37 = vld [vmem:[%s2208_s13] sm:$0xff]   ;;  %v1905_v40 = vld [vmem:[%s2206_s12 + $0x28] sm:$0xff]  }
  0x47   : > { %1787 = vmatpush3.bf16.msra.mxu0 %v1900_v33  ;;  %1842 = vmatpush3.bf16.msra.mxu1 %v1900_v33  ;;  %v1909_v38 = vld [vmem:[%s2208_s13 + $0x40] sm:$0xff]   ;;  %v1906_v41 = vld [vmem:[%s2206_s12 + $0x30] sm:$0xff]   ;;  %v1907_v42 = vld [vmem:[%s2206_s12 + $0x38] sm:$0xff]  }
  0x48   : > { %1788 = vmatprep.subr.bf16.mxu0 %v1901_v34  ;;  %1835 = vmatprep.subr.bf16.mxu1 %v1901_v34  ;;  %v1904_v39 = vld [vmem:[%s2206_s12 + $0x20] sm:$0xff]   ;;  %v1910_v43 = vld [vmem:[%s2208_s13 + $0x8] sm:$0xff]   ;;  %v1912_v45 = vld [vmem:[%s2208_s13 + $0x10] sm:$0xff]  }
  0x49   : > { %1802 = vmatprep.mubr.bf16.mxu0 %v1908_v37  ;;  %1818 = vmatprep.mubr.bf16.mxu1 %v1909_v38  ;;  %v1911_v44 = vld [vmem:[%s2208_s13 + $0x48] sm:$0xff]   ;;  %v1913_v46 = vld [vmem:[%s2208_s13 + $0x50] sm:$0xff]   ;;  %v1914_v47 = vld [vmem:[%s2208_s13 + $0x18] sm:$0xff]  }
  0x4a   : > { %v1915_v48 = vld [vmem:[%s2208_s13 + $0x58] sm:$0xff]   ;;  %v1916_v49 = vld [vmem:[%s2208_s13 + $0x20] sm:$0xff]   ;;  %v1918_v51 = vld [vmem:[%s2208_s13 + $0x28] sm:$0xff]  }
  0x4b   : > { %1789 = vmatpush3.bf16.msra.mxu0 %v1901_v34  ;;  %1843 = vmatpush3.bf16.msra.mxu1 %v1901_v34  ;;  %v1917_v50 = vld [vmem:[%s2208_s13 + $0x60] sm:$0xff]   ;;  %v1919_v52 = vld [vmem:[%s2208_s13 + $0x68] sm:$0xff]   ;;  %v1920_v53 = vld [vmem:[%s2208_s13 + $0x30] sm:$0xff]  }
  0x4c   : > { %1790 = vmatprep.subr.bf16.mxu0 %v1902_v35  ;;  %1836 = vmatprep.subr.bf16.mxu1 %v1902_v35  ;;  %v1921_v54 = vld [vmem:[%s2208_s13 + $0x70] sm:$0xff]   ;;  %v1922_v55 = vld [vmem:[%s2208_s13 + $0x38] sm:$0xff]   ;;  %v468_v59 = vld [vmem:[#allocation2] sm:$0xff] }
  0x4d   : > { %v1923_v56 = vld [vmem:[%s2208_s13 + $0x78] sm:$0xff]   ;;  %v470_v57 = vld [vmem:[#allocation2 + $0x10] sm:$0xff]  ;;  %v484_v60 = vld [vmem:[#allocation2 + $0x80] sm:$0xff] }
  0x4e   : > { %v486_v58 = vld [vmem:[#allocation2 + $0x90] sm:$0xff]  ;;  %v471_v63 = vld [vmem:[#allocation2 + $0x18] sm:$0xff]  ;;  %v469_v5 = vld [vmem:[#allocation2 + $0x8] sm:$0xff] }
  0x4f   : > { %1791 = vmatpush3.bf16.msra.mxu0 %v1902_v35  ;;  %1844 = vmatpush3.bf16.msra.mxu1 %v1902_v35  ;;  %v487_v0 = vld [vmem:[#allocation2 + $0x98] sm:$0xff]  ;;  %v485_v6 = vld [vmem:[#allocation2 + $0x88] sm:$0xff]  ;;  %v474_v17 = vld [vmem:[#allocation2 + $0x30] sm:$0xff] }
  0x50   : > { %1792 = vmatprep.subr.bf16.mxu0 %v1903_v36  ;;  %1837 = vmatprep.subr.bf16.mxu1 %v1903_v36  ;;  %v490_v18 = vld [vmem:[#allocation2 + $0xb0] sm:$0xff]  ;;  %v472_v19 = vld [vmem:[#allocation2 + $0x20] sm:$0xff]  ;;  %v475_v23 = vld [vmem:[#allocation2 + $0x38] sm:$0xff] }
  0x51   : > { %v488_v20 = vld [vmem:[#allocation2 + $0xa0] sm:$0xff]  ;;  %v491_v24 = vld [vmem:[#allocation2 + $0xb8] sm:$0xff]  ;;  %v473_v29 = vld [vmem:[#allocation2 + $0x28] sm:$0xff] }
  0x52   : > { %v489_v30 = vld [vmem:[#allocation2 + $0xa8] sm:$0xff] }
  0x53   : > { %1793 = vmatpush3.bf16.msra.mxu0 %v1903_v36  ;;  %1845 = vmatpush3.bf16.msra.mxu1 %v1903_v36 }
  0x54   : > { %1794 = vmatprep.subr.bf16.mxu0 %v1904_v39  ;;  %1838 = vmatprep.subr.bf16.mxu1 %v1904_v39 }
  0x57   : > { %1795 = vmatpush3.bf16.msra.mxu0 %v1904_v39  ;;  %1846 = vmatpush3.bf16.msra.mxu1 %v1904_v39 }
  0x58   : > { %1796 = vmatprep.subr.bf16.mxu0 %v1905_v40  ;;  %1839 = vmatprep.subr.bf16.mxu1 %v1905_v40 }
  0x5b   : > { %1797 = vmatpush3.bf16.msra.mxu0 %v1905_v40  ;;  %1847 = vmatpush3.bf16.msra.mxu1 %v1905_v40 }
  0x5c   : > { %1798 = vmatprep.subr.bf16.mxu0 %v1906_v41  ;;  %1840 = vmatprep.subr.bf16.mxu1 %v1906_v41 }
  0x5f   : > { %1799 = vmatpush3.bf16.msra.mxu0 %v1906_v41  ;;  %1848 = vmatpush3.bf16.msra.mxu1 %v1906_v41  ;;  %v478_v41 = vld [vmem:[#allocation2 + $0x50] sm:$0xff] }
  0x60   : > { %1800 = vmatprep.subr.bf16.mxu0 %v1907_v42  ;;  %1841 = vmatprep.subr.bf16.mxu1 %v1907_v42 }
  0x63   : > { %1801 = vmatpush3.bf16.msra.mxu0 %v1907_v42  ;;  %1849 = vmatpush3.bf16.msra.mxu1 %v1907_v42  ;;  %v494_v42 = vld [vmem:[#allocation2 + $0xd0] sm:$0xff] }
  0x66   : > { %1803 = vmatmul.mubr.bf16.vlgmr.msra.gmra.mrb[0].mxu0 %v1910_v43  ;;  %1819 = vmatmul.mubr.bf16.vlgmr.msra.gmra.mrb[0].mxu1 %v1911_v44  ;;  %v476_v43 = vld [vmem:[#allocation2 + $0x40] sm:$0xff] }
  0x67   : > { %1806 = vmatprep.mubr.bf16.mxu0 %v1912_v45  ;;  %1822 = vmatprep.mubr.bf16.mxu1 %v1913_v46  ;;  %v492_v44 = vld [vmem:[#allocation2 + $0xc0] sm:$0xff] }
  0x6e   : > { %1807 = vmatmul.mubr.bf16.gmra.mrb[4].mxu0 %v1914_v47  ;;  %1823 = vmatmul.mubr.bf16.gmra.mrb[4].mxu1 %v1915_v48  ;;  %v479_v47 = vld [vmem:[#allocation2 + $0x58] sm:$0xff] }
  0x6f   : > { %1810 = vmatprep.mubr.bf16.mxu0 %v1916_v49  ;;  %1826 = vmatprep.mubr.bf16.mxu1 %v1917_v50  ;;  %v495_v48 = vld [vmem:[#allocation2 + $0xd8] sm:$0xff] }
  0x76   : > { %1811 = vmatmul.mubr.bf16.gmra.mrb[8].mxu0 %v1918_v51  ;;  %1827 = vmatmul.mubr.bf16.gmra.mrb[8].mxu1 %v1919_v52 }
  0x77   : > { %1814 = vmatprep.mubr.bf16.mxu0 %v1920_v53  ;;  %1830 = vmatprep.mubr.bf16.mxu1 %v1921_v54  ;;  %v477_v53 = vld [vmem:[#allocation2 + $0x48] sm:$0xff] }
  0x78   : > { %v493_v54 = vld [vmem:[#allocation2 + $0xc8] sm:$0xff] }
  0x7e   : > { %1815 = vmatmul.mubr.bf16.gmra.mrb[12].mxu0 %v1922_v55  ;;  %1831 = vmatmul.mubr.bf16.gmra.mrb[12].mxu1 %v1923_v56 }
 0x139   : > { %v1804_v61 = vpop.f32.mrb[0].mxu0  ;;  %v1820_v62 = vpop.f32.mrb[0].mxu1 }
 0x13a   : > { %v855_v1 = vadd.f32 %v1804_v61, %v470_v57  ;;  %v871_v2 = vadd.f32 %v1820_v62, %v486_v58  ;;  %v726_v3 = vpop.f32.mrb[1].mxu0  ;;  %v790_v4 = vpop.f32.mrb[1].mxu1 }
 0x13b   : > { %v853_v7 = vadd.f32 %v726_v3, %v468_v59  ;;  %v869_v8 = vadd.f32 %v790_v4, %v484_v60  ;;  %v1805_v9 = vpop.f32.mrb[2].mxu0  ;;  %v1821_v10 = vpop.f32.mrb[2].mxu1  ;;  %v480_v3 = vld [vmem:[#allocation2 + $0x60] sm:$0xff] }
 0x13c   : > { %887 = vst [vmem:[#allocation2 + $0x10] sm:$0xff] %v855_v1  ;;  %903 = vst [vmem:[#allocation2 + $0x90] sm:$0xff] %v871_v2  ;;  %v856_v11 = vadd.f32 %v1805_v9, %v471_v63  ;;  %v872_v12 = vadd.f32 %v1821_v10, %v487_v0  ;;  %v729_v13 = vpop.f32.mrb[3].mxu0  ;;  %v793_v14 = vpop.f32.mrb[3].mxu1  ;;  %v482_v1 = vld [vmem:[#allocation2 + $0x70] sm:$0xff]  ;;  %v496_v4 = vld [vmem:[#allocation2 + $0xe0] sm:$0xff] }
 0x13d   : > { %885 = vst [vmem:[#allocation2] sm:$0xff] %v853_v7  ;;  %901 = vst [vmem:[#allocation2 + $0x80] sm:$0xff] %v869_v8  ;;  %v854_v15 = vadd.f32 %v729_v13, %v469_v5  ;;  %v870_v16 = vadd.f32 %v793_v14, %v485_v6  ;;  %v498_v2 = vld [vmem:[#allocation2 + $0xf0] sm:$0xff]  ;;  %v483_v7 = vld [vmem:[#allocation2 + $0x78] sm:$0xff] }
 0x13e   : > { %888 = vst [vmem:[#allocation2 + $0x18] sm:$0xff] %v856_v11  ;;  %904 = vst [vmem:[#allocation2 + $0x98] sm:$0xff] %v872_v12  ;;  %v499_v8 = vld [vmem:[#allocation2 + $0xf8] sm:$0xff]  ;;  %v481_v13 = vld [vmem:[#allocation2 + $0x68] sm:$0xff] }
 0x13f   : > { %886 = vst [vmem:[#allocation2 + $0x8] sm:$0xff] %v854_v15  ;;  %902 = vst [vmem:[#allocation2 + $0x88] sm:$0xff] %v870_v16  ;;  %v497_v14 = vld [vmem:[#allocation2 + $0xe8] sm:$0xff] }
 0x141   : > { %v1808_v21 = vpop.f32.mrb[4].mxu0  ;;  %v1824_v22 = vpop.f32.mrb[4].mxu1 }
 0x142   : > { %v859_v25 = vadd.f32 %v1808_v21, %v474_v17  ;;  %v875_v26 = vadd.f32 %v1824_v22, %v490_v18  ;;  %v742_v27 = vpop.f32.mrb[5].mxu0  ;;  %v806_v28 = vpop.f32.mrb[5].mxu1 }
 0x143   : > { %v857_v31 = vadd.f32 %v742_v27, %v472_v19  ;;  %v873_v32 = vadd.f32 %v806_v28, %v488_v20  ;;  %v1809_v33 = vpop.f32.mrb[6].mxu0  ;;  %v1825_v34 = vpop.f32.mrb[6].mxu1 }
 0x144   : > { %891 = vst [vmem:[#allocation2 + $0x30] sm:$0xff] %v859_v25  ;;  %907 = vst [vmem:[#allocation2 + $0xb0] sm:$0xff] %v875_v26  ;;  %v860_v35 = vadd.f32 %v1809_v33, %v475_v23  ;;  %v876_v36 = vadd.f32 %v1825_v34, %v491_v24  ;;  %v745_v37 = vpop.f32.mrb[7].mxu0  ;;  %v809_v38 = vpop.f32.mrb[7].mxu1  ;;  %v2236_v25 = vld [vmem:[#allocation2 + $0x10] sm:$0xff] (!%p1596_p11)  ;;  %v2238_v26 = vld [vmem:[#allocation2] sm:$0xff] (!%p1596_p11) }
 0x145   : > { %889 = vst [vmem:[#allocation2 + $0x20] sm:$0xff] %v857_v31  ;;  %905 = vst [vmem:[#allocation2 + $0xa0] sm:$0xff] %v873_v32  ;;  %v858_v39 = vadd.f32 %v745_v37, %v473_v29  ;;  %v874_v40 = vadd.f32 %v809_v38, %v489_v30  ;;  %v2240_v27 = vld [vmem:[#allocation2 + $0x18] sm:$0xff] (!%p1596_p11)  ;;  %v955_v28 = vmul.f32 (!%p1596_p11), %v2236_v25, %v2236_v25  ;;  %v1115_v29 = vmul.f32 (!%p1596_p11), 0.33333334, %v2236_v25 }
 0x146   : > { %892 = vst [vmem:[#allocation2 + $0x38] sm:$0xff] %v860_v35  ;;  %908 = vst [vmem:[#allocation2 + $0xb8] sm:$0xff] %v876_v36  ;;  %v953_v30 = vmul.f32 (!%p1596_p11), %v2238_v26, %v2238_v26  ;;  %v1113_v31 = vmul.f32 (!%p1596_p11), 0.33333334, %v2238_v26  ;;  %v2248_v32 = vld [vmem:[#allocation2 + $0x8] sm:$0xff] (!%p1596_p11)  ;;  %v956_v37 = vmul.f32 (!%p1596_p11), %v2240_v27, %v2240_v27 }
 0x147   : > { %890 = vst [vmem:[#allocation2 + $0x28] sm:$0xff] %v858_v39  ;;  %906 = vst [vmem:[#allocation2 + $0xa8] sm:$0xff] %v874_v40  ;;  %v1116_v33 = vmul.f32 (!%p1596_p11), 0.33333334, %v2240_v27  ;;  %v1114_v34 = vmul.f32 (!%p1596_p11), 0.33333334, %v2248_v32  ;;  %989 = vadd.xlane.f32.xlu1 (!%p1596_p11), %v955_v28  ;;  %v954_v38 = vmul.f32 (!%p1596_p11), %v2248_v32, %v2248_v32 }
 0x148   : > { %985 = vadd.xlane.f32.xlu0 (!%p1596_p11), %v953_v30 }
 0x149   : > { %v1812_v45 = vpop.f32.mrb[8].mxu0  ;;  %v1828_v46 = vpop.f32.mrb[8].mxu1 }
 0x14a   : > { %v863_v49 = vadd.f32 %v1812_v45, %v478_v41  ;;  %v879_v50 = vadd.f32 %v1828_v46, %v494_v42  ;;  %v758_v51 = vpop.f32.mrb[9].mxu0  ;;  %v822_v52 = vpop.f32.mrb[9].mxu1  ;;  %v1675_v42 = vpack.c.bf16 (!%p1596_p11), %v1116_v33, %v1115_v29 }
 0x14b   : > { %v861_v55 = vadd.f32 %v758_v51, %v476_v43  ;;  %v877_v56 = vadd.f32 %v822_v52, %v492_v44  ;;  %v1813_v57 = vpop.f32.mrb[10].mxu0  ;;  %v1829_v58 = vpop.f32.mrb[10].mxu1  ;;  %v1670_v43 = vpack.c.bf16 (!%p1596_p11), %v1114_v34, %v1113_v31  ;;  %v2265_v45 = vld [vmem:[#allocation2 + $0x30] sm:$0xff] (!%p1596_p11)  ;;  %991 = vadd.xlane.f32.xlu1 (!%p1596_p11), %v956_v37 }
 0x14c   : > { %895 = vst [vmem:[#allocation2 + $0x50] sm:$0xff] %v863_v49  ;;  %911 = vst [vmem:[#allocation2 + $0xd0] sm:$0xff] %v879_v50  ;;  %v864_v59 = vadd.f32 %v1813_v57, %v479_v47  ;;  %v880_v60 = vadd.f32 %v1829_v58, %v495_v48  ;;  %v761_v61 = vpop.f32.mrb[11].mxu0  ;;  %v825_v62 = vpop.f32.mrb[11].mxu1  ;;  %v2254_v36 = vld [vmem:[#allocation2 + $0x20] sm:$0xff] (!%p1596_p11)  ;;  %987 = vadd.xlane.f32.xlu0 (!%p1596_p11), %v954_v38  ;;  %v2321_v28 = vld [vmem:[#allocation2 + $0xb0] sm:$0xff] (!%p1596_p11) }
 0x14d   : > { %893 = vst [vmem:[#allocation2 + $0x40] sm:$0xff] %v861_v55  ;;  %909 = vst [vmem:[#allocation2 + $0xc0] sm:$0xff] %v877_v56  ;;  %v862_v63 = vadd.f32 %v761_v61, %v477_v53  ;;  %v878_v0 = vadd.f32 %v825_v62, %v493_v54  ;;  %v1117_v40 = vmul.f32 (!%p1596_p11), 0.33333334, %v2254_v36  ;;  %v2262_v41 = vld [vmem:[#allocation2 + $0x38] sm:$0xff] (!%p1596_p11)  ;;  %v957_v55 = vmul.f32 (!%p1596_p11), %v2254_v36, %v2254_v36 }
 0x14e   : > { %896 = vst [vmem:[#allocation2 + $0x58] sm:$0xff] %v864_v59  ;;  %912 = vst [vmem:[#allocation2 + $0xd8] sm:$0xff] %v880_v60  ;;  %v2252_v35 = vld [vmem:[#allocation2 + $0x28] sm:$0xff] (!%p1596_p11)  ;;  %v1120_v44 = vmul.f32 (!%p1596_p11), 0.33333334, %v2262_v41 }
 0x14f   : > { %894 = vst [vmem:[#allocation2 + $0x48] sm:$0xff] %v862_v63  ;;  %910 = vst [vmem:[#allocation2 + $0xc8] sm:$0xff] %v878_v0  ;;  %v1118_v39 = vmul.f32 (!%p1596_p11), 0.33333334, %v2252_v35  ;;  %v1119_v47 = vmul.f32 (!%p1596_p11), 0.33333334, %v2265_v45  ;;  %v958_v50 = vmul.f32 (!%p1596_p11), %v2252_v35, %v2252_v35 }
 0x150   : > { %1747 = vst [vmem:[#allocation4 + $0x8] sm:$0xff] (!%p1596_p11), %v1675_v42   ;;  %1671 = vst [vmem:[#allocation4] sm:$0xff] (!%p1596_p11), %v1670_v43   ;;  %993 = vadd.xlane.f32.xlu0 (!%p1596_p11), %v957_v55  ;;  %v1135_v33 = vmul.f32 (!%p1596_p11), 0.33333334, %v2321_v28 }
 0x151   : > { %v1816_v5 = vpop.f32.mrb[12].mxu0  ;;  %v1832_v6 = vpop.f32.mrb[12].mxu1  ;;  %920 = sbr.rel (%p1596_p11) target bundleno = 721 (0x2d1), region = 81  ;;  %v1680_v46 = vpack.c.bf16 (!%p1596_p11), %v1118_v39, %v1117_v40  ;;  %v1685_v56 = vpack.c.bf16 (!%p1596_p11), %v1120_v44, %v1119_v47  ;;  %995 = vadd.xlane.f32.xlu1 (!%p1596_p11), %v958_v50 }
 0x152   : > { %v867_v9 = vadd.f32 %v1816_v5, %v482_v1  ;;  %v883_v10 = vadd.f32 %v1832_v6, %v498_v2  ;;  %v774_v11 = vpop.f32.mrb[13].mxu0  ;;  %v838_v12 = vpop.f32.mrb[13].mxu1 }
 0x153   : > { %v865_v15 = vadd.f32 %v774_v11, %v480_v3  ;;  %v881_v16 = vadd.f32 %v838_v12, %v496_v4  ;;  %v1817_v17 = vpop.f32.mrb[14].mxu0  ;;  %v1833_v18 = vpop.f32.mrb[14].mxu1  ;;  %v2278_v54 = vld [vmem:[#allocation2 + $0x50] sm:$0xff] (!%p1596_p11)  ;;  %1748 = vst [vmem:[#allocation4 + $0x10] sm:$0xff] (!%p1596_p11), %v1680_v46   ;;  %1749 = vst [vmem:[#allocation4 + $0x18] sm:$0xff] (!%p1596_p11), %v1685_v56   ;;  %v2295_v4 = vld [vmem:[#allocation2 + $0x88] sm:$0xff] (!%p1596_p11) }
 0x154   : > { %899 = vst [vmem:[#allocation2 + $0x70] sm:$0xff] %v867_v9  ;;  %915 = vst [vmem:[#allocation2 + $0xf0] sm:$0xff] %v883_v10  ;;  %v868_v19 = vadd.f32 %v1817_v17, %v483_v7  ;;  %v884_v20 = vadd.f32 %v1833_v18, %v499_v8  ;;  %v777_v21 = vpop.f32.mrb[15].mxu0  ;;  %v841_v22 = vpop.f32.mrb[15].mxu1  ;;  %v2270_v49 = vld [vmem:[#allocation2 + $0x40] sm:$0xff] (!%p1596_p11)  ;;  %v960_v8 = vmul.f32 (!%p1596_p11), %v2262_v41, %v2262_v41  ;;  %v2306_v12 = vld [vmem:[#allocation2 + $0x98] sm:$0xff] (!%p1596_p11) }
 0x155   : > { %897 = vst [vmem:[#allocation2 + $0x60] sm:$0xff] %v865_v15  ;;  %913 = vst [vmem:[#allocation2 + $0xe0] sm:$0xff] %v881_v16  ;;  %v866_v23 = vadd.f32 %v777_v21, %v481_v13  ;;  %v882_v24 = vadd.f32 %v841_v22, %v497_v14  ;;  %v1121_v52 = vmul.f32 (!%p1596_p11), 0.33333334, %v2270_v49  ;;  %v2276_v53 = vld [vmem:[#allocation2 + $0x58] sm:$0xff] (!%p1596_p11)  ;;  %v2299_v7 = vld [vmem:[#allocation2 + $0x80] sm:$0xff] (!%p1596_p11)  ;;  %v959_v9 = vmul.f32 (!%p1596_p11), %v2265_v45, %v2265_v45 }
 0x156   : > { %900 = vst [vmem:[#allocation2 + $0x78] sm:$0xff] %v868_v19  ;;  %916 = vst [vmem:[#allocation2 + $0xf8] sm:$0xff] %v884_v20  ;;  %v2268_v48 = vld [vmem:[#allocation2 + $0x48] sm:$0xff] (!%p1596_p11)  ;;  %v1124_v57 = vmul.f32 (!%p1596_p11), 0.33333334, %v2276_v53  ;;  %v2308_v13 = vld [vmem:[#allocation2 + $0x90] sm:$0xff] (!%p1596_p11)  ;;  %999 = vadd.xlane.f32.xlu1 (!%p1596_p11), %v960_v8  ;;  %v961_v31 = vmul.f32 (!%p1596_p11), %v2270_v49, %v2270_v49  ;;  %v964_v50 = vmul.f32 (!%p1596_p11), %v2276_v53, %v2276_v53 }
 0x157   : > { %898 = vst [vmem:[#allocation2 + $0x68] sm:$0xff] %v866_v23  ;;  %914 = vst [vmem:[#allocation2 + $0xe8] sm:$0xff] %v882_v24  ;;  %v1122_v51 = vmul.f32 (!%p1596_p11), 0.33333334, %v2268_v48  ;;  %v1123_v58 = vmul.f32 (!%p1596_p11), 0.33333334, %v2278_v54  ;;  %997 = vadd.xlane.f32.xlu0 (!%p1596_p11), %v959_v9  ;;  %v962_v30 = vmul.f32 (!%p1596_p11), %v2268_v48, %v2268_v48 }
 0x158   : > { %v1130_v6 = vmul.f32 0.33333334, %v2295_v4  ;;  %v1129_v11 = vmul.f32 0.33333334, %v2299_v7  ;;  %v1132_v15 = vmul.f32 0.33333334, %v2306_v12 }
 0x159   : > { %v1690_v60 = vpack.c.bf16 %v1122_v51, %v1121_v52  ;;  %v1695_v0 = vpack.c.bf16 %v1124_v57, %v1123_v58  ;;  %v1131_v16 = vmul.f32 0.33333334, %v2308_v13  ;;  %v2312_v17 = vld [vmem:[#allocation2 + $0xa8] sm:$0xff]  ;;  %v2315_v20 = vld [vmem:[#allocation2 + $0xa0] sm:$0xff]  ;;  %v2317_v21 = vld [vmem:[#allocation2 + $0xb8] sm:$0xff]  ;;  %v963_v57 = vmul.f32 %v2278_v54, %v2278_v54 }
 0x15a   : > { %v1710_v18 = vpack.c.bf16 %v1130_v6, %v1129_v11  ;;  %v1134_v19 = vmul.f32 0.33333334, %v2312_v17  ;;  %v1133_v23 = vmul.f32 0.33333334, %v2315_v20  ;;  %v1136_v24 = vmul.f32 0.33333334, %v2317_v21  ;;  %1003 = vadd.xlane.f32.xlu1 %v962_v30 }
 0x15b   : > { %v2293_v3 = vld [vmem:[#allocation2 + $0x70] sm:$0xff]  ;;  %1750 = vst [vmem:[#allocation4 + $0x20] sm:$0xff] %v1690_v60   ;;  %1751 = vst [vmem:[#allocation4 + $0x28] sm:$0xff] %v1695_v0   ;;  %v1715_v22 = vpack.c.bf16 %v1132_v15, %v1131_v16  ;;  %v2323_v29 = vld [vmem:[#allocation2 + $0xc8] sm:$0xff]  ;;  %1001 = vadd.xlane.f32.xlu0 %v961_v31  ;;  %v970_v11 = vmul.f32 %v2295_v4, %v2295_v4  ;;  %v972_v15 = vmul.f32 %v2306_v12, %v2306_v12 }
 0x15c   : > { %v2287_v62 = vld [vmem:[#allocation2 + $0x60] sm:$0xff]  ;;  %v1127_v5 = vmul.f32 0.33333334, %v2293_v3  ;;  %1754 = vst [vmem:[#allocation4 + $0x40] sm:$0xff] %v1710_v18   ;;  %v1138_v34 = vmul.f32 0.33333334, %v2323_v29  ;;  %v1720_v38 = vpack.c.bf16 %v1134_v19, %v1133_v23  ;;  %v1725_v43 = vpack.c.bf16 %v1136_v24, %v1135_v33 }
 0x15d   : > { %v2289_v63 = vld [vmem:[#allocation2 + $0x78] sm:$0xff]  ;;  %v1125_v1 = vmul.f32 0.33333334, %v2287_v62  ;;  %v2331_v37 = vld [vmem:[#allocation2 + $0xc0] sm:$0xff]  ;;  %1755 = vst [vmem:[#allocation4 + $0x48] sm:$0xff] %v1715_v22   ;;  %v2336_v42 = vld [vmem:[#allocation2 + $0xd0] sm:$0xff]  ;;  %v965_v8 = vmul.f32 %v2287_v62, %v2287_v62  ;;  %v971_v16 = vmul.f32 %v2308_v13, %v2308_v13  ;;  %v974_v18 = vmul.f32 %v2312_v17, %v2312_v17 }
 0x15e   : > { %v2284_v59 = vld [vmem:[#allocation2 + $0x68] sm:$0xff]  ;;  %v1128_v2 = vmul.f32 0.33333334, %v2289_v63  ;;  %v1137_v39 = vmul.f32 0.33333334, %v2331_v37  ;;  %v2334_v40 = vld [vmem:[#allocation2 + $0xd8] sm:$0xff]  ;;  %1007 = vadd.xlane.f32.xlu1 %v964_v50  ;;  %v968_v9 = vmul.f32 %v2289_v63, %v2289_v63  ;;  %v973_v19 = vmul.f32 %v2315_v20, %v2315_v20 }
 0x15f   : > { %v1126_v61 = vmul.f32 0.33333334, %v2284_v59  ;;  %v1140_v44 = vmul.f32 0.33333334, %v2334_v40  ;;  %v1139_v46 = vmul.f32 0.33333334, %v2336_v42  ;;  %1005 = vadd.xlane.f32.xlu0 %v963_v57  ;;  %v966_v6 = vmul.f32 %v2284_v59, %v2284_v59 }
 0x160   : > { %v1705_v14 = vpack.c.bf16 %v1128_v2, %v1127_v5  ;;  %v2340_v47 = vld [vmem:[#allocation2 + $0xe8] sm:$0xff]  ;;  %1756 = vst [vmem:[#allocation4 + $0x50] sm:$0xff] %v1720_v38   ;;  %v1730_v51 = vpack.c.bf16 %v1138_v34, %v1137_v39  ;;  %v2345_v55 = vld [vmem:[#allocation2 + $0xe0] sm:$0xff]  ;;  %v2347_v56 = vld [vmem:[#allocation2 + $0xf8] sm:$0xff]  ;;  %v976_v22 = vmul.f32 %v2317_v21, %v2317_v21  ;;  %v975_v23 = vmul.f32 %v2321_v28, %v2321_v28 }
 0x161   : > { %v1700_v10 = vpack.c.bf16 %v1126_v61, %v1125_v1  ;;  %v1142_v52 = vmul.f32 0.33333334, %v2340_v47  ;;  %1757 = vst [vmem:[#allocation4 + $0x58] sm:$0xff] %v1725_v43   ;;  %v1735_v58 = vpack.c.bf16 %v1140_v44, %v1139_v46  ;;  %v1141_v60 = vmul.f32 0.33333334, %v2345_v55  ;;  %v2353_v0 = vld [vmem:[#allocation2 + $0xf0] sm:$0xff] }
 0x162   : > { %1753 = vst [vmem:[#allocation4 + $0x38] sm:$0xff] %v1705_v14   ;;  %v1144_v61 = vmul.f32 0.33333334, %v2347_v56  ;;  %1758 = vst [vmem:[#allocation4 + $0x60] sm:$0xff] %v1730_v51   ;;  %v1143_v1 = vmul.f32 0.33333334, %v2353_v0  ;;  %1011 = vadd.xlane.f32.xlu1 %v966_v6  ;;  %v969_v14 = vmul.f32 %v2299_v7, %v2299_v7  ;;  %v978_v24 = vmul.f32 %v2323_v29, %v2323_v29 }
 0x163   : > { %1752 = vst [vmem:[#allocation4 + $0x30] sm:$0xff] %v1700_v10   ;;  %1759 = vst [vmem:[#allocation4 + $0x68] sm:$0xff] %v1735_v58   ;;  %v1740_v2 = vpack.c.bf16 %v1142_v52, %v1141_v60  ;;  %1009 = vadd.xlane.f32.xlu0 %v965_v8  ;;  %v967_v10 = vmul.f32 %v2293_v3, %v2293_v3  ;;  %v977_v30 = vmul.f32 %v2331_v37, %v2331_v37 }
 0x164   : > { %v1745_v5 = vpack.c.bf16 %v1144_v61, %v1143_v1  ;;  %v980_v31 = vmul.f32 %v2334_v40, %v2334_v40  ;;  %v979_v33 = vmul.f32 %v2336_v42, %v2336_v42  ;;  %v982_v34 = vmul.f32 %v2340_v47, %v2340_v47 }
 0x165   : > { %1760 = vst [vmem:[#allocation4 + $0x70] sm:$0xff] %v1740_v2   ;;  %v981_v38 = vmul.f32 %v2345_v55, %v2345_v55  ;;  %v984_v39 = vmul.f32 %v2347_v56, %v2347_v56  ;;  %v983_v43 = vmul.f32 %v2353_v0, %v2353_v0 }
 0x166   : > { %1761 = vst [vmem:[#allocation4 + $0x78] sm:$0xff] %v1745_v5   ;;  %1015 = vadd.xlane.f32.xlu1 %v968_v9 }
 0x167   : > { %1013 = vadd.xlane.f32.xlu0 %v967_v10  ;;  %v1307_v10 = vld [vmem:[%s2665_s2 + $0x10] sm:$0xff] }
 0x16a   : > { %1019 = vadd.xlane.f32.xlu1 %v970_v11 }
 0x16b   : > { %1017 = vadd.xlane.f32.xlu0 %v969_v14 }
 0x16e   : > { %1023 = vadd.xlane.f32.xlu1 %v972_v15 }
 0x16f   : > { %1021 = vadd.xlane.f32.xlu0 %v971_v16 }
 0x172   : > { %1027 = vadd.xlane.f32.xlu1 %v974_v18  ;;  %v1305_v18 = vld [vmem:[%s2665_s2] sm:$0xff] }
 0x173   : > { %1025 = vadd.xlane.f32.xlu0 %v973_v19 }
 0x176   : > { %1031 = vadd.xlane.f32.xlu1 %v976_v22 }
 0x177   : > { %1029 = vadd.xlane.f32.xlu0 %v975_v23 }
 0x17a   : > { %1035 = vadd.xlane.f32.xlu1 %v978_v24 }
 0x17b   : > { %1033 = vadd.xlane.f32.xlu0 %v977_v30 }
 0x17e   : > { %1039 = vadd.xlane.f32.xlu1 %v980_v31 }
 0x17f   : > { %1037 = vadd.xlane.f32.xlu0 %v979_v33  ;;  %v1308_v33 = vld [vmem:[%s2665_s2 + $0x18] sm:$0xff] }
 0x182   : > { %1043 = vadd.xlane.f32.xlu1 %v982_v34 }
 0x183   : > { %1041 = vadd.xlane.f32.xlu0 %v981_v38 }
 0x186   : > { %1047 = vadd.xlane.f32.xlu1 %v984_v39 }
 0x187   : > { %1045 = vadd.xlane.f32.xlu0 %v983_v43 }
 0x1d4   : > { %v990_v44 = vpop.xlane.xlu1 %989 }
 0x1d5   : > { %v986_v46 = vpop.xlane.xlu0 %985  ;;  %v1051_v50 = vmax.f32 %v990_v44, 1e-24 }
 0x1d6   : > { %v1049_v51 = vmax.f32 %v986_v46, 1e-24 }
 0x1d7   : > { %1924 = vrsqrt.f32 %v1051_v50 }
 0x1d8   : > { %1926 = vrsqrt.f32 %v1049_v51  ;;  %v992_v52 = vpop.xlane.xlu1 %991 }
 0x1d9   : > { %v988_v57 = vpop.xlane.xlu0 %987  ;;  %v1052_v58 = vmax.f32 %v992_v52, 1e-24 }
 0x1da   : > { %v1050_v60 = vmax.f32 %v988_v57, 1e-24 }
 0x1db   : > { %1928 = vrsqrt.f32 %v1052_v58 }
 0x1dc   : > { %1930 = vrsqrt.f32 %v1050_v60 }
 0x1dd   : > { %v994_v1 = vpop.xlane.xlu0 %993 }
 0x1de   : > { %v996_v61 = vpop.xlane.xlu1 %995  ;;  %v1053_v5 = vmax.f32 %v994_v1, 1e-24 }
 0x1df   : > { %v1054_v2 = vmax.f32 %v996_v61, 1e-24 }
 0x1e1   : > { %1932 = vrsqrt.f32 %v1054_v2  ;;  %v1925_v9 = vpop.eup %1924 }
 0x1e2   : > { %1934 = vrsqrt.f32 %v1053_v5  ;;  %v1927_v15 = vpop.eup %1926  ;;  %v1339_v16 = vmul.f32 %v1925_v9, %v2236_v25 }
 0x1e3   : > { %v1000_v6 = vpop.xlane.xlu1 %999  ;;  %v1337_v19 = vmul.f32 %v1927_v15, %v2238_v26 }
 0x1e4   : > { %v998_v8 = vpop.xlane.xlu0 %997  ;;  %v1056_v11 = vmax.f32 %v1000_v6, 1e-24  ;;  %v1371_v22 = vadd.f32 %v1339_v16, %v1307_v10 }
 0x1e5   : > { %v1055_v14 = vmax.f32 %v998_v8, 1e-24  ;;  %v1929_v30 = vpop.eup %1928  ;;  %v1369_v31 = vadd.f32 %v1337_v19, %v1305_v18 }
 0x1e6   : > { %1936 = vrsqrt.f32 %v1056_v11  ;;  %v1931_v25 = vpop.eup %1930  ;;  %1403 = vst [vmem:[%s2667_s4 + $0x10] sm:$0xff] %v1371_v22  ;;  %v1340_v26 = vmul.f32 %v1929_v30, %v2240_v27 }
 0x1e7   : > { %1938 = vrsqrt.f32 %v1055_v14  ;;  %v1004_v23 = vpop.xlane.xlu1 %1003  ;;  %v1338_v43 = vmul.f32 %v1931_v25, %v2248_v32 }
 0x1e8   : > { %v1002_v24 = vpop.xlane.xlu0 %1001  ;;  %v1058_v34 = vmax.f32 %v1004_v23, 1e-24  ;;  %v1372_v44 = vadd.f32 %v1340_v26, %v1308_v33 }
 0x1e9   : > { %v1057_v38 = vmax.f32 %v1002_v24, 1e-24 }
 0x1ea   : > { %1940 = vrsqrt.f32 %v1058_v34 }
 0x1eb   : > { %1942 = vrsqrt.f32 %v1057_v38  ;;  %v1008_v46 = vpop.xlane.xlu1 %1007  ;;  %v1933_v51 = vpop.eup %1932 }
 0x1ec   : > { %v1006_v50 = vpop.xlane.xlu0 %1005  ;;  %v1060_v57 = vmax.f32 %v1008_v46, 1e-24  ;;  %v1935_v60 = vpop.eup %1934  ;;  %v1342_v32 = vmul.f32 %v1933_v51, %v2252_v35 }
 0x1ed   : > { %v1306_v39 = vld [vmem:[%s2665_s2 + $0x8] sm:$0xff]  ;;  %v1059_v58 = vmax.f32 %v1006_v50, 1e-24  ;;  %v1341_v1 = vmul.f32 %v1935_v60, %v2254_v36 }
 0x1ee   : > { %1401 = vst [vmem:[%s2667_s4] sm:$0xff] %v1369_v31  ;;  %v1370_v52 = vadd.f32 %v1338_v43, %v1306_v39  ;;  %1944 = vrsqrt.f32 %v1060_v57 }
 0x1ef   : > { %1946 = vrsqrt.f32 %v1059_v58  ;;  %v1012_v5 = vpop.xlane.xlu1 %1011 }
 0x1f0   : > { %v1010_v6 = vpop.xlane.xlu0 %1009  ;;  %v1937_v8 = vpop.eup %1936  ;;  %v1062_v10 = vmax.f32 %v1012_v5, 1e-24 }
 0x1f1   : > { %v1061_v11 = vmax.f32 %v1010_v6, 1e-24  ;;  %v1939_v14 = vpop.eup %1938  ;;  %v1344_v36 = vmul.f32 %v1937_v8, %v2262_v41 }
 0x1f2   : > { %v1343_v16 = vmul.f32 %v1939_v14, %v2265_v45  ;;  %1948 = vrsqrt.f32 %v1062_v10 }
 0x1f3   : > { %1950 = vrsqrt.f32 %v1061_v11  ;;  %v1016_v19 = vpop.xlane.xlu1 %1015 }
 0x1f4   : > { %v1014_v22 = vpop.xlane.xlu0 %1013  ;;  %v1941_v23 = vpop.eup %1940  ;;  %v1064_v30 = vmax.f32 %v1016_v19, 1e-24 }
 0x1f5   : > { %v1310_v27 = vld [vmem:[%s2665_s2 + $0x28] sm:$0xff]  ;;  %v1063_v31 = vmax.f32 %v1014_v22, 1e-24  ;;  %v1943_v33 = vpop.eup %1942  ;;  %v1346_v45 = vmul.f32 %v1941_v23, %v2268_v48 }
 0x1f6   : > { %1404 = vst [vmem:[%s2667_s4 + $0x18] sm:$0xff] %v1372_v44  ;;  %v1374_v2 = vadd.f32 %v1342_v32, %v1310_v27  ;;  %v1345_v38 = vmul.f32 %v1943_v33, %v2270_v49  ;;  %1952 = vrsqrt.f32 %v1064_v30 }
 0x1f7   : > { %1954 = vrsqrt.f32 %v1063_v31  ;;  %v1020_v26 = vpop.xlane.xlu1 %1019 }
 0x1f8   : > { %v1018_v39 = vpop.xlane.xlu0 %1017  ;;  %v1945_v43 = vpop.eup %1944  ;;  %v1066_v46 = vmax.f32 %v1020_v26, 1e-24 }
 0x1f9   : > { %v1065_v50 = vmax.f32 %v1018_v39, 1e-24  ;;  %v1947_v51 = vpop.eup %1946  ;;  %v1348_v49 = vmul.f32 %v1945_v43, %v2276_v53 }
 0x1fa   : > { %v1347_v27 = vmul.f32 %v1947_v51, %v2278_v54  ;;  %1956 = vrsqrt.f32 %v1066_v46 }
 0x1fb   : > { %1958 = vrsqrt.f32 %v1065_v50  ;;  %v1024_v58 = vpop.xlane.xlu1 %1023 }
 0x1fc   : > { %v1022_v60 = vpop.xlane.xlu0 %1021  ;;  %v1949_v32 = vpop.eup %1948 }
 0x1fd   : > { %v1309_v61 = vld [vmem:[%s2665_s2 + $0x20] sm:$0xff]  ;;  %v1951_v5 = vpop.eup %1950  ;;  %v1350_v54 = vmul.f32 %v1949_v32, %v2284_v59 }
 0x1fe   : > { %1402 = vst [vmem:[%s2667_s4 + $0x8] sm:$0xff] %v1370_v52  ;;  %v1373_v9 = vadd.f32 %v1341_v1, %v1309_v61  ;;  %v1068_v1 = vmax.f32 %v1024_v58, 1e-24  ;;  %v1349_v8 = vmul.f32 %v1951_v5, %v2287_v62 }
 0x200   : > { %1960 = vrsqrt.f32 %v1068_v1  ;;  %v1026_v10 = vpop.xlane.xlu0 %1025  ;;  %v1953_v11 = vpop.eup %1952 }
 0x201   : > { %v1352_v62 = vmul.f32 %v1953_v11, %v2289_v63 }
 0x205   : > { %v1312_v35 = vld [vmem:[%s2665_s2 + $0x38] sm:$0xff] }
 0x206   : > { %1406 = vst [vmem:[%s2667_s4 + $0x28] sm:$0xff] %v1374_v2  ;;  %v1376_v18 = vadd.f32 %v1344_v36, %v1312_v35  ;;  %v1067_v2 = vmax.f32 %v1022_v60, 1e-24  ;;  %v1028_v35 = vpop.xlane.xlu1 %1027 }
 0x207   : > { %v1070_v36 = vmax.f32 %v1028_v35, 1e-24 }
 0x208   : > { %1962 = vrsqrt.f32 %v1067_v2 }
 0x209   : > { %1964 = vrsqrt.f32 %v1070_v36 }
 0x20a   : > { %v1032_v23 = vpop.xlane.xlu1 %1031 }
 0x20b   : > { %v1072_v31 = vmax.f32 %v1032_v23, 1e-24 }
 0x20d   : > { %v1311_v15 = vld [vmem:[%s2665_s2 + $0x30] sm:$0xff] }
 0x20e   : > { %1405 = vst [vmem:[%s2667_s4 + $0x20] sm:$0xff] %v1373_v9  ;;  %v1375_v24 = vadd.f32 %v1343_v16, %v1311_v15  ;;  %v1069_v15 = vmax.f32 %v1026_v10, 1e-24  ;;  %v1955_v16 = vpop.eup %1954  ;;  %v1036_v26 = vpop.xlane.xlu1 %1035 }
 0x20f   : > { %v1351_v19 = vmul.f32 %v1955_v16, %v2293_v3 }
 0x210   : > { %1966 = vrsqrt.f32 %v1069_v15 }
 0x211   : > { %1968 = vrsqrt.f32 %v1072_v31 }
 0x215   : > { %v1314_v41 = vld [vmem:[%s2665_s2 + $0x48] sm:$0xff] }
 0x216   : > { %1408 = vst [vmem:[%s2667_s4 + $0x38] sm:$0xff] %v1376_v18  ;;  %v1378_v25 = vadd.f32 %v1346_v45, %v1314_v41  ;;  %v1957_v41 = vpop.eup %1956 }
 0x217   : > { %v1959_v45 = vpop.eup %1958  ;;  %v1354_v3 = vmul.f32 %v1957_v41, %v2295_v4 }
 0x218   : > { %v1961_v43 = vpop.eup %1960 }
 0x219   : > { %v1963_v50 = vpop.eup %1962 }
 0x21a   : > { %v1965_v58 = vpop.eup %1964 }
 0x21d   : > { %v1313_v34 = vld [vmem:[%s2665_s2 + $0x40] sm:$0xff] }
 0x21e   : > { %1407 = vst [vmem:[%s2667_s4 + $0x30] sm:$0xff] %v1375_v24  ;;  %v1377_v44 = vadd.f32 %v1345_v38, %v1313_v34  ;;  %v1030_v24 = vpop.xlane.xlu0 %1029  ;;  %v1353_v38 = vmul.f32 %v1959_v45, %v2299_v7  ;;  %v1356_v7 = vmul.f32 %v1961_v43, %v2306_v12 }
 0x21f   : > { %v1071_v33 = vmax.f32 %v1030_v24, 1e-24 }
 0x221   : > { %1970 = vrsqrt.f32 %v1071_v33 }
 0x222   : > { %v1034_v39 = vpop.xlane.xlu0 %1033 }
 0x223   : > { %v1073_v46 = vmax.f32 %v1034_v39, 1e-24 }
 0x225   : > { %v1316_v48 = vld [vmem:[%s2665_s2 + $0x58] sm:$0xff] }
 0x226   : > { %1410 = vst [vmem:[%s2667_s4 + $0x48] sm:$0xff] %v1378_v25  ;;  %v1380_v57 = vadd.f32 %v1348_v49, %v1316_v48  ;;  %v1074_v48 = vmax.f32 %v1036_v26, 1e-24  ;;  %v1355_v49 = vmul.f32 %v1963_v50, %v2308_v13  ;;  %v1358_v13 = vmul.f32 %v1965_v58, %v2312_v17 }
 0x228   : > { %1972 = vrsqrt.f32 %v1074_v48 }
 0x229   : > { %1974 = vrsqrt.f32 %v1073_v46 }
 0x22d   : > { %v1315_v52 = vld [vmem:[%s2665_s2 + $0x50] sm:$0xff] }
 0x22e   : > { %1409 = vst [vmem:[%s2667_s4 + $0x40] sm:$0xff] %v1377_v44  ;;  %v1379_v61 = vadd.f32 %v1347_v27, %v1315_v52  ;;  %v1040_v27 = vpop.xlane.xlu1 %1039 }
 0x22f   : > { %v1076_v32 = vmax.f32 %v1040_v27, 1e-24 }
 0x231   : > { %1976 = vrsqrt.f32 %v1076_v32 }
 0x235   : > { %v1318_v53 = vld [vmem:[%s2665_s2 + $0x68] sm:$0xff] }
 0x236   : > { %1412 = vst [vmem:[%s2667_s4 + $0x58] sm:$0xff] %v1380_v57  ;;  %v1382_v9 = vadd.f32 %v1350_v54, %v1318_v53  ;;  %v1038_v57 = vpop.xlane.xlu0 %1037  ;;  %v1967_v53 = vpop.eup %1966 }
 0x237   : > { %v1357_v2 = vmul.f32 %v1967_v53, %v2315_v20  ;;  %v1044_v54 = vpop.xlane.xlu1 %1043 }
 0x238   : > { %v1078_v35 = vmax.f32 %v1044_v54, 1e-24 }
 0x23b   : > { %v1048_v15 = vpop.xlane.xlu1 %1047 }
 0x23d   : > { %v1317_v6 = vld [vmem:[%s2665_s2 + $0x60] sm:$0xff] }
 0x23e   : > { %1411 = vst [vmem:[%s2667_s4 + $0x50] sm:$0xff] %v1379_v61  ;;  %v1381_v14 = vadd.f32 %v1349_v8, %v1317_v6  ;;  %v1075_v61 = vmax.f32 %v1038_v57, 1e-24  ;;  %v1042_v6 = vpop.xlane.xlu0 %1041  ;;  %v1969_v8 = vpop.eup %1968 }
 0x23f   : > { %v1077_v10 = vmax.f32 %v1042_v6, 1e-24  ;;  %v1971_v11 = vpop.eup %1970  ;;  %v1360_v20 = vmul.f32 %v1969_v8, %v2317_v21 }
 0x240   : > { %1978 = vrsqrt.f32 %v1075_v61 }
 0x241   : > { %1980 = vrsqrt.f32 %v1078_v35 }
 0x242   : > { %1982 = vrsqrt.f32 %v1077_v10  ;;  %v1046_v16 = vpop.xlane.xlu0 %1045 }
 0x245   : > { %v1320_v59 = vld [vmem:[%s2665_s2 + $0x78] sm:$0xff] }
 0x246   : > { %1414 = vst [vmem:[%s2667_s4 + $0x68] sm:$0xff] %v1382_v9  ;;  %v1384_v22 = vadd.f32 %v1352_v62, %v1320_v59  ;;  %v1359_v59 = vmul.f32 %v1971_v11, %v2321_v28  ;;  %v1973_v62 = vpop.eup %1972 }
 0x247   : > { %v1975_v23 = vpop.eup %1974  ;;  %v1362_v28 = vmul.f32 %v1973_v62, %v2323_v29 }
 0x248   : > { %v1361_v41 = vmul.f32 %v1975_v23, %v2331_v37 }
 0x24d   : > { %v1319_v18 = vld [vmem:[%s2665_s2 + $0x70] sm:$0xff] }
 0x24e   : > { %1413 = vst [vmem:[%s2667_s4 + $0x60] sm:$0xff] %v1381_v14  ;;  %v1383_v30 = vadd.f32 %v1351_v19, %v1319_v18  ;;  %v1080_v19 = vmax.f32 %v1048_v15, 1e-24 }
 0x250   : > { %1984 = vrsqrt.f32 %v1080_v19 }
 0x255   : > { %v1322_v63 = vld [vmem:[%s2665_s2 + $0x88] sm:$0xff] }
 0x256   : > { %1416 = vst [vmem:[%s2667_s4 + $0x78] sm:$0xff] %v1384_v22  ;;  %v1386_v25 = vadd.f32 %v1354_v3, %v1322_v63  ;;  %v1079_v22 = vmax.f32 %v1046_v16, 1e-24  ;;  %v1977_v63 = vpop.eup %1976 }
 0x257   : > { %v1979_v29 = vpop.eup %1978  ;;  %v1364_v45 = vmul.f32 %v1977_v63, %v2334_v40 }
 0x258   : > { %1986 = vrsqrt.f32 %v1079_v22  ;;  %v1363_v3 = vmul.f32 %v1979_v29, %v2336_v42 }
 0x25d   : > { %v1321_v34 = vld [vmem:[%s2665_s2 + $0x80] sm:$0xff] }
 0x25e   : > { %1415 = vst [vmem:[%s2667_s4 + $0x70] sm:$0xff] %v1383_v30  ;;  %v1385_v44 = vadd.f32 %v1353_v38, %v1321_v34  ;;  %v1981_v38 = vpop.eup %1980 }
 0x25f   : > { %v1983_v39 = vpop.eup %1982  ;;  %v1366_v40 = vmul.f32 %v1981_v38, %v2340_v47 }
 0x260   : > { %v1365_v42 = vmul.f32 %v1983_v39, %v2345_v55 }
 0x265   : > { %v1324_v4 = vld [vmem:[%s2665_s2 + $0x98] sm:$0xff] }
 0x266   : > { %1418 = vst [vmem:[%s2667_s4 + $0x88] sm:$0xff] %v1386_v25  ;;  %v1388_v52 = vadd.f32 %v1356_v7, %v1324_v4  ;;  %v1985_v4 = vpop.eup %1984 }
 0x267   : > { %v1987_v50 = vpop.eup %1986  ;;  %v1368_v47 = vmul.f32 %v1985_v4, %v2347_v56 }
 0x268   : > { %v1367_v55 = vmul.f32 %v1987_v50, %v2353_v0 }
 0x26d   : > { %v1323_v51 = vld [vmem:[%s2665_s2 + $0x90] sm:$0xff] }
 0x26e   : > { %1417 = vst [vmem:[%s2667_s4 + $0x80] sm:$0xff] %v1385_v44  ;;  %v1387_v60 = vadd.f32 %v1355_v49, %v1323_v51 }
 0x275   : > { %v1326_v12 = vld [vmem:[%s2665_s2 + $0xa8] sm:$0xff] }
 0x276   : > { %1420 = vst [vmem:[%s2667_s4 + $0x98] sm:$0xff] %v1388_v52  ;;  %v1390_v5 = vadd.f32 %v1358_v13, %v1326_v12 }
 0x27d   : > { %v1325_v1 = vld [vmem:[%s2665_s2 + $0xa0] sm:$0xff] }
 0x27e   : > { %1419 = vst [vmem:[%s2667_s4 + $0x90] sm:$0xff] %v1387_v60  ;;  %v1389_v9 = vadd.f32 %v1357_v2, %v1325_v1 }
 0x285   : > { %v1328_v17 = vld [vmem:[%s2665_s2 + $0xb8] sm:$0xff] }
 0x286   : > { %1422 = vst [vmem:[%s2667_s4 + $0xa8] sm:$0xff] %v1390_v5  ;;  %v1392_v36 = vadd.f32 %v1360_v20, %v1328_v17 }
 0x28d   : > { %v1327_v14 = vld [vmem:[%s2665_s2 + $0xb0] sm:$0xff] }
 0x28e   : > { %1421 = vst [vmem:[%s2667_s4 + $0xa0] sm:$0xff] %v1389_v9  ;;  %v1391_v18 = vadd.f32 %v1359_v59, %v1327_v14 }
 0x295   : > { %v1330_v21 = vld [vmem:[%s2665_s2 + $0xc8] sm:$0xff] }
 0x296   : > { %1424 = vst [vmem:[%s2667_s4 + $0xb8] sm:$0xff] %v1392_v36  ;;  %v1394_v30 = vadd.f32 %v1362_v28, %v1330_v21 }
 0x29d   : > { %v1329_v24 = vld [vmem:[%s2665_s2 + $0xc0] sm:$0xff] }
 0x29e   : > { %1423 = vst [vmem:[%s2667_s4 + $0xb0] sm:$0xff] %v1391_v18  ;;  %v1393_v31 = vadd.f32 %v1361_v41, %v1329_v24 }
 0x2a5   : > { %v1332_v33 = vld [vmem:[%s2665_s2 + $0xd8] sm:$0xff] }
 0x2a6   : > { %1426 = vst [vmem:[%s2667_s4 + $0xc8] sm:$0xff] %v1394_v30  ;;  %v1396_v34 = vadd.f32 %v1364_v45, %v1332_v33 }
 0x2ad   : > { %v1331_v37 = vld [vmem:[%s2665_s2 + $0xd0] sm:$0xff] }
 0x2ae   : > { %1425 = vst [vmem:[%s2667_s4 + $0xc0] sm:$0xff] %v1393_v31  ;;  %v1395_v25 = vadd.f32 %v1363_v3, %v1331_v37 }
 0x2b5   : > { %v1334_v26 = vld [vmem:[%s2665_s2 + $0xe8] sm:$0xff] }
 0x2b6   : > { %1428 = vst [vmem:[%s2667_s4 + $0xd8] sm:$0xff] %v1396_v34  ;;  %v1398_v44 = vadd.f32 %v1366_v40, %v1334_v26 }
 0x2bd   : > { %v1333_v43 = vld [vmem:[%s2665_s2 + $0xe0] sm:$0xff] }
 0x2be   : > { %1427 = vst [vmem:[%s2667_s4 + $0xd0] sm:$0xff] %v1395_v25  ;;  %v1397_v48 = vadd.f32 %v1365_v42, %v1333_v43 }
 0x2c5   : > { %v1336_v46 = vld [vmem:[%s2665_s2 + $0xf8] sm:$0xff] }
 0x2c6   : > { %1430 = vst [vmem:[%s2667_s4 + $0xe8] sm:$0xff] %v1398_v44  ;;  %v1400_v51 = vadd.f32 %v1368_v47, %v1336_v46 }
 0x2cd   : > { %v1335_v7 = vld [vmem:[%s2665_s2 + $0xf0] sm:$0xff] }
 0x2ce   : > { %1429 = vst [vmem:[%s2667_s4 + $0xe0] sm:$0xff] %v1397_v48  ;;  %v1399_v49 = vadd.f32 %v1367_v55, %v1335_v7  ;;  %1432 = vst [vmem:[%s2667_s4 + $0xf8] sm:$0xff] %v1400_v51 }
 0x2d0   : > { %1431 = vst [vmem:[%s2667_s4 + $0xf0] sm:$0xff] %v1399_v49 }
 0x2d1 PF: > { %p2622_p12 = scmp.eq.s32.totalorder %s1561_s20, 3  ;;  %s2059_s29 = smov [#allocation4]  }
 0x2d2   : > { %s1447_s30 = sshll.u32 %s2059_s29, 4  ;;  %s1448_s30 = int_to_ptr.vmem [resolvable:$true] %s1447_s30 }
 0x2d3   : > { %s1988_s5 = scalar_lea.vmem %s1448_s30, 2048  ;;  %p1995_p2 = scmp.lt.s32.totalorder %s1448_s30, %s1448_s30 }
 0x2d4   : > { %p1989_p13 = scmp.ne.s32.totalorder %s1448_s30, %s1988_s5  ;;  %p1996_p3 = scmp.lt.s32.totalorder %s1988_s5, %s1988_s5 }
 0x2d6   : > { %p1990_p0 = pnand %p1989_p13, %p2622_p12  ;;  %p1997_p4 = por %p1996_p3, %p1995_p2 }
 0x2d8   : > { %p1991_p1 = pneg %p1990_p0 }
 0x2da   : > { %p1998_p5 = pnand %p1997_p4, %p1991_p1 }
 0x2dc   : > { %2001 = shalt.err (!%p1998_p5)
}
 0x2dd   : > { %s2002_s20 = scalar_lea.hbm %s2666_s3, 2048 }
 0x2de   : > { %p2003_p6 = scmp.ne.s32.totalorder %s2666_s3, %s2002_s20  ;;  %p2008_p9 = scmp.lt.u32.totalorder %s2002_s20, %s2666_s3 }
 0x2e0   : > { %p2004_p7 = pnand %p2003_p6, %p2622_p12 }
 0x2e2   : > { %p2005_p8 = pneg %p2004_p7 }
 0x2e4   : > { %p2010_p10 = pnand %p2008_p9, %p2005_p8 }
 0x2e6   : > { %2013 = shalt.err (!%p2010_p10)
}
 0x2e7   : > { %s2060_s12 = smov 64   ;;  %s2061_s13 = smov 4  }
 0x2e8   : > { %1851 = dma.vmem_to_hbm [thread:$0]  (%p2622_p12), %s1448_s30, 2048, %s2666_s3, [#allocation5], %s2060_s12, %s2060_s12, %s2061_s13  }
 0x2e9   : > { %2035 = dma.done.wait (%p2622_p12), [#allocation5], 2048  }
 0x2ea   : > { %2037 = vsyncadd (%p2622_p12), [#allocation5], 4294965248 }
 0x2eb PF: > { %s16_s19 = sadd.s32 1, %s2056_s19   ;;  %s2669_s15 = smov %s2044_s16 }
 0x2ec   : > { %p13_p11 = scmp.ge.s32.totalorder %s16_s19, 6   ;;  %s2670_s16 = smov %s2123_s24 }
 0x2ed   : > { %s2671_s17 = smov %s2052_s18  ;;  %s2672_s18 = smov %s2674_s21 }
 0x2ee   :  { %15 = sbr.rel (!%p13_p11) target bundleno = 3 (0x3), region = 132 }
 0x2f5   :  { %1475 = vsyncpa [#allocation5], 1 }
 0x2f6   :  { %1477 = vsyncpa [#allocation5 + $0x1], 1 }

// kernel: llmcrec_forward.18
= control target key start
LH: loop header
LB: loop body
LE: loop exit
PB: predicated region body
PF: predicated region fallthrough
CT: control target
= control target key end

     0   :  { %s1234_s9 = smov 0   ;;  %s1236_s10 = smov 0   ;;  %s1493_s0 = inlined_call_operand.vmem [shape: bf16[256,256], index: 0, kind: input, shape index: {}]   ;;  %s1494_s1 = inlined_call_operand.vmem [shape: bf16[256,128], index: 1, kind: input, shape index: {}]   ;;  %s1495_s2 = inlined_call_operand.vmem [shape: f32[256,128], index: 2, kind: output, shape index: {}]  }
   0x1   :  { %s1238_s11 = smov 0   ;;  %s1240_s12 = smov 0  }
   0x2   :  { %s1242_s13 = smov 0  }
   0x3 LB: > { %s21_s14 = sadd.s32 1, %s1212_s12  ;;  %p40_p1 = scmp.ne.s32.totalorder %s1204_s10, %s1200_s9  ;;  %s1216_s13 = sphi %s1242_s13, %s12_s13   ;;  %s1212_s12 = sphi %s1240_s12, %s1499_s12   ;;  %s1208_s11 = sphi %s1238_s11, %s1498_s11   ;;  %s1204_s10 = sphi %s1236_s10, %s1497_s10   ;;  %s1200_s9 = sphi %s1234_s9, %s1496_s9  }
   0x4   : > { %p22_p0 = scmp.ge.s32.totalorder %s21_s14, 2  ;;  %p41_p2 = scmp.eq.s32.totalorder %s1216_s13, 0 }
   0x5   : > { %s33_s16 = sadd.s32 1, %s1204_s10  ;;  %p988_p5 = scmp.ge.s32.totalorder %s1216_s13, 2 }
   0x6   : > { %s1501_s14 = smov (%p22_p0, %s21_s14), 0  ;;  %p42_p3 = por %p41_p2, %p40_p1 }
   0x7   : > { %s29_s15 = ssub.s32 %s1212_s12, %s1501_s14  ;;  %118 = sbr.rel (%p988_p5) target bundleno = 39 (0x27), region = 16 }
   0x8   : > { %p31_p4 = scmp.eq.s32.totalorder %s29_s15, 0 }
   0xa   : > { %s1269_s17 = scalar_select %p31_p4, %s1204_s10, %s33_s16  }
   0xe   : > { %121 = sbr.rel (!%p42_p3) target bundleno = 39 (0x27), region = 20  ;;  %s123_s18 = sand.u32 (%p42_p3), 1, %s1204_s10  }
   0xf   : > { %s990_s19 = sshll.u32 (%p42_p3), %s1212_s12, 2  ;;  %s989_s20 = sshll.u32 (%p42_p3), %s123_s18, 7 }
  0x10   : > { %s1277_s23 = scalar_lea.vmem (%p42_p3), %s1493_s0, %s990_s19  ;;  %s1281_s24 = scalar_lea.vmem (%p42_p3), [#allocation3], %s989_s20 }
  0x11   : > { %v146_v0 = vld [vmem:[%s1277_s23] sm:$0xf] (%p42_p3)  ;;  %v148_v1 = vld [vmem:[%s1277_s23 + $0x8] sm:$0xf] (%p42_p3)  ;;  %v150_v2 = vld [vmem:[%s1277_s23 + $0x10] sm:$0xf] (%p42_p3) }
  0x12   : > { %147 = vst [vmem:[%s1281_s24] sm:$0xf] (%p42_p3), %v146_v0  ;;  %149 = vst [vmem:[%s1281_s24 + $0x4] sm:$0xf] (%p42_p3), %v148_v1  ;;  %v152_v3 = vld [vmem:[%s1277_s23 + $0x18] sm:$0xf] (%p42_p3) }
  0x13   : > { %v154_v4 = vld [vmem:[%s1277_s23 + $0x20] sm:$0xf] (%p42_p3)  ;;  %151 = vst [vmem:[%s1281_s24 + $0x8] sm:$0xf] (%p42_p3), %v150_v2  ;;  %153 = vst [vmem:[%s1281_s24 + $0xc] sm:$0xf] (%p42_p3), %v152_v3 }
  0x14   : > { %155 = vst [vmem:[%s1281_s24 + $0x10] sm:$0xf] (%p42_p3), %v154_v4  ;;  %v156_v5 = vld [vmem:[%s1277_s23 + $0x28] sm:$0xf] (%p42_p3)  ;;  %v158_v6 = vld [vmem:[%s1277_s23 + $0x30] sm:$0xf] (%p42_p3) }
  0x15   : > { %v160_v7 = vld [vmem:[%s1277_s23 + $0x38] sm:$0xf]  ;;  %157 = vst [vmem:[%s1281_s24 + $0x14] sm:$0xf] %v156_v5  ;;  %159 = vst [vmem:[%s1281_s24 + $0x18] sm:$0xf] %v158_v6 }
  0x16   : > { %161 = vst [vmem:[%s1281_s24 + $0x1c] sm:$0xf] %v160_v7  ;;  %v162_v8 = vld [vmem:[%s1277_s23 + $0x40] sm:$0xf]  ;;  %v164_v9 = vld [vmem:[%s1277_s23 + $0x48] sm:$0xf] }
  0x17   : > { %v166_v10 = vld [vmem:[%s1277_s23 + $0x50] sm:$0xf]  ;;  %163 = vst [vmem:[%s1281_s24 + $0x20] sm:$0xf] %v162_v8  ;;  %165 = vst [vmem:[%s1281_s24 + $0x24] sm:$0xf] %v164_v9 }
  0x18   : > { %167 = vst [vmem:[%s1281_s24 + $0x28] sm:$0xf] %v166_v10  ;;  %v168_v11 = vld [vmem:[%s1277_s23 + $0x58] sm:$0xf]  ;;  %v170_v12 = vld [vmem:[%s1277_s23 + $0x60] sm:$0xf] }
  0x19   : > { %v172_v13 = vld [vmem:[%s1277_s23 + $0x68] sm:$0xf]  ;;  %169 = vst [vmem:[%s1281_s24 + $0x2c] sm:$0xf] %v168_v11  ;;  %171 = vst [vmem:[%s1281_s24 + $0x30] sm:$0xf] %v170_v12 }
  0x1a   : > { %173 = vst [vmem:[%s1281_s24 + $0x34] sm:$0xf] %v172_v13  ;;  %v174_v14 = vld [vmem:[%s1277_s23 + $0x70] sm:$0xf]  ;;  %v176_v15 = vld [vmem:[%s1277_s23 + $0x78] sm:$0xf] }
  0x1b   : > { %v178_v16 = vld [vmem:[%s1277_s23 + $0x80] sm:$0xf]  ;;  %175 = vst [vmem:[%s1281_s24 + $0x38] sm:$0xf] %v174_v14  ;;  %177 = vst [vmem:[%s1281_s24 + $0x3c] sm:$0xf] %v176_v15 }
  0x1c   : > { %179 = vst [vmem:[%s1281_s24 + $0x40] sm:$0xf] %v178_v16  ;;  %v180_v17 = vld [vmem:[%s1277_s23 + $0x88] sm:$0xf]  ;;  %v182_v18 = vld [vmem:[%s1277_s23 + $0x90] sm:$0xf] }
  0x1d   : > { %v184_v19 = vld [vmem:[%s1277_s23 + $0x98] sm:$0xf]  ;;  %181 = vst [vmem:[%s1281_s24 + $0x44] sm:$0xf] %v180_v17  ;;  %183 = vst [vmem:[%s1281_s24 + $0x48] sm:$0xf] %v182_v18 }
  0x1e   : > { %185 = vst [vmem:[%s1281_s24 + $0x4c] sm:$0xf] %v184_v19  ;;  %v186_v20 = vld [vmem:[%s1277_s23 + $0xa0] sm:$0xf]  ;;  %v188_v21 = vld [vmem:[%s1277_s23 + $0xa8] sm:$0xf] }
  0x1f   : > { %v190_v22 = vld [vmem:[%s1277_s23 + $0xb0] sm:$0xf]  ;;  %187 = vst [vmem:[%s1281_s24 + $0x50] sm:$0xf] %v186_v20  ;;  %189 = vst [vmem:[%s1281_s24 + $0x54] sm:$0xf] %v188_v21 }
  0x20   : > { %191 = vst [vmem:[%s1281_s24 + $0x58] sm:$0xf] %v190_v22  ;;  %v192_v23 = vld [vmem:[%s1277_s23 + $0xb8] sm:$0xf]  ;;  %v194_v24 = vld [vmem:[%s1277_s23 + $0xc0] sm:$0xf] }
  0x21   : > { %v196_v25 = vld [vmem:[%s1277_s23 + $0xc8] sm:$0xf]  ;;  %193 = vst [vmem:[%s1281_s24 + $0x5c] sm:$0xf] %v192_v23  ;;  %195 = vst [vmem:[%s1281_s24 + $0x60] sm:$0xf] %v194_v24 }
  0x22   : > { %197 = vst [vmem:[%s1281_s24 + $0x64] sm:$0xf] %v196_v25  ;;  %v198_v26 = vld [vmem:[%s1277_s23 + $0xd0] sm:$0xf]  ;;  %v200_v27 = vld [vmem:[%s1277_s23 + $0xd8] sm:$0xf] }
  0x23   : > { %v202_v28 = vld [vmem:[%s1277_s23 + $0xe0] sm:$0xf]  ;;  %199 = vst [vmem:[%s1281_s24 + $0x68] sm:$0xf] %v198_v26  ;;  %201 = vst [vmem:[%s1281_s24 + $0x6c] sm:$0xf] %v200_v27 }
  0x24   : > { %203 = vst [vmem:[%s1281_s24 + $0x70] sm:$0xf] %v202_v28  ;;  %v204_v29 = vld [vmem:[%s1277_s23 + $0xe8] sm:$0xf]  ;;  %v206_v30 = vld [vmem:[%s1277_s23 + $0xf0] sm:$0xf] }
  0x25   : > { %v208_v31 = vld [vmem:[%s1277_s23 + $0xf8] sm:$0xf]  ;;  %205 = vst [vmem:[%s1281_s24 + $0x74] sm:$0xf] %v204_v29  ;;  %207 = vst [vmem:[%s1281_s24 + $0x78] sm:$0xf] %v206_v30 }
  0x26   : > { %209 = vst [vmem:[%s1281_s24 + $0x7c] sm:$0xf] %v208_v31 }
  0x27 PF: > { %p991_p6 = scmp.ge.s32.totalorder %s1216_s13, 1  ;;  %p304_p7 = scmp.lt.s32.totalorder %s1216_s13, 3 }
  0x29   : > { %p305_p8 = pnand %p991_p6, %p304_p7 }
  0x2a   : > { %s311_s25 = sand.u32 (!%p305_p8), 1, %s1200_s9   ;;  %s993_s26 = sshll.u32 (!%p305_p8), %s1208_s11, 4 }
  0x2b   : > { %308 = sbr.rel (%p305_p8) target bundleno = 352 (0x160), region = 65  ;;  %s992_s27 = sshll.u32 (!%p305_p8), %s311_s25, 7 }
  0x2c   : > { %p339_p9 = scmp.lt.s32.totalorder (!%p305_p8), %s993_s26, 31  ;;  %s1354_s4 = scalar_lea.vmem (!%p305_p8), [#allocation3], %s992_s27 }
  0x2d   : > { %p995_p10 = scmp.ne.s32.totalorder (!%p305_p8), %s1208_s11, 0 }
  0x32   : > { %s1503_s26 = smov (!%p339_p9, %s993_s26), 31  ;;  %354 = sbr.rel (%p995_p10) target bundleno = 68 (0x44), region = 73 }
  0x33   : > { %s994_s28 = sshll.u32 %s1503_s26, 2  ;;  %v1218_v32 = vmov (!%p995_p10), 0.0  }
  0x34   : > { %s1352_s3 = scalar_lea.vmem %s1494_s1, %s994_s28  ;;  %355 = vst [vmem:[#allocation2] sm:$0xff] (!%p995_p10), %v1218_v32  ;;  %356 = vst [vmem:[#allocation2 + $0x8] sm:$0xff] (!%p995_p10), %v1218_v32 }
  0x35   : > { %357 = vst [vmem:[#allocation2 + $0x10] sm:$0xff] (!%p995_p10), %v1218_v32  ;;  %358 = vst [vmem:[#allocation2 + $0x18] sm:$0xff] (!%p995_p10), %v1218_v32 }
  0x36   : > { %359 = vst [vmem:[#allocation2 + $0x20] sm:$0xff] (!%p995_p10), %v1218_v32  ;;  %360 = vst [vmem:[#allocation2 + $0x28] sm:$0xff] (!%p995_p10), %v1218_v32 }
  0x37   : > { %361 = vst [vmem:[#allocation2 + $0x30] sm:$0xff] (!%p995_p10), %v1218_v32  ;;  %362 = vst [vmem:[#allocation2 + $0x38] sm:$0xff] (!%p995_p10), %v1218_v32 }
  0x38   : > { %363 = vst [vmem:[#allocation2 + $0x40] sm:$0xff] (!%p995_p10), %v1218_v32  ;;  %364 = vst [vmem:[#allocation2 + $0x48] sm:$0xff] (!%p995_p10), %v1218_v32 }
  0x39   : > { %365 = vst [vmem:[#allocation2 + $0x50] sm:$0xff] %v1218_v32  ;;  %366 = vst [vmem:[#allocation2 + $0x58] sm:$0xff] %v1218_v32 }
  0x3a   : > { %367 = vst [vmem:[#allocation2 + $0x60] sm:$0xff] %v1218_v32  ;;  %368 = vst [vmem:[#allocation2 + $0x68] sm:$0xff] %v1218_v32 }
  0x3b   : > { %369 = vst [vmem:[#allocation2 + $0x70] sm:$0xff] %v1218_v32  ;;  %370 = vst [vmem:[#allocation2 + $0x78] sm:$0xff] %v1218_v32 }
  0x3c   : > { %371 = vst [vmem:[#allocation2 + $0x80] sm:$0xff] %v1218_v32  ;;  %372 = vst [vmem:[#allocation2 + $0x88] sm:$0xff] %v1218_v32 }
  0x3d   : > { %373 = vst [vmem:[#allocation2 + $0x90] sm:$0xff] %v1218_v32  ;;  %374 = vst [vmem:[#allocation2 + $0x98] sm:$0xff] %v1218_v32 }
  0x3e   : > { %375 = vst [vmem:[#allocation2 + $0xa0] sm:$0xff] %v1218_v32  ;;  %376 = vst [vmem:[#allocation2 + $0xa8] sm:$0xff] %v1218_v32 }
  0x3f   : > { %377 = vst [vmem:[#allocation2 + $0xb0] sm:$0xff] %v1218_v32  ;;  %378 = vst [vmem:[#allocation2 + $0xb8] sm:$0xff] %v1218_v32 }
  0x40   : > { %379 = vst [vmem:[#allocation2 + $0xc0] sm:$0xff] %v1218_v32  ;;  %380 = vst [vmem:[#allocation2 + $0xc8] sm:$0xff] %v1218_v32 }
  0x41   : > { %381 = vst [vmem:[#allocation2 + $0xd0] sm:$0xff] %v1218_v32  ;;  %382 = vst [vmem:[#allocation2 + $0xd8] sm:$0xff] %v1218_v32 }
  0x42   : > { %383 = vst [vmem:[#allocation2 + $0xe0] sm:$0xff] %v1218_v32  ;;  %384 = vst [vmem:[#allocation2 + $0xe8] sm:$0xff] %v1218_v32 }
  0x43   : > { %385 = vst [vmem:[#allocation2 + $0xf0] sm:$0xff] %v1218_v32  ;;  %386 = vst [vmem:[#allocation2 + $0xf8] sm:$0xff] %v1218_v32 }
  0x44 PF: > { %v1154_v33 = vld [vmem:[%s1352_s3] sm:$0xff]   ;;  %v1155_v34 = vld [vmem:[%s1352_s3 + $0x8] sm:$0xff]   ;;  %v1156_v35 = vld [vmem:[%s1352_s3 + $0x10] sm:$0xff]   ;;  %p1020_p11 = scmp.ne.s32.totalorder %s1208_s11, 1 }
  0x45   : > { %1049 = vmatprep.subr.bf16.mxu0 %v1154_v33  ;;  %1097 = vmatprep.subr.bf16.mxu1 %v1154_v33  ;;  %v1157_v36 = vld [vmem:[%s1352_s3 + $0x18] sm:$0xff]   ;;  %v1162_v37 = vld [vmem:[%s1354_s4] sm:$0xff]   ;;  %v1159_v40 = vld [vmem:[%s1352_s3 + $0x28] sm:$0xff]  }
  0x46   : > { %1050 = vmatpush3.bf16.msra.mxu0 %v1154_v33  ;;  %1105 = vmatpush3.bf16.msra.mxu1 %v1154_v33  ;;  %v1163_v38 = vld [vmem:[%s1354_s4 + $0x40] sm:$0xff]   ;;  %v1160_v41 = vld [vmem:[%s1352_s3 + $0x30] sm:$0xff]   ;;  %v1161_v42 = vld [vmem:[%s1352_s3 + $0x38] sm:$0xff]  }
  0x47   : > { %1051 = vmatprep.subr.bf16.mxu0 %v1155_v34  ;;  %1098 = vmatprep.subr.bf16.mxu1 %v1155_v34  ;;  %v1158_v39 = vld [vmem:[%s1352_s3 + $0x20] sm:$0xff]   ;;  %v1164_v43 = vld [vmem:[%s1354_s4 + $0x8] sm:$0xff]   ;;  %v1166_v45 = vld [vmem:[%s1354_s4 + $0x10] sm:$0xff]  }
  0x48   : > { %1065 = vmatprep.mubr.bf16.mxu0 %v1162_v37  ;;  %1081 = vmatprep.mubr.bf16.mxu1 %v1163_v38  ;;  %v1165_v44 = vld [vmem:[%s1354_s4 + $0x48] sm:$0xff]   ;;  %v1167_v46 = vld [vmem:[%s1354_s4 + $0x50] sm:$0xff]   ;;  %v1168_v47 = vld [vmem:[%s1354_s4 + $0x18] sm:$0xff]  }
  0x49   : > { %v1169_v48 = vld [vmem:[%s1354_s4 + $0x58] sm:$0xff]   ;;  %v1170_v49 = vld [vmem:[%s1354_s4 + $0x20] sm:$0xff]   ;;  %v1172_v51 = vld [vmem:[%s1354_s4 + $0x28] sm:$0xff]  }
  0x4a   : > { %1052 = vmatpush3.bf16.msra.mxu0 %v1155_v34  ;;  %1106 = vmatpush3.bf16.msra.mxu1 %v1155_v34  ;;  %v1171_v50 = vld [vmem:[%s1354_s4 + $0x60] sm:$0xff]   ;;  %v1173_v52 = vld [vmem:[%s1354_s4 + $0x68] sm:$0xff]   ;;  %v1174_v53 = vld [vmem:[%s1354_s4 + $0x30] sm:$0xff]  }
  0x4b   : > { %1053 = vmatprep.subr.bf16.mxu0 %v1156_v35  ;;  %1099 = vmatprep.subr.bf16.mxu1 %v1156_v35  ;;  %v1175_v54 = vld [vmem:[%s1354_s4 + $0x70] sm:$0xff]   ;;  %v1176_v55 = vld [vmem:[%s1354_s4 + $0x38] sm:$0xff]   ;;  %v387_v59 = vld [vmem:[#allocation2] sm:$0xff] }
  0x4c   : > { %v1177_v56 = vld [vmem:[%s1354_s4 + $0x78] sm:$0xff]   ;;  %v389_v57 = vld [vmem:[#allocation2 + $0x10] sm:$0xff]  ;;  %v403_v60 = vld [vmem:[#allocation2 + $0x80] sm:$0xff] }
  0x4d   : > { %v405_v58 = vld [vmem:[#allocation2 + $0x90] sm:$0xff]  ;;  %v390_v63 = vld [vmem:[#allocation2 + $0x18] sm:$0xff]  ;;  %v388_v5 = vld [vmem:[#allocation2 + $0x8] sm:$0xff] }
  0x4e   : > { %1054 = vmatpush3.bf16.msra.mxu0 %v1156_v35  ;;  %1107 = vmatpush3.bf16.msra.mxu1 %v1156_v35  ;;  %v406_v0 = vld [vmem:[#allocation2 + $0x98] sm:$0xff]  ;;  %v404_v6 = vld [vmem:[#allocation2 + $0x88] sm:$0xff]  ;;  %v393_v17 = vld [vmem:[#allocation2 + $0x30] sm:$0xff] }
  0x4f   : > { %1055 = vmatprep.subr.bf16.mxu0 %v1157_v36  ;;  %1100 = vmatprep.subr.bf16.mxu1 %v1157_v36  ;;  %v409_v18 = vld [vmem:[#allocation2 + $0xb0] sm:$0xff]  ;;  %v391_v19 = vld [vmem:[#allocation2 + $0x20] sm:$0xff]  ;;  %v394_v23 = vld [vmem:[#allocation2 + $0x38] sm:$0xff] }
  0x50   : > { %v407_v20 = vld [vmem:[#allocation2 + $0xa0] sm:$0xff]  ;;  %v410_v24 = vld [vmem:[#allocation2 + $0xb8] sm:$0xff]  ;;  %v392_v29 = vld [vmem:[#allocation2 + $0x28] sm:$0xff] }
  0x51   : > { %v408_v30 = vld [vmem:[#allocation2 + $0xa8] sm:$0xff] }
  0x52   : > { %1056 = vmatpush3.bf16.msra.mxu0 %v1157_v36  ;;  %1108 = vmatpush3.bf16.msra.mxu1 %v1157_v36 }
  0x53   : > { %1057 = vmatprep.subr.bf16.mxu0 %v1158_v39  ;;  %1101 = vmatprep.subr.bf16.mxu1 %v1158_v39 }
  0x56   : > { %1058 = vmatpush3.bf16.msra.mxu0 %v1158_v39  ;;  %1109 = vmatpush3.bf16.msra.mxu1 %v1158_v39 }
  0x57   : > { %1059 = vmatprep.subr.bf16.mxu0 %v1159_v40  ;;  %1102 = vmatprep.subr.bf16.mxu1 %v1159_v40 }
  0x5a   : > { %1060 = vmatpush3.bf16.msra.mxu0 %v1159_v40  ;;  %1110 = vmatpush3.bf16.msra.mxu1 %v1159_v40 }
  0x5b   : > { %1061 = vmatprep.subr.bf16.mxu0 %v1160_v41  ;;  %1103 = vmatprep.subr.bf16.mxu1 %v1160_v41 }
  0x5e   : > { %1062 = vmatpush3.bf16.msra.mxu0 %v1160_v41  ;;  %1111 = vmatpush3.bf16.msra.mxu1 %v1160_v41  ;;  %v397_v41 = vld [vmem:[#allocation2 + $0x50] sm:$0xff] }
  0x5f   : > { %1063 = vmatprep.subr.bf16.mxu0 %v1161_v42  ;;  %1104 = vmatprep.subr.bf16.mxu1 %v1161_v42 }
  0x62   : > { %1064 = vmatpush3.bf16.msra.mxu0 %v1161_v42  ;;  %1112 = vmatpush3.bf16.msra.mxu1 %v1161_v42  ;;  %v413_v42 = vld [vmem:[#allocation2 + $0xd0] sm:$0xff] }
  0x65   : > { %1066 = vmatmul.mubr.bf16.vlgmr.msra.gmra.mrb[0].mxu0 %v1164_v43  ;;  %1082 = vmatmul.mubr.bf16.vlgmr.msra.gmra.mrb[0].mxu1 %v1165_v44  ;;  %v395_v43 = vld [vmem:[#allocation2 + $0x40] sm:$0xff] }
  0x66   : > { %1069 = vmatprep.mubr.bf16.mxu0 %v1166_v45  ;;  %1085 = vmatprep.mubr.bf16.mxu1 %v1167_v46  ;;  %v411_v44 = vld [vmem:[#allocation2 + $0xc0] sm:$0xff] }
  0x6d   : > { %1070 = vmatmul.mubr.bf16.gmra.mrb[4].mxu0 %v1168_v47  ;;  %1086 = vmatmul.mubr.bf16.gmra.mrb[4].mxu1 %v1169_v48  ;;  %v398_v47 = vld [vmem:[#allocation2 + $0x58] sm:$0xff] }
  0x6e   : > { %1073 = vmatprep.mubr.bf16.mxu0 %v1170_v49  ;;  %1089 = vmatprep.mubr.bf16.mxu1 %v1171_v50  ;;  %v414_v48 = vld [vmem:[#allocation2 + $0xd8] sm:$0xff] }
  0x75   : > { %1074 = vmatmul.mubr.bf16.gmra.mrb[8].mxu0 %v1172_v51  ;;  %1090 = vmatmul.mubr.bf16.gmra.mrb[8].mxu1 %v1173_v52 }
  0x76   : > { %1077 = vmatprep.mubr.bf16.mxu0 %v1174_v53  ;;  %1093 = vmatprep.mubr.bf16.mxu1 %v1175_v54  ;;  %v396_v53 = vld [vmem:[#allocation2 + $0x48] sm:$0xff] }
  0x77   : > { %v412_v54 = vld [vmem:[#allocation2 + $0xc8] sm:$0xff] }
  0x7d   : > { %1078 = vmatmul.mubr.bf16.gmra.mrb[12].mxu0 %v1176_v55  ;;  %1094 = vmatmul.mubr.bf16.gmra.mrb[12].mxu1 %v1177_v56 }
 0x138   : > { %v1067_v61 = vpop.f32.mrb[0].mxu0  ;;  %v1083_v62 = vpop.f32.mrb[0].mxu1 }
 0x139   : > { %v774_v1 = vadd.f32 %v1067_v61, %v389_v57  ;;  %v790_v2 = vadd.f32 %v1083_v62, %v405_v58  ;;  %v645_v3 = vpop.f32.mrb[1].mxu0  ;;  %v709_v4 = vpop.f32.mrb[1].mxu1 }
 0x13a   : > { %v772_v7 = vadd.f32 %v645_v3, %v387_v59  ;;  %v788_v8 = vadd.f32 %v709_v4, %v403_v60  ;;  %v1068_v9 = vpop.f32.mrb[2].mxu0  ;;  %v1084_v10 = vpop.f32.mrb[2].mxu1  ;;  %v399_v3 = vld [vmem:[#allocation2 + $0x60] sm:$0xff] }
 0x13b   : > { %806 = vst [vmem:[#allocation2 + $0x10] sm:$0xff] %v774_v1  ;;  %822 = vst [vmem:[#allocation2 + $0x90] sm:$0xff] %v790_v2  ;;  %v775_v11 = vadd.f32 %v1068_v9, %v390_v63  ;;  %v791_v12 = vadd.f32 %v1084_v10, %v406_v0  ;;  %v648_v13 = vpop.f32.mrb[3].mxu0  ;;  %v712_v14 = vpop.f32.mrb[3].mxu1  ;;  %v401_v1 = vld [vmem:[#allocation2 + $0x70] sm:$0xff]  ;;  %v415_v4 = vld [vmem:[#allocation2 + $0xe0] sm:$0xff] }
 0x13c   : > { %804 = vst [vmem:[#allocation2] sm:$0xff] %v772_v7  ;;  %820 = vst [vmem:[#allocation2 + $0x80] sm:$0xff] %v788_v8  ;;  %v773_v15 = vadd.f32 %v648_v13, %v388_v5  ;;  %v789_v16 = vadd.f32 %v712_v14, %v404_v6  ;;  %v417_v2 = vld [vmem:[#allocation2 + $0xf0] sm:$0xff]  ;;  %v402_v7 = vld [vmem:[#allocation2 + $0x78] sm:$0xff] }
 0x13d   : > { %807 = vst [vmem:[#allocation2 + $0x18] sm:$0xff] %v775_v11  ;;  %823 = vst [vmem:[#allocation2 + $0x98] sm:$0xff] %v791_v12  ;;  %v418_v8 = vld [vmem:[#allocation2 + $0xf8] sm:$0xff]  ;;  %v400_v13 = vld [vmem:[#allocation2 + $0x68] sm:$0xff] }
 0x13e   : > { %805 = vst [vmem:[#allocation2 + $0x8] sm:$0xff] %v773_v15  ;;  %821 = vst [vmem:[#allocation2 + $0x88] sm:$0xff] %v789_v16  ;;  %v416_v14 = vld [vmem:[#allocation2 + $0xe8] sm:$0xff] }
 0x140   : > { %v1071_v21 = vpop.f32.mrb[4].mxu0  ;;  %v1087_v22 = vpop.f32.mrb[4].mxu1 }
 0x141   : > { %v778_v25 = vadd.f32 %v1071_v21, %v393_v17  ;;  %v794_v26 = vadd.f32 %v1087_v22, %v409_v18  ;;  %v661_v27 = vpop.f32.mrb[5].mxu0  ;;  %v725_v28 = vpop.f32.mrb[5].mxu1 }
 0x142   : > { %v776_v31 = vadd.f32 %v661_v27, %v391_v19  ;;  %v792_v32 = vadd.f32 %v725_v28, %v407_v20  ;;  %v1072_v33 = vpop.f32.mrb[6].mxu0  ;;  %v1088_v34 = vpop.f32.mrb[6].mxu1  ;;  %v842_v27 = vld [vmem:[#allocation2 + $0x10] sm:$0xff] (!%p1020_p11) }
 0x143   : > { %810 = vst [vmem:[#allocation2 + $0x30] sm:$0xff] %v778_v25  ;;  %826 = vst [vmem:[#allocation2 + $0xb0] sm:$0xff] %v794_v26  ;;  %v779_v35 = vadd.f32 %v1072_v33, %v394_v23  ;;  %v795_v36 = vadd.f32 %v1088_v34, %v410_v24  ;;  %v664_v37 = vpop.f32.mrb[7].mxu0  ;;  %v728_v38 = vpop.f32.mrb[7].mxu1  ;;  %v840_v25 = vld [vmem:[#allocation2] sm:$0xff] (!%p1020_p11) }
 0x144   : > { %808 = vst [vmem:[#allocation2 + $0x20] sm:$0xff] %v776_v31  ;;  %824 = vst [vmem:[#allocation2 + $0xa0] sm:$0xff] %v792_v32  ;;  %v777_v39 = vadd.f32 %v664_v37, %v392_v29  ;;  %v793_v40 = vadd.f32 %v728_v38, %v408_v30  ;;  %v843_v28 = vld [vmem:[#allocation2 + $0x18] sm:$0xff] (!%p1020_p11) }
 0x145   : > { %811 = vst [vmem:[#allocation2 + $0x38] sm:$0xff] %v779_v35  ;;  %827 = vst [vmem:[#allocation2 + $0xb8] sm:$0xff] %v795_v36  ;;  %v841_v26 = vld [vmem:[#allocation2 + $0x8] sm:$0xff] (!%p1020_p11) }
 0x146   : > { %809 = vst [vmem:[#allocation2 + $0x28] sm:$0xff] %v777_v39  ;;  %825 = vst [vmem:[#allocation2 + $0xa8] sm:$0xff] %v793_v40 }
 0x147   : > { %872 = vst [vmem:[%s1495_s2] sm:$0xff] (!%p1020_p11), %v840_v25  ;;  %873 = vst [vmem:[%s1495_s2 + $0x8] sm:$0xff] (!%p1020_p11), %v841_v26 }
 0x148   : > { %v1075_v45 = vpop.f32.mrb[8].mxu0  ;;  %v1091_v46 = vpop.f32.mrb[8].mxu1  ;;  %874 = vst [vmem:[%s1495_s2 + $0x10] sm:$0xff] (!%p1020_p11), %v842_v27  ;;  %875 = vst [vmem:[%s1495_s2 + $0x18] sm:$0xff] (!%p1020_p11), %v843_v28 }
 0x149   : > { %v782_v49 = vadd.f32 %v1075_v45, %v397_v41  ;;  %v798_v50 = vadd.f32 %v1091_v46, %v413_v42  ;;  %v677_v51 = vpop.f32.mrb[9].mxu0  ;;  %v741_v52 = vpop.f32.mrb[9].mxu1  ;;  %v856_v41 = vld [vmem:[#allocation2 + $0x80] sm:$0xff] (!%p1020_p11)  ;;  %v857_v42 = vld [vmem:[#allocation2 + $0x88] sm:$0xff] (!%p1020_p11) }
 0x14a   : > { %v780_v55 = vadd.f32 %v677_v51, %v395_v43  ;;  %v796_v56 = vadd.f32 %v741_v52, %v411_v44  ;;  %v1076_v57 = vpop.f32.mrb[10].mxu0  ;;  %v1092_v58 = vpop.f32.mrb[10].mxu1  ;;  %v846_v31 = vld [vmem:[#allocation2 + $0x30] sm:$0xff] (!%p1020_p11)  ;;  %888 = vst [vmem:[%s1495_s2 + $0x80] sm:$0xff] (!%p1020_p11), %v856_v41  ;;  %889 = vst [vmem:[%s1495_s2 + $0x88] sm:$0xff] (!%p1020_p11), %v857_v42  ;;  %v859_v44 = vld [vmem:[#allocation2 + $0x98] sm:$0xff] (!%p1020_p11) }
 0x14b   : > { %814 = vst [vmem:[#allocation2 + $0x50] sm:$0xff] %v782_v49  ;;  %830 = vst [vmem:[#allocation2 + $0xd0] sm:$0xff] %v798_v50  ;;  %v783_v59 = vadd.f32 %v1076_v57, %v398_v47  ;;  %v799_v60 = vadd.f32 %v1092_v58, %v414_v48  ;;  %v680_v61 = vpop.f32.mrb[11].mxu0  ;;  %v744_v62 = vpop.f32.mrb[11].mxu1  ;;  %v844_v29 = vld [vmem:[#allocation2 + $0x20] sm:$0xff] (!%p1020_p11)  ;;  %v858_v43 = vld [vmem:[#allocation2 + $0x90] sm:$0xff] (!%p1020_p11) }
 0x14c   : > { %812 = vst [vmem:[#allocation2 + $0x40] sm:$0xff] %v780_v55  ;;  %828 = vst [vmem:[#allocation2 + $0xc0] sm:$0xff] %v796_v56  ;;  %v781_v63 = vadd.f32 %v680_v61, %v396_v53  ;;  %v797_v0 = vadd.f32 %v744_v62, %v412_v54  ;;  %v847_v32 = vld [vmem:[#allocation2 + $0x38] sm:$0xff] (!%p1020_p11)  ;;  %v860_v45 = vld [vmem:[#allocation2 + $0xa0] sm:$0xff] (!%p1020_p11) }
 0x14d   : > { %815 = vst [vmem:[#allocation2 + $0x58] sm:$0xff] %v783_v59  ;;  %831 = vst [vmem:[#allocation2 + $0xd8] sm:$0xff] %v799_v60  ;;  %v845_v30 = vld [vmem:[#allocation2 + $0x28] sm:$0xff] (!%p1020_p11)  ;;  %v862_v47 = vld [vmem:[#allocation2 + $0xb0] sm:$0xff] (!%p1020_p11) }
 0x14e   : > { %813 = vst [vmem:[#allocation2 + $0x48] sm:$0xff] %v781_v63  ;;  %829 = vst [vmem:[#allocation2 + $0xc8] sm:$0xff] %v797_v0  ;;  %v861_v46 = vld [vmem:[#allocation2 + $0xa8] sm:$0xff] (!%p1020_p11)  ;;  %v863_v48 = vld [vmem:[#allocation2 + $0xb8] sm:$0xff] (!%p1020_p11) }
 0x14f   : > { %876 = vst [vmem:[%s1495_s2 + $0x20] sm:$0xff] (!%p1020_p11), %v844_v29  ;;  %877 = vst [vmem:[%s1495_s2 + $0x28] sm:$0xff] (!%p1020_p11), %v845_v30 }
 0x150   : > { %v1079_v5 = vpop.f32.mrb[12].mxu0  ;;  %v1095_v6 = vpop.f32.mrb[12].mxu1  ;;  %839 = sbr.rel (%p1020_p11) target bundleno = 352 (0x160), region = 77  ;;  %878 = vst [vmem:[%s1495_s2 + $0x30] sm:$0xff] (!%p1020_p11), %v846_v31  ;;  %879 = vst [vmem:[%s1495_s2 + $0x38] sm:$0xff] (!%p1020_p11), %v847_v32 }
 0x151   : > { %v786_v9 = vadd.f32 %v1079_v5, %v401_v1  ;;  %v802_v10 = vadd.f32 %v1095_v6, %v417_v2  ;;  %v693_v11 = vpop.f32.mrb[13].mxu0  ;;  %v757_v12 = vpop.f32.mrb[13].mxu1  ;;  %890 = vst [vmem:[%s1495_s2 + $0x90] sm:$0xff] (!%p1020_p11), %v858_v43  ;;  %891 = vst [vmem:[%s1495_s2 + $0x98] sm:$0xff] (!%p1020_p11), %v859_v44 }
 0x152   : > { %v784_v15 = vadd.f32 %v693_v11, %v399_v3  ;;  %v800_v16 = vadd.f32 %v757_v12, %v415_v4  ;;  %v1080_v17 = vpop.f32.mrb[14].mxu0  ;;  %v1096_v18 = vpop.f32.mrb[14].mxu1  ;;  %v850_v35 = vld [vmem:[#allocation2 + $0x50] sm:$0xff] (!%p1020_p11)  ;;  %892 = vst [vmem:[%s1495_s2 + $0xa0] sm:$0xff] (!%p1020_p11), %v860_v45  ;;  %893 = vst [vmem:[%s1495_s2 + $0xa8] sm:$0xff] (!%p1020_p11), %v861_v46 }
 0x153   : > { %818 = vst [vmem:[#allocation2 + $0x70] sm:$0xff] %v786_v9  ;;  %834 = vst [vmem:[#allocation2 + $0xf0] sm:$0xff] %v802_v10  ;;  %v787_v19 = vadd.f32 %v1080_v17, %v402_v7  ;;  %v803_v20 = vadd.f32 %v1096_v18, %v418_v8  ;;  %v696_v21 = vpop.f32.mrb[15].mxu0  ;;  %v760_v22 = vpop.f32.mrb[15].mxu1  ;;  %v848_v33 = vld [vmem:[#allocation2 + $0x40] sm:$0xff] (!%p1020_p11)  ;;  %v866_v51 = vld [vmem:[#allocation2 + $0xd0] sm:$0xff] (!%p1020_p11) }
 0x154   : > { %816 = vst [vmem:[#allocation2 + $0x60] sm:$0xff] %v784_v15  ;;  %832 = vst [vmem:[#allocation2 + $0xe0] sm:$0xff] %v800_v16  ;;  %v785_v23 = vadd.f32 %v696_v21, %v400_v13  ;;  %v801_v24 = vadd.f32 %v760_v22, %v416_v14  ;;  %v851_v36 = vld [vmem:[#allocation2 + $0x58] sm:$0xff] (!%p1020_p11)  ;;  %v864_v49 = vld [vmem:[#allocation2 + $0xc0] sm:$0xff] (!%p1020_p11) }
 0x155   : > { %819 = vst [vmem:[#allocation2 + $0x78] sm:$0xff] %v787_v19  ;;  %835 = vst [vmem:[#allocation2 + $0xf8] sm:$0xff] %v803_v20  ;;  %v849_v34 = vld [vmem:[#allocation2 + $0x48] sm:$0xff] (!%p1020_p11)  ;;  %v867_v52 = vld [vmem:[#allocation2 + $0xd8] sm:$0xff] (!%p1020_p11) }
 0x156   : > { %817 = vst [vmem:[#allocation2 + $0x68] sm:$0xff] %v785_v23  ;;  %833 = vst [vmem:[#allocation2 + $0xe8] sm:$0xff] %v801_v24  ;;  %v865_v50 = vld [vmem:[#allocation2 + $0xc8] sm:$0xff] (!%p1020_p11) }
 0x157   : > { %880 = vst [vmem:[%s1495_s2 + $0x40] sm:$0xff] %v848_v33  ;;  %881 = vst [vmem:[%s1495_s2 + $0x48] sm:$0xff] %v849_v34 }
 0x158   : > { %882 = vst [vmem:[%s1495_s2 + $0x50] sm:$0xff] %v850_v35  ;;  %883 = vst [vmem:[%s1495_s2 + $0x58] sm:$0xff] %v851_v36 }
 0x159   : > { %894 = vst [vmem:[%s1495_s2 + $0xb0] sm:$0xff] %v862_v47  ;;  %895 = vst [vmem:[%s1495_s2 + $0xb8] sm:$0xff] %v863_v48 }
 0x15a   : > { %v854_v39 = vld [vmem:[#allocation2 + $0x70] sm:$0xff]  ;;  %896 = vst [vmem:[%s1495_s2 + $0xc0] sm:$0xff] %v864_v49  ;;  %897 = vst [vmem:[%s1495_s2 + $0xc8] sm:$0xff] %v865_v50 }
 0x15b   : > { %v852_v37 = vld [vmem:[#allocation2 + $0x60] sm:$0xff]  ;;  %886 = vst [vmem:[%s1495_s2 + $0x70] sm:$0xff] %v854_v39  ;;  %898 = vst [vmem:[%s1495_s2 + $0xd0] sm:$0xff] %v866_v51  ;;  %v870_v55 = vld [vmem:[#allocation2 + $0xf0] sm:$0xff] }
 0x15c   : > { %884 = vst [vmem:[%s1495_s2 + $0x60] sm:$0xff] %v852_v37  ;;  %v855_v40 = vld [vmem:[#allocation2 + $0x78] sm:$0xff]  ;;  %v868_v53 = vld [vmem:[#allocation2 + $0xe0] sm:$0xff]  ;;  %899 = vst [vmem:[%s1495_s2 + $0xd8] sm:$0xff] %v867_v52 }
 0x15d   : > { %v853_v38 = vld [vmem:[#allocation2 + $0x68] sm:$0xff]  ;;  %887 = vst [vmem:[%s1495_s2 + $0x78] sm:$0xff] %v855_v40  ;;  %900 = vst [vmem:[%s1495_s2 + $0xe0] sm:$0xff] %v868_v53  ;;  %v871_v56 = vld [vmem:[#allocation2 + $0xf8] sm:$0xff] }
 0x15e   : > { %885 = vst [vmem:[%s1495_s2 + $0x68] sm:$0xff] %v853_v38  ;;  %v869_v54 = vld [vmem:[#allocation2 + $0xe8] sm:$0xff]  ;;  %902 = vst [vmem:[%s1495_s2 + $0xf0] sm:$0xff] %v870_v55 }
 0x15f   : > { %901 = vst [vmem:[%s1495_s2 + $0xe8] sm:$0xff] %v869_v54  ;;  %903 = vst [vmem:[%s1495_s2 + $0xf8] sm:$0xff] %v871_v56 }
 0x160 PF: > { %s12_s13 = sadd.s32 1, %s1216_s13   ;;  %s1496_s9 = smov %s1204_s10 }
 0x161   : > { %p9_p12 = scmp.ge.s32.totalorder %s12_s13, 4   ;;  %s1497_s10 = smov %s1269_s17 }
 0x162   : > { %s1498_s11 = smov %s1212_s12  ;;  %s1499_s12 = smov %s1501_s14 }
 0x163   :  { %11 = sbr.rel (!%p9_p12) target bundleno = 3 (0x3), region = 115 }

// kernel: llmcrec_forward.19
= control target key start
LH: loop header
LB: loop body
LE: loop exit
PB: predicated region body
PF: predicated region fallthrough
CT: control target
= control target key end

     0   :  { %11 = vsyncpa [#allocation3], 0  ;;  %vm471_vm0 = vcmask 1041409   ;;  %vm473_vm1 = vcmask 1042434   ;;  %vm475_vm2 = vcmask 1043459   ;;  %vm477_vm3 = vcmask 1044484   ;;  %s1438_s0 = inlined_call_operand.vmem [shape: f32[8,128], index: 0, kind: input, shape index: {}]   ;;  %s1439_s1 = inlined_call_operand.vmem [shape: f32[8,128], index: 1, kind: input, shape index: {}]   ;;  %s1440_s2 = inlined_call_operand.vmem [shape: f32[8,3,128], index: 2, kind: input, shape index: {}]   ;;  %s1441_s3 = inlined_call_operand.vmem [shape: f32[8,3,128], index: 3, kind: input, shape index: {}]   ;;  %s1442_s4 = inlined_call_operand.hbm [shape: f32[1,1], index: 4, kind: output, shape index: {0}]   ;;  %s1443_s5 = inlined_call_operand.hbm [shape: f32[1,1], index: 5, kind: output, shape index: {1}]  }
   0x1   :  { %v1100_v0 = vld [vmem:[%s1439_s1] sm:$0xff]  ;;  %v1122_v5 = vld [vmem:[%s1441_s3 + $0x8] sm:$0x7]  ;;  %v1127_v6 = vld [vmem:[%s1441_s3 + $0xc] sm:$0x7]  ;;  %vm479_vm4 = vcmask 1045509  }
   0x2   :  { %v1105_v1 = vld [vmem:[%s1438_s0] sm:$0xff]  ;;  %v505_v2 = vmul.f32 %v1100_v0, %v1100_v0  ;;  %v1132_v7 = vld [vmem:[%s1441_s3 + $0x10] sm:$0x7]  ;;  %v1137_v8 = vld [vmem:[%s1441_s3 + $0x14] sm:$0x7]  ;;  %vm481_vm5 = vcmask 1046534   ;;  %v669_v14 = vmul.f32 %v1122_v5, %v1122_v5  ;;  %v670_v15 = vmul.f32 %v1127_v6, %v1127_v6 }
   0x3   :  { %v1112_v3 = vld [vmem:[%s1441_s3] sm:$0x7]  ;;  %v1117_v4 = vld [vmem:[%s1441_s3 + $0x4] sm:$0x7]  ;;  %v499_v9 = vmul.f32 %v1105_v1, %v1105_v1  ;;  %v1144_v10 = vld [vmem:[%s1441_s3 + $0x18] sm:$0x7]  ;;  %v671_v19 = vmul.f32 %v1132_v7, %v1132_v7  ;;  %v672_v20 = vmul.f32 %v1137_v8, %v1137_v8 }
   0x4   :  { %506 = vadd.xlane.f32.xlu1 %v505_v2  ;;  %v1149_v11 = vld [vmem:[%s1441_s3 + $0x1c] sm:$0x7]  ;;  %v668_v12 = vmul.f32 %v1117_v4, %v1117_v4  ;;  %v667_v13 = vmul.f32 %v1112_v3, %v1112_v3  ;;  %v1162_v16 = vld [vmem:[%s1440_s2] sm:$0x7]  ;;  %v1167_v17 = vld [vmem:[%s1440_s2 + $0x4] sm:$0x7]  ;;  %v673_v21 = vmul.f32 %v1144_v10, %v1144_v10 }
   0x5   :  { %v1172_v18 = vld [vmem:[%s1440_s2 + $0x8] sm:$0x7]  ;;  %v674_v22 = vmul.f32 %v1149_v11, %v1149_v11  ;;  %v1185_v23 = vld [vmem:[%s1440_s2 + $0xc] sm:$0x7]  ;;  %v1190_v24 = vld [vmem:[%s1440_s2 + $0x10] sm:$0x7]  ;;  %v608_v36 = vmul.f32 %v1162_v16, %v1162_v16  ;;  %v609_v37 = vmul.f32 %v1167_v17, %v1167_v17 }
   0x6   :  { %v1195_v25 = vld [vmem:[%s1440_s2 + $0x14] sm:$0x7]  ;;  %vm483_vm6 = vcmask 1047559   ;;  %v683_v26 = vrot.slane %v668_v12, 7  ;;  %v685_v27 = vrot.slane %v669_v14, 6  ;;  %v687_v28 = vrot.slane %v670_v15, 5 }
   0x7   :  { %v1200_v29 = vld [vmem:[%s1440_s2 + $0x18] sm:$0x7]  ;;  %v689_v30 = vrot.slane %v671_v19, 4  ;;  %v691_v31 = vrot.slane %v672_v20, 3  ;;  %v693_v32 = vrot.slane %v673_v21, 2  ;;  %v695_v33 = vrot.slane %v674_v22, 1 }
   0x8   :  { %500 = vadd.xlane.f32.xlu1 %v499_v9  ;;  %v1205_v34 = vld [vmem:[%s1440_s2 + $0x1c] sm:$0x7]  ;;  %v684_v35 = vsel %vm471_vm0, %v683_v26, %v667_v13  ;;  %v610_v38 = vmul.f32 %v1172_v18, %v1172_v18 }
   0x9   :  { %12 = vsyncpa [#allocation5], 0  ;;  %v686_v39 = vsel %vm473_vm1, %v685_v27, %v684_v35  ;;  %v611_v40 = vmul.f32 %v1185_v23, %v1185_v23  ;;  %v612_v41 = vmul.f32 %v1190_v24, %v1190_v24  ;;  %v613_v42 = vmul.f32 %v1195_v25, %v1195_v25  ;;  %s1065_s2 = smov [#allocation2]  }
   0xa   :  { %v688_v43 = vsel %vm475_vm2, %v687_v28, %v686_v39  ;;  %v614_v44 = vmul.f32 %v1200_v29, %v1200_v29  ;;  %v615_v45 = vmul.f32 %v1205_v34, %v1205_v34  ;;  %v624_v46 = vrot.slane %v609_v37, 7  ;;  %s907_s1 = sshll.u32 %s1065_s2, 4  ;;  %s908_s1 = int_to_ptr.vmem [resolvable:$true] %s907_s1 }
   0xb   :  { %v690_v47 = vsel %vm477_vm3, %v689_v30, %v688_v43  ;;  %v626_v48 = vrot.slane %v610_v38, 6  ;;  %v628_v49 = vrot.slane %v611_v40, 5  ;;  %v630_v50 = vrot.slane %v612_v41, 4  ;;  %s1014_s26 = scalar_lea.vmem %s908_s1, 16  ;;  %s1018_s0 = scalar_lea.vmem %s908_s1, 32 }
   0xc   :  { %v692_v51 = vsel %vm479_vm4, %v691_v31, %v690_v47  ;;  %v625_v52 = vsel %vm471_vm0, %v624_v46, %v608_v36  ;;  %v632_v53 = vrot.slane %v613_v42, 3  ;;  %v634_v56 = vrot.slane %v614_v44, 2  ;;  %p1015_p0 = scmp.ne.s32.totalorder %s908_s1, %s1014_s26  ;;  %p1019_p1 = scmp.lt.s32.totalorder %s908_s1, %s908_s1 }
   0xd   :  { %v694_v54 = vsel %vm481_vm5, %v693_v32, %v692_v51  ;;  %v627_v55 = vsel %vm473_vm1, %v626_v48, %v625_v52  ;;  %v636_v59 = vrot.slane %v615_v45, 1  ;;  %v1062_v2 = vmov 0.0   ;;  %p1020_p2 = scmp.lt.s32.totalorder %s1018_s0, %s1014_s26 }
   0xe   :  { %v696_v57 = vsel %vm483_vm6, %v695_v33, %v694_v54  ;;  %v629_v58 = vsel %vm475_vm2, %v628_v49, %v627_v55  ;;  %933 = vmatprep.subr.mxu0 %v1062_v2  ;;  %938 = vmatprep.subr.mxu1 %v1062_v2  ;;  %vm1063_vm7 = vmmov 0   ;;  %v1064_v9 = vmov 1966171168  }
   0xf   :  { %698 = vadd.xlane.f32.xlu0 %v696_v57  ;;  %v631_v60 = vsel %vm477_vm3, %v630_v50, %v629_v58  ;;  %935 = vmatprep.mubr.msk.f32.mxu0 %vm1063_vm7, %v1062_v2  ;;  %v42_v12 = vunpack.c.l.s4 %v1064_v9  ;;  %v44_v13 = vlaneseq  ;;  %v40_v28 = vcombine.high %v1105_v1, %v1105_v1  ;;  %p1021_p3 = por %p1020_p2, %p1019_p1 }
  0x10   :  { %v633_v61 = vsel %vm479_vm4, %v632_v53, %v631_v60  ;;  %940 = vmatprep.mubr.msk.f32.mxu1 %vm1063_vm7, %v1062_v2  ;;  %v163_v35 = vcombine.high %v1100_v0, %v1100_v0  ;;  %vm137_vm8 = vcmask 1042432   ;;  %vm586_vm9 = vcmask 64512  }
  0x11   :  { %v635_v62 = vsel %vm481_vm5, %v634_v56, %v633_v61  ;;  %v43_v14 = vunpack.c.0.s8 %v42_v12  ;;  %v1238_v15 = vshrl.u32 %v44_v13, 7  ;;  %vm486_vm10 = vcmask 15360   ;;  %p1022_p4 = pnand %p1021_p3, %p1015_p0 }
  0x12   :  { %v637_v63 = vsel %vm483_vm6, %v636_v59, %v635_v62  ;;  %vm497_vm11 = vcmask 0  }
  0x13   :  { %639 = vadd.xlane.f32.xlu0 %v637_v63  ;;  %v46_v19 = vsub.s32 %v43_v14, %v1238_v15  ;;  %v1243_v21 = vsub.s32 0, %v1238_v15 }
  0x15   :  { %v170_v20 = vrot.slane %v1100_v0, %v46_v19  ;;  %v47_v22 = vrot.slane %v1105_v1, %v46_v19  ;;  %v54_v41 = vrot.slane %v40_v28, %v46_v19  ;;  %v177_v48 = vrot.slane %v163_v35, %v46_v19 }
  0x17   :  { %v186_v26 = vrot.slane %v170_v20, %v46_v19  ;;  %v178_v27 = vcombine.high %v170_v20, %v170_v20  ;;  %v63_v30 = vrot.slane %v47_v22, %v46_v19  ;;  %v55_v31 = vcombine.high %v47_v22, %v47_v22 }
  0x18   :  { %v70_v53 = vrot.slane %v54_v41, %v46_v19  ;;  %v193_v58 = vrot.slane %v177_v48, %v46_v19  ;;  %v56_v59 = vcombine.high %v54_v41, %v54_v41  ;;  %v179_v63 = vcombine.high %v177_v48, %v177_v48 }
  0x19   :  { %v215_v32 = vrot.slane %v186_v26, %v1243_v21  ;;  %v200_v33 = vrot.slane %v178_v27, %v46_v19  ;;  %v208_v36 = vcombine.high %v186_v26, %v186_v26  ;;  %v92_v37 = vrot.slane %v63_v30, %v1243_v21 }
  0x1a   :  { %v77_v38 = vrot.slane %v55_v31, %v46_v19  ;;  %v85_v40 = vcombine.high %v63_v30, %v63_v30  ;;  %v108_v12 = vrot.slane %v70_v53, %v1243_v21  ;;  %v84_v14 = vrot.slane %v56_v59, %v46_v19 }
  0x1b   :  { %v219_v39 = vrot.slane %v200_v33, %v1243_v21  ;;  %v129_v42 = vmul.f32 %v92_v37, %v1162_v16  ;;  %v252_v44 = vmul.f32 %v215_v32, %v1112_v3  ;;  %v223_v46 = vrot.slane %v208_v36, %v1243_v21 }
  0x1c   :  { %v96_v43 = vrot.slane %v77_v38, %v1243_v21  ;;  %v100_v45 = vrot.slane %v85_v40, %v1243_v21  ;;  %v87_v47 = vcombine.high %v77_v38, %v77_v38  ;;  %v210_v52 = vcombine.high %v200_v33, %v200_v33 }
  0x1d   :  { %v138_v49 = vsel %vm137_vm8, %v129_v42, 0.0  ;;  %v253_v51 = vmul.f32 %v219_v39, %v1117_v4  ;;  %v260_v55 = vsel %vm137_vm8, %v252_v44, 0.0  ;;  %v254_v61 = vmul.f32 %v223_v46, %v1122_v5 }
  0x1e   :  { %v130_v50 = vmul.f32 %v96_v43, %v1167_v17  ;;  %139 = vadd.xlane.f32.xlu0 %v138_v49  ;;  %v131_v56 = vmul.f32 %v100_v45, %v1172_v18  ;;  %v104_v57 = vrot.slane %v87_v47, %v1243_v21  ;;  %v227_v62 = vrot.slane %v210_v52, %v1243_v21 }
  0x1f   :  { %v263_v60 = vsel %vm137_vm8, %v253_v51, 0.0  ;;  %v266_v20 = vsel %vm137_vm8, %v254_v61, 0.0  ;;  %v231_v26 = vrot.slane %v193_v58, %v1243_v21  ;;  %v207_v27 = vrot.slane %v179_v63, %v46_v19 }
  0x20   :  { %v141_v54 = vsel %vm137_vm8, %v130_v50, 0.0  ;;  %v144_v2 = vsel %vm137_vm8, %v131_v56, 0.0  ;;  %v132_v9 = vmul.f32 %v104_v57, %v1185_v23  ;;  %v255_v22 = vmul.f32 %v227_v62, %v1127_v6 }
  0x21   :  { %142 = vadd.xlane.f32.xlu1 %v141_v54  ;;  %v133_v30 = vmul.f32 %v108_v12, %v1190_v24  ;;  %v112_v31 = vrot.slane %v84_v14, %v1243_v21  ;;  %v86_v32 = vcombine.high %v70_v53, %v70_v53  ;;  %v256_v35 = vmul.f32 %v231_v26, %v1132_v7 }
  0x22   :  { %261 = vadd.xlane.f32.xlu0 %v260_v55  ;;  %v147_v28 = vsel %vm137_vm8, %v132_v9, 0.0  ;;  %v269_v33 = vsel %vm137_vm8, %v255_v22, 0.0  ;;  %v235_v36 = vrot.slane %v207_v27, %v1243_v21  ;;  %v209_v37 = vcombine.high %v193_v58, %v193_v58 }
  0x23   :  { %v150_v38 = vsel %vm137_vm8, %v133_v30, 0.0  ;;  %v134_v19 = vmul.f32 %v112_v31, %v1195_v25  ;;  %v116_v39 = vrot.slane %v86_v32, %v1243_v21  ;;  %v88_v40 = vcombine.high %v84_v14, %v84_v14 }
  0x24   :  { %v272_v41 = vsel %vm137_vm8, %v256_v35, 0.0  ;;  %v257_v42 = vmul.f32 %v235_v36, %v1137_v8  ;;  %v239_v43 = vrot.slane %v209_v37, %v1243_v21  ;;  %v211_v44 = vcombine.high %v207_v27, %v207_v27 }
  0x25   :  { %264 = vadd.xlane.f32.xlu1 %v263_v60  ;;  %v153_v45 = vsel %vm137_vm8, %v134_v19, 0.0  ;;  %v135_v46 = vmul.f32 %v116_v39, %v1200_v29  ;;  %v120_v47 = vrot.slane %v88_v40, %v1243_v21 }
  0x26   :  { %145 = vadd.xlane.f32.xlu0 %v144_v2  ;;  %v275_v48 = vsel %vm137_vm8, %v257_v42, 0.0  ;;  %v258_v49 = vmul.f32 %v239_v43, %v1144_v10  ;;  %v243_v50 = vrot.slane %v211_v44, %v1243_v21 }
  0x27   :  { %v156_v51 = vsel %vm137_vm8, %v135_v46, 0.0  ;;  %v136_v52 = vmul.f32 %v120_v47, %v1205_v34 }
  0x28   :  { %v278_v53 = vsel %vm137_vm8, %v258_v49, 0.0  ;;  %v259_v54 = vmul.f32 %v243_v50, %v1149_v11 }
  0x29   :  { %267 = vadd.xlane.f32.xlu1 %v266_v20  ;;  %v159_v55 = vsel %vm137_vm8, %v136_v52, 0.0 }
  0x2a   :  { %148 = vadd.xlane.f32.xlu0 %v147_v28  ;;  %v281_v56 = vsel %vm137_vm8, %v259_v54, 0.0 }
  0x2d   :  { %270 = vadd.xlane.f32.xlu1 %v269_v33 }
  0x2e   :  { %151 = vadd.xlane.f32.xlu0 %v150_v38 }
  0x31   :  { %273 = vadd.xlane.f32.xlu1 %v272_v41 }
  0x32   :  { %154 = vadd.xlane.f32.xlu0 %v153_v45 }
  0x35   :  { %276 = vadd.xlane.f32.xlu1 %v275_v48 }
  0x36   :  { %157 = vadd.xlane.f32.xlu0 %v156_v51 }
  0x39   :  { %279 = vadd.xlane.f32.xlu1 %v278_v53 }
  0x3a   :  { %160 = vadd.xlane.f32.xlu0 %v159_v55 }
  0x3d   :  { %282 = vadd.xlane.f32.xlu1 %v281_v56 }
  0x91   :  { %v507_v57 = vpop.xlane.xlu1 %506 }
  0x92   :  { %v508_v58 = vmax.f32 %v507_v57, 1e-24 }
  0x94   :  { %950 = vrsqrt.f32 %v508_v58 }
  0x95   :  { %v501_v59 = vpop.xlane.xlu1 %500 }
  0x96   :  { %v502_v60 = vmax.f32 %v501_v59, 1e-24 }
  0x98   :  { %952 = vrsqrt.f32 %v502_v60 }
  0x9c   :  { %v699_v62 = vpop.xlane.xlu0 %698 }
  0x9d   :  { %v700_v63 = vmax.f32 %v699_v62, 1e-24 }
  0x9e   :  { %v951_v61 = vpop.eup %950 }
  0x9f   :  { %v510_v2 = vmul.f32 %v951_v61, %v1100_v0  ;;  %954 = vrsqrt.f32 %v700_v63 }
  0xa0   :  { %v640_v12 = vpop.xlane.xlu0 %639 }
  0xa1   :  { %934 = vmatpush3.xpose.msra.mxu0 %v510_v2  ;;  %v641_v14 = vmax.f32 %v640_v12, 1e-24 }
  0xa2   :  { %v953_v9 = vpop.eup %952 }
  0xa3   :  { %v504_v20 = vmul.f32 %v953_v9, %v1105_v1  ;;  %956 = vrsqrt.f32 %v641_v14 }
  0xa5   :  { %936 = vmatmul.mubr.f32.vlgmr.msra.gmra.mrb[0].mxu0 %v504_v20  ;;  %v1300_v22 = vmul.f32 %v510_v2, %v504_v20 }
  0xa9   :  { %v955_v26 = vpop.eup %954 }
  0xaa   :  { %v703_v27 = vrot.slane %v955_v26, 1  ;;  %v704_v28 = vrot.slane %v955_v26, 2  ;;  %v705_v30 = vrot.slane %v955_v26, 3  ;;  %v706_v31 = vrot.slane %v955_v26, 4 }
  0xab   :  { %v707_v32 = vrot.slane %v955_v26, 5  ;;  %v708_v33 = vrot.slane %v955_v26, 6  ;;  %v709_v35 = vrot.slane %v955_v26, 7  ;;  %v718_v19 = vmul.f32 %v955_v26, %v1112_v3 }
  0xac   :  { %v719_v0 = vmul.f32 %v703_v27, %v1117_v4  ;;  %v720_v36 = vmul.f32 %v704_v28, %v1122_v5  ;;  %v721_v37 = vmul.f32 %v705_v30, %v1127_v6  ;;  %v722_v1 = vmul.f32 %v706_v31, %v1132_v7 }
  0xad   :  { %v957_v38 = vpop.eup %956  ;;  %v723_v39 = vmul.f32 %v707_v32, %v1137_v8  ;;  %v724_v40 = vmul.f32 %v708_v33, %v1144_v10  ;;  %v725_v41 = vmul.f32 %v709_v35, %v1149_v11 }
  0xae   :  { %v791_v42 = vrot.slane %v719_v0, 7  ;;  %v793_v43 = vrot.slane %v720_v36, 6  ;;  %v795_v44 = vrot.slane %v721_v37, 5  ;;  %v797_v45 = vrot.slane %v722_v1, 4 }
  0xaf   :  { %v799_v4 = vrot.slane %v723_v39, 3  ;;  %v801_v46 = vrot.slane %v724_v40, 2  ;;  %v644_v5 = vrot.slane %v957_v38, 1  ;;  %v645_v47 = vrot.slane %v957_v38, 2 }
  0xb0   :  { %v792_v6 = vsel %vm471_vm0, %v791_v42, %v718_v19  ;;  %v646_v7 = vrot.slane %v957_v38, 3  ;;  %v647_v48 = vrot.slane %v957_v38, 4  ;;  %v648_v49 = vrot.slane %v957_v38, 5 }
  0xb1   :  { %v794_v3 = vsel %vm473_vm1, %v793_v43, %v792_v6  ;;  %v649_v8 = vrot.slane %v957_v38, 6  ;;  %v650_v50 = vrot.slane %v957_v38, 7  ;;  %v659_v11 = vmul.f32 %v957_v38, %v1162_v16 }
  0xb2   :  { %v796_v10 = vsel %vm475_vm2, %v795_v44, %v794_v3  ;;  %v660_v51 = vmul.f32 %v644_v5, %v1167_v17  ;;  %v661_v52 = vmul.f32 %v645_v47, %v1172_v18  ;;  %v662_v54 = vmul.f32 %v646_v7, %v1185_v23 }
  0xb3   :  { %v798_v53 = vsel %vm477_vm3, %v797_v45, %v796_v10  ;;  %v663_v55 = vmul.f32 %v647_v48, %v1190_v24  ;;  %v664_v56 = vmul.f32 %v648_v49, %v1195_v25  ;;  %v803_v58 = vrot.slane %v725_v41, 1 }
  0xb4   :  { %v800_v57 = vsel %vm479_vm4, %v799_v4, %v798_v53  ;;  %v665_v59 = vmul.f32 %v649_v8, %v1200_v29  ;;  %v768_v60 = vrot.slane %v660_v51, 7  ;;  %v666_v17 = vmul.f32 %v650_v50, %v1205_v34  ;;  %v140_v8 = vpop.xlane.xlu0 %139  ;;  %v143_v50 = vpop.xlane.xlu1 %142 }
  0xb5   :  { %v802_v16 = vsel %vm481_vm5, %v801_v46, %v800_v57  ;;  %v770_v61 = vrot.slane %v661_v52, 6  ;;  %v772_v18 = vrot.slane %v662_v54, 5  ;;  %v774_v63 = vrot.slane %v663_v55, 4 }
  0xb6   :  { %v804_v62 = vsel %vm483_vm6, %v803_v58, %v802_v16  ;;  %v769_v23 = vsel %vm471_vm0, %v768_v60, %v659_v11  ;;  %v776_v24 = vrot.slane %v664_v56, 3  ;;  %v778_v2 = vrot.slane %v665_v59, 2 }
  0xb7   :  { %939 = vmatpush3.xpose.msra.mxu1 %v804_v62  ;;  %v771_v25 = vsel %vm473_vm1, %v770_v61, %v769_v23  ;;  %v726_v9 = vmul.f32 %v718_v19, %v659_v11  ;;  %v727_v12 = vmul.f32 %v719_v0, %v660_v51  ;;  %v728_v14 = vmul.f32 %v720_v36, %v661_v52 }
  0xb8   :  { %v773_v29 = vsel %vm475_vm2, %v772_v18, %v771_v25  ;;  %v729_v20 = vmul.f32 %v721_v37, %v662_v54  ;;  %v730_v26 = vmul.f32 %v722_v1, %v663_v55  ;;  %v731_v27 = vmul.f32 %v723_v39, %v664_v56  ;;  %v262_v10 = vpop.xlane.xlu0 %261  ;;  %v265_v11 = vpop.xlane.xlu1 %264 }
  0xb9   :  { %v775_v34 = vsel %vm477_vm3, %v774_v63, %v773_v29  ;;  %v732_v28 = vmul.f32 %v724_v40, %v665_v59  ;;  %v733_v30 = vmul.f32 %v725_v41, %v666_v17  ;;  %v780_v32 = vrot.slane %v666_v17, 1 }
  0xba   :  { %v777_v31 = vsel %vm479_vm4, %v776_v24, %v775_v34  ;;  %v742_v33 = vrot.slane %v727_v12, 7  ;;  %v744_v35 = vrot.slane %v728_v14, 6  ;;  %v746_v42 = vrot.slane %v729_v20, 5 }
  0xbb   :  { %v779_v38 = vsel %vm481_vm5, %v778_v2, %v777_v31  ;;  %v748_v37 = vrot.slane %v730_v26, 4  ;;  %v750_v39 = vrot.slane %v731_v27, 3  ;;  %v752_v41 = vrot.slane %v732_v28, 2 }
  0xbc   :  { %v781_v19 = vsel %vm483_vm6, %v780_v32, %v779_v38  ;;  %v743_v0 = vsel %vm471_vm0, %v742_v33, %v726_v9  ;;  %v754_v44 = vrot.slane %v733_v30, 1  ;;  %v146_v51 = vpop.xlane.xlu0 %145  ;;  %v268_v52 = vpop.xlane.xlu1 %267  ;;  %v284_v55 = vadd.f32 %v262_v10, %v140_v8 }
  0xbd   :  { %941 = vmatmul.mubr.f32.vlgmr.msra.gmra.mrb[0].mxu1 %v781_v19  ;;  %v745_v36 = vsel %vm473_vm1, %v744_v35, %v743_v0  ;;  %v285_v58 = vadd.f32 %v265_v11, %v143_v50  ;;  %v286_v16 = vadd.f32 %v268_v52, %v146_v51 }
  0xbe   :  { %v747_v1 = vsel %vm475_vm2, %v746_v42, %v745_v36  ;;  %v295_v59 = vrot.slane %v284_v55, %v1243_v21 }
  0xbf   :  { %v749_v40 = vsel %vm477_vm3, %v748_v37, %v747_v1  ;;  %v299_v60 = vrot.slane %v285_v58, %v1243_v21  ;;  %v303_v63 = vrot.slane %v286_v16, %v1243_v21 }
  0xc0   :  { %v751_v43 = vsel %vm479_vm4, %v750_v39, %v749_v40  ;;  %v271_v53 = vpop.xlane.xlu1 %270  ;;  %v149_v54 = vpop.xlane.xlu0 %148  ;;  %v324_v18 = vsub.f32 %v295_v59, %v284_v55 }
  0xc1   :  { %v753_v45 = vsel %vm481_vm5, %v752_v41, %v751_v43  ;;  %v287_v62 = vadd.f32 %v271_v53, %v149_v54  ;;  %v325_v23 = vsub.f32 %v299_v60, %v285_v58  ;;  %v326_v14 = vsub.f32 %v303_v63, %v286_v16 }
  0xc2   :  { %v1339_v4 = vsel %vm483_vm6, %v754_v44, %v753_v45  ;;  %v332_v24 = vsub.f32 0.0, %v324_v18 }
  0xc3   :  { %v307_v12 = vrot.slane %v287_v62, %v1243_v21  ;;  %v333_v29 = vsub.f32 0.0, %v325_v23  ;;  %v334_v30 = vsub.f32 0.0, %v326_v14 }
  0xc4   :  { %v274_v56 = vpop.xlane.xlu1 %273  ;;  %v152_v57 = vpop.xlane.xlu0 %151  ;;  %v1353_v20 = vmax.f32 %v332_v24, 0.0 }
  0xc5   :  { %v288_v25 = vadd.f32 %v274_v56, %v152_v57  ;;  %v327_v27 = vsub.f32 %v307_v12, %v287_v62  ;;  %v1356_v28 = vmax.f32 %v333_v29, 0.0  ;;  %v1362_v1 = vmax.f32 %v334_v30, 0.0 }
  0xc6   :  { %v348_v35 = vsub.f32 0.0, %v1353_v20  ;;  %v372_v19 = vsub.f32 %v332_v24, %v1353_v20 }
  0xc7   :  { %v311_v34 = vrot.slane %v288_v25, %v1243_v21  ;;  %v335_v42 = vsub.f32 0.0, %v327_v27  ;;  %v349_v37 = vsub.f32 0.0, %v1356_v28  ;;  %v373_v41 = vsub.f32 %v333_v29, %v1356_v28 }
  0xc8   :  { %v277_v17 = vpop.xlane.xlu1 %276  ;;  %v155_v61 = vpop.xlane.xlu0 %154  ;;  %v356_v40 = vmul.f32 1.442695, %v348_v35  ;;  %v380_v44 = vmul.f32 1.442695, %v372_v19  ;;  %v374_v8 = vsub.f32 %v334_v30, %v1362_v1 }
  0xc9   :  { %v289_v26 = vadd.f32 %v277_v17, %v155_v61  ;;  %v328_v0 = vsub.f32 %v311_v34, %v288_v25 }
  0xca   :  { %958 = vpow2.f32 %v356_v40  ;;  %v384_v54 = vmul.f32 1.442695, %v374_v8 }
  0xcb   :  { %v315_v38 = vrot.slane %v289_v26, %v1243_v21  ;;  %v336_v45 = vsub.f32 0.0, %v328_v0  ;;  %960 = vpow2.f32 %v380_v44 }
  0xcc   :  { %v280_v2 = vpop.xlane.xlu1 %279  ;;  %v158_v9 = vpop.xlane.xlu0 %157 }
  0xcd   :  { %v290_v31 = vadd.f32 %v280_v2, %v158_v9  ;;  %v329_v43 = vsub.f32 %v315_v38, %v289_v26  ;;  %v1371_v10 = vmax.f32 %v336_v45, 0.0 }
  0xcf   :  { %v319_v39 = vrot.slane %v290_v31, %v1243_v21  ;;  %v337_v50 = vsub.f32 0.0, %v329_v43  ;;  %v352_v56 = vsub.f32 0.0, %v1371_v10  ;;  %v376_v58 = vsub.f32 %v336_v45, %v1371_v10 }
  0xd0   :  { %v283_v32 = vpop.xlane.xlu1 %282  ;;  %v161_v33 = vpop.xlane.xlu0 %160 }
  0xd1   :  { %v291_v36 = vadd.f32 %v283_v32, %v161_v33  ;;  %v1375_v55 = vmax.f32 %v337_v50, 0.0  ;;  %v364_v61 = vmul.f32 1.442695, %v352_v56  ;;  %v388_v23 = vmul.f32 1.442695, %v376_v58 }
  0xd3   :  { %v353_v17 = vsub.f32 0.0, %v1375_v55  ;;  %v377_v18 = vsub.f32 %v337_v50, %v1375_v55 }
  0xd4   :  { %v959_v62 = vpop.eup %958 }
  0xd5   :  { %v961_v24 = vpop.eup %960  ;;  %v366_v2 = vmul.f32 1.442695, %v353_v17  ;;  %v390_v29 = vmul.f32 1.442695, %v377_v18 }
  0xd6   :  { %v396_v26 = vadd.f32 %v961_v24, %v959_v62 }
 0x178   :  { %v581_v46 = vpop.f32.mrb[0].mxu0 }
 0x179   :  { %v1341_v5 = vmul.f32 4.0, %v581_v46  ;;  %v937_v6 = vpop.f32.mrb[1].mxu0  ;;  %v1366_v46 = vmax.f32 %v335_v42, 0.0 }
 0x17a   :  { %v323_v6 = vrot.slane %v291_v36, %v1243_v21 }
 0x17b   :  { %v587_v47 = vsel %vm586_vm9, %v1341_v5, -inf  ;;  %v351_v11 = vsub.f32 0.0, %v1366_v46  ;;  %v375_v53 = vsub.f32 %v335_v42, %v1366_v46 }
 0x17c   :  { %588 = vmax.xlane.f32.xlu0 %v587_v47  ;;  %v358_v47 = vmul.f32 1.442695, %v349_v37  ;;  %v331_v51 = vsub.f32 %v323_v6, %v291_v36 }
 0x17d   :  { %v362_v57 = vmul.f32 1.442695, %v351_v11  ;;  %v386_v60 = vmul.f32 1.442695, %v375_v53 }
 0x17e   :  { %962 = vpow2.f32 %v358_v47  ;;  %v339_v59 = vsub.f32 0.0, %v331_v51 }
 0x180   :  { %v1383_v63 = vmax.f32 %v339_v59, 0.0 }
 0x182   :  { %v355_v34 = vsub.f32 0.0, %v1383_v63  ;;  %v379_v30 = vsub.f32 %v339_v59, %v1383_v63 }
 0x184   :  { %v370_v38 = vmul.f32 1.442695, %v355_v34  ;;  %v394_v19 = vmul.f32 1.442695, %v379_v30 }
 0x188   :  { %v963_v12 = vpop.eup %962 }
 0x190   :  { %v872_v7 = vpop.f32.mrb[0].mxu1 }
 0x191   :  { %v1345_v48 = vmul.f32 4.0, %v872_v7  ;;  %v942_v3 = vpop.f32.mrb[1].mxu1  ;;  %v350_v7 = vsub.f32 0.0, %v1362_v1 }
 0x192   :  { %v330_v3 = vsub.f32 %v319_v39, %v290_v31 }
 0x193   :  { %v877_v49 = vsel %vm586_vm9, %v1345_v48, -inf  ;;  %v360_v52 = vmul.f32 1.442695, %v350_v7 }
 0x194   :  { %878 = vmax.xlane.f32.xlu1 %v877_v49  ;;  %v382_v49 = vmul.f32 1.442695, %v373_v41  ;;  %v338_v21 = vsub.f32 0.0, %v330_v3 }
 0x196   :  { %964 = vpow2.f32 %v382_v49  ;;  %v1379_v16 = vmax.f32 %v338_v21, 0.0  ;;  %v437_v49 = vand.u32 127, %v44_v13 }
 0x197   :  { %966 = vpow2.f32 %v360_v52 }
 0x198   :  { %968 = vpow2.f32 %v384_v54  ;;  %v354_v25 = vsub.f32 0.0, %v1379_v16  ;;  %v378_v9 = vsub.f32 %v338_v21, %v1379_v16  ;;  %v438_v52 = vadd.s32 1, %v437_v49 }
 0x199   :  { %970 = vpow2.f32 %v362_v57 }
 0x19a   :  { %972 = vpow2.f32 %v386_v60  ;;  %v368_v27 = vmul.f32 1.442695, %v354_v25  ;;  %v392_v31 = vmul.f32 1.442695, %v378_v9  ;;  %v441_v58 = vsub.s32 %v438_v52, %v1238_v15 }
 0x19b   :  { %974 = vpow2.f32 %v364_v61 }
 0x19c   :  { %976 = vpow2.f32 %v388_v23 }
 0x19d   :  { %978 = vpow2.f32 %v366_v2 }
 0x19e   :  { %980 = vpow2.f32 %v390_v29 }
 0x19f   :  { %982 = vlog2.f32 %v396_v26 }
 0x1a0   :  { %v965_v14 = vpop.eup %964  ;;  %984 = vpow2.f32 %v368_v27 }
 0x1a1   :  { %v967_v32 = vpop.eup %966  ;;  %v397_v33 = vadd.f32 %v965_v14, %v963_v12  ;;  %986 = vpow2.f32 %v392_v31 }
 0x1a2   :  { %v969_v35 = vpop.eup %968 }
 0x1a3   :  { %v971_v0 = vpop.eup %970  ;;  %988 = vlog2.f32 %v397_v33  ;;  %v398_v36 = vadd.f32 %v969_v35, %v967_v32 }
 0x1a4   :  { %v973_v42 = vpop.eup %972  ;;  %990 = vpow2.f32 %v370_v38 }
 0x1a5   :  { %v975_v37 = vpop.eup %974  ;;  %992 = vpow2.f32 %v394_v19  ;;  %v399_v40 = vadd.f32 %v973_v42, %v971_v0 }
 0x1a6   :  { %v977_v39 = vpop.eup %976  ;;  %994 = vlog2.f32 %v398_v36 }
 0x1a7   :  { %v979_v41 = vpop.eup %978  ;;  %v400_v44 = vadd.f32 %v977_v39, %v975_v37  ;;  %996 = vlog2.f32 %v399_v40 }
 0x1a8   :  { %v981_v43 = vpop.eup %980 }
 0x1a9   :  { %v983_v45 = vpop.eup %982  ;;  %v401_v7 = vadd.f32 %v981_v43, %v979_v41  ;;  %998 = vlog2.f32 %v400_v44 }
 0x1aa   :  { %v985_v6 = vpop.eup %984  ;;  %v405_v53 = vmul.f32 0.6931472, %v983_v45 }
 0x1ab   :  { %v987_v47 = vpop.eup %986  ;;  %1000 = vlog2.f32 %v401_v7 }
 0x1ac   :  { %v402_v11 = vadd.f32 %v987_v47, %v985_v6  ;;  %v420_v59 = vadd.f32 %v405_v53, %v1353_v20 }
 0x1ad   :  { %v989_v3 = vpop.eup %988 }
 0x1ae   :  { %v991_v8 = vpop.eup %990  ;;  %v407_v21 = vmul.f32 0.6931472, %v989_v3  ;;  %1002 = vlog2.f32 %v402_v11  ;;  %v442_v18 = vrot.slane %v420_v59, %v441_v58 }
 0x1af   :  { %v993_v50 = vpop.eup %992 }
 0x1b0   :  { %v995_v51 = vpop.eup %994  ;;  %v403_v54 = vadd.f32 %v993_v50, %v991_v8  ;;  %v421_v60 = vadd.f32 %v407_v21, %v1356_v28 }
 0x1b1   :  { %v997_v56 = vpop.eup %996  ;;  %v409_v57 = vmul.f32 0.6931472, %v995_v51 }
 0x1b2   :  { %1004 = vlog2.f32 %v403_v54  ;;  %v411_v17 = vmul.f32 0.6931472, %v997_v56  ;;  %v446_v62 = vrot.slane %v421_v60, %v441_v58 }
 0x1b3   :  { %v999_v13 = vpop.eup %998  ;;  %v422_v61 = vadd.f32 %v409_v57, %v1362_v1 }
 0x1b4   :  { %v413_v24 = vmul.f32 0.6931472, %v999_v13  ;;  %v423_v2 = vadd.f32 %v411_v17, %v1366_v46  ;;  %v472_v28 = vsel %vm471_vm0, %v446_v62, %v442_v18 }
 0x1b5   :  { %v1001_v23 = vpop.eup %1000  ;;  %v450_v12 = vrot.slane %v422_v61, %v441_v58 }
 0x1b6   :  { %v415_v29 = vmul.f32 0.6931472, %v1001_v23  ;;  %v424_v14 = vadd.f32 %v413_v24, %v1371_v10  ;;  %v454_v26 = vrot.slane %v423_v2, %v441_v58 }
 0x1b7   :  { %v474_v27 = vsel %vm473_vm1, %v450_v12, %v472_v28 }
 0x1b8   :  { %v1003_v15 = vpop.eup %1002  ;;  %v425_v30 = vadd.f32 %v415_v29, %v1375_v55  ;;  %v458_v31 = vrot.slane %v424_v14, %v441_v58 }
 0x1b9   :  { %v417_v34 = vmul.f32 0.6931472, %v1003_v15 }
 0x1ba   :  { %v462_v33 = vrot.slane %v425_v30, %v441_v58 }
 0x1bb   :  { %v426_v32 = vadd.f32 %v417_v34, %v1379_v16 }
 0x1bc   :  { %v1005_v1 = vpop.eup %1004 }
 0x1bd   :  { %v419_v46 = vmul.f32 0.6931472, %v1005_v1  ;;  %v466_v10 = vrot.slane %v426_v32, %v441_v58 }
 0x1bf   :  { %v427_v38 = vadd.f32 %v419_v46, %v1383_v63 }
 0x1c1   :  { %v470_v36 = vrot.slane %v427_v38, %v441_v58 }
 0x209   :  { %v589_v25 = vpop.xlane.xlu0 %588 }
 0x20a   :  { %v590_v9 = vsub.f32 %v1341_v5, %v589_v25  ;;  %v476_v5 = vsel %vm475_vm2, %v454_v26, %v474_v27 }
 0x20b   :  { %v478_v35 = vsel %vm477_vm3, %v458_v31, %v476_v5 }
 0x20c   :  { %v591_v20 = vmul.f32 1.442695, %v590_v9  ;;  %v480_v0 = vsel %vm479_vm4, %v462_v33, %v478_v35 }
 0x20d   :  { %v482_v55 = vsel %vm481_vm5, %v466_v10, %v480_v0 }
 0x20e   :  { %1006 = vpow2.f32 %v591_v20  ;;  %v484_v37 = vsel %vm483_vm6, %v470_v36, %v482_v55 }
 0x20f   :  { %v487_v16 = vsel %vm486_vm10, %v484_v37, 0.0 }
 0x218   :  { %v1007_v19 = vpop.eup %1006 }
 0x219   :  { %v593_v42 = vsel %vm586_vm9, %v1007_v19, 0.0 }
 0x21a   :  { %594 = vadd.xlane.f32.xlu0 %v593_v42 }
 0x21e   :  { %512 = vadd.xlane.f32.xlu0 %v1300_v22 }
 0x221   :  { %v879_v39 = vpop.xlane.xlu1 %878 }
 0x222   :  { %488 = vadd.xlane.f32.xlu0 %v487_v16  ;;  %v880_v63 = vsub.f32 %v1345_v48, %v879_v39 }
 0x224   :  { %v881_v40 = vmul.f32 1.442695, %v880_v63 }
 0x226   :  { %1008 = vpow2.f32 %v881_v40 }
 0x230   :  { %v1009_v41 = vpop.eup %1008 }
 0x231   :  { %v883_v43 = vsel %vm586_vm9, %v1009_v41, 0.0 }
 0x232   :  { %884 = vadd.xlane.f32.xlu1 %v883_v43 }
 0x236   :  { %757 = vadd.xlane.f32.xlu1 %v1339_v4 }
 0x2a7   :  { %v595_v44 = vpop.xlane.xlu0 %594 }
 0x2a8   :  { %1010 = vlog2.f32 %v595_v44 }
 0x2ab   :  { %v513_v45 = vpop.xlane.xlu0 %512 }
 0x2ac   :  { %v514_v4 = vmul.f32 4.0, %v513_v45 }
 0x2af   :  { %v489_v22 = vpop.xlane.xlu0 %488 }
 0x2b0   :  { %v490_v6 = vrot.slane %v489_v22, 4 }
 0x2b2   :  { %v491_v47 = vadd.f32 %v490_v6, %v489_v22  ;;  %v1011_v3 = vpop.eup %1010 }
 0x2b3   :  { %v597_v50 = vmul.f32 0.6931472, %v1011_v3 }
 0x2b4   :  { %v492_v7 = vrot.slane %v491_v47, 2 }
 0x2b5   :  { %v598_v51 = vadd.f32 %v597_v50, %v589_v25 }
 0x2b6   :  { %v493_v49 = vadd.f32 %v492_v7, %v491_v47 }
 0x2b8   :  { %v494_v8 = vrot.slane %v493_v49, 1 }
 0x2ba   :  { %v495_v48 = vadd.f32 %v494_v8, %v493_v49 }
 0x2bc   :  { %v496_v11 = vmul.f32 0.0625, %v495_v48 }
 0x2be   :  { %498 = vst.msk [vmem:[#allocation2] sm:$0x1] %vm497_vm11, %v496_v11 }
 0x2bf   :  { %1025 = shalt.err (!%p1022_p4)
}
 0x2c0   :  { %s1026_s29 = scalar_lea.hbm %s1442_s4, 16 }
 0x2c1   :  { %p1027_p5 = scmp.ne.s32.totalorder %s1442_s4, %s1026_s29  ;;  %p1030_p6 = scmp.lt.u32.totalorder %s1026_s29, %s1442_s4 }
 0x2c3   :  { %p1032_p7 = pnand %p1030_p6, %p1027_p5 }
 0x2c5   :  { %1035 = shalt.err (!%p1032_p7)
}
 0x2c6   :  { %910 = dma.vmem_to_hbm [thread:$0]  %s908_s1, 16, %s1442_s4, [#allocation3]   ;;  %v599_v52 = vsub.f32 %v514_v4, %v598_v51  ;;  %v885_v53 = vpop.xlane.xlu1 %884 }
 0x2c7   :  { %1012 = vlog2.f32 %v885_v53  ;;  %s1066_s4 = smov [#allocation4]  }
 0x2c8   :  { %v600_v21 = vrot.slane %v599_v52, 4  ;;  %s917_s3 = sshll.u32 %s1066_s4, 4  ;;  %s918_s3 = int_to_ptr.vmem [resolvable:$true] %s917_s3 }
 0x2c9   :  { %s1036_s11 = scalar_lea.vmem %s918_s3, 16  ;;  %s1040_s12 = scalar_lea.vmem %s918_s3, 32 }
 0x2ca   :  { %v601_v54 = vadd.f32 %v600_v21, %v599_v52  ;;  %v758_v57 = vpop.xlane.xlu1 %757  ;;  %p1037_p8 = scmp.ne.s32.totalorder %s918_s3, %s1036_s11  ;;  %p1041_p9 = scmp.lt.s32.totalorder %s918_s3, %s918_s3 }
 0x2cb   :  { %v759_v13 = vmul.f32 4.0, %v758_v57  ;;  %p1042_p10 = scmp.lt.s32.totalorder %s1040_s12, %s1036_s11 }
 0x2cc   :  { %v602_v58 = vrot.slane %v601_v54, 2 }
 0x2cd   :  { %p1043_p11 = por %p1042_p10, %p1041_p9 }
 0x2ce   :  { %v603_v17 = vadd.f32 %v602_v58, %v601_v54 }
 0x2cf   :  { %p1044_p12 = pnand %p1043_p11, %p1037_p8 }
 0x2d0   :  { %v604_v62 = vrot.slane %v603_v17, 1 }
 0x2d1   :  { %v1013_v56 = vpop.eup %1012 }
 0x2d2   :  { %v887_v59 = vmul.f32 0.6931472, %v1013_v56  ;;  %v605_v2 = vadd.f32 %v604_v62, %v603_v17 }
 0x2d4   :  { %v888_v60 = vadd.f32 %v887_v59, %v879_v39  ;;  %v606_v12 = vsub.f32 0.0, %v605_v2 }
 0x2d6   :  { %v889_v61 = vsub.f32 %v759_v13, %v888_v60  ;;  %v607_v20 = vmul.f32 0.125, %v606_v12 }
 0x2d8   :  { %v890_v18 = vrot.slane %v889_v61, 4 }
 0x2da   :  { %v891_v23 = vadd.f32 %v890_v18, %v889_v61 }
 0x2dc   :  { %v892_v24 = vrot.slane %v891_v23, 2 }
 0x2de   :  { %v893_v25 = vadd.f32 %v892_v24, %v891_v23 }
 0x2e0   :  { %v894_v9 = vrot.slane %v893_v25, 1 }
 0x2e2   :  { %v895_v15 = vadd.f32 %v894_v9, %v893_v25 }
 0x2e4   :  { %v896_v29 = vsub.f32 0.0, %v895_v15 }
 0x2e6   :  { %v897_v28 = vmul.f32 0.125, %v896_v29 }
 0x2e8   :  { %v898_v14 = vadd.f32 %v897_v28, %v607_v20 }
 0x2ea   :  { %v899_v26 = vmul.f32 0.5, %v898_v14 }
 0x2ec   :  { %900 = vst.msk [vmem:[#allocation4] sm:$0x1] %vm497_vm11, %v899_v26 }
 0x2ed   :  { %1047 = shalt.err (!%p1044_p12)
}
 0x2ee   :  { %s1048_s15 = scalar_lea.hbm %s1443_s5, 16 }
 0x2ef   :  { %p1049_p13 = scmp.ne.s32.totalorder %s1443_s5, %s1048_s15  ;;  %p1052_p0 = scmp.lt.u32.totalorder %s1048_s15, %s1443_s5 }
 0x2f1   :  { %p1054_p1 = pnand %p1052_p0, %p1049_p13 }
 0x2f3   :  { %1057 = shalt.err (!%p1054_p1)
}
 0x2f4   :  { %920 = dma.vmem_to_hbm [thread:$0]  %s918_s3, 16, %s1443_s5, [#allocation5]  }
 0x2f5   :  { %1058 = dma.done.wait [#allocation3], 16  }
 0x2f6   :  { %1059 = vsyncadd [#allocation3], 4294967280 }
 0x2f7   :  { %1060 = dma.done.wait [#allocation5], 16  }
 0x2f8   :  { %1061 = vsyncadd [#allocation5], 4294967280 }
 0x2f9   :  { %927 = vsyncpa [#allocation3], 1 }
 0x2fa   :  { %928 = vsyncpa [#allocation5], 1 }

</bundles_post_ra>
